<compile_context>
chip_gen: v6e
topology: v6e:2x2x1
jax: 0.10.0
libtpu: 0.0.40
codegen_flags: <defaults>
</compile_context>

<pallas_src>
import jax
import jax.numpy as jnp
from jax import lax
from jax.experimental import pallas as pl
from jax.experimental.pallas import tpu as pltpu

_LANE = 128
_NEG_BIG = -1e9  # masked_fill sentinel (matches the PyTorch module); padding uses 2*-1e9


def _concat_attn_kernel(q_ref, k_ref, v_ref, mask_ref,
                        w1q_ref, w1k_ref, b1_ref, w2lin_ref, w2abs_ref,
                        o_ref,
                        qw_s, sq_s, m_s, l_s, acc_s):
    """Grid = (batch, q-tile, k-tile); the k-tile axis is innermost ('arbitrary')."""
    ki = pl.program_id(2)
    nk = pl.num_programs(2)

    # ---- per-(batch, q-tile) init: runs once, reused across all k-tiles ----
    @pl.when(ki == 0)
    def _init():
        # qw = Q_tile @ W1q^T  (bf16 x bf16 -> f32 accumulation on the MXU)
        qw = jnp.dot(q_ref[0], w1q_ref[...], preferred_element_type=jnp.float32)
        qw_s[...] = qw                                                       # [tq, H]
        # rank-1 row term of the factored LeakyReLU: sq_i = (0.505*w2) . qw_i
        sq_s[...] = jnp.sum(qw * w2lin_ref[...], axis=-1, keepdims=True)     # [tq, 1]
        m_s[...] = jnp.full_like(m_s, -1e30)
        l_s[...] = jnp.zeros_like(l_s)
        acc_s[...] = jnp.zeros_like(acc_s)

    # ---- per k-tile score computation ----
    # kwb = K_tile @ W1k^T + b1   (bias hoisted out of the [tq,tk,H] broadcast)
    kw = jnp.dot(k_ref[0], w1k_ref[...], preferred_element_type=jnp.float32)  # [tk, H]
    kwb = kw + b1_ref[...]

    # rank-1 column term: skb_j = (0.505*w2) . kwb_j   ([1,H] @ [H,tk] on the MXU)
    skb = jnp.dot(w2lin_ref[...], kwb.T, preferred_element_type=jnp.float32)  # [1, tk]
    qw = qw_s[...]
    s_lin = sq_s[...] + skb                                                   # [tq, tk]

    # |x| term: only add + abs per element of the [tq, tk, H] tensor, then a
    # w2-weighted lane reduction (XLU).  The weights/cmp/select of LeakyReLU and one
    # add were removed by the factorization; the reduce could additionally be pushed
    # onto the (idle) MXU as a [tq*tk, H] @ [H, 1] matmul.
    abs_h = jnp.abs(qw[:, None, :] + kwb[None, :, :])                         # [tq, tk, H]
    s_abs = jnp.sum(abs_h * w2abs_ref[...], axis=-1)                          # [tq, tk]

    scores = s_lin + s_abs

    # masked_fill: mask==1 -> -1e9 (user mask), mask==2 -> -2e9 (key padding, strictly
    # below the user sentinel so fully-masked rows still normalize over real keys only)
    m8 = mask_ref[0]
    scores = jnp.where(m8 != 0, jnp.float32(_NEG_BIG) * m8.astype(jnp.float32), scores)

    # ---- online (flash-style) softmax over the key axis ----
    m_prev = m_s[...]
    m_new = jnp.maximum(m_prev, jnp.max(scores, axis=-1, keepdims=True))      # [tq, 1]
    alpha = jnp.exp(m_prev - m_new)
    p = jnp.exp(scores - m_new)                                               # [tq, tk]
    l_s[...] = alpha * l_s[...] + jnp.sum(p, axis=-1, keepdims=True)
    acc_s[...] = alpha * acc_s[...] + jnp.dot(p.astype(jnp.bfloat16), v_ref[0],
                                              preferred_element_type=jnp.float32)
    m_s[...] = m_new

    # ---- finalize: normalize and store once per (batch, q-tile) ----
    @pl.when(ki == nk - 1)
    def _done():
        inv_l = pl.reciprocal(l_s[...], approx=True)
        o_ref[0] = (acc_s[...] * inv_l).astype(o_ref.dtype)


def _pad_to(x, m):
    return ((x + m - 1) // m) * m


def concat_attention(Q, K, V, mask, W1, b1, w2, *, tq=32, tk=128):
    """ConcatAttention forward.

    Q:[B,Lq,Qs] K:[B,Lk,Ks] V:[B,Lk,Vs]; mask:[B,Lq,Lk] (nonzero/True = masked).
    W1:[H,H], b1:[H], w2:[H] with H = Qs+Ks (torch nn.Linear layout).
    """
    assert tq % 32 == 0 and tk % _LANE == 0, "int8 mask tiles require (32,128) blocks"
    B, Lq, Qs = Q.shape
    _, Lk, Ks = K.shape
    Vs = V.shape[-1]
    H = Qs + Ks
    out_dtype = V.dtype

    Hp = _pad_to(H, _LANE)
    Vsp = _pad_to(Vs, _LANE)
    Lqp = _pad_to(Lq, tq)
    Lkp = _pad_to(Lk, tk)

    # --- weights: split the concat-Linear, fold in the LeakyReLU factorization,
    #     zero-pad the hidden dim to a lane-dense multiple of 128 ---
    slope = 0.01                       # torch nn.LeakyReLU() default
    a_lin = (1.0 + slope) / 2.0        # LeakyReLU(x) = a_lin*x + a_abs*|x|
    a_abs = (1.0 - slope) / 2.0
    w1q = jnp.zeros((Qs, Hp), jnp.bfloat16).at[:, :H].set(W1[:, :Qs].T.astype(jnp.bfloat16))
    w1k = jnp.zeros((Ks, Hp), jnp.bfloat16).at[:, :H].set(W1[:, Qs:].T.astype(jnp.bfloat16))
    b1p = jnp.zeros((1, Hp), jnp.float32).at[0, :H].set(b1.astype(jnp.float32))
    w2p = jnp.zeros((Hp,), jnp.float32).at[:H].set(w2.astype(jnp.float32))
    w2lin = (a_lin * w2p)[None, :]     # [1, Hp]
    w2abs = (a_abs * w2p)[None, :]     # [1, Hp]

    # --- activations: bf16 operands for the MXU, zero-padded to tile boundaries ---
    Qp = jnp.zeros((B, Lqp, Qs), jnp.bfloat16).at[:, :Lq, :].set(Q.astype(jnp.bfloat16))
    Kp = jnp.zeros((B, Lkp, Ks), jnp.bfloat16).at[:, :Lk, :].set(K.astype(jnp.bfloat16))
    Vp = jnp.zeros((B, Lkp, Vsp), jnp.bfloat16).at[:, :Lk, :Vs].set(V.astype(jnp.bfloat16))

    # --- mask as int8: 0 = keep, 1 = user-masked, 2 = key padding ---
    m_i8 = jnp.full((B, Lqp, Lkp), 2, jnp.int8)
    m_i8 = m_i8.at[:, :Lq, :Lk].set(mask.astype(bool).astype(jnp.int8))

    grid = (B, Lqp // tq, Lkp // tk)

    out = pl.pallas_call(
        _concat_attn_kernel,
        out_shape=jax.ShapeDtypeStruct((B, Lqp, Vsp), out_dtype),
        grid_spec=pltpu.PrefetchScalarGridSpec(
            num_scalar_prefetch=0,
            grid=grid,
            in_specs=[
                pl.BlockSpec((1, tq, Qs), lambda b, qi, ki: (b, qi, 0)),   # Q tile
                pl.BlockSpec((1, tk, Ks), lambda b, qi, ki: (b, ki, 0)),   # K tile
                pl.BlockSpec((1, tk, Vsp), lambda b, qi, ki: (b, ki, 0)),  # V tile
                pl.BlockSpec((1, tq, tk), lambda b, qi, ki: (b, qi, ki)),  # mask tile
                pl.BlockSpec((Qs, Hp), lambda b, qi, ki: (0, 0)),          # W1q^T
                pl.BlockSpec((Ks, Hp), lambda b, qi, ki: (0, 0)),          # W1k^T
                pl.BlockSpec((1, Hp), lambda b, qi, ki: (0, 0)),           # b1
                pl.BlockSpec((1, Hp), lambda b, qi, ki: (0, 0)),           # 0.505*w2
                pl.BlockSpec((1, Hp), lambda b, qi, ki: (0, 0)),           # 0.495*w2
            ],
            out_specs=pl.BlockSpec((1, tq, Vsp), lambda b, qi, ki: (b, qi, 0)),
            scratch_shapes=[
                pltpu.VMEM((tq, Hp), jnp.float32),   # qw (Q-tile hidden), reused over k
                pltpu.VMEM((tq, 1), jnp.float32),    # sq rank-1 row term
                pltpu.VMEM((tq, 1), jnp.float32),    # running max
                pltpu.VMEM((tq, 1), jnp.float32),    # running sum
                pltpu.VMEM((tq, Vsp), jnp.float32),  # output accumulator
            ],
        ),
        compiler_params=pltpu.CompilerParams(
            dimension_semantics=("parallel", "parallel", "arbitrary"),
            vmem_limit_bytes=32 * 1024 * 1024,
        ),
    )(Qp, Kp, Vp, m_i8, w1q, w1k, b1p, w2lin, w2abs)

    return out[:, :Lq, :Vs]


def _reference(Q, K, V, mask, W1, b1, w2):
    """Pure-JAX reference of the PyTorch module (f32 math)."""
    B, Lq, Qs = Q.shape
    _, Lk, Ks = K.shape
    q_in = jnp.broadcast_to(Q[:, :, None, :], (B, Lq, Lk, Qs))
    k_in = jnp.broadcast_to(K[:, None, :, :], (B, Lq, Lk, Ks))
    x = jnp.concatenate([q_in, k_in], axis=-1)                 # [B,Lq,Lk,H]
    h = x @ W1.T + b1
    h = jnp.where(h >= 0, h, 0.01 * h)
    s = jnp.einsum("bqkh,h->bqk", h, w2)
    s = jnp.where(mask > 0.5, -1e9, s)
    attn = jax.nn.softmax(s, axis=-1)
    return jnp.einsum("bqk,bkv->bqv", attn, V)


if __name__ == "__main__":
    # Small shapes consistent with the module's forward
    B, Lq, Lk = 2, 8, 8
    Qs, Ks, Vs = 16, 16, 32
    H = Qs + Ks

    key = jax.random.PRNGKey(0)
    kq, kk, kv, kw1, kb1, kw2, km = jax.random.split(key, 7)

    Q = jax.random.normal(kq, (B, Lq, Qs), jnp.float32)
    K = jax.random.normal(kk, (B, Lk, Ks), jnp.float32)
    V = jax.random.normal(kv, (B, Lk, Vs), jnp.float32)

    # nn.Linear(H,H,bias=True) and nn.Linear(H,1,bias=False) shaped parameters
    W1 = jax.random.normal(kw1, (H, H), jnp.float32) * (1.0 / jnp.sqrt(H))
    b1 = jax.random.normal(kb1, (H,), jnp.float32) * 0.1
    w2 = jax.random.normal(kw2, (H,), jnp.float32) * (1.0 / jnp.sqrt(H))

    # mask_out analogue (1.0 = masked); keep at least one unmasked key per row
    mask = (jax.random.uniform(km, (B, Lq, Lk)) < 0.25).astype(jnp.float32)
    mask = mask.at[:, :, 0].set(0.0)

    out = concat_attention(Q, K, V, mask, W1, b1, w2)
    out = jax.block_until_ready(out)

    # Reference uses the same bf16 rounding applied to Q/K/V/W1 inside the kernel
    # (accumulation is f32 in both), so only the p@V bf16 cast / approx reciprocal differ.
    def _rt(x):
        return x.astype(jnp.bfloat16).astype(jnp.float32)

    ref = _reference(_rt(Q), _rt(K), _rt(V), mask, _rt(W1), b1, w2)

    assert out.shape == (B, Lq, Vs)
    assert jnp.allclose(out, ref, atol=3e-2, rtol=3e-2), "mismatch vs reference"

    print("KERNEL_OK")
</pallas_src>

<mosaic_0001>
module attributes {stable_mosaic.version = 11 : i64} {
  func.func @_concat_attn_kernel(%arg0: i32, %arg1: i32, %arg2: i32, %arg3: memref<1x32x16xbf16, #tpu.memory_space<vmem>>, %arg4: memref<1x128x16xbf16, #tpu.memory_space<vmem>>, %arg5: memref<1x128x128xbf16, #tpu.memory_space<vmem>>, %arg6: memref<1x32x128xi8, #tpu.memory_space<vmem>>, %arg7: memref<16x128xbf16, #tpu.memory_space<vmem>>, %arg8: memref<16x128xbf16, #tpu.memory_space<vmem>>, %arg9: memref<1x128xf32, #tpu.memory_space<vmem>>, %arg10: memref<1x128xf32, #tpu.memory_space<vmem>>, %arg11: memref<1x128xf32, #tpu.memory_space<vmem>>, %arg12: memref<1x32x128xf32, #tpu.memory_space<vmem>>, %arg13: memref<32x128xf32, #tpu.memory_space<vmem>>, %arg14: memref<32x1xf32, #tpu.memory_space<vmem>>, %arg15: memref<32x1xf32, #tpu.memory_space<vmem>>, %arg16: memref<32x1xf32, #tpu.memory_space<vmem>>, %arg17: memref<32x128xf32, #tpu.memory_space<vmem>>) attributes {dimension_semantics = [#tpu.dimension_semantics<parallel>, #tpu.dimension_semantics<parallel>, #tpu.dimension_semantics<arbitrary>], iteration_bounds = array<i64: 2, 1, 1>, scalar_prefetch = 0 : i64, scratch_operands = 5 : i64, tpu.core_type = #tpu.core_type<tc>, window_params = [{transform_indices = @transform_0, window_bounds = array<i64: 1, 32, 16>}, {transform_indices = @transform_1, window_bounds = array<i64: 1, 128, 16>}, {transform_indices = @transform_2, window_bounds = array<i64: 1, 128, 128>}, {transform_indices = @transform_3, window_bounds = array<i64: 1, 32, 128>}, {pipeline_mode = #tpu.pipeline_mode<synchronous>, transform_indices = @transform_4, window_bounds = array<i64: 16, 128>}, {pipeline_mode = #tpu.pipeline_mode<synchronous>, transform_indices = @transform_5, window_bounds = array<i64: 16, 128>}, {pipeline_mode = #tpu.pipeline_mode<synchronous>, transform_indices = @transform_6, window_bounds = array<i64: 1, 128>}, {pipeline_mode = #tpu.pipeline_mode<synchronous>, transform_indices = @transform_7, window_bounds = array<i64: 1, 128>}, {pipeline_mode = #tpu.pipeline_mode<synchronous>, transform_indices = @transform_8, window_bounds = array<i64: 1, 128>}, {transform_indices = @transform_9, window_bounds = array<i64: 1, 32, 128>}]} {
    %c0_i32 = arith.constant 0 : i32
    %0 = arith.cmpi eq, %arg2, %c0_i32 : i32
    %1 = arith.extui %0 : i1 to i32
    %c0_i32_0 = arith.constant 0 : i32
    %2 = arith.cmpi ne, %1, %c0_i32_0 : i32
    scf.if %2 {
      %c0_41 = arith.constant 0 : index
      %c0_42 = arith.constant 0 : index
      %c0_43 = arith.constant 0 : index
      %66 = vector.load %arg3[%c0_41, %c0_42, %c0_43] : memref<1x32x16xbf16, #tpu.memory_space<vmem>>, vector<1x32x16xbf16>
      %67 = vector.shape_cast %66 : vector<1x32x16xbf16> to vector<32x16xbf16>
      %c0_44 = arith.constant 0 : index
      %c0_45 = arith.constant 0 : index
      %68 = vector.load %arg7[%c0_44, %c0_45] : memref<16x128xbf16, #tpu.memory_space<vmem>>, vector<16x128xbf16>
      %cst_46 = arith.constant dense<0.000000e+00> : vector<32x128xf32>
      %69 = tpu.matmul %67, %68, %cst_46 {dimension_numbers = #tpu.dot_dimension_numbers<[1], [0], [0], [1], [0, 0, 1, 1], [], []>} : vector<32x16xbf16>, vector<16x128xbf16>, vector<32x128xf32> -> vector<32x128xf32>
      %c0_47 = arith.constant 0 : index
      %c0_48 = arith.constant 0 : index
      %70 = vector.load %arg13[%c0_47, %c0_48] : memref<32x128xf32, #tpu.memory_space<vmem>>, vector<32x128xf32>
      tpu.vector_store %arg13[%c0_47, %c0_48], %69 {strides = array<i32>} : memref<32x128xf32, #tpu.memory_space<vmem>>, vector<32x128xf32>,
      %c0_49 = arith.constant 0 : index
      %c0_50 = arith.constant 0 : index
      %71 = vector.load %arg10[%c0_49, %c0_50] : memref<1x128xf32, #tpu.memory_space<vmem>>, vector<1x128xf32>
      %72 = vector.broadcast %71 : vector<1x128xf32> to vector<32x128xf32>
      %73 = arith.mulf %69, %72 : vector<32x128xf32>
      %cst_51 = arith.constant dense<0.000000e+00> : vector<32xf32>
      %74 = vector.multi_reduction <add>, %73, %cst_51 [1] : vector<32x128xf32> to vector<32xf32>
      %75 = vector.shape_cast %74 : vector<32xf32> to vector<32x1xf32>
      %c0_52 = arith.constant 0 : index
      %c0_53 = arith.constant 0 : index
      %76 = vector.load %arg14[%c0_52, %c0_53] : memref<32x1xf32, #tpu.memory_space<vmem>>, vector<32x1xf32>
      tpu.vector_store %arg14[%c0_52, %c0_53], %75 {strides = array<i32>} : memref<32x1xf32, #tpu.memory_space<vmem>>, vector<32x1xf32>,
      %cst_54 = arith.constant -1.000000e+30 : f32
      %77 = vector.broadcast %cst_54 : f32 to vector<32x1xf32>
      %c0_55 = arith.constant 0 : index
      %c0_56 = arith.constant 0 : index
      %78 = vector.load %arg15[%c0_55, %c0_56] : memref<32x1xf32, #tpu.memory_space<vmem>>, vector<32x1xf32>
      tpu.vector_store %arg15[%c0_55, %c0_56], %77 {strides = array<i32>} : memref<32x1xf32, #tpu.memory_space<vmem>>, vector<32x1xf32>,
      %cst_57 = arith.constant 0.000000e+00 : f32
      %79 = vector.broadcast %cst_57 : f32 to vector<32x1xf32>
      %c0_58 = arith.constant 0 : index
      %c0_59 = arith.constant 0 : index
      %80 = vector.load %arg16[%c0_58, %c0_59] : memref<32x1xf32, #tpu.memory_space<vmem>>, vector<32x1xf32>
      tpu.vector_store %arg16[%c0_58, %c0_59], %79 {strides = array<i32>} : memref<32x1xf32, #tpu.memory_space<vmem>>, vector<32x1xf32>,
      %cst_60 = arith.constant 0.000000e+00 : f32
      %81 = vector.broadcast %cst_60 : f32 to vector<32x128xf32>
      %c0_61 = arith.constant 0 : index
      %c0_62 = arith.constant 0 : index
      %82 = vector.load %arg17[%c0_61, %c0_62] : memref<32x128xf32, #tpu.memory_space<vmem>>, vector<32x128xf32>
      tpu.vector_store %arg17[%c0_61, %c0_62], %81 {strides = array<i32>} : memref<32x128xf32, #tpu.memory_space<vmem>>, vector<32x128xf32>,
    } else {
    }
    %c0 = arith.constant 0 : index
    %c0_1 = arith.constant 0 : index
    %c0_2 = arith.constant 0 : index
    %3 = vector.load %arg4[%c0, %c0_1, %c0_2] : memref<1x128x16xbf16, #tpu.memory_space<vmem>>, vector<1x128x16xbf16>
    %4 = vector.shape_cast %3 : vector<1x128x16xbf16> to vector<128x16xbf16>
    %c0_3 = arith.constant 0 : index
    %c0_4 = arith.constant 0 : index
    %5 = vector.load %arg8[%c0_3, %c0_4] : memref<16x128xbf16, #tpu.memory_space<vmem>>, vector<16x128xbf16>
    %cst = arith.constant dense<0.000000e+00> : vector<128x128xf32>
    %6 = tpu.matmul %4, %5, %cst {dimension_numbers = #tpu.dot_dimension_numbers<[1], [0], [0], [1], [0, 0, 1, 1], [], []>} : vector<128x16xbf16>, vector<16x128xbf16>, vector<128x128xf32> -> vector<128x128xf32>
    %c0_5 = arith.constant 0 : index
    %c0_6 = arith.constant 0 : index
    %7 = vector.load %arg9[%c0_5, %c0_6] : memref<1x128xf32, #tpu.memory_space<vmem>>, vector<1x128xf32>
    %8 = vector.broadcast %7 : vector<1x128xf32> to vector<128x128xf32>
    %9 = arith.addf %6, %8 : vector<128x128xf32>
    %c0_7 = arith.constant 0 : index
    %c0_8 = arith.constant 0 : index
    %10 = vector.load %arg10[%c0_7, %c0_8] : memref<1x128xf32, #tpu.memory_space<vmem>>, vector<1x128xf32>
    %11 = tpu.transpose %9, [1, 0] : vector<128x128xf32> -> vector<128x128xf32>
    %cst_9 = arith.constant dense<0.000000e+00> : vector<1x128xf32>
    %12 = tpu.matmul %10, %11, %cst_9 {dimension_numbers = #tpu.dot_dimension_numbers<[1], [0], [0], [1], [0, 0, 1, 1], [], []>} : vector<1x128xf32>, vector<128x128xf32>, vector<1x128xf32> -> vector<1x128xf32>
    %c0_10 = arith.constant 0 : index
    %c0_11 = arith.constant 0 : index
    %13 = vector.load %arg13[%c0_10, %c0_11] : memref<32x128xf32, #tpu.memory_space<vmem>>, vector<32x128xf32>
    %c0_12 = arith.constant 0 : index
    %c0_13 = arith.constant 0 : index
    %14 = vector.load %arg14[%c0_12, %c0_13] : memref<32x1xf32, #tpu.memory_space<vmem>>, vector<32x1xf32>
    %15 = vector.broadcast %14 : vector<32x1xf32> to vector<32x128xf32>
    %16 = vector.broadcast %12 : vector<1x128xf32> to vector<32x128xf32>
    %17 = arith.addf %15, %16 : vector<32x128xf32>
    %18 = vector.shape_cast %13 : vector<32x128xf32> to vector<32x1x128xf32>
    %19 = vector.shape_cast %9 : vector<128x128xf32> to vector<1x128x128xf32>
    %20 = vector.broadcast %18 : vector<32x1x128xf32> to vector<32x128x128xf32>
    %21 = vector.broadcast %19 : vector<1x128x128xf32> to vector<32x128x128xf32>
    %22 = arith.addf %20, %21 : vector<32x128x128xf32>
    %23 = math.absf %22 : vector<32x128x128xf32>
    %c0_14 = arith.constant 0 : index
    %c0_15 = arith.constant 0 : index
    %24 = vector.load %arg11[%c0_14, %c0_15] : memref<1x128xf32, #tpu.memory_space<vmem>>, vector<1x128xf32>
    %25 = vector.shape_cast %24 : vector<1x128xf32> to vector<1x1x128xf32>
    %26 = vector.broadcast %25 : vector<1x1x128xf32> to vector<32x128x128xf32>
    %27 = arith.mulf %23, %26 : vector<32x128x128xf32>
    %cst_16 = arith.constant dense<0.000000e+00> : vector<32x128xf32>
    %28 = vector.multi_reduction <add>, %27, %cst_16 [2] : vector<32x128x128xf32> to vector<32x128xf32>
    %29 = arith.addf %17, %28 : vector<32x128xf32>
    %c0_17 = arith.constant 0 : index
    %c0_18 = arith.constant 0 : index
    %c0_19 = arith.constant 0 : index
    %30 = vector.load %arg6[%c0_17, %c0_18, %c0_19] : memref<1x32x128xi8, #tpu.memory_space<vmem>>, vector<1x32x128xi8>
    %31 = vector.shape_cast %30 : vector<1x32x128xi8> to vector<32x128xi8>
    %c0_i8 = arith.constant 0 : i8
    %32 = vector.broadcast %c0_i8 : i8 to vector<32x128xi8>
    %33 = arith.cmpi ne, %31, %32 : vector<32x128xi8>
    %34 = arith.sitofp %31 : vector<32x128xi8> to vector<32x128xf32>
    %cst_20 = arith.constant -1.000000e+09 : f32
    %35 = vector.broadcast %cst_20 : f32 to vector<32x128xf32>
    %36 = arith.mulf %35, %34 : vector<32x128xf32>
    %37 = arith.select %33, %36, %29 : vector<32x128xi1>, vector<32x128xf32>
    %c0_21 = arith.constant 0 : index
    %c0_22 = arith.constant 0 : index
    %38 = vector.load %arg15[%c0_21, %c0_22] : memref<32x1xf32, #tpu.memory_space<vmem>>, vector<32x1xf32>
    %cst_23 = arith.constant dense<0xFF800000> : vector<32xf32>
    %39 = vector.multi_reduction <maximumf>, %37, %cst_23 [1] : vector<32x128xf32> to vector<32xf32>
    %40 = vector.shape_cast %39 : vector<32xf32> to vector<32x1xf32>
    %41 = arith.maximumf %38, %40 : vector<32x1xf32>
    %42 = arith.subf %38, %41 : vector<32x1xf32>
    %43 = math.exp %42 : vector<32x1xf32>
    %44 = vector.broadcast %41 : vector<32x1xf32> to vector<32x128xf32>
    %45 = arith.subf %37, %44 : vector<32x128xf32>
    %46 = math.exp %45 : vector<32x128xf32>
    %c0_24 = arith.constant 0 : index
    %c0_25 = arith.constant 0 : index
    %47 = vector.load %arg16[%c0_24, %c0_25] : memref<32x1xf32, #tpu.memory_space<vmem>>, vector<32x1xf32>
    %48 = arith.mulf %43, %47 : vector<32x1xf32>
    %cst_26 = arith.constant dense<0.000000e+00> : vector<32xf32>
    %49 = vector.multi_reduction <add>, %46, %cst_26 [1] : vector<32x128xf32> to vector<32xf32>
    %50 = vector.shape_cast %49 : vector<32xf32> to vector<32x1xf32>
    %51 = arith.addf %48, %50 : vector<32x1xf32>
    %c0_27 = arith.constant 0 : index
    %c0_28 = arith.constant 0 : index
    %52 = vector.load %arg16[%c0_27, %c0_28] : memref<32x1xf32, #tpu.memory_space<vmem>>, vector<32x1xf32>
    tpu.vector_store %arg16[%c0_27, %c0_28], %51 {strides = array<i32>} : memref<32x1xf32, #tpu.memory_space<vmem>>, vector<32x1xf32>,
    %c0_29 = arith.constant 0 : index
    %c0_30 = arith.constant 0 : index
    %53 = vector.load %arg17[%c0_29, %c0_30] : memref<32x128xf32, #tpu.memory_space<vmem>>, vector<32x128xf32>
    %54 = vector.broadcast %43 : vector<32x1xf32> to vector<32x128xf32>
    %55 = arith.mulf %54, %53 : vector<32x128xf32>
    %56 = arith.truncf %46 : vector<32x128xf32> to vector<32x128xbf16>
    %c0_31 = arith.constant 0 : index
    %c0_32 = arith.constant 0 : index
    %c0_33 = arith.constant 0 : index
    %57 = vector.load %arg5[%c0_31, %c0_32, %c0_33] : memref<1x128x128xbf16, #tpu.memory_space<vmem>>, vector<1x128x128xbf16>
    %58 = vector.shape_cast %57 : vector<1x128x128xbf16> to vector<128x128xbf16>
    %cst_34 = arith.constant dense<0.000000e+00> : vector<32x128xf32>
    %59 = tpu.matmul %56, %58, %cst_34 {dimension_numbers = #tpu.dot_dimension_numbers<[1], [0], [0], [1], [0, 0, 1, 1], [], []>} : vector<32x128xbf16>, vector<128x128xbf16>, vector<32x128xf32> -> vector<32x128xf32>
    %60 = arith.addf %55, %59 : vector<32x128xf32>
    %c0_35 = arith.constant 0 : index
    %c0_36 = arith.constant 0 : index
    %61 = vector.load %arg17[%c0_35, %c0_36] : memref<32x128xf32, #tpu.memory_space<vmem>>, vector<32x128xf32>
    tpu.vector_store %arg17[%c0_35, %c0_36], %60 {strides = array<i32>} : memref<32x128xf32, #tpu.memory_space<vmem>>, vector<32x128xf32>,
    %c0_37 = arith.constant 0 : index
    %c0_38 = arith.constant 0 : index
    %62 = vector.load %arg15[%c0_37, %c0_38] : memref<32x1xf32, #tpu.memory_space<vmem>>, vector<32x1xf32>
    tpu.vector_store %arg15[%c0_37, %c0_38], %41 {strides = array<i32>} : memref<32x1xf32, #tpu.memory_space<vmem>>, vector<32x1xf32>,
    %c0_i32_39 = arith.constant 0 : i32
    %63 = arith.cmpi eq, %arg2, %c0_i32_39 : i32
    %64 = arith.extui %63 : i1 to i32
    %c0_i32_40 = arith.constant 0 : i32
    %65 = arith.cmpi ne, %64, %c0_i32_40 : i32
    scf.if %65 {
      %c0_41 = arith.constant 0 : index
      %c0_42 = arith.constant 0 : index
      %66 = vector.load %arg16[%c0_41, %c0_42] : memref<32x1xf32, #tpu.memory_space<vmem>>, vector<32x1xf32>
      %67 = tpu.reciprocal %66 {approx = true} : vector<32x1xf32> -> vector<32x1xf32>
      %c0_43 = arith.constant 0 : index
      %c0_44 = arith.constant 0 : index
      %68 = vector.load %arg17[%c0_43, %c0_44] : memref<32x128xf32, #tpu.memory_space<vmem>>, vector<32x128xf32>
      %69 = vector.broadcast %67 : vector<32x1xf32> to vector<32x128xf32>
      %70 = arith.mulf %68, %69 : vector<32x128xf32>
      %c0_45 = arith.constant 0 : index
      %c0_46 = arith.constant 0 : index
      %c0_47 = arith.constant 0 : index
      %71 = vector.load %arg12[%c0_45, %c0_46, %c0_47] : memref<1x32x128xf32, #tpu.memory_space<vmem>>, vector<1x32x128xf32>
      %72 = vector.shape_cast %71 : vector<1x32x128xf32> to vector<32x128xf32>
      %73 = vector.shape_cast %70 : vector<32x128xf32> to vector<1x32x128xf32>
      tpu.vector_store %arg12[%c0_45, %c0_46, %c0_47], %73 {strides = array<i32>} : memref<1x32x128xf32, #tpu.memory_space<vmem>>, vector<1x32x128xf32>,
    } else {
    }
    return
  }
  func.func @transform_0(%arg0: i32, %arg1: i32, %arg2: i32) -> (i32, i32, i32) {
    %c0_i32 = arith.constant 0 : i32
    %c0_i32_0 = arith.constant 0 : i32
    return %arg0, %arg1, %c0_i32 : i32, i32, i32
  }
  func.func @transform_1(%arg0: i32, %arg1: i32, %arg2: i32) -> (i32, i32, i32) {
    %c0_i32 = arith.constant 0 : i32
    %c0_i32_0 = arith.constant 0 : i32
    return %arg0, %arg2, %c0_i32 : i32, i32, i32
  }
  func.func @transform_2(%arg0: i32, %arg1: i32, %arg2: i32) -> (i32, i32, i32) {
    %c0_i32 = arith.constant 0 : i32
    %c0_i32_0 = arith.constant 0 : i32
    return %arg0, %arg2, %c0_i32 : i32, i32, i32
  }
  func.func @transform_3(%arg0: i32, %arg1: i32, %arg2: i32) -> (i32, i32, i32) {
    %c0_i32 = arith.constant 0 : i32
    return %arg0, %arg1, %arg2 : i32, i32, i32
  }
  func.func @transform_4(%arg0: i32, %arg1: i32, %arg2: i32) -> (i32, i32) {
    %c0_i32 = arith.constant 0 : i32
    %c0_i32_0 = arith.constant 0 : i32
    %c0_i32_1 = arith.constant 0 : i32
    return %c0_i32, %c0_i32_0 : i32, i32
  }
  func.func @transform_5(%arg0: i32, %arg1: i32, %arg2: i32) -> (i32, i32) {
    %c0_i32 = arith.constant 0 : i32
    %c0_i32_0 = arith.constant 0 : i32
    %c0_i32_1 = arith.constant 0 : i32
    return %c0_i32, %c0_i32_0 : i32, i32
  }
  func.func @transform_6(%arg0: i32, %arg1: i32, %arg2: i32) -> (i32, i32) {
    %c0_i32 = arith.constant 0 : i32
    %c0_i32_0 = arith.constant 0 : i32
    %c0_i32_1 = arith.constant 0 : i32
    return %c0_i32, %c0_i32_0 : i32, i32
  }
  func.func @transform_7(%arg0: i32, %arg1: i32, %arg2: i32) -> (i32, i32) {
    %c0_i32 = arith.constant 0 : i32
    %c0_i32_0 = arith.constant 0 : i32
    %c0_i32_1 = arith.constant 0 : i32
    return %c0_i32, %c0_i32_0 : i32, i32
  }
  func.func @transform_8(%arg0: i32, %arg1: i32, %arg2: i32) -> (i32, i32) {
    %c0_i32 = arith.constant 0 : i32
    %c0_i32_0 = arith.constant 0 : i32
    %c0_i32_1 = arith.constant 0 : i32
    return %c0_i32, %c0_i32_0 : i32, i32
  }
  func.func @transform_9(%arg0: i32, %arg1: i32, %arg2: i32) -> (i32, i32, i32) {
    %c0_i32 = arith.constant 0 : i32
    %c0_i32_0 = arith.constant 0 : i32
    return %arg0, %arg1, %c0_i32 : i32, i32, i32
  }
}

</mosaic_0001>

<bundles_post_ra>
// kernel: tpu_custom_call.1
= control target key start
LH: loop header
LB: loop body
LE: loop exit
PB: predicated region body
PF: predicated region fallthrough
CT: control target
= control target key end

     0   :  { %14 = vsyncpa [#allocation8], 0  ;;  %s12086_s0 = inlined_call_operand.vmem [shape: bf16[2,32,16], index: 0, kind: input, shape index: {}]   ;;  %s12087_s1 = inlined_call_operand.vmem [shape: bf16[2,128,16], index: 1, kind: input, shape index: {}]   ;;  %s12088_s2 = inlined_call_operand.vmem [shape: bf16[2,128,128], index: 2, kind: input, shape index: {}]   ;;  %s12089_s3 = inlined_call_operand.vmem [shape: s8[2,32,128], index: 3, kind: input, shape index: {}]   ;;  %s12090_s4 = inlined_call_operand.vmem [shape: bf16[16,128], index: 4, kind: input, shape index: {}]   ;;  %s12091_s5 = inlined_call_operand.vmem [shape: bf16[16,128], index: 5, kind: input, shape index: {}]   ;;  %s12092_s6 = inlined_call_operand.vmem [shape: f32[1,128], index: 6, kind: input, shape index: {}]   ;;  %s12093_s7 = inlined_call_operand.vmem [shape: f32[1,128], index: 7, kind: input, shape index: {}]   ;;  %s12094_s8 = inlined_call_operand.vmem [shape: f32[1,128], index: 8, kind: input, shape index: {}]   ;;  %s12095_s9 = inlined_call_operand.hbm [shape: f32[2,32,128], index: 9, kind: output, shape index: {}]  }
   0x1   :  { %16 = vsyncpa [#allocation8 + $0x1], 0  ;;  %s7852_s30 = smov 0   ;;  %s7854_s10 = smov 0  }
   0x2   :  { %s7856_s11 = smov 0   ;;  %s7858_s12 = smov 0  }
   0x3   :  { %s7860_s13 = smov 0   ;;  %s7862_s14 = smov 0  }
   0x4 LB: > { %s7429_s15 = sadd.s32 4294967295, %s7792_s14   ;;  %s7430_s16 = sadd.s32 4294967294, %s7792_s14   ;;  %s7792_s14 = sphi %s7862_s14, %s22_s14   ;;  %s7788_s13 = sphi %s7860_s13, %s12442_s13   ;;  %s7784_s12 = sphi %s7858_s12, %s12441_s12   ;;  %s7780_s11 = sphi %s7856_s11, %s12440_s11   ;;  %s7776_s10 = sphi %s7854_s10, %s12439_s10   ;;  %s7772_s30 = sphi %s7852_s30, %s12438_s30  }
   0x5   : > { %s41_s17 = sadd.s32 1, %s7788_s13  ;;  %s269_s18 = sadd.s32 1, %s7780_s11 }
   0x6   : > { %p43_p0 = scmp.ge.s32.totalorder %s41_s17, 2  ;;  %p279_p1 = scmp.ne.s32.totalorder %s7780_s11, %s7776_s10 }
   0x7   : > { %p280_p2 = scmp.eq.s32.totalorder %s7429_s15, 1  ;;  %p285_p3 = scmp.ne.s32.totalorder %s7776_s10, %s7772_s30 }
   0x8   : > { %s12444_s17 = smov (%p43_p0, %s41_s17), 0  ;;  %p286_p5 = scmp.eq.s32.totalorder %s7430_s16, 1 }
   0x9   : > { %p7892_p4 = por %p280_p2, %p279_p1  ;;  %s264_s20 = ssub.s32 %s7788_s13, %s12444_s17 }
   0xa   : > { %p7433_p6 = scmp.ge.s32.totalorder %s7792_s14, 1  ;;  %p267_p7 = scmp.eq.s32.totalorder %s264_s20, 0 }
   0xb   : > { %p7899_p8 = por %p286_p5, %p285_p3  ;;  %p371_p9 = scmp.lt.s32.totalorder %s7792_s14, 3 }
   0xc   : > { %s7905_s22 = scalar_select %p267_p7, %s7780_s11, %s269_s18  }
   0xd   : > { %p372_p10 = pnand %p7433_p6, %p371_p9 }
   0xf   : > { %375 = sbr.rel (%p372_p10) target bundleno = 2056 (0x808), region = 56 }
  0x14   : > { %v7666_v0 = vld [vmem:[%s12090_s4] sm:$0xff]   ;;  %p440_p11 = scmp.lt.s32.totalorder %s7784_s12, 1  ;;  %vm509_vm0 = vcmask 130048   ;;  %v7794_v12 = vmov 0.0   ;;  %v12096_v13 = vlaneseq  ;;  %v7795_v14 = vmov 1966171168  }
  0x15   : > { %v7668_v1 = vld [vmem:[%s12091_s5] sm:$0xff]   ;;  %7523 = vmatprep.subr.bf16.mxu1 %v7666_v0  ;;  %7547 = vmatprep.subr.mxu0 %v7794_v12  ;;  %v911_v15 = vunpack.c.l.s4 %v7795_v14  ;;  %vm12172_vm1 = vcmask 7168   ;;  %vm7796_vm2 = vmmov 0   ;;  %vm4355_vm3 = vcmask 130112   ;;  %s7483_s26 = sshll.u32 %s7784_s12, 9 }
  0x16   : > { %s7915_s27 = scalar_select %p440_p11, %s7784_s12, 1  ;;  %7524 = vmatpush3.bf16.msra.mxu1 %v7666_v0  ;;  %v7942_v16 = vshrl.u32 %v12096_v13, 7  ;;  %v7447_v19 = vld [vmem:[%s12093_s7] ss:$0 sm:$0xff]  ;;  %597 = vst.msk [vmem:[#allocation5] sm:$0xff] %vm12172_vm1, %v7794_v12  ;;  %598 = vst.msk [vmem:[#allocation5 + $0x8] sm:$0xff] %vm12172_vm1, %v7794_v12  ;;  %7579 = vmatprep.mubr.msk.f32.mxu0 %vm7796_vm2, %v7794_v12 }
  0x17   : > { %7529 = vmatprep.subr.bf16.mxu1 %v7668_v1  ;;  %v912_v17 = vunpack.c.0.s8 %v911_v15  ;;  %599 = vst.msk [vmem:[#allocation5 + $0x10] sm:$0xff] %vm12172_vm1, %v7794_v12  ;;  %600 = vst.msk [vmem:[#allocation5 + $0x18] sm:$0xff] %vm12172_vm1, %v7794_v12  ;;  %vm4362_vm4 = vcmask 195712   ;;  %vm4369_vm5 = vcmask 261312   ;;  %vm12192_vm6 = vcmask 326912   ;;  %s7799_s12 = smov [#allocation7]  }
  0x18   : > { %s7480_s28 = sshll.u32 %s7915_s27, 4  ;;  %s7481_s29 = sshll.u32 %s7915_s27, 6  ;;  %12203 = vst [vmem:[#allocation10_spill] sm:$0xff] %v7942_v16  ;;  %vm12174_vm7 = vcmask 392512   ;;  %vm12173_vm8 = vcmask 458112   ;;  %vm4397_vm9 = vcmask 523712  }
  0x19   : > { %s447_s18 = scalar_lea.vmem %s12086_s0, %s7480_s28  ;;  %s457_s24 = scalar_lea.vmem %s12087_s1, %s7481_s29  ;;  %v7945_v18 = vsub.s32 %v912_v17, %v7942_v16  ;;  %vm4404_vm10 = vcmask 589312   ;;  %vm4411_vm11 = vcmask 654912   ;;  %vm4418_vm12 = vcmask 720512  }
  0x1a   : > { %v7667_v2 = vld [vmem:[%s447_s18] sm:$0xff]   ;;  %v7669_v3 = vld [vmem:[%s447_s18 + $0x8] sm:$0xff]   ;;  %v7672_v6 = vld [vmem:[%s457_s24 + $0x10] sm:$0xff]   ;;  %s7931_s28 = scalar_lea.vmem %s12088_s2, %s7481_s29  ;;  %vm4425_vm13 = vcmask 786112   ;;  %vm4432_vm14 = vcmask 851712   ;;  %vm4439_vm15 = vcmask 917312  }
  0x1b   : > { %7525 = vmatprep.mubr.msk.bf16.mxu1 %vm509_vm0, %v7667_v2  ;;  %v7670_v4 = vld [vmem:[%s457_s24] sm:$0xff]   ;;  %v7671_v5 = vld [vmem:[%s457_s24 + $0x8] sm:$0xff]   ;;  %v7673_v7 = vld [vmem:[%s457_s24 + $0x18] sm:$0xff]   ;;  %vm4453_vm2 = vcmask 1048512   ;;  %s7441_s16 = sshll.u32 %s7915_s27, 3 }
  0x1c   : > { %7526 = vmatmul.mubr.msk.bf16.vlgmr.msra.gmra.mxu1 %vm509_vm0, %v7669_v3  ;;  %v7674_v8 = vld [vmem:[%s457_s24 + $0x20] sm:$0xff]   ;;  %v7675_v9 = vld [vmem:[%s457_s24 + $0x28] sm:$0xff]   ;;  %v7676_v10 = vld [vmem:[%s457_s24 + $0x30] sm:$0xff]   ;;  %s478_s20 = scalar_lea.vmem %s12089_s3, %s7441_s16  ;;  %s12037_s16 = scalar_lea.hbm %s12095_s9, %s7483_s26 }
  0x1d   : > { %7530 = vmatpush3.bf16.msra.mxu1 %v7668_v1  ;;  %7531 = vmatprep.mubr.msk.bf16.mxu1 %vm509_vm0, %v7670_v4  ;;  %v7677_v11 = vld [vmem:[%s457_s24 + $0x38] sm:$0xff]   ;;  %v7999_v1 = vsub.s32 0, %v7942_v16 }
  0x1f   : > { %12214 = vst [vmem:[#allocation21_spill] sm:$0xff] %v7999_v1 }
  0x24   : > { %7532 = vmatmul.mubr.msk.bf16.vlgmr.msra.gmra.mxu1 %vm509_vm0, %v7671_v5 }
  0x25   : > { %7535 = vmatprep.mubr.msk.bf16.mxu1 %vm509_vm0, %v7672_v6  ;;  %v8016_v6 = vld [vmem:[%s12092_s6] ss:$0 sm:$0xff] }
  0x2c   : > { %7536 = vmatmul.mubr.msk.bf16.gmra.mxu1 %vm509_vm0, %v7673_v7 }
  0x2d   : > { %7539 = vmatprep.mubr.msk.bf16.mxu1 %vm509_vm0, %v7674_v8 }
  0x34   : > { %7540 = vmatmul.mubr.msk.bf16.gmra.mxu1 %vm509_vm0, %v7675_v9 }
  0x35   : > { %7543 = vmatprep.mubr.msk.bf16.mxu1 %vm509_vm0, %v7676_v10 }
  0x3c   : > { %7544 = vmatmul.mubr.msk.bf16.gmra.mxu1 %vm509_vm0, %v7677_v11  ;;  %vm4446_vm0 = vcmask 982912  }
  0xdc   : > { %v7527_v20 = vpop.f32.mrf.mxu1 }
  0xdd   : > { %v1007_v21 = vcombine.high %v7527_v20, %v7527_v20  ;;  %v1014_v22 = vrot.slane %v7527_v20, %v7945_v18  ;;  %v578_v23 = vmul.f32 %v7527_v20, %v7447_v19 }
  0xde   : > { %v550_v24 = vpop.f32.mrf.mxu1 }
  0xdf   : > { %v1021_v25 = vrot.slane %v1007_v21, %v7945_v18  ;;  %v1022_v26 = vcombine.high %v1014_v22, %v1014_v22  ;;  %v7953_v27 = vrot.slane %v1014_v22, %v7945_v18  ;;  %584 = vadd.xlane.f32.xlu1 %v578_v23  ;;  %v576_v29 = vmul.f32 %v7447_v19, %v550_v24 }
  0xe0   : > { %v7528_v28 = vpop.f32.mrf.mxu1  ;;  %v916_v36 = vrot.slane %v550_v24, %v7945_v18  ;;  %v909_v40 = vcombine.high %v550_v24, %v550_v24  ;;  %v8053_v24 = vld [vmem:[%s12094_s8] ss:$0 sm:$0xff] }
  0xe1   : > { %12204 = vst [vmem:[#allocation11_spill] sm:$0xff] %v7953_v27  ;;  %v1023_v30 = vcombine.high %v1021_v25, %v1021_v25  ;;  %v7956_v31 = vrot.slane %v1021_v25, %v7945_v18  ;;  %v7959_v32 = vrot.slane %v1022_v26, %v7945_v18  ;;  %580 = vadd.xlane.f32.xlu0 %v576_v29 }
  0xe2   : > { %v553_v33 = vpop.f32.mrf.mxu1  ;;  %v1056_v38 = vcombine.high %v7528_v28, %v7528_v28  ;;  %v1063_v41 = vrot.slane %v7528_v28, %v7945_v18  ;;  %v924_v43 = vcombine.high %v916_v36, %v916_v36  ;;  %v932_v44 = vrot.slane %v916_v36, %v7945_v18 }
  0xe3   : > { %12205 = vst [vmem:[#allocation12_spill] sm:$0xff] %v7956_v31  ;;  %12206 = vst [vmem:[#allocation13_spill] sm:$0xff] %v7959_v32  ;;  %v7962_v34 = vrot.slane %v1023_v30, %v7945_v18  ;;  %v958_v45 = vcombine.high %v553_v33, %v553_v33  ;;  %v965_v46 = vrot.slane %v553_v33, %v7945_v18 }
  0xe4   : > { %v7533_v35 = vpop.f32.mrf.mxu1  ;;  %v1070_v42 = vrot.slane %v1056_v38, %v7945_v18  ;;  %v1071_v48 = vcombine.high %v1063_v41, %v1063_v41  ;;  %v7972_v50 = vrot.slane %v1063_v41, %v7945_v18  ;;  %v579_v55 = vmul.f32 %v7528_v28, %v7447_v19 }
  0xe5   : > { %12207 = vst [vmem:[#allocation14_spill] sm:$0xff] %v7962_v34  ;;  %v972_v52 = vrot.slane %v958_v45, %v7945_v18  ;;  %v973_v53 = vcombine.high %v965_v46, %v965_v46  ;;  %v7979_v54 = vrot.slane %v965_v46, %v7945_v18  ;;  %v7984_v57 = vrot.slane %v909_v40, %v7945_v18 }
  0xe6   : > { %v735_v37 = vpop.f32.mrf.mxu1  ;;  %v1072_v49 = vcombine.high %v1070_v42, %v1070_v42  ;;  %12208 = vst [vmem:[#allocation15_spill] sm:$0xff] %v7972_v50  ;;  %v7975_v51 = vrot.slane %v1070_v42, %v7945_v18  ;;  %v7987_v58 = vrot.slane %v1071_v48, %v7945_v18  ;;  %v946_v60 = vrot.slane %v924_v43, %v7945_v18 }
  0xe7   : > { %12210 = vst [vmem:[#allocation17_spill] sm:$0xff] %v7979_v54  ;;  %v974_v61 = vcombine.high %v972_v52, %v972_v52  ;;  %v7994_v62 = vrot.slane %v972_v52, %v7945_v18  ;;  %586 = vadd.xlane.f32.xlu1 %v579_v55  ;;  %v954_v0 = vcombine.high %v932_v44, %v932_v44 }
  0xe8   : > { %v7534_v39 = vpop.f32.mrf.mxu1  ;;  %12209 = vst [vmem:[#allocation16_spill] sm:$0xff] %v7975_v51  ;;  %12211 = vst [vmem:[#allocation18_spill] sm:$0xff] %v7987_v58  ;;  %v7990_v59 = vrot.slane %v1072_v49, %v7945_v18  ;;  %v8002_v2 = vrot.slane %v973_v53, %v7945_v18  ;;  %v8011_v5 = vrot.slane %v7984_v57, %v7945_v18 }
  0xe9   : > { %12213 = vst [vmem:[#allocation20_spill] sm:$0xff] %v7994_v62  ;;  %v8005_v3 = vrot.slane %v974_v61, %v7945_v18  ;;  %v8019_v7 = vrot.slane %v946_v60, %v7999_v1  ;;  %v8024_v9 = vrot.slane %v954_v0, %v7999_v1  ;;  %v8027_v10 = vrot.slane %v932_v44, %v7999_v1 }
  0xea   : > { %v7969_v47 = vpop.f32.mrf.mxu1  ;;  %12212 = vst [vmem:[#allocation19_spill] sm:$0xff] %v7990_v59  ;;  %12215 = vst [vmem:[#allocation22_spill] sm:$0xff] %v8002_v2  ;;  %v8030_v11 = vadd.f32 %v7533_v35, %v8016_v6  ;;  %v577_v14 = vmul.f32 %v7447_v19, %v553_v33  ;;  %v8036_v17 = vrot.slane %v8011_v5, %v7999_v1 }
  0xeb   : > { %12216 = vst [vmem:[#allocation23_spill] sm:$0xff] %v8005_v3  ;;  %v8039_v20 = vadd.f32 %v8016_v6, %v735_v37  ;;  %v8042_v21 = vadd.f32 %v7534_v39, %v8016_v6  ;;  %v956_v42 = vcombine.high %v946_v60, %v946_v60 }
  0xec   : > { %v7981_v56 = vpop.f32.mrf.mxu1  ;;  %12217 = vst [vmem:[#allocation24_spill] sm:$0xff] %v8030_v11  ;;  %582 = vadd.xlane.f32.xlu0 %v577_v14  ;;  %v1267_v22 = vadd.f32 %v8027_v10, %v8030_v11  ;;  %v1283_v23 = vadd.f32 %v8019_v7, %v8030_v11  ;;  %v1299_v26 = vadd.f32 %v8024_v9, %v8030_v11 }
  0xed   : > { %12218 = vst [vmem:[#allocation25_spill] sm:$0xff] %v8039_v20  ;;  %12219 = vst [vmem:[#allocation26_spill] sm:$0xff] %v8042_v21  ;;  %v1265_v25 = vadd.f32 %v8027_v10, %v8039_v20  ;;  %v1268_v33 = vadd.f32 %v8027_v10, %v8042_v21  ;;  %v1331_v35 = vadd.f32 %v8036_v17, %v8030_v11 }
  0xee   : > { %v7996_v63 = vpop.f32.mrf.mxu1  ;;  %v1779_v28 = vand.u32 2147483647, %v1267_v22  ;;  %v1795_v29 = vand.u32 2147483647, %v1283_v23  ;;  %v1811_v39 = vand.u32 2147483647, %v1299_v26  ;;  %v1284_v48 = vadd.f32 %v8019_v7, %v8042_v21 }
  0xef   : > { %v1777_v38 = vand.u32 2147483647, %v1265_v25  ;;  %v1780_v43 = vand.u32 2147483647, %v1268_v33  ;;  %v1843_v44 = vand.u32 2147483647, %v1331_v35  ;;  %v1281_v49 = vadd.f32 %v8019_v7, %v8039_v20 }
  0xf0   : > { %v8007_v4 = vpop.f32.mrf.mxu1  ;;  %v2298_v36 = vmul.f32 %v8053_v24, %v1779_v28  ;;  %v2314_v37 = vmul.f32 %v8053_v24, %v1795_v29  ;;  %v2330_v46 = vmul.f32 %v8053_v24, %v1811_v39  ;;  %v8084_v55 = vrot.slane %v956_v42, %v7999_v1 }
  0xf1   : > { %v2296_v45 = vmul.f32 %v8053_v24, %v1777_v38  ;;  %v2299_v60 = vmul.f32 %v8053_v24, %v1780_v43  ;;  %v2362_v61 = vmul.f32 %v8053_v24, %v1843_v44  ;;  %v1796_v14 = vand.u32 2147483647, %v1284_v48 }
  0xf2   : > { %v8021_v8 = vpop.f32.mrf.mxu1  ;;  %2812 = vadd.xlane.f32.xlu1 %v2298_v36  ;;  %2844 = vadd.xlane.f32.xlu0 %v2314_v37  ;;  %v1793_v22 = vand.u32 2147483647, %v1281_v49  ;;  %v1300_v23 = vadd.f32 %v8024_v9, %v8042_v21  ;;  %v1297_v25 = vadd.f32 %v8024_v9, %v8039_v20  ;;  %v925_v26 = vcombine.high %v7984_v57, %v7984_v57 }
  0xf3   : > { %v1316_v29 = vadd.f32 %v8084_v55, %v8042_v21  ;;  %v1313_v33 = vadd.f32 %v8084_v55, %v8039_v20  ;;  %v2315_v35 = vmul.f32 %v8053_v24, %v1796_v14  ;;  %v1332_v43 = vadd.f32 %v8036_v17, %v8042_v21 }
  0xf4   : > { %v8032_v15 = vpop.f32.mrf.mxu1  ;;  %v2312_v36 = vmul.f32 %v8053_v24, %v1793_v22  ;;  %v1812_v57 = vand.u32 2147483647, %v1300_v23  ;;  %v1809_v37 = vand.u32 2147483647, %v1297_v25  ;;  %v8109_v39 = vrot.slane %v925_v26, %v7945_v18 }
  0xf5   : > { %v1315_v18 = vadd.f32 %v8084_v55, %v8030_v11  ;;  %v955_v49 = vcombine.high %v8011_v5, %v8011_v5  ;;  %v1329_v25 = vadd.f32 %v8036_v17, %v8039_v20 }
  0xf6   : > { %v8048_v19 = vpop.f32.mrf.mxu1  ;;  %2808 = vadd.xlane.f32.xlu1 %v2296_v45  ;;  %2876 = vadd.xlane.f32.xlu0 %v2330_v46  ;;  %v2331_v44 = vmul.f32 %v8053_v24, %v1812_v57  ;;  %v2328_v45 = vmul.f32 %v8053_v24, %v1809_v37  ;;  %v1825_v46 = vand.u32 2147483647, %v1313_v33  ;;  %v8124_v48 = vrot.slane %v8109_v39, %v7999_v1 }
  0xf7   : > { %v1827_v23 = vand.u32 2147483647, %v1315_v18  ;;  %v8141_v5 = vrot.slane %v955_v49, %v7999_v1 }
  0xf8   : > { %v8059_v30 = vpop.f32.mrf.mxu1  ;;  %v2344_v22 = vmul.f32 %v8053_v24, %v1825_v46  ;;  %v1345_v37 = vadd.f32 %v8124_v48, %v8039_v20 }
  0xf9   : > { %v8149_v26 = vadd.f32 %v8059_v30, %v8016_v6  ;;  %v1364_v57 = vadd.f32 %v8141_v5, %v8042_v21  ;;  %v1361_v18 = vadd.f32 %v8141_v5, %v8039_v20 }
  0xfa   : > { %v8067_v40 = vpop.f32.mrf.mxu1  ;;  %2814 = vadd.xlane.f32.xlu1 %v2299_v60  ;;  %2940 = vadd.xlane.f32.xlu0 %v2362_v61  ;;  %v1844_v60 = vand.u32 2147483647, %v1332_v43  ;;  %v1348_v61 = vadd.f32 %v8124_v48, %v8042_v21 }
  0xfb   : > { %12225 = vst [vmem:[#allocation32_spill] sm:$0xff] %v8149_v26  ;;  %v1876_v43 = vand.u32 2147483647, %v1364_v57 }
  0xfc   : > { %v7545_v41 = vpop.f32.mrf.mxu1  ;;  %v1860_v33 = vand.u32 2147483647, %v1348_v61 }
  0xfd   : > { %v8099_v28 = vadd.f32 %v7545_v41, %v8016_v6  ;;  %v1828_v41 = vand.u32 2147483647, %v1316_v29  ;;  %v2363_v29 = vmul.f32 %v8053_v24, %v1844_v60  ;;  %v2395_v49 = vmul.f32 %v8053_v24, %v1876_v43 }
  0xfe   : > { %v783_v52 = vpop.f32.mrf.mxu1  ;;  %2846 = vadd.xlane.f32.xlu1 %v2315_v35  ;;  %2840 = vadd.xlane.f32.xlu0 %v2312_v36  ;;  %v2346_v35 = vmul.f32 %v8053_v24, %v1827_v23  ;;  %v1841_v36 = vand.u32 2147483647, %v1329_v25  ;;  %v2379_v30 = vmul.f32 %v8053_v24, %v1860_v33  ;;  %v1873_v33 = vand.u32 2147483647, %v1361_v18 }
  0xff   : > { %12221 = vst [vmem:[#allocation28_spill] sm:$0xff] %v8099_v28  ;;  %v2347_v14 = vmul.f32 %v8053_v24, %v1828_v41 }
 0x100   : > { %v7546_v53 = vpop.f32.mrf.mxu1  ;;  %v2360_v41 = vmul.f32 %v8053_v24, %v1841_v36  ;;  %v8201_v36 = vadd.f32 %v8007_v4, %v8016_v6 }
 0x101   : > { %v8089_v0 = vadd.f32 %v7546_v53, %v8016_v6  ;;  %v8130_v53 = vadd.f32 %v8016_v6, %v783_v52  ;;  %v8145_v52 = vadd.f32 %v8016_v6, %v7969_v47  ;;  %v8161_v47 = vadd.f32 %v8032_v15, %v8016_v6 }
 0x102   : > { %v786_v38 = vpop.f32.mrf.mxu1  ;;  %2878 = vadd.xlane.f32.xlu1 %v2331_v44  ;;  %2872 = vadd.xlane.f32.xlu0 %v2328_v45  ;;  %v1857_v44 = vand.u32 2147483647, %v1345_v37  ;;  %v1347_v45 = vadd.f32 %v8124_v48, %v8030_v11  ;;  %v8173_v15 = vadd.f32 %v8016_v6, %v8067_v40  ;;  %v8185_v40 = vadd.f32 %v8016_v6, %v8048_v19 }
 0x103   : > { %12220 = vst [vmem:[#allocation27_spill] sm:$0xff] %v8089_v0  ;;  %7548 = vmatpush3.xpose.msra.mxu0 %v8089_v0  ;;  %v8113_v42 = vadd.f32 %v8016_v6, %v786_v38  ;;  %12223 = vst [vmem:[#allocation30_spill] sm:$0xff] %v8130_v53  ;;  %v1282_v38 = vadd.f32 %v8019_v7, %v8145_v52  ;;  %v1298_v46 = vadd.f32 %v8024_v9, %v8145_v52 }
 0x104   : > { %7549 = vmatprep.subr.mxu0 %v7794_v12  ;;  %12224 = vst [vmem:[#allocation31_spill] sm:$0xff] %v8145_v52  ;;  %12226 = vst [vmem:[#allocation33_spill] sm:$0xff] %v8161_v47  ;;  %v2376_v60 = vmul.f32 %v8053_v24, %v1857_v44  ;;  %v1314_v23 = vadd.f32 %v8084_v55, %v8145_v52  ;;  %v8197_v19 = vadd.f32 %v7981_v56, %v8016_v6 }
 0x105   : > { %12222 = vst [vmem:[#allocation29_spill] sm:$0xff] %v8113_v42  ;;  %12227 = vst [vmem:[#allocation34_spill] sm:$0xff] %v8173_v15  ;;  %v1794_v61 = vand.u32 2147483647, %v1282_v38  ;;  %v1266_v43 = vadd.f32 %v8027_v10, %v8145_v52  ;;  %v1346_v4 = vadd.f32 %v8124_v48, %v8145_v52  ;;  %v1312_v59 = vadd.f32 %v8024_v9, %v8089_v0 }
 0x106   : > { %2910 = vadd.xlane.f32.xlu1 %v2347_v14  ;;  %2904 = vadd.xlane.f32.xlu0 %v2344_v22  ;;  %v1859_v14 = vand.u32 2147483647, %v1347_v45  ;;  %12228 = vst [vmem:[#allocation35_spill] sm:$0xff] %v8185_v40  ;;  %v1810_v22 = vand.u32 2147483647, %v1298_v46  ;;  %12229 = vst [vmem:[#allocation36_spill] sm:$0xff] %v8197_v19  ;;  %v1271_v18 = vadd.f32 %v8027_v10, %v8197_v19 }
 0x107   : > { %7550 = vmatpush3.xpose.msra.mxu0 %v8099_v28  ;;  %v2313_v25 = vmul.f32 %v8053_v24, %v1794_v61  ;;  %12230 = vst [vmem:[#allocation37_spill] sm:$0xff] %v8201_v36  ;;  %v1826_v37 = vand.u32 2147483647, %v1314_v23  ;;  %v1778_v46 = vand.u32 2147483647, %v1266_v43  ;;  %v1362_v61 = vadd.f32 %v8141_v5, %v8145_v52 }
 0x108   : > { %7551 = vmatprep.subr.mxu0 %v7794_v12  ;;  %v2329_v57 = vmul.f32 %v8053_v24, %v1810_v22  ;;  %v1272_v43 = vadd.f32 %v8027_v10, %v8201_v36  ;;  %v1328_v34 = vadd.f32 %v8084_v55, %v8089_v0  ;;  %v1344_v31 = vadd.f32 %v8036_v17, %v8089_v0 }
 0x109   : > { %v2345_v56 = vmul.f32 %v8053_v24, %v1826_v37  ;;  %v2297_v23 = vmul.f32 %v8053_v24, %v1778_v46  ;;  %v1293_v32 = vadd.f32 %v8019_v7, %v8130_v53  ;;  %v1309_v2 = vadd.f32 %v8024_v9, %v8130_v53 }
 0x10a   : > { %2942 = vadd.xlane.f32.xlu1 %v2363_v29  ;;  %2908 = vadd.xlane.f32.xlu0 %v2346_v35  ;;  %v2378_v29 = vmul.f32 %v8053_v24, %v1859_v14  ;;  %v1363_v35 = vadd.f32 %v8141_v5, %v8030_v11  ;;  %v1287_v14 = vadd.f32 %v8019_v7, %v8197_v19  ;;  %v1784_v46 = vand.u32 2147483647, %v1272_v43 }
 0x10b   : > { %7552 = vmatpush3.xpose.msra.mxu0 %v8113_v42  ;;  %v1840_v3 = vand.u32 2147483647, %v1328_v34  ;;  %v1278_v54 = vadd.f32 %v8027_v10, %v8113_v42 }
 0x10c   : > { %7553 = vmatprep.subr.mxu0 %v7794_v12  ;;  %v1875_v38 = vand.u32 2147483647, %v1363_v35  ;;  %v1799_v35 = vand.u32 2147483647, %v1287_v14  ;;  %v1304_v14 = vadd.f32 %v8024_v9, %v8201_v36 }
 0x10e   : > { %2974 = vadd.xlane.f32.xlu1 %v2379_v30  ;;  %2936 = vadd.xlane.f32.xlu0 %v2360_v41  ;;  %v2392_v30 = vmul.f32 %v8053_v24, %v1873_v33  ;;  %v1330_v41 = vadd.f32 %v8036_v17, %v8145_v52  ;;  %v2394_v44 = vmul.f32 %v8053_v24, %v1875_v38 }
 0x10f   : > { %7554 = vmatpush3.xpose.msra.mxu0 %v8130_v53  ;;  %v2318_v38 = vmul.f32 %v8053_v24, %v1799_v35 }
 0x110   : > { %7555 = vmatprep.subr.mxu0 %v7794_v12  ;;  %v1842_v45 = vand.u32 2147483647, %v1330_v41 }
 0x112   : > { %3006 = vadd.xlane.f32.xlu1 %v2395_v49  ;;  %2968 = vadd.xlane.f32.xlu0 %v2376_v60  ;;  %v8221_v49 = vadd.f32 %v8016_v6, %v7996_v63  ;;  %v8225_v60 = vadd.f32 %v8016_v6, %v8021_v8  ;;  %v2361_v22 = vmul.f32 %v8053_v24, %v1842_v45  ;;  %v1874_v63 = vand.u32 2147483647, %v1362_v61 }
 0x113   : > { %7556 = vmatpush3.xpose.msra.mxu0 %v8149_v26  ;;  %v1335_v61 = vadd.f32 %v8036_v17, %v8197_v19 }
 0x114   : > { %7557 = vmatprep.subr.mxu0 %v7794_v12  ;;  %12231 = vst [vmem:[#allocation38_spill] sm:$0xff] %v8221_v49  ;;  %12232 = vst [vmem:[#allocation39_spill] sm:$0xff] %v8225_v60  ;;  %v1269_v6 = vadd.f32 %v8027_v10, %v8221_v49  ;;  %v2393_v37 = vmul.f32 %v8053_v24, %v1874_v63 }
 0x115   : > { %v1847_v63 = vand.u32 2147483647, %v1335_v61 }
 0x116   : > { %2842 = vadd.xlane.f32.xlu1 %v2313_v25  ;;  %2972 = vadd.xlane.f32.xlu0 %v2378_v29  ;;  %v1858_v25 = vand.u32 2147483647, %v1346_v4  ;;  %v1783_v29 = vand.u32 2147483647, %v1271_v18 }
 0x117   : > { %7558 = vmatpush3.xpose.msra.mxu0 %v8161_v47  ;;  %v2366_v35 = vmul.f32 %v8053_v24, %v1847_v63 }
 0x118   : > { %7559 = vmatprep.subr.mxu0 %v7794_v12  ;;  %v2377_v8 = vmul.f32 %v8053_v24, %v1858_v25  ;;  %v2302_v33 = vmul.f32 %v8053_v24, %v1783_v29 }
 0x11a   : > { %2874 = vadd.xlane.f32.xlu1 %v2329_v57  ;;  %3000 = vadd.xlane.f32.xlu0 %v2392_v30  ;;  %v1303_v57 = vadd.f32 %v8024_v9, %v8197_v19  ;;  %v1781_v30 = vand.u32 2147483647, %v1269_v6  ;;  %v1816_v6 = vand.u32 2147483647, %v1304_v14  ;;  %v1301_v14 = vadd.f32 %v8024_v9, %v8221_v49 }
 0x11b   : > { %7560 = vmatpush3.xpose.msra.mxu0 %v8173_v15 }
 0x11c   : > { %7561 = vmatprep.subr.mxu0 %v7794_v12  ;;  %v1815_v41 = vand.u32 2147483647, %v1303_v57  ;;  %v2300_v4 = vmul.f32 %v8053_v24, %v1781_v30  ;;  %v2335_v30 = vmul.f32 %v8053_v24, %v1816_v6  ;;  %v1813_v6 = vand.u32 2147483647, %v1301_v14 }
 0x11e   : > { %2906 = vadd.xlane.f32.xlu1 %v2345_v56  ;;  %3004 = vadd.xlane.f32.xlu0 %v2394_v44  ;;  %v1319_v56 = vadd.f32 %v8084_v55, %v8197_v19  ;;  %v1288_v44 = vadd.f32 %v8019_v7, %v8201_v36  ;;  %v2334_v45 = vmul.f32 %v8053_v24, %v1815_v41 }
 0x11f   : > { %7562 = vmatpush3.xpose.msra.mxu0 %v8185_v40 }
 0x120   : > { %7563 = vmatprep.subr.mxu0 %v7794_v12  ;;  %v1831_v18 = vand.u32 2147483647, %v1319_v56  ;;  %v1800_v29 = vand.u32 2147483647, %v1288_v44  ;;  %v1336_v56 = vadd.f32 %v8036_v17, %v8201_v36 }
 0x122   : > { %2938 = vadd.xlane.f32.xlu1 %v2361_v22  ;;  %2810 = vadd.xlane.f32.xlu0 %v2297_v23  ;;  %v1351_v22 = vadd.f32 %v8124_v48, %v8197_v19  ;;  %v2303_v23 = vmul.f32 %v8053_v24, %v1784_v46  ;;  %v2350_v25 = vmul.f32 %v8053_v24, %v1831_v18  ;;  %v1848_v18 = vand.u32 2147483647, %v1336_v56 }
 0x123   : > { %7564 = vmatpush3.xpose.msra.mxu0 %v8201_v36 }
 0x124   : > { %7565 = vmatprep.subr.mxu0 %v7794_v12  ;;  %v1863_v57 = vand.u32 2147483647, %v1351_v22  ;;  %v1270_v22 = vadd.f32 %v8027_v10, %v8225_v60 }
 0x126   : > { %2970 = vadd.xlane.f32.xlu1 %v2377_v8  ;;  %2820 = vadd.xlane.f32.xlu0 %v2302_v33  ;;  %v1320_v8 = vadd.f32 %v8084_v55, %v8201_v36  ;;  %v2319_v33 = vmul.f32 %v8053_v24, %v1800_v29  ;;  %v2382_v41 = vmul.f32 %v8053_v24, %v1863_v57 }
 0x127   : > { %7566 = vmatpush3.xpose.msra.mxu0 %v8197_v19  ;;  %v2332_v57 = vmul.f32 %v8053_v24, %v1813_v6 }
 0x128   : > { %7567 = vmatprep.subr.mxu0 %v7794_v12 }
 0x12a   : > { %3002 = vadd.xlane.f32.xlu1 %v2393_v37  ;;  %2852 = vadd.xlane.f32.xlu0 %v2318_v38  ;;  %v1367_v37 = vadd.f32 %v8141_v5, %v8197_v19  ;;  %v1832_v38 = vand.u32 2147483647, %v1320_v8  ;;  %v1782_v8 = vand.u32 2147483647, %v1270_v22  ;;  %v1365_v22 = vadd.f32 %v8141_v5, %v8221_v49 }
 0x12b   : > { %7568 = vmatpush3.xpose.msra.mxu0 %v8225_v60  ;;  %v1790_v19 = vand.u32 2147483647, %v1278_v54 }
 0x12c   : > { %7569 = vmatprep.subr.mxu0 %v7794_v12  ;;  %v1879_v43 = vand.u32 2147483647, %v1367_v37  ;;  %v2351_v44 = vmul.f32 %v8053_v24, %v1832_v38  ;;  %v2301_v38 = vmul.f32 %v8053_v24, %v1782_v8  ;;  %v1877_v8 = vand.u32 2147483647, %v1365_v22 }
 0x12d   : > { %v1276_v22 = vadd.f32 %v8027_v10, %v8149_v26 }
 0x12e   : > { %2816 = vadd.xlane.f32.xlu1 %v2300_v4  ;;  %2884 = vadd.xlane.f32.xlu0 %v2334_v45  ;;  %v1285_v4 = vadd.f32 %v8019_v7, %v8221_v49  ;;  %v1352_v45 = vadd.f32 %v8124_v48, %v8201_v36  ;;  %v2398_v46 = vmul.f32 %v8053_v24, %v1879_v43 }
 0x12f   : > { %7570 = vmatpush3.xpose.msra.mxu0 %v8221_v49 }
 0x130   : > { %7571 = vmatprep.subr.mxu0 %v7794_v12  ;;  %v1797_v61 = vand.u32 2147483647, %v1285_v4  ;;  %v1864_v63 = vand.u32 2147483647, %v1352_v45  ;;  %v1302_v4 = vadd.f32 %v8024_v9, %v8225_v60 }
 0x132   : > { %2822 = vadd.xlane.f32.xlu1 %v2303_v23  ;;  %2916 = vadd.xlane.f32.xlu0 %v2350_v25  ;;  %v1317_v23 = vadd.f32 %v8084_v55, %v8221_v49  ;;  %v2367_v25 = vmul.f32 %v8053_v24, %v1848_v18  ;;  %v2316_v29 = vmul.f32 %v8053_v24, %v1797_v61  ;;  %v1814_v61 = vand.u32 2147483647, %v1302_v4 }
 0x133   : > { %7572 = vmatpush3.xpose.msra.mxu0 %v8042_v21 }
 0x134   : > { %7573 = vmatprep.subr.mxu0 %v7794_v12  ;;  %v1829_v37 = vand.u32 2147483647, %v1317_v23  ;;  %v1334_v23 = vadd.f32 %v8036_v17, %v8225_v60 }
 0x136   : > { %2854 = vadd.xlane.f32.xlu1 %v2319_v33  ;;  %2948 = vadd.xlane.f32.xlu0 %v2366_v35  ;;  %v1286_v33 = vadd.f32 %v8019_v7, %v8225_v60  ;;  %v2383_v35 = vmul.f32 %v8053_v24, %v1864_v63  ;;  %v2348_v43 = vmul.f32 %v8053_v24, %v1829_v37 }
 0x137   : > { %7574 = vmatpush3.xpose.msra.mxu0 %v8030_v11 }
 0x138   : > { %7575 = vmatprep.subr.mxu0 %v7794_v12 }
 0x13a   : > { %2886 = vadd.xlane.f32.xlu1 %v2335_v30  ;;  %2980 = vadd.xlane.f32.xlu0 %v2382_v41  ;;  %v1333_v30 = vadd.f32 %v8036_v17, %v8221_v49  ;;  %v1798_v41 = vand.u32 2147483647, %v1286_v33  ;;  %v798_v33 = vld [vmem:[%s12093_s7] sm:$0x1] }
 0x13b   : > { %7576 = vmatpush3.xpose.msra.mxu0 %v8145_v52 }
 0x13c   : > { %7577 = vmatprep.subr.mxu0 %v7794_v12  ;;  %v1845_v56 = vand.u32 2147483647, %v1333_v30  ;;  %v2317_v45 = vmul.f32 %v8053_v24, %v1798_v41  ;;  %v2396_v30 = vmul.f32 %v8053_v24, %v1877_v8  ;;  %v1307_v12 = vadd.f32 %v8024_v9, %v8161_v47 }
 0x13e   : > { %2918 = vadd.xlane.f32.xlu1 %v2351_v44  ;;  %3012 = vadd.xlane.f32.xlu0 %v2398_v46  ;;  %v1349_v44 = vadd.f32 %v8124_v48, %v8221_v49  ;;  %v1318_v46 = vadd.f32 %v8084_v55, %v8225_v60  ;;  %v2364_v18 = vmul.f32 %v8053_v24, %v1845_v56 }
 0x13f   : > { %7578 = vmatpush3.xpose.msra.mxu0 %v8039_v20 }
 0x140   : > { %v1861_v14 = vand.u32 2147483647, %v1349_v44  ;;  %v1830_v6 = vand.u32 2147483647, %v1318_v46 }
 0x142   : > { %2950 = vadd.xlane.f32.xlu1 %v2367_v25  ;;  %2848 = vadd.xlane.f32.xlu0 %v2316_v29  ;;  %v1275_v25 = vadd.f32 %v8027_v10, %v8161_v47  ;;  %v2333_v29 = vmul.f32 %v8053_v24, %v1814_v61  ;;  %v2380_v63 = vmul.f32 %v8053_v24, %v1861_v14  ;;  %v1819_v14 = vand.u32 2147483647, %v1307_v12 }
 0x143   : > { %v2349_v37 = vmul.f32 %v8053_v24, %v1830_v6  ;;  %7580 = vmatmul.mubr.f32.vlgmr.msra.gmra.mxu0 %v798_v33  ;;  %v1788_v33 = vand.u32 2147483647, %v1276_v22 }
 0x144   : > { %v1787_v41 = vand.u32 2147483647, %v1275_v25  ;;  %v2338_v8 = vmul.f32 %v8053_v24, %v1819_v14 }
 0x146   : > { %2982 = vadd.xlane.f32.xlu1 %v2383_v35  ;;  %2880 = vadd.xlane.f32.xlu0 %v2332_v57  ;;  %v1350_v35 = vadd.f32 %v8124_v48, %v8225_v60  ;;  %v1291_v57 = vadd.f32 %v8019_v7, %v8161_v47  ;;  %v2306_v44 = vmul.f32 %v8053_v24, %v1787_v41 }
 0x148   : > { %v1803_v56 = vand.u32 2147483647, %v1291_v57 }
 0x14a   : > { %2818 = vadd.xlane.f32.xlu1 %v2301_v38  ;;  %2912 = vadd.xlane.f32.xlu0 %v2348_v43  ;;  %v1846_v38 = vand.u32 2147483647, %v1334_v23  ;;  %v1862_v43 = vand.u32 2147483647, %v1350_v35  ;;  %v1323_v23 = vadd.f32 %v8084_v55, %v8161_v47 }
 0x14c   : > { %v2365_v4 = vmul.f32 %v8053_v24, %v1846_v38  ;;  %v2381_v46 = vmul.f32 %v8053_v24, %v1862_v43  ;;  %v1835_v35 = vand.u32 2147483647, %v1323_v23  ;;  %v2307_v38 = vmul.f32 %v8053_v24, %v1788_v33 }
 0x14e   : > { %2850 = vadd.xlane.f32.xlu1 %v2317_v45  ;;  %2944 = vadd.xlane.f32.xlu0 %v2364_v18  ;;  %v1366_v45 = vadd.f32 %v8141_v5, %v8225_v60  ;;  %v2322_v18 = vmul.f32 %v8053_v24, %v1803_v56  ;;  %v2354_v41 = vmul.f32 %v8053_v24, %v1835_v35 }
 0x150   : > { %v1878_v61 = vand.u32 2147483647, %v1366_v45 }
 0x152   : > { %2882 = vadd.xlane.f32.xlu1 %v2333_v29  ;;  %2976 = vadd.xlane.f32.xlu0 %v2380_v63  ;;  %v1292_v29 = vadd.f32 %v8019_v7, %v8149_v26  ;;  %v1339_v63 = vadd.f32 %v8036_v17, %v8161_v47  ;;  %v2397_v6 = vmul.f32 %v8053_v24, %v1878_v61 }
 0x154   : > { %v1804_v43 = vand.u32 2147483647, %v1292_v29  ;;  %v1851_v56 = vand.u32 2147483647, %v1339_v63  ;;  %v1289_v29 = vadd.f32 %v8019_v7, %v8185_v40 }
 0x156   : > { %2914 = vadd.xlane.f32.xlu1 %v2349_v37  ;;  %3008 = vadd.xlane.f32.xlu0 %v2396_v30  ;;  %v1308_v37 = vadd.f32 %v8024_v9, %v8149_v26  ;;  %v1355_v30 = vadd.f32 %v8124_v48, %v8161_v47  ;;  %v2323_v45 = vmul.f32 %v8053_v24, %v1804_v43 }
 0x157   : > { %v2370_v12 = vmul.f32 %v8053_v24, %v1851_v56 }
 0x15a   : > { %2946 = vadd.xlane.f32.xlu1 %v2365_v4  ;;  %2828 = vadd.xlane.f32.xlu0 %v2306_v44  ;;  %v1820_v4 = vand.u32 2147483647, %v1308_v37  ;;  %v1867_v44 = vand.u32 2147483647, %v1355_v30  ;;  %v1801_v37 = vand.u32 2147483647, %v1289_v29 }
 0x15c   : > { %v2339_v61 = vmul.f32 %v8053_v24, %v1820_v4  ;;  %v2386_v14 = vmul.f32 %v8053_v24, %v1867_v44  ;;  %v2320_v43 = vmul.f32 %v8053_v24, %v1801_v37  ;;  %v1321_v4 = vadd.f32 %v8084_v55, %v8185_v40 }
 0x15d   : > { %v1322_v37 = vadd.f32 %v8084_v55, %v8173_v15 }
 0x15e   : > { %2978 = vadd.xlane.f32.xlu1 %v2381_v46  ;;  %2860 = vadd.xlane.f32.xlu0 %v2322_v18  ;;  %v1324_v46 = vadd.f32 %v8084_v55, %v8149_v26  ;;  %v1273_v18 = vadd.f32 %v8027_v10, %v8185_v40 }
 0x160   : > { %v1836_v22 = vand.u32 2147483647, %v1324_v46  ;;  %v1785_v23 = vand.u32 2147483647, %v1273_v18 }
 0x162   : > { %3010 = vadd.xlane.f32.xlu1 %v2397_v6  ;;  %2892 = vadd.xlane.f32.xlu0 %v2338_v8  ;;  %v1356_v6 = vadd.f32 %v8124_v48, %v8149_v26  ;;  %v1305_v8 = vadd.f32 %v8024_v9, %v8185_v40  ;;  %v2355_v33 = vmul.f32 %v8053_v24, %v1836_v22 }
 0x163   : > { %v2304_v35 = vmul.f32 %v8053_v24, %v1785_v23 }
 0x164   : > { %v1868_v30 = vand.u32 2147483647, %v1356_v6  ;;  %v1817_v56 = vand.u32 2147483647, %v1305_v8  ;;  %v1306_v8 = vadd.f32 %v8024_v9, %v8173_v15 }
 0x166   : > { %2830 = vadd.xlane.f32.xlu1 %v2307_v38  ;;  %2924 = vadd.xlane.f32.xlu0 %v2354_v41  ;;  %v1274_v38 = vadd.f32 %v8027_v10, %v8173_v15  ;;  %v2387_v46 = vmul.f32 %v8053_v24, %v1868_v30  ;;  %v2336_v18 = vmul.f32 %v8053_v24, %v1817_v56 }
 0x167   : > { %v1279_v30 = vadd.f32 %v8027_v10, %v8099_v28 }
 0x168   : > { %v585_v25 = vpop.xlane.xlu1 %584 }
 0x169   : > { %591 = vst.msk [vmem:[#allocation3 + $0x10] sm:$0xff] %vm12172_vm1, %v585_v25  ;;  %v1340_v25 = vadd.f32 %v8036_v17, %v8149_v26 }
 0x16a   : > { %v581_v57 = vpop.xlane.xlu0 %580  ;;  %2862 = vadd.xlane.f32.xlu1 %v2323_v45  ;;  %2956 = vadd.xlane.f32.xlu0 %v2370_v12  ;;  %v1786_v45 = vand.u32 2147483647, %v1274_v38  ;;  %v1290_v12 = vadd.f32 %v8019_v7, %v8173_v15 }
 0x16b   : > { %589 = vst.msk [vmem:[#allocation3] sm:$0xff] %vm12172_vm1, %v581_v57  ;;  %v1852_v57 = vand.u32 2147483647, %v1340_v25 }
 0x16c   : > { %v2305_v25 = vmul.f32 %v8053_v24, %v1786_v45  ;;  %v1802_v29 = vand.u32 2147483647, %v1290_v12  ;;  %v1834_v45 = vand.u32 2147483647, %v1322_v37  ;;  %v1338_v12 = vadd.f32 %v8036_v17, %v8173_v15 }
 0x16d   : > { %v2371_v41 = vmul.f32 %v8053_v24, %v1852_v57 }
 0x16e   : > { %2894 = vadd.xlane.f32.xlu1 %v2339_v61  ;;  %2988 = vadd.xlane.f32.xlu0 %v2386_v14  ;;  %v1833_v61 = vand.u32 2147483647, %v1321_v4  ;;  %v1337_v14 = vadd.f32 %v8036_v17, %v8185_v40  ;;  %v2321_v38 = vmul.f32 %v8053_v24, %v1802_v29 }
 0x170   : > { %v587_v63 = vpop.xlane.xlu1 %586  ;;  %v1849_v6 = vand.u32 2147483647, %v1337_v14  ;;  %v1295_v14 = vadd.f32 %v8019_v7, %v8099_v28 }
 0x171   : > { %592 = vst.msk [vmem:[#allocation3 + $0x18] sm:$0xff] %vm12172_vm1, %v587_v63  ;;  %v2352_v63 = vmul.f32 %v8053_v24, %v1833_v61  ;;  %v1791_v61 = vand.u32 2147483647, %v1279_v30  ;;  %v1311_v30 = vadd.f32 %v8024_v9, %v8099_v28 }
 0x172   : > { %2926 = vadd.xlane.f32.xlu1 %v2355_v33  ;;  %2824 = vadd.xlane.f32.xlu0 %v2304_v35  ;;  %v1353_v33 = vadd.f32 %v8124_v48, %v8185_v40  ;;  %v1807_v37 = vand.u32 2147483647, %v1295_v14 }
 0x174   : > { %v1865_v56 = vand.u32 2147483647, %v1353_v33  ;;  %v2310_v33 = vmul.f32 %v8053_v24, %v1791_v61 }
 0x175   : > { %v583_v44 = vpop.xlane.xlu0 %582 }
 0x176   : > { %590 = vst.msk [vmem:[#allocation3 + $0x8] sm:$0xff] %vm12172_vm1, %v583_v44  ;;  %2958 = vadd.xlane.f32.xlu1 %v2371_v41  ;;  %2856 = vadd.xlane.f32.xlu0 %v2320_v43  ;;  %v2368_v41 = vmul.f32 %v8053_v24, %v1849_v6  ;;  %v1818_v43 = vand.u32 2147483647, %v1306_v8  ;;  %v1354_v6 = vadd.f32 %v8124_v48, %v8173_v15  ;;  %vm6904_vm1 = vcmask 1041409  }
 0x177   : > { %v2353_v8 = vmul.f32 %v8053_v24, %v1834_v45  ;;  %v1280_v45 = vadd.f32 %v8027_v10, %v8089_v0 }
 0x17a   : > { %2990 = vadd.xlane.f32.xlu1 %v2387_v46  ;;  %2888 = vadd.xlane.f32.xlu0 %v2336_v18  ;;  %v2337_v46 = vmul.f32 %v8053_v24, %v1818_v43  ;;  %v2384_v18 = vmul.f32 %v8053_v24, %v1865_v56  ;;  %v1866_v56 = vand.u32 2147483647, %v1354_v6 }
 0x17b   : > { %v8385_v22 = vpop.xlane.xlu1 %2812  ;;  %v8387_v23 = vpop.xlane.xlu0 %2844 }
 0x17c   : > { %v2385_v6 = vmul.f32 %v8053_v24, %v1866_v56  ;;  %v1359_v56 = vadd.f32 %v8124_v48, %v8099_v28 }
 0x17e   : > { %2826 = vadd.xlane.f32.xlu1 %v2305_v25  ;;  %2920 = vadd.xlane.f32.xlu0 %v2352_v63  ;;  %v1850_v63 = vand.u32 2147483647, %v1338_v12  ;;  %v2326_v12 = vmul.f32 %v8053_v24, %v1807_v37  ;;  %v1792_v37 = vand.u32 2147483647, %v1280_v45 }
 0x17f   : > { %v8395_v35 = vpop.xlane.xlu1 %2808  ;;  %v8397_v57 = vpop.xlane.xlu0 %2876 }
 0x180   : > { %v2369_v43 = vmul.f32 %v8053_v24, %v1850_v63  ;;  %v1343_v63 = vadd.f32 %v8036_v17, %v8099_v28  ;;  %v2311_v51 = vmul.f32 %v8053_v24, %v1792_v37 }
 0x182   : > { %2858 = vadd.xlane.f32.xlu1 %v2321_v38  ;;  %2952 = vadd.xlane.f32.xlu0 %v2368_v41  ;;  %v1855_v50 = vand.u32 2147483647, %v1343_v63  ;;  %v1871_v63 = vand.u32 2147483647, %v1359_v56 }
 0x183   : > { %v8405_v4 = vpop.xlane.xlu1 %2814  ;;  %v8407_v44 = vpop.xlane.xlu0 %2940 }
 0x186   : > { %2890 = vadd.xlane.f32.xlu1 %v2337_v46  ;;  %2984 = vadd.xlane.f32.xlu0 %v2384_v18  ;;  %v1823_v46 = vand.u32 2147483647, %v1311_v30  ;;  %v1327_v18 = vadd.f32 %v8084_v55, %v8099_v28 }
 0x187   : > { %v8415_v25 = vpop.xlane.xlu1 %2846  ;;  %v8417_v29 = vpop.xlane.xlu0 %2840 }
 0x188   : > { %v1839_v30 = vand.u32 2147483647, %v1327_v18 }
 0x18a   : > { %2922 = vadd.xlane.f32.xlu1 %v2353_v8  ;;  %2836 = vadd.xlane.f32.xlu0 %v2310_v33  ;;  %v1296_v8 = vadd.f32 %v8019_v7, %v8089_v0  ;;  %v2342_v33 = vmul.f32 %v8053_v24, %v1823_v46  ;;  %v2358_v58 = vmul.f32 %v8053_v24, %v1839_v30  ;;  %v12233_v46 = vlaneseq }
 0x18b   : > { %v8425_v38 = vpop.xlane.xlu1 %2878  ;;  %v8427_v41 = vpop.xlane.xlu0 %2872  ;;  %v2374_v30 = vmul.f32 %v8053_v24, %v1855_v50 }
 0x18c   : > { %v1808_v13 = vand.u32 2147483647, %v1296_v8  ;;  %v8456_v45 = vand.u32 127, %v12233_v46  ;;  %v1277_v46 = vadd.f32 %v8027_v10, %v8130_v53 }
 0x18e   : > { %2954 = vadd.xlane.f32.xlu1 %v2369_v43  ;;  %2868 = vadd.xlane.f32.xlu0 %v2326_v12  ;;  %v2327_v8 = vmul.f32 %v8053_v24, %v1808_v13  ;;  %v4350_v37 = vadd.s32 4294967288, %v8456_v45  ;;  %v4364_v13 = vadd.s32 4294967272, %v8456_v45  ;;  %v8491_v62 = vsub.s32 %v8456_v45, %v7942_v16 }
 0x18f   : > { %v8435_v61 = vpop.xlane.xlu1 %2910  ;;  %v8437_v14 = vpop.xlane.xlu0 %2904 }
 0x190   : > { %v8484_v27 = vsub.s32 %v4350_v37, %v7942_v16  ;;  %12236 = vst [vmem:[#allocation42_spill] sm:$0xff] %v8491_v62  ;;  %v1360_v37 = vadd.f32 %v8124_v48, %v8089_v0  ;;  %v4537_v0 = vrot.slane %v8427_v41, %v8491_v62  ;;  %v1341_v41 = vadd.f32 %v8036_v17, %v8130_v53 }
 0x192   : > { %2986 = vadd.xlane.f32.xlu1 %v2385_v6  ;;  %2900 = vadd.xlane.f32.xlu0 %v2342_v33  ;;  %v1824_v33 = vand.u32 2147483647, %v1312_v59  ;;  %12234 = vst [vmem:[#allocation40_spill] sm:$0xff] %v8484_v27 }
 0x193   : > { %v8445_v43 = vpop.xlane.xlu1 %2942  ;;  %v8447_v12 = vpop.xlane.xlu0 %2908 }
 0x194   : > { %v2343_v56 = vmul.f32 %v8053_v24, %v1824_v33  ;;  %v8494_v33 = vsub.s32 %v4364_v13, %v7942_v16  ;;  %v4458_v13 = vrot.slane %v8417_v29, %v8491_v62  ;;  %v1872_v29 = vand.u32 2147483647, %v1360_v37 }
 0x195   : > { %v1294_v37 = vadd.f32 %v8019_v7, %v8113_v42  ;;  %v1310_v7 = vadd.f32 %v8024_v9, %v8113_v42 }
 0x196   : > { %2838 = vadd.xlane.f32.xlu1 %v2311_v51  ;;  %2932 = vadd.xlane.f32.xlu0 %v2358_v58  ;;  %v12104_v51 = vmov 0   ;;  %v4357_v58 = vadd.s32 4294967280, %v8456_v45  ;;  %12237 = vst [vmem:[#allocation43_spill] sm:$0xff] %v8494_v33  ;;  %v4551_v54 = vrot.slane %v8425_v38, %v8494_v33  ;;  %v2309_v38 = vmul.f32 %v8053_v24, %v1790_v19 }
 0x197   : > { %v8458_v18 = vpop.xlane.xlu1 %2974  ;;  %v8460_v6 = vpop.xlane.xlu0 %2936  ;;  %7664 = vset.pattern.permute.xlu0 %v12104_v51  ;;  %7665 = vset.pattern.permute.xlu1 %v12104_v51  ;;  %v2390_v51 = vmul.f32 %v8053_v24, %v1871_v63  ;;  %v4630_v9 = vrot.slane %v8435_v61, %v8494_v33  ;;  %v1853_v19 = vand.u32 2147483647, %v1341_v41 }
 0x198   : > { %v4695_v61 = vrot.slane %v8460_v6, %v8491_v62 }
 0x19a   : > { %2870 = vadd.xlane.f32.xlu1 %v2327_v8  ;;  %2964 = vadd.xlane.f32.xlu0 %v2374_v30  ;;  %v1789_v8 = vand.u32 2147483647, %v1277_v46  ;;  %v8487_v30 = vsub.s32 %v4357_v58, %v7942_v16  ;;  %v1856_v46 = vand.u32 2147483647, %v1344_v31  ;;  %v1805_v58 = vand.u32 2147483647, %v1293_v32 }
 0x19b   : > { %v8473_v59 = vpop.xlane.xlu1 %3006  ;;  %v8475_v50 = vpop.xlane.xlu0 %2968  ;;  %v1325_v31 = vadd.f32 %v8084_v55, %v8130_v53  ;;  %v4472_v32 = vrot.slane %v8415_v25, %v8494_v33 }
 0x19c   : > { %12235 = vst [vmem:[#allocation41_spill] sm:$0xff] %v8487_v30  ;;  %v2308_v60 = vmul.f32 %v8053_v24, %v1789_v8  ;;  %v4467_v21 = vrot.slane %v8387_v23, %v8487_v30  ;;  %v2375_v8 = vmul.f32 %v8053_v24, %v1856_v46  ;;  %v1821_v23 = vand.u32 2147483647, %v1309_v2 }
 0x19d   : > { %v2324_v25 = vmul.f32 %v8053_v24, %v1805_v58  ;;  %v4704_v41 = vrot.slane %v8407_v44, %v8487_v30 }
 0x19e   : > { %2902 = vadd.xlane.f32.xlu1 %v2343_v56  ;;  %2996 = vadd.xlane.f32.xlu0 %v2390_v51  ;;  %v2359_v56 = vmul.f32 %v8053_v24, %v1840_v3 }
 0x19f   : > { %v2843_v63 = vpop.xlane.xlu1 %2842  ;;  %v8498_v34 = vpop.xlane.xlu0 %2972 }
 0x1a0   : > { %v4462_v51 = vrot.slane %v2843_v63, %v8484_v27 }
 0x1a2   : > { %v4463_v10 = vsel %vm4355_vm3, %v4462_v51, %v4458_v13  ;;  %2934 = vadd.xlane.f32.xlu1 %v2359_v56  ;;  %2832 = vadd.xlane.f32.xlu0 %v2308_v60  ;;  %v1837_v60 = vand.u32 2147483647, %v1325_v31  ;;  %v2340_v56 = vmul.f32 %v8053_v24, %v1821_v23 }
 0x1a3   : > { %v4468_v63 = vsel %vm4362_vm4, %v4467_v21, %v4463_v10  ;;  %v2875_v3 = vpop.xlane.xlu1 %2874  ;;  %v8517_v52 = vpop.xlane.xlu0 %3000  ;;  %v4546_v21 = vrot.slane %v8397_v57, %v8487_v30  ;;  %v2391_v57 = vmul.f32 %v8053_v24, %v1872_v29  ;;  %v1806_v29 = vand.u32 2147483647, %v1294_v37 }
 0x1a4   : > { %v4541_v49 = vrot.slane %v2875_v3, %v8484_v27  ;;  %v8525_v13 = vsel %vm4369_vm5, %v4472_v32, %v4468_v63  ;;  %v4625_v32 = vrot.slane %v8447_v12, %v8487_v30  ;;  %v2356_v10 = vmul.f32 %v8053_v24, %v1837_v60 }
 0x1a5   : > { %v1357_v63 = vadd.f32 %v8124_v48, %v8130_v53  ;;  %v4371_v3 = vadd.s32 4294967264, %v8456_v45 }
 0x1a6   : > { %v4542_v2 = vsel %vm4355_vm3, %v4541_v49, %v4537_v0  ;;  %2966 = vadd.xlane.f32.xlu1 %v2375_v8  ;;  %2864 = vadd.xlane.f32.xlu0 %v2324_v25  ;;  %v4616_v0 = vrot.slane %v8437_v14, %v8491_v62  ;;  %v4349_v8 = vrot.slane %v8395_v35, %v8491_v62  ;;  %v1822_v25 = vand.u32 2147483647, %v1310_v7 }
 0x1a7   : > { %v4547_v46 = vsel %vm4362_vm4, %v4546_v21, %v4542_v2  ;;  %v2907_v58 = vpop.xlane.xlu1 %2906  ;;  %v8537_v51 = vpop.xlane.xlu0 %3004  ;;  %v1326_v21 = vadd.f32 %v8084_v55, %v8113_v42  ;;  %v4361_v35 = vrot.slane %v8385_v22, %v8487_v30  ;;  %v4368_v2 = vrot.slane %v8405_v4, %v8494_v33  ;;  %v8580_v55 = vld [vmem:[%s12094_s8] ss:$0 sm:$0xff] }
 0x1a8   : > { %v4620_v49 = vrot.slane %v2907_v58, %v8484_v27  ;;  %v8548_v31 = vsel %vm4369_vm5, %v4551_v54, %v4547_v46  ;;  %v2325_v6 = vmul.f32 %v8580_v55, %v1806_v29  ;;  %v4709_v46 = vrot.slane %v8445_v43, %v8494_v33 }
 0x1a9   : > { %v1869_v4 = vand.u32 2147483647, %v1357_v63  ;;  %v4774_v43 = vrot.slane %v8475_v50, %v8491_v62  ;;  %v4783_v29 = vrot.slane %v8498_v34, %v8487_v30  ;;  %v8604_v63 = vsub.s32 %v4371_v3, %v7942_v16 }
 0x1aa   : > { %v4621_v14 = vsel %vm4355_vm3, %v4620_v49, %v4616_v0  ;;  %2998 = vadd.xlane.f32.xlu1 %v2391_v57  ;;  %2896 = vadd.xlane.f32.xlu0 %v2340_v56  ;;  %v2372_v0 = vmul.f32 %v8580_v55, %v1853_v19  ;;  %v1369_v49 = vadd.f32 %v8141_v5, %v8185_v40  ;;  %v1838_v19 = vand.u32 2147483647, %v1326_v21 }
 0x1ab   : > { %v4626_v12 = vsel %vm4362_vm4, %v4625_v32, %v4621_v14  ;;  %v2939_v24 = vpop.xlane.xlu1 %2938  ;;  %v2811_v23 = vpop.xlane.xlu0 %2810  ;;  %12238 = vst [vmem:[#allocation44_spill] sm:$0xff] %v8604_v63  ;;  %v2341_v50 = vmul.f32 %v8580_v55, %v1822_v25  ;;  %v2388_v34 = vmul.f32 %v8580_v55, %v1869_v4  ;;  %v1342_v3 = vadd.f32 %v8036_v17, %v8113_v42 }
 0x1ac   : > { %v4699_v60 = vrot.slane %v2939_v24, %v8484_v27  ;;  %v4354_v37 = vrot.slane %v2811_v23, %v8484_v27  ;;  %v8569_v54 = vsel %vm4369_vm5, %v4630_v9, %v4626_v12  ;;  %v4788_v9 = vrot.slane %v8458_v18, %v8494_v33 }
 0x1ad   : > { %v1881_v23 = vand.u32 2147483647, %v1369_v49  ;;  %v4853_v18 = vrot.slane %v8517_v52, %v8491_v62  ;;  %v1371_v25 = vadd.f32 %v8141_v5, %v8161_v47  ;;  %v4867_v17 = vrot.slane %v8473_v59, %v8494_v33  ;;  %v12247_v33 = vld [vmem:[#allocation39_spill] sm:$0xff] }
 0x1ae   : > { %v4700_v58 = vsel %vm4355_vm3, %v4699_v60, %v4695_v61  ;;  %v4356_v22 = vsel %vm4355_vm3, %v4354_v37, %v4349_v8  ;;  %2834 = vadd.xlane.f32.xlu1 %v2309_v38  ;;  %2928 = vadd.xlane.f32.xlu0 %v2356_v10  ;;  %v957_v60 = vcombine.high %v8109_v39, %v8109_v39 }
 0x1af   : > { %v4705_v57 = vsel %vm4362_vm4, %v4704_v41, %v4700_v58  ;;  %v4363_v44 = vsel %vm4362_vm4, %v4361_v35, %v4356_v22  ;;  %v2971_v56 = vpop.xlane.xlu1 %2970  ;;  %v8589_v7 = vpop.xlane.xlu0 %2820  ;;  %v4862_v37 = vrot.slane %v8537_v51, %v8487_v30  ;;  %v2357_v52 = vmul.f32 %v8580_v55, %v1838_v19 }
 0x1b0   : > { %v4778_v32 = vrot.slane %v2971_v56, %v8484_v27  ;;  %v4370_v38 = vsel %vm4369_vm5, %v4368_v2, %v4363_v44  ;;  %v8599_v10 = vsel %vm4369_vm5, %v4709_v46, %v4705_v57  ;;  %v2400_v39 = vmul.f32 %v8580_v55, %v1881_v23 }
 0x1b1   : > { %v1358_v51 = vadd.f32 %v8124_v48, %v8113_v42  ;;  %v1373_v59 = vadd.f32 %v8141_v5, %v8130_v53  ;;  %v1854_v58 = vand.u32 2147483647, %v1342_v3  ;;  %v1883_v22 = vand.u32 2147483647, %v1371_v25 }
 0x1b2   : > { %v4779_v14 = vsel %vm4355_vm3, %v4778_v32, %v4774_v43  ;;  %2866 = vadd.xlane.f32.xlu1 %v2325_v6  ;;  %2960 = vadd.xlane.f32.xlu0 %v2372_v0  ;;  %v8648_v44 = vrot.slane %v957_v60, %v7999_v1  ;;  %v1368_v49 = vadd.f32 %v8141_v5, %v8201_v36 }
 0x1b3   : > { %v4784_v8 = vsel %vm4362_vm4, %v4783_v29, %v4779_v14  ;;  %v3003_v12 = vpop.xlane.xlu1 %3002  ;;  %v8611_v24 = vpop.xlane.xlu0 %2852  ;;  %v1870_v0 = vand.u32 2147483647, %v1358_v51  ;;  %v2373_v43 = vmul.f32 %v8580_v55, %v1854_v58  ;;  %v2402_v32 = vmul.f32 %v8580_v55, %v1883_v22  ;;  %v12239_v58 = vld [vmem:[#allocation38_spill] sm:$0xff] }
 0x1b4   : > { %v4857_v61 = vrot.slane %v3003_v12, %v8484_v27  ;;  %v8622_v21 = vsel %vm4369_vm5, %v4788_v9, %v4784_v8  ;;  %v1885_v29 = vand.u32 2147483647, %v1373_v59  ;;  %v1370_v19 = vadd.f32 %v8141_v5, %v8173_v15 }
 0x1b5   : > { %v2389_v8 = vmul.f32 %v8580_v55, %v1870_v0  ;;  %v1377_v23 = vadd.f32 %v8648_v44, %v8039_v20  ;;  %v1381_v22 = vadd.f32 %v8648_v44, %v12239_v58 }
 0x1b6   : > { %v4858_v35 = vsel %vm4355_vm3, %v4857_v61, %v4853_v18  ;;  %2898 = vadd.xlane.f32.xlu1 %v2341_v50  ;;  %2992 = vadd.xlane.f32.xlu0 %v2388_v34  ;;  %v1880_v50 = vand.u32 2147483647, %v1368_v49  ;;  %v2404_v12 = vmul.f32 %v8580_v55, %v1885_v29  ;;  %v1882_v25 = vand.u32 2147483647, %v1370_v19 }
 0x1b7   : > { %v4863_v2 = vsel %vm4362_vm4, %v4862_v37, %v4858_v35  ;;  %v2817_v41 = vpop.xlane.xlu1 %2816  ;;  %v8633_v6 = vpop.xlane.xlu0 %2884  ;;  %v1889_v37 = vand.u32 2147483647, %v1377_v23  ;;  %v1379_v35 = vadd.f32 %v8648_v44, %v8030_v11  ;;  %v4385_v23 = vadd.s32 4294967248, %v8456_v45 }
 0x1b8   : > { %v4375_v46 = vrot.slane %v2817_v41, %v8604_v63  ;;  %v8642_v4 = vsel %vm4369_vm5, %v4867_v17, %v4863_v2  ;;  %v2399_v61 = vmul.f32 %v8580_v55, %v1880_v50  ;;  %v1372_v17 = vadd.f32 %v8141_v5, %v8149_v26 }
 0x1b9   : > { %v2401_v41 = vmul.f32 %v8580_v55, %v1882_v25  ;;  %v2408_v51 = vmul.f32 %v8580_v55, %v1889_v37  ;;  %v12242_v25 = vld [vmem:[#allocation31_spill] sm:$0xff] }
 0x1ba   : > { %v8645_v57 = vsel %vm12192_vm6, %v4375_v46, %v4370_v38  ;;  %2930 = vadd.xlane.f32.xlu1 %v2357_v52  ;;  %3016 = vadd.xlane.f32.xlu0 %v2400_v39  ;;  %v1375_v38 = vadd.f32 %v8141_v5, %v8099_v28  ;;  %v1374_v39 = vadd.f32 %v8141_v5, %v8113_v42  ;;  %v1884_v59 = vand.u32 2147483647, %v1372_v17 }
 0x1bb   : > { %v8650_v56 = vpop.xlane.xlu1 %2822  ;;  %v8652_v48 = vpop.xlane.xlu0 %2916  ;;  %v1891_v46 = vand.u32 2147483647, %v1379_v35  ;;  %v1385_v35 = vadd.f32 %v8648_v44, %v8185_v40 }
 0x1bc   : > { %v1887_v34 = vand.u32 2147483647, %v1375_v38  ;;  %v12241_v38 = vld [vmem:[#allocation36_spill] sm:$0xff]  ;;  %v2403_v19 = vmul.f32 %v8580_v55, %v1884_v59 }
 0x1bd   : > { %v1383_v50 = vadd.f32 %v8648_v44, %v12241_v38  ;;  %v1897_v30 = vand.u32 2147483647, %v1385_v35 }
 0x1be   : > { %2962 = vadd.xlane.f32.xlu1 %v2373_v43  ;;  %3020 = vadd.xlane.f32.xlu0 %v2402_v32  ;;  %v2406_v60 = vmul.f32 %v8580_v55, %v1887_v34  ;;  %v1886_v43 = vand.u32 2147483647, %v1374_v39  ;;  %v12240_v32 = vld [vmem:[#allocation27_spill] sm:$0xff]  ;;  %v4378_v34 = vadd.s32 4294967256, %v8456_v45 }
 0x1bf   : > { %v8660_v9 = vpop.xlane.xlu1 %2854  ;;  %v8662_v14 = vpop.xlane.xlu0 %2948  ;;  %v1376_v29 = vadd.f32 %v8141_v5, %v12240_v32  ;;  %v1895_v59 = vand.u32 2147483647, %v1383_v50 }
 0x1c0   : > { %v2405_v17 = vmul.f32 %v8580_v55, %v1886_v43  ;;  %v8710_v39 = vsub.s32 %v4378_v34, %v7942_v16 }
 0x1c2   : > { %2994 = vadd.xlane.f32.xlu1 %v2389_v8  ;;  %3024 = vadd.xlane.f32.xlu0 %v2404_v12  ;;  %v2410_v8 = vmul.f32 %v8580_v55, %v1891_v46  ;;  %v1893_v12 = vand.u32 2147483647, %v1381_v22  ;;  %12243 = vst [vmem:[#allocation45_spill] sm:$0xff] %v8710_v39  ;;  %v8713_v46 = vsub.s32 %v4385_v23, %v7942_v16 }
 0x1c3   : > { %v8670_v3 = vpop.xlane.xlu1 %2886  ;;  %v8672_v18 = vpop.xlane.xlu0 %2980 }
 0x1c4   : > { %12244 = vst [vmem:[#allocation46_spill] sm:$0xff] %v8713_v46 }
 0x1c6   : > { %3014 = vadd.xlane.f32.xlu1 %v2399_v61  ;;  %3028 = vadd.xlane.f32.xlu0 %v2406_v60  ;;  %v4392_v61 = vadd.s32 4294967240, %v8456_v45  ;;  %v1378_v60 = vadd.f32 %v8648_v44, %v12242_v25 }
 0x1c7   : > { %v8680_v52 = vpop.xlane.xlu1 %2918  ;;  %v8682_v2 = vpop.xlane.xlu0 %3012 }
 0x1c8   : > { %v8716_v22 = vsub.s32 %v4392_v61, %v7942_v16  ;;  %v2414_v61 = vmul.f32 %v8580_v55, %v1895_v59 }
 0x1ca   : > { %3018 = vadd.xlane.f32.xlu1 %v2401_v41  ;;  %3032 = vadd.xlane.f32.xlu0 %v2408_v51  ;;  %v2412_v41 = vmul.f32 %v8580_v55, %v1893_v12  ;;  %v1888_v51 = vand.u32 2147483647, %v1376_v29  ;;  %12245 = vst [vmem:[#allocation47_spill] sm:$0xff] %v8716_v22  ;;  %v12246_v12 = vld [vmem:[#allocation26_spill] sm:$0xff]  ;;  %v1387_v29 = vadd.f32 %v8648_v44, %v8161_v47 }
 0x1cb   : > { %v8690_v0 = vpop.xlane.xlu1 %2950  ;;  %v2849_v49 = vpop.xlane.xlu0 %2848  ;;  %v1380_v34 = vadd.f32 %v8648_v44, %v12246_v12  ;;  %v4396_v35 = vrot.slane %v8650_v56, %v8716_v22 }
 0x1cc   : > { %v2407_v23 = vmul.f32 %v8580_v55, %v1888_v51  ;;  %v1899_v16 = vand.u32 2147483647, %v1387_v29  ;;  %v4492_v29 = vrot.slane %v8660_v9, %v8716_v22 }
 0x1cd   : > { %v1892_v27 = vand.u32 2147483647, %v1380_v34 }
 0x1ce   : > { %3022 = vadd.xlane.f32.xlu1 %v2403_v19  ;;  %3036 = vadd.xlane.f32.xlu0 %v2410_v8  ;;  %v1890_v19 = vand.u32 2147483647, %v1378_v60  ;;  %v4389_v60 = vrot.slane %v8589_v7, %v8713_v46 }
 0x1cf   : > { %v8703_v5 = vpop.xlane.xlu1 %2982  ;;  %v2881_v37 = vpop.xlane.xlu0 %2880 }
 0x1d0   : > { %v2409_v7 = vmul.f32 %v8580_v55, %v1890_v19  ;;  %v4556_v19 = vrot.slane %v2881_v37, %v8604_v63  ;;  %v1384_v37 = vadd.f32 %v8648_v44, %v8201_v36 }
 0x1d2   : > { %3026 = vadd.xlane.f32.xlu1 %v2405_v17  ;;  %3040 = vadd.xlane.f32.xlu0 %v2412_v41  ;;  %v4477_v17 = vrot.slane %v2849_v49, %v8604_v63  ;;  %v2416_v49 = vmul.f32 %v8580_v55, %v1897_v30  ;;  %v12248_v30 = vld [vmem:[#allocation17_spill] sm:$0xff] }
 0x1d3   : > { %v2819_v43 = vpop.xlane.xlu1 %2818  ;;  %v8718_v8 = vpop.xlane.xlu0 %2912  ;;  %v8754_v34 = vrot.slane %v12248_v30, %v7999_v1 }
 0x1d4   : > { %v4382_v50 = vrot.slane %v2819_v43, %v8710_v39  ;;  %v1382_v43 = vadd.f32 %v8648_v44, %v12247_v33 }
 0x1d6   : > { %v4384_v41 = vsel %vm12174_vm7, %v4382_v50, %v8645_v57  ;;  %3030 = vadd.xlane.f32.xlu1 %v2407_v23  ;;  %3044 = vadd.xlane.f32.xlu0 %v2414_v61  ;;  %v1389_v57 = vadd.f32 %v8648_v44, %v8130_v53  ;;  %v4487_v23 = vrot.slane %v8611_v24, %v8713_v46 }
 0x1d7   : > { %v4391_v51 = vsel %vm12173_vm8, %v4389_v60, %v4384_v41  ;;  %v2851_v59 = vpop.xlane.xlu1 %2850  ;;  %v8737_v62 = vpop.xlane.xlu0 %2944  ;;  %v4478_v61 = vsel %vm12192_vm6, %v4477_v17, %v8525_v13  ;;  %v2411_v13 = vmul.f32 %v8580_v55, %v1892_v27  ;;  %v1391_v17 = vadd.f32 %v8648_v44, %v8099_v28 }
 0x1d8   : > { %v4482_v56 = vrot.slane %v2851_v59, %v8710_v39  ;;  %v8745_v50 = vsel %vm4397_vm9, %v4396_v35, %v4391_v51  ;;  %v1894_v35 = vand.u32 2147483647, %v1382_v43  ;;  %v2418_v59 = vmul.f32 %v8580_v55, %v1899_v16 }
 0x1d9   : > { %v4557_v27 = vsel %vm12192_vm6, %v4556_v19, %v8548_v31  ;;  %v1386_v16 = vadd.f32 %v8648_v44, %v8173_v15  ;;  %v1896_v19 = vand.u32 2147483647, %v1384_v37  ;;  %v4650_v37 = vrot.slane %v8680_v52, %v8716_v22 }
 0x1da   : > { %v4483_v60 = vsel %vm12174_vm7, %v4482_v56, %v4478_v61  ;;  %3034 = vadd.xlane.f32.xlu1 %v2409_v7  ;;  %3048 = vadd.xlane.f32.xlu0 %v2416_v49  ;;  %v1901_v7 = vand.u32 2147483647, %v1389_v57  ;;  %v4566_v49 = vrot.slane %v8633_v6, %v8713_v46  ;;  %v4635_v56 = vrot.slane %v8718_v8, %v8604_v63 }
 0x1db   : > { %v4488_v41 = vsel %vm12173_vm8, %v4487_v23, %v4483_v60  ;;  %v2883_v24 = vpop.xlane.xlu1 %2882  ;;  %v8760_v51 = vpop.xlane.xlu0 %2976  ;;  %v4571_v23 = vrot.slane %v8670_v3, %v8716_v22  ;;  %v2413_v31 = vmul.f32 %v8580_v55, %v1894_v35  ;;  %v1393_v8 = vadd.f32 %v8754_v34, %v8039_v20 }
 0x1dc   : > { %v4561_v9 = vrot.slane %v2883_v24, %v8710_v39  ;;  %v8770_v43 = vsel %vm4397_vm9, %v4492_v29, %v4488_v41  ;;  %v2420_v60 = vmul.f32 %v8580_v55, %v1901_v7  ;;  %v1903_v41 = vand.u32 2147483647, %v1391_v17 }
 0x1dd   : > { %v4714_v35 = vrot.slane %v8737_v62, %v8604_v63  ;;  %v1898_v17 = vand.u32 2147483647, %v1386_v16  ;;  %v1395_v62 = vadd.f32 %v8754_v34, %v8030_v11  ;;  %v2415_v52 = vmul.f32 %v8580_v55, %v1896_v19 }
 0x1de   : > { %v4562_v61 = vsel %vm12174_vm7, %v4561_v9, %v4557_v27  ;;  %3038 = vadd.xlane.f32.xlu1 %v2411_v13  ;;  %3052 = vadd.xlane.f32.xlu0 %v2418_v59  ;;  %v4645_v13 = vrot.slane %v8652_v48, %v8713_v46  ;;  %v4636_v9 = vsel %vm12192_vm6, %v4635_v56, %v8569_v54  ;;  %v1905_v48 = vand.u32 2147483647, %v1393_v8 }
 0x1df   : > { %v4567_v57 = vsel %vm12173_vm8, %v4566_v49, %v4562_v61  ;;  %v2915_v29 = vpop.xlane.xlu1 %2914  ;;  %v8784_v6 = vpop.xlane.xlu0 %3008  ;;  %v1388_v54 = vadd.f32 %v8648_v44, %v8149_v26  ;;  %v4724_v16 = vrot.slane %v8662_v14, %v8713_v46  ;;  %v2417_v19 = vmul.f32 %v8580_v55, %v1898_v17 }
 0x1e0   : > { %v4640_v3 = vrot.slane %v2915_v29, %v8710_v39  ;;  %v8792_v24 = vsel %vm4397_vm9, %v4571_v23, %v4567_v57  ;;  %v2422_v23 = vmul.f32 %v8580_v55, %v1903_v41  ;;  %v4715_v57 = vsel %vm12192_vm6, %v4714_v35, %v8599_v10 }
 0x1e1   : > { %v4793_v29 = vrot.slane %v8760_v51, %v8604_v63  ;;  %v2424_v14 = vmul.f32 %v8580_v55, %v1905_v48  ;;  %v1900_v10 = vand.u32 2147483647, %v1388_v54  ;;  %v4872_v17 = vrot.slane %v8784_v6, %v8604_v63 }
 0x1e2   : > { %v4641_v59 = vsel %vm12174_vm7, %v4640_v3, %v4636_v9  ;;  %3042 = vadd.xlane.f32.xlu1 %v2413_v31  ;;  %3056 = vadd.xlane.f32.xlu0 %v2420_v60  ;;  %v4729_v31 = vrot.slane %v8690_v0, %v8716_v22  ;;  %v1390_v0 = vadd.f32 %v8648_v44, %v8113_v42 }
 0x1e3   : > { %v4646_v7 = vsel %vm12173_vm8, %v4645_v13, %v4641_v59  ;;  %v2947_v49 = vpop.xlane.xlu1 %2946  ;;  %v8804_v27 = vpop.xlane.xlu0 %2828  ;;  %v1907_v13 = vand.u32 2147483647, %v1395_v62  ;;  %v1397_v9 = vadd.f32 %v8754_v34, %v12239_v58  ;;  %v4794_v59 = vsel %vm12192_vm6, %v4793_v29, %v8622_v21 }
 0x1e4   : > { %v4719_v56 = vrot.slane %v2947_v49, %v8710_v39  ;;  %v8814_v61 = vsel %vm4397_vm9, %v4650_v37, %v4646_v7  ;;  %v4803_v37 = vrot.slane %v8672_v18, %v8713_v46  ;;  %v4808_v7 = vrot.slane %v8703_v5, %v8716_v22 }
 0x1e5   : > { %v1392_v48 = vadd.f32 %v8648_v44, %v12240_v32  ;;  %v2419_v21 = vmul.f32 %v8580_v55, %v1900_v10  ;;  %v1399_v6 = vadd.f32 %v8754_v34, %v12241_v38  ;;  %v4882_v44 = vrot.slane %v8682_v2, %v8713_v46  ;;  %v873_v46 = vld [vmem:[#allocation3] sm:$0xff] }
 0x1e6   : > { %v4720_v8 = vsel %vm12174_vm7, %v4719_v56, %v4715_v57  ;;  %3046 = vadd.xlane.f32.xlu1 %v2415_v52  ;;  %3060 = vadd.xlane.f32.xlu0 %v2422_v23  ;;  %v2426_v56 = vmul.f32 %v8580_v55, %v1907_v13  ;;  %v1902_v52 = vand.u32 2147483647, %v1390_v0  ;;  %v1909_v23 = vand.u32 2147483647, %v1397_v9 }
 0x1e7   : > { %v4725_v3 = vsel %vm12173_vm8, %v4724_v16, %v4720_v8  ;;  %v2979_v60 = vpop.xlane.xlu1 %2978  ;;  %v8827_v41 = vpop.xlane.xlu0 %2860  ;;  %v4873_v57 = vsel %vm12192_vm6, %v4872_v17, %v8642_v4  ;;  %v1911_v10 = vand.u32 2147483647, %v1399_v6  ;;  %v1396_v9 = vadd.f32 %v8754_v34, %v12246_v12 }
 0x1e8   : > { %v4798_v51 = vrot.slane %v2979_v60, %v8710_v39  ;;  %v8836_v35 = vsel %vm4397_vm9, %v4729_v31, %v4725_v3  ;;  %v1401_v3 = vadd.f32 %v8754_v34, %v8185_v40  ;;  %v2421_v2 = vmul.f32 %v8580_v55, %v1902_v52 }
 0x1e9   : > { %v2428_v4 = vmul.f32 %v8580_v55, %v1909_v23  ;;  %v1398_v6 = vadd.f32 %v8754_v34, %v12247_v33 }
 0x1ea   : > { %v4799_v49 = vsel %vm12174_vm7, %v4798_v51, %v4794_v59  ;;  %3050 = vadd.xlane.f32.xlu1 %v2417_v19  ;;  %3064 = vadd.xlane.f32.xlu0 %v2424_v14  ;;  %v1394_v19 = vadd.f32 %v8754_v34, %v12242_v25  ;;  %v1904_v14 = vand.u32 2147483647, %v1392_v48  ;;  %v2430_v59 = vmul.f32 %v8580_v55, %v1911_v10 }
 0x1eb   : > { %v4804_v54 = vsel %vm12173_vm8, %v4803_v37, %v4799_v49  ;;  %v3011_v62 = vpop.xlane.xlu1 %3010  ;;  %v8850_v18 = vpop.xlane.xlu0 %2892  ;;  %v1913_v17 = vand.u32 2147483647, %v1401_v3  ;;  %v1400_v3 = vadd.f32 %v8754_v34, %v8201_v36 }
 0x1ec   : > { %v4877_v5 = vrot.slane %v3011_v62, %v8710_v39  ;;  %v8858_v16 = vsel %vm4397_vm9, %v4808_v7, %v4804_v54  ;;  %v1906_v0 = vand.u32 2147483647, %v1394_v19  ;;  %v2423_v37 = vmul.f32 %v8580_v55, %v1904_v14 }
 0x1ed   : > { %v1403_v7 = vadd.f32 %v8754_v34, %v8161_v47  ;;  %v1908_v62 = vand.u32 2147483647, %v1396_v9  ;;  %v1402_v9 = vadd.f32 %v8754_v34, %v8173_v15  ;;  %v1003_v15 = vcombine.high %v12248_v30, %v12248_v30 }
 0x1ee   : > { %v4878_v29 = vsel %vm12174_vm7, %v4877_v5, %v4873_v57  ;;  %3054 = vadd.xlane.f32.xlu1 %v2419_v21  ;;  %3068 = vadd.xlane.f32.xlu0 %v2426_v56  ;;  %v2425_v54 = vmul.f32 %v8580_v55, %v1906_v0  ;;  %v2432_v21 = vmul.f32 %v8580_v55, %v1913_v17  ;;  %v1912_v0 = vand.u32 2147483647, %v1400_v3 }
 0x1ef   : > { %v8865_v31 = vpop.xlane.xlu1 %2830  ;;  %v8867_v8 = vpop.xlane.xlu0 %2924  ;;  %v8874_v60 = vsel %vm12173_vm8, %v4882_v44, %v4878_v29  ;;  %v1915_v56 = vand.u32 2147483647, %v1403_v7  ;;  %v1405_v5 = vadd.f32 %v8754_v34, %v8130_v53  ;;  %v2427_v44 = vmul.f32 %v8580_v55, %v1908_v62 }
 0x1f0   : > { %12249 = vst [vmem:[#allocation17_spill] sm:$0xff] %v8874_v60  ;;  %v1910_v29 = vand.u32 2147483647, %v1398_v6  ;;  %v2431_v17 = vmul.f32 %v8580_v55, %v1912_v0  ;;  %v1914_v7 = vand.u32 2147483647, %v1402_v9  ;;  %v1408_v3 = vadd.f32 %v8754_v34, %v12240_v32 }
 0x1f1   : > { %v2434_v57 = vmul.f32 %v8580_v55, %v1915_v56  ;;  %v1917_v19 = vand.u32 2147483647, %v1405_v5  ;;  %v1406_v5 = vadd.f32 %v8754_v34, %v8113_v42  ;;  %v4406_v32 = vadd.s32 4294967224, %v8456_v45  ;;  %v875_v42 = vld [vmem:[#allocation3 + $0x10] sm:$0xff] }
 0x1f2   : > { %3058 = vadd.xlane.f32.xlu1 %v2421_v2  ;;  %3072 = vadd.xlane.f32.xlu0 %v2428_v4  ;;  %v2429_v14 = vmul.f32 %v8580_v55, %v1910_v29  ;;  %v2433_v56 = vmul.f32 %v8580_v55, %v1914_v7  ;;  %v1920_v9 = vand.u32 2147483647, %v1408_v3  ;;  %vm12175_vm8 = vcmask 1042434  }
 0x1f3   : > { %v8878_v13 = vpop.xlane.xlu1 %2862  ;;  %v8880_v51 = vpop.xlane.xlu0 %2956  ;;  %v2436_v10 = vmul.f32 %v8580_v55, %v1917_v19  ;;  %v1918_v19 = vand.u32 2147483647, %v1406_v5  ;;  %vm12176_vm7 = vcmask 1043459  }
 0x1f5   : > { %v2437_v0 = vmul.f32 %v8580_v55, %v1918_v19 }
 0x1f6   : > { %3062 = vadd.xlane.f32.xlu1 %v2423_v37  ;;  %3076 = vadd.xlane.f32.xlu0 %v2430_v59 }
 0x1f7   : > { %v8888_v49 = vpop.xlane.xlu1 %2894  ;;  %v8890_v48 = vpop.xlane.xlu0 %2988 }
 0x1fa   : > { %3066 = vadd.xlane.f32.xlu1 %v2425_v54  ;;  %3080 = vadd.xlane.f32.xlu0 %v2432_v21  ;;  %v1404_v54 = vadd.f32 %v8754_v34, %v8149_v26 }
 0x1fb   : > { %v8898_v52 = vpop.xlane.xlu1 %2926  ;;  %v8900_v23 = vpop.xlane.xlu0 %2824 }
 0x1fc   : > { %v1916_v6 = vand.u32 2147483647, %v1404_v54  ;;  %v2439_v54 = vmul.f32 %v8580_v55, %v1920_v9  ;;  %v12252_v9 = vld [vmem:[#allocation22_spill] sm:$0xff] }
 0x1fd   : > { %v8961_v39 = vrot.slane %v12252_v9, %v7999_v1 }
 0x1fe   : > { %3070 = vadd.xlane.f32.xlu1 %v2427_v44  ;;  %3084 = vadd.xlane.f32.xlu0 %v2434_v57  ;;  %v2435_v29 = vmul.f32 %v8580_v55, %v1916_v6 }
 0x1ff   : > { %v8906_v2 = vpop.xlane.xlu1 %2958  ;;  %v8908_v4 = vpop.xlane.xlu0 %2856  ;;  %12253 = vst [vmem:[#allocation50_spill] sm:$0xff] %v8961_v39  ;;  %v1409_v26 = vadd.f32 %v8961_v39, %v8039_v20  ;;  %v1413_v33 = vadd.f32 %v8961_v39, %v12239_v58  ;;  %v1415_v22 = vadd.f32 %v8961_v39, %v12241_v38 }
 0x201   : > { %v1921_v12 = vand.u32 2147483647, %v1409_v26  ;;  %v9006_v26 = vadd.f32 %v8961_v39, %v8161_v47 }
 0x202   : > { %3074 = vadd.xlane.f32.xlu1 %v2429_v14  ;;  %3088 = vadd.xlane.f32.xlu0 %v2436_v10 }
 0x203   : > { %v8914_v37 = vpop.xlane.xlu1 %2990  ;;  %v8916_v59 = vpop.xlane.xlu0 %2888  ;;  %v2440_v47 = vmul.f32 %v8580_v55, %v1921_v12 }
 0x204   : > { %12250 = vst [vmem:[#allocation48_spill] sm:$0xff] %v8914_v37  ;;  %v1925_v37 = vand.u32 2147483647, %v1413_v33 }
 0x206   : > { %3078 = vadd.xlane.f32.xlu1 %v2431_v17  ;;  %v9034_v12 = vmul.f32 %v8580_v55, %v1925_v37 }
 0x207   : > { %v8921_v62 = vpop.xlane.xlu1 %2826  ;;  %v8923_v21 = vpop.xlane.xlu0 %2920 }
 0x20a   : > { %3082 = vadd.xlane.f32.xlu1 %v2433_v56  ;;  %v8945_v56 = vpop.f32.mrf.mxu0 }
 0x20b   : > { %v8928_v44 = vpop.xlane.xlu1 %2858  ;;  %v8930_v57 = vpop.xlane.xlu0 %2952  ;;  %12251 = vst [vmem:[#allocation49_spill] sm:$0xff] %v8945_v56  ;;  %v1407_v56 = vadd.f32 %v8754_v34, %v8099_v28  ;;  %v1411_v34 = vadd.f32 %v8961_v39, %v8030_v11  ;;  %v12256_v28 = vld [vmem:[#allocation10_spill] sm:$0xff] }
 0x20c   : > { %v7581_v6 = vpop.f32.mrf.mxu0  ;;  %v8989_v30 = vsub.s32 %v4406_v32, %v12256_v28 }
 0x20d   : > { %v1919_v60 = vand.u32 2147483647, %v1407_v56  ;;  %v4413_v56 = vadd.s32 4294967216, %v8456_v45  ;;  %v1923_v32 = vand.u32 2147483647, %v1411_v34  ;;  %v874_v34 = vld [vmem:[#allocation3 + $0x8] sm:$0xff] }
 0x20e   : > { %3086 = vadd.xlane.f32.xlu1 %v2435_v29  ;;  %v4410_v33 = vrot.slane %v8921_v62, %v8989_v30  ;;  %v4434_v62 = vadd.s32 4294967192, %v8456_v45  ;;  %v4502_v37 = vrot.slane %v8928_v44, %v8989_v30 }
 0x20f   : > { %v8935_v14 = vpop.xlane.xlu1 %2890  ;;  %v8937_v10 = vpop.xlane.xlu0 %2984  ;;  %v2438_v38 = vmul.f32 %v8580_v55, %v1919_v60  ;;  %v9014_v60 = vadd.f32 %v8961_v39, %v12242_v25 }
 0x210   : > { %v9067_v44 = vsub.s32 %v4434_v62, %v12256_v28 }
 0x211   : > { %12258 = vst [vmem:[#allocation53_spill] sm:$0xff] %v9014_v60 }
 0x212   : > { %3090 = vadd.xlane.f32.xlu1 %v2437_v0  ;;  %12261 = vst [vmem:[#allocation56_spill] sm:$0xff] %v9067_v44 }
 0x213   : > { %v8940_v17 = vpop.xlane.xlu1 %2922  ;;  %v8942_v7 = vpop.xlane.xlu0 %2836 }
 0x216   : > { %3094 = vadd.xlane.f32.xlu1 %v2439_v54 }
 0x217   : > { %v8947_v5 = vpop.xlane.xlu1 %2954  ;;  %v8949_v29 = vpop.xlane.xlu0 %2868 }
 0x218   : > { %879 = vperm.xlu0 %7664, %v873_v46   ;;  %v4399_v46 = vadd.s32 4294967232, %v8456_v45 }
 0x21a   : > { %v8986_v20 = vsub.s32 %v4399_v46, %v12256_v28  ;;  %v9002_v46 = vadd.f32 %v8961_v39, %v8185_v40  ;;  %v9021_v40 = vsub.s32 %v4413_v56, %v12256_v28  ;;  %v9031_v39 = vmul.f32 %v8580_v55, %v1923_v32 }
 0x21b   : > { %v8951_v63 = vpop.xlane.xlu1 %2986  ;;  %v8953_v19 = vpop.xlane.xlu0 %2900 }
 0x21c   : > { %v4497_v60 = vrot.slane %v8908_v4, %v8986_v20 }
 0x21f   : > { %v8955_v3 = vpop.xlane.xlu1 %2838  ;;  %v8957_v0 = vpop.xlane.xlu0 %2932 }
 0x223   : > { %v8963_v54 = vpop.xlane.xlu1 %2870  ;;  %v8965_v6 = vpop.xlane.xlu0 %2964 }
 0x224   : > { %12254 = vst [vmem:[#allocation51_spill] sm:$0xff] %v8965_v6  ;;  %v1927_v6 = vand.u32 2147483647, %v1415_v22  ;;  %v4441_v22 = vadd.s32 4294967184, %v8456_v45 }
 0x226   : > { %v9037_v56 = vmul.f32 %v8580_v55, %v1927_v6  ;;  %v9053_v6 = vsub.s32 %v4441_v22, %v12256_v28  ;;  %v4581_v22 = vrot.slane %v8935_v14, %v8989_v30  ;;  %v4655_v14 = vrot.slane %v8923_v21, %v8986_v20 }
 0x227   : > { %889 = vperm.xlu1 %7665, %v875_v42   ;;  %v8975_v9 = vpop.xlane.xlu1 %2902  ;;  %v8977_v36 = vpop.xlane.xlu0 %2996  ;;  %v876_v42 = vld [vmem:[#allocation3 + $0x18] sm:$0xff] }
 0x228   : > { %12255 = vst [vmem:[#allocation52_spill] sm:$0xff] %v8977_v36  ;;  %v8992_v36 = vrot.slane %v1003_v15, %v7999_v1  ;;  %v4420_v15 = vadd.s32 4294967208, %v8456_v45  ;;  %v4427_v1 = vadd.s32 4294967200, %v8456_v45  ;;  %12259 = vst [vmem:[#allocation54_spill] sm:$0xff] %v9053_v6 }
 0x22a   : > { %12257 = vst [vmem:[#allocation10_spill] sm:$0xff] %v8992_v36  ;;  %v9040_v53 = vsub.s32 %v4420_v15, %v12256_v28  ;;  %v4417_v15 = vrot.slane %v8804_v27, %v9021_v40  ;;  %v4498_v27 = vsel %vm4404_vm10, %v4497_v60, %v8770_v43  ;;  %v4586_v43 = vrot.slane %v8850_v18, %v9021_v40 }
 0x22b   : > { %894 = vperm.xlu1 %7665, %v876_v42   ;;  %v8995_v11 = vpop.xlane.xlu1 %2934  ;;  %v8997_v58 = vpop.xlane.xlu0 %2832  ;;  %v4403_v42 = vrot.slane %v8900_v23, %v8986_v20  ;;  %v4448_v23 = vadd.s32 4294967176, %v8456_v45  ;;  %v9047_v45 = vsub.s32 %v4427_v1, %v12256_v28  ;;  %v4503_v62 = vsel %vm4411_vm11, %v4502_v37, %v4498_v27 }
 0x22c   : > { %v4665_v60 = vrot.slane %v8867_v8, %v9021_v40  ;;  %v4656_v27 = vsel %vm4404_vm10, %v4655_v14, %v8814_v61 }
 0x22f   : > { %v9024_v36 = vpop.xlane.xlu1 %2966  ;;  %884 = vperm.xlu1 %7665, %v874_v34   ;;  %v9026_v25 = vpop.xlane.xlu0 %2864  ;;  %v4405_v34 = vsel %vm4404_vm10, %v4403_v42, %v8745_v50  ;;  %v9058_v50 = vsub.s32 %v4448_v23, %v12256_v28  ;;  %v4576_v42 = vrot.slane %v8916_v59, %v8986_v20  ;;  %v4431_v23 = vrot.slane %v8997_v58, %v9047_v45 }
 0x230   : > { %v4412_v32 = vsel %vm4411_vm11, %v4410_v33, %v4405_v34  ;;  %v4507_v59 = vrot.slane %v8827_v41, %v9021_v40  ;;  %v4424_v28 = vrot.slane %v8865_v31, %v9040_v53  ;;  %v4734_v58 = vrot.slane %v8930_v57, %v8986_v20 }
 0x231   : > { %12260 = vst [vmem:[#allocation55_spill] sm:$0xff] %v9058_v50  ;;  %v4419_v33 = vsel %vm4418_vm12, %v4417_v15, %v4412_v32  ;;  %v4577_v31 = vsel %vm4404_vm10, %v4576_v42, %v8792_v24  ;;  %v4660_v32 = vrot.slane %v8940_v17, %v8989_v30  ;;  %v4512_v15 = vrot.slane %v8878_v13, %v9040_v53 }
 0x232   : > { %v4426_v18 = vsel %vm4425_vm13, %v4424_v28, %v4419_v33  ;;  %v4508_v37 = vsel %vm4418_vm12, %v4507_v59, %v4503_v62  ;;  %v4582_v21 = vsel %vm4411_vm11, %v4581_v22, %v4577_v31  ;;  %v4591_v24 = vrot.slane %v8888_v49, %v9040_v53 }
 0x233   : > { %v9060_v4 = vpop.xlane.xlu1 %2998  ;;  %v9062_v1 = vpop.xlane.xlu0 %2896  ;;  %v4433_v57 = vsel %vm4432_vm14, %v4431_v23, %v4426_v18  ;;  %v4670_v17 = vrot.slane %v8898_v52, %v9040_v53  ;;  %v4735_v33 = vsel %vm4404_vm10, %v4734_v58, %v8836_v35  ;;  %v4739_v13 = vrot.slane %v8947_v5, %v8989_v30 }
 0x234   : > { %v4587_v52 = vsel %vm4418_vm12, %v4586_v43, %v4582_v21  ;;  %v4661_v23 = vsel %vm4411_vm11, %v4660_v32, %v4656_v27  ;;  %v4513_v59 = vsel %vm4425_vm13, %v4512_v15, %v4508_v37  ;;  %v4527_v35 = vrot.slane %v8949_v29, %v9053_v6 }
 0x235   : > { %v4596_v5 = vrot.slane %v9062_v1, %v9047_v45  ;;  %v4813_v28 = vrot.slane %v8937_v10, %v8986_v20  ;;  %v4452_v62 = vrot.slane %v8955_v3, %v9058_v50  ;;  %v4532_v43 = vrot.slane %v8963_v54, %v9058_v50 }
 0x236   : > { %v4666_v29 = vsel %vm4418_vm12, %v4665_v60, %v4661_v23  ;;  %v4740_v58 = vsel %vm4411_vm11, %v4739_v13, %v4735_v33  ;;  %v4818_v3 = vrot.slane %v8951_v63, %v8989_v30  ;;  %v4606_v18 = vrot.slane %v8953_v19, %v9053_v6 }
 0x237   : > { %v2835_v34 = vpop.xlane.xlu1 %2834  ;;  %3092 = vadd.xlane.f32.xlu0 %v2438_v38  ;;  %v9089_v41 = vpop.xlane.xlu0 %2928  ;;  %v4517_v38 = vrot.slane %v9026_v25, %v9047_v45  ;;  %v4445_v25 = vrot.slane %v8942_v7, %v9053_v6  ;;  %v4744_v21 = vrot.slane %v8880_v51, %v9021_v40  ;;  %v4611_v63 = vrot.slane %v8975_v9, %v9058_v50 }
 0x238   : > { %v4438_v8 = vrot.slane %v2835_v34, %v9067_v44  ;;  %v4592_v34 = vsel %vm4425_vm13, %v4591_v24, %v4587_v52  ;;  %v4675_v37 = vrot.slane %v9089_v41, %v9047_v45  ;;  %v4671_v19 = vsel %vm4425_vm13, %v4670_v17, %v4666_v29 }
 0x239   : > { %v4518_v7 = vsel %vm4432_vm14, %v4517_v38, %v4513_v59  ;;  %v4814_v38 = vsel %vm4404_vm10, %v4813_v28, %v8858_v16  ;;  %v4745_v51 = vsel %vm4418_vm12, %v4744_v21, %v4740_v58  ;;  %v4685_v16 = vrot.slane %v8957_v0, %v9053_v6  ;;  %v12269_v21 = vld [vmem:[#allocation52_spill] sm:$0xff] }
 0x23a   : > { %v4440_v42 = vsel %vm4439_vm15, %v4438_v8, %v4433_v57  ;;  %v4597_v8 = vsel %vm4432_vm14, %v4596_v5, %v4592_v34  ;;  %v4819_v9 = vsel %vm4411_vm11, %v4818_v3, %v4814_v38  ;;  %v4676_v17 = vsel %vm4432_vm14, %v4675_v37, %v4671_v19  ;;  %v12268_v37 = vld [vmem:[#allocation26_spill] sm:$0xff]  ;;  %v12270_v38 = vld [vmem:[#allocation28_spill] sm:$0xff] }
 0x23b   : > { %v2867_v22 = vpop.xlane.xlu1 %2866  ;;  %3096 = vadd.xlane.f32.xlu0 %v2440_v47  ;;  %v9117_v49 = vpop.xlane.xlu0 %2960  ;;  %v4447_v47 = vsel %vm4446_vm0, %v4445_v25, %v4440_v42  ;;  %v4823_v25 = vrot.slane %v8890_v48, %v9021_v40  ;;  %v4749_v13 = vrot.slane %v8906_v2, %v9040_v53  ;;  %v1931_v48 = vand.u32 2147483647, %v9006_v26  ;;  %v12264_v2 = vld [vmem:[#allocation50_spill] sm:$0xff] }
 0x23c   : > { %v4522_v61 = vrot.slane %v2867_v22, %v9067_v44  ;;  %v4454_v54 = vsel %vm4453_vm2, %v4452_v62, %v4447_v47  ;;  %v4754_v33 = vrot.slane %v9117_v49, %v9047_v45  ;;  %v4690_v22 = vrot.slane %v8995_v11, %v9058_v50 }
 0x23d   : > { %v12262_v49 = vand.u32 2147483647, %v9002_v46  ;;  %v4824_v11 = vsel %vm4418_vm12, %v4823_v25, %v4819_v9  ;;  %v4750_v5 = vsel %vm4425_vm13, %v4749_v13, %v4745_v51  ;;  %v4769_v58 = vrot.slane %v9024_v36, %v9058_v50  ;;  %v12272_v25 = vld [vmem:[#allocation39_spill] sm:$0xff] }
 0x23e   : > { %v4523_v14 = vsel %vm4439_vm15, %v4522_v61, %v4518_v7  ;;  %v4755_v46 = vsel %vm4432_vm14, %v4754_v33, %v4750_v5  ;;  %v12271_v33 = vld [vmem:[#allocation47_spill] sm:$0xff]  ;;  %v1414_v13 = vadd.f32 %v12264_v2, %v12272_v25 }
 0x23f   : > { %v4528_v1 = vsel %vm4446_vm0, %v4527_v35, %v4523_v14  ;;  %v2899_v31 = vpop.xlane.xlu1 %2898  ;;  %3100 = vadd.xlane.f32.xlu0 %v9031_v39  ;;  %v9141_v10 = vpop.xlane.xlu0 %2992  ;;  %v2448_v61 = vmul.f32 %v8580_v55, %v12262_v49  ;;  %v12263_v35 = vld [vmem:[#allocation30_spill] sm:$0xff]  ;;  %v12266_v14 = vld [vmem:[#allocation48_spill] sm:$0xff] }
 0x240   : > { %v4533_v32 = vsel %vm4453_vm2, %v4532_v43, %v4528_v1  ;;  %v4601_v60 = vrot.slane %v2899_v31, %v9067_v44  ;;  %v1421_v7 = vadd.f32 %v12264_v2, %v12263_v35  ;;  %v4833_v43 = vrot.slane %v9141_v10, %v9047_v45  ;;  %v12267_v10 = vld [vmem:[#allocation53_spill] sm:$0xff] }
 0x241   : > { %v6905_v39 = vsel %vm6904_vm1, %v4533_v32, %v4454_v54  ;;  %v4828_v29 = vrot.slane %v12266_v14, %v9040_v53  ;;  %v2450_v54 = vmul.f32 %v8580_v55, %v1931_v48  ;;  %v1922_v32 = vand.u32 2147483647, %v12267_v10  ;;  %v12275_v48 = vld [vmem:[#allocation17_spill] sm:$0xff] }
 0x242   : > { %v4602_v57 = vsel %vm4439_vm15, %v4601_v60, %v4597_v8  ;;  %v1933_v60 = vand.u32 2147483647, %v1421_v7  ;;  %v1423_v55 = vadd.f32 %v12264_v2, %v12270_v38 }
 0x243   : > { %v4607_v15 = vsel %vm4446_vm0, %v4606_v18, %v4602_v57  ;;  %v2931_v41 = vpop.xlane.xlu1 %2930  ;;  %3104 = vadd.xlane.f32.xlu0 %v9034_v12  ;;  %v9164_v24 = vpop.xlane.xlu0 %3016  ;;  %v4829_v18 = vsel %vm4425_vm13, %v4828_v29, %v4824_v11 }
 0x244   : > { %v4612_v42 = vsel %vm4453_vm2, %v4611_v63, %v4607_v15  ;;  %v4680_v27 = vrot.slane %v2931_v41, %v9067_v44  ;;  %v4843_v63 = vrot.slane %v12269_v21, %v9053_v6  ;;  %v4834_v57 = vsel %vm4432_vm14, %v4833_v43, %v4829_v18  ;;  %v12277_v43 = vld [vmem:[#allocation24_spill] sm:$0xff]  ;;  %v12278_v18 = vld [vmem:[#allocation34_spill] sm:$0xff] }
 0x245   : > { %v6907_v12 = vsel %vm12175_vm8, %v4612_v42, %v6905_v39  ;;  %vm12179_vm8 = vcmask 1044484   ;;  %v1412_v39 = vadd.f32 %v12264_v2, %v12268_v37  ;;  %v4848_v15 = vrot.slane %v9060_v4, %v9058_v50 }
 0x246   : > { %v4681_v52 = vsel %vm4439_vm15, %v4680_v27, %v4676_v17  ;;  %v9233_v27 = vld [vmem:[%s12094_s8] ss:$0 sm:$0xff]  ;;  %v4892_v11 = vrot.slane %v9164_v24, %v8986_v20 }
 0x247   : > { %v4686_v0 = vsel %vm4446_vm0, %v4685_v16, %v4681_v52  ;;  %v2963_v23 = vpop.xlane.xlu1 %2962  ;;  %3108 = vadd.xlane.f32.xlu0 %v9037_v56  ;;  %v9185_v59 = vpop.xlane.xlu0 %3020  ;;  %v12265_v56 = vld [vmem:[#allocation51_spill] sm:$0xff]  ;;  %v2441_v16 = vmul.f32 %v9233_v27, %v1922_v32  ;;  %v1935_v52 = vand.u32 2147483647, %v1423_v55 }
 0x248   : > { %v4691_v47 = vsel %vm4453_vm2, %v4690_v22, %v4686_v0  ;;  %v4759_v28 = vrot.slane %v2963_v23, %v9067_v44  ;;  %v4764_v62 = vrot.slane %v12265_v56, %v9053_v6  ;;  %v1924_v22 = vand.u32 2147483647, %v1412_v39  ;;  %v12273_v0 = vld [vmem:[#allocation25_spill] sm:$0xff]  ;;  %v12274_v23 = vld [vmem:[#allocation10_spill] sm:$0xff] }
 0x249   : > { %v6909_v26 = vsel %vm12176_vm7, %v4691_v47, %v6907_v12  ;;  %vm12177_vm7 = vcmask 1045509   ;;  %v2452_v12 = vmul.f32 %v9233_v27, %v1933_v60  ;;  %v1425_v49 = vadd.f32 %v12274_v23, %v12273_v0 }
 0x24a   : > { %v4760_v34 = vsel %vm4439_vm15, %v4759_v28, %v4755_v46  ;;  %v1926_v56 = vand.u32 2147483647, %v1414_v13  ;;  %v2443_v29 = vmul.f32 %v9233_v27, %v1924_v22  ;;  %v2454_v24 = vmul.f32 %v9233_v27, %v1935_v52  ;;  %v12281_v22 = vld [vmem:[#allocation36_spill] sm:$0xff] }
 0x24b   : > { %v4765_v1 = vsel %vm4446_vm0, %v4764_v62, %v4760_v34  ;;  %v2995_v31 = vpop.xlane.xlu1 %2994  ;;  %3112 = vadd.xlane.f32.xlu0 %v2448_v61  ;;  %v9209_v3 = vpop.xlane.xlu0 %3024  ;;  %v12276_v62 = vld [vmem:[#allocation37_spill] sm:$0xff] }
 0x24c   : > { %v4770_v8 = vsel %vm4453_vm2, %v4769_v58, %v4765_v1  ;;  %v4838_v36 = vrot.slane %v2995_v31, %v9067_v44  ;;  %v1416_v46 = vadd.f32 %v12264_v2, %v12276_v62  ;;  %v1937_v58 = vand.u32 2147483647, %v1425_v49 }
 0x24d   : > { %v6911_v19 = vsel %vm12179_vm8, %v4770_v8, %v6909_v26  ;;  %v1427_v26 = vadd.f32 %v12274_v23, %v12277_v43  ;;  %v4902_v1 = vrot.slane %v9185_v59, %v9021_v40  ;;  %v2445_v32 = vmul.f32 %v9233_v27, %v1926_v56 }
 0x24e   : > { %v4839_v41 = vsel %vm4439_vm15, %v4838_v36, %v4834_v57  ;;  %v1928_v60 = vand.u32 2147483647, %v1416_v46  ;;  %v1418_v8 = vadd.f32 %v12264_v2, %v12278_v18  ;;  %v2456_v39 = vmul.f32 %v9233_v27, %v1937_v58 }
 0x24f   : > { %v4844_v51 = vsel %vm4446_vm0, %v4843_v63, %v4839_v41  ;;  %v3015_v9 = vpop.xlane.xlu1 %3014  ;;  %3116 = vadd.xlane.f32.xlu0 %v2450_v54  ;;  %v9228_v42 = vpop.xlane.xlu0 %3028  ;;  %v1939_v21 = vand.u32 2147483647, %v1427_v26  ;;  %v12279_v63 = vld [vmem:[#allocation38_spill] sm:$0xff]  ;;  %v4912_v55 = vrot.slane %v9209_v3, %v9047_v45  ;;  %v1431_v3 = vadd.f32 %v12274_v23, %v12281_v22 }
 0x250   : > { %v4849_v17 = vsel %vm4453_vm2, %v4848_v15, %v4844_v51  ;;  %v4887_v4 = vrot.slane %v3015_v9, %v12271_v33  ;;  %v1429_v59 = vadd.f32 %v12274_v23, %v12279_v63  ;;  %v2447_v51 = vmul.f32 %v9233_v27, %v1928_v60 }
 0x251   : > { %v9244_v61 = vsel %vm12177_vm7, %v4849_v17, %v6911_v19  ;;  %v1930_v9 = vand.u32 2147483647, %v1418_v8  ;;  %v4922_v49 = vrot.slane %v9228_v42, %v9053_v6  ;;  %vm12178_vm7 = vcmask 1046534   ;;  %v12283_v42 = vld [vmem:[#allocation35_spill] sm:$0xff] }
 0x252   : > { %v4888_v7 = vsel %vm4397_vm9, %v4887_v4, %v12275_v48  ;;  %v1941_v13 = vand.u32 2147483647, %v1429_v59  ;;  %vm12299_vm8 = vcmask 458112  }
 0x253   : > { %v3019_v5 = vpop.xlane.xlu1 %3018  ;;  %3098 = vadd.xlane.f32.xlu1 %v2441_v16  ;;  %3120 = vadd.xlane.f32.xlu0 %v2452_v12  ;;  %v9250_v47 = vpop.xlane.xlu0 %3032  ;;  %v4893_v14 = vsel %vm4404_vm10, %v4892_v11, %v4888_v7  ;;  %v12280_v16 = vld [vmem:[#allocation32_spill] sm:$0xff]  ;;  %v2458_v12 = vmul.f32 %v9233_v27, %v1939_v21  ;;  %v12282_v11 = vld [vmem:[#allocation29_spill] sm:$0xff]  ;;  %v2449_v56 = vmul.f32 %v9233_v27, %v1930_v9 }
 0x254   : > { %v4897_v28 = vrot.slane %v3019_v5, %v8989_v30  ;;  %v1420_v17 = vadd.f32 %v12264_v2, %v12280_v16  ;;  %v1422_v5 = vadd.f32 %v12264_v2, %v12282_v11  ;;  %v12285_v21 = vld [vmem:[#allocation33_spill] sm:$0xff] }
 0x255   : > { %v1435_v59 = vadd.f32 %v12274_v23, %v12285_v21 }
 0x256   : > { %v4898_v34 = vsel %vm4411_vm11, %v4897_v28, %v4893_v14  ;;  %v1932_v46 = vand.u32 2147483647, %v1420_v17  ;;  %v2460_v14 = vmul.f32 %v9233_v27, %v1941_v13  ;;  %v12287_v17 = vld [vmem:[#allocation31_spill] sm:$0xff] }
 0x257   : > { %v3023_v31 = vpop.xlane.xlu1 %3022  ;;  %3102 = vadd.xlane.f32.xlu1 %v2443_v29  ;;  %3124 = vadd.xlane.f32.xlu0 %v2454_v24  ;;  %v9263_v54 = vpop.xlane.xlu0 %3036  ;;  %v4903_v36 = vsel %vm4418_vm12, %v4902_v1, %v4898_v34  ;;  %v1943_v29 = vand.u32 2147483647, %v1431_v3  ;;  %v1433_v24 = vadd.f32 %v12274_v23, %v12283_v42  ;;  %v1947_v9 = vand.u32 2147483647, %v1435_v59  ;;  %v12288_v3 = vld [vmem:[#allocation21_spill] sm:$0xff] }
 0x258   : > { %v4907_v10 = vrot.slane %v3023_v31, %v9040_v53  ;;  %v2451_v8 = vmul.f32 %v9233_v27, %v1932_v46 }
 0x25a   : > { %v4908_v57 = vsel %vm4425_vm13, %v4907_v10, %v4903_v36  ;;  %v1934_v10 = vand.u32 2147483647, %v1422_v5  ;;  %v2462_v36 = vmul.f32 %v9233_v27, %v1943_v29 }
 0x25b   : > { %v3027_v19 = vpop.xlane.xlu1 %3026  ;;  %3106 = vadd.xlane.f32.xlu1 %v2445_v32  ;;  %3128 = vadd.xlane.f32.xlu0 %v2456_v39  ;;  %v9276_v15 = vpop.xlane.xlu0 %3040  ;;  %v4913_v4 = vsel %vm4432_vm14, %v4912_v55, %v4908_v57  ;;  %v12284_v32 = vld [vmem:[#allocation27_spill] sm:$0xff]  ;;  %v1945_v39 = vand.u32 2147483647, %v1433_v24  ;;  %v1430_v24 = vadd.f32 %v12274_v23, %v12272_v25 }
 0x25c   : > { %v4917_v41 = vrot.slane %v3027_v19, %v9067_v44  ;;  %v1424_v60 = vadd.f32 %v12264_v2, %v12284_v32  ;;  %v12286_v19 = vld [vmem:[#allocation22_spill] sm:$0xff] }
 0x25d   : > { %v2464_v2 = vmul.f32 %v9233_v27, %v1945_v39 }
 0x25e   : > { %v4918_v52 = vsel %vm4439_vm15, %v4917_v41, %v4913_v4  ;;  %v2453_v41 = vmul.f32 %v9233_v27, %v1934_v10  ;;  %v1426_v4 = vadd.f32 %v12274_v23, %v12287_v17 }
 0x25f   : > { %v3031_v48 = vpop.xlane.xlu1 %3030  ;;  %3110 = vadd.xlane.f32.xlu1 %v2447_v51  ;;  %3132 = vadd.xlane.f32.xlu0 %v2458_v12  ;;  %v9289_v7 = vpop.xlane.xlu0 %3044  ;;  %v4923_v26 = vsel %vm4446_vm0, %v4922_v49, %v4918_v52  ;;  %v1936_v51 = vand.u32 2147483647, %v1424_v60  ;;  %v1437_v12 = vadd.f32 %v12274_v23, %v12263_v35 }
 0x260   : > { %v4927_v28 = vrot.slane %v3031_v48, %v9058_v50  ;;  %v1428_v48 = vadd.f32 %v12274_v23, %v12268_v37 }
 0x261   : > { %v2455_v49 = vmul.f32 %v9233_v27, %v1936_v51  ;;  %v1949_v46 = vand.u32 2147483647, %v1437_v12  ;;  %v1942_v51 = vand.u32 2147483647, %v1430_v24  ;;  %v1434_v24 = vadd.f32 %v12274_v23, %v12278_v18 }
 0x262   : > { %v4928_v58 = vsel %vm4453_vm2, %v4927_v28, %v4923_v26  ;;  %v2466_v28 = vmul.f32 %v9233_v27, %v1947_v9  ;;  %v1439_v26 = vadd.f32 %v12274_v23, %v12270_v38  ;;  %v1940_v29 = vand.u32 2147483647, %v1428_v48  ;;  %v12291_v48 = vld [vmem:[#allocation43_spill] sm:$0xff] }
 0x263   : > { %v3035_v34 = vpop.xlane.xlu1 %3034  ;;  %3114 = vadd.xlane.f32.xlu1 %v2449_v56  ;;  %3136 = vadd.xlane.f32.xlu0 %v2460_v14  ;;  %v9300_v1 = vpop.xlane.xlu0 %3048  ;;  %v9304_v31 = vsel %vm12178_vm7, %v4928_v58, %v9244_v61  ;;  %v1005_v61 = vcombine.high %v12286_v19, %v12286_v19  ;;  %v1938_v56 = vand.u32 2147483647, %v1426_v4  ;;  %v2468_v10 = vmul.f32 %v9233_v27, %v1949_v46 }
 0x264   : > { %v1951_v60 = vand.u32 2147483647, %v1439_v26  ;;  %v2459_v9 = vmul.f32 %v9233_v27, %v1940_v29  ;;  %v2461_v26 = vmul.f32 %v9233_v27, %v1942_v51  ;;  %vm12296_vm7 = vcmask 392512  }
 0x265   : > { %v9325_v52 = vrot.slane %v1005_v61, %v12288_v3  ;;  %v2457_v58 = vmul.f32 %v9233_v27, %v1938_v56  ;;  %v12290_v61 = vld [vmem:[#allocation42_spill] sm:$0xff]  ;;  %v12292_v56 = vld [vmem:[#allocation41_spill] sm:$0xff] }
 0x266   : > { %v2470_v4 = vmul.f32 %v9233_v27, %v1951_v60  ;;  %v4941_v46 = vrot.slane %v9263_v54, %v12292_v56 }
 0x267   : > { %v3039_v57 = vpop.xlane.xlu1 %3038  ;;  %3118 = vadd.xlane.f32.xlu1 %v2451_v8  ;;  %3140 = vadd.xlane.f32.xlu0 %v2462_v36  ;;  %v9312_v55 = vpop.xlane.xlu0 %3052  ;;  %v1441_v8 = vadd.f32 %v9325_v52, %v12273_v0  ;;  %v12289_v36 = vld [vmem:[#allocation40_spill] sm:$0xff] }
 0x268   : > { %v4936_v39 = vrot.slane %v3035_v34, %v12289_v36  ;;  %v1443_v34 = vadd.f32 %v9325_v52, %v12277_v43 }
 0x269   : > { %v1953_v12 = vand.u32 2147483647, %v1441_v8 }
 0x26a   : > { %v1955_v8 = vand.u32 2147483647, %v1443_v34 }
 0x26b   : > { %3122 = vadd.xlane.f32.xlu1 %v2453_v41  ;;  %3144 = vadd.xlane.f32.xlu0 %v2464_v2  ;;  %v9322_v13 = vpop.xlane.xlu0 %3056  ;;  %v3043_v5 = vpop.xlane.xlu1 %3042  ;;  %v4932_v41 = vrot.slane %v9250_v47, %v12290_v61  ;;  %v1432_v2 = vadd.f32 %v12274_v23, %v12276_v62  ;;  %v2472_v60 = vmul.f32 %v9233_v27, %v1953_v12 }
 0x26c   : > { %v1436_v12 = vadd.f32 %v12274_v23, %v12280_v16 }
 0x26d   : > { %v1944_v29 = vand.u32 2147483647, %v1432_v2 }
 0x26f   : > { %3126 = vadd.xlane.f32.xlu1 %v2455_v49  ;;  %3148 = vadd.xlane.f32.xlu0 %v2466_v28  ;;  %v9333_v14 = vpop.xlane.xlu0 %3060  ;;  %v3047_v59 = vpop.xlane.xlu1 %3046  ;;  %v4937_v49 = vsel %vm4355_vm3, %v4936_v39, %v4932_v41  ;;  %v4946_v28 = vrot.slane %v3039_v57, %v12291_v48  ;;  %v1445_v57 = vadd.f32 %v9325_v52, %v12279_v63  ;;  %v12293_v39 = vld [vmem:[#allocation45_spill] sm:$0xff] }
 0x270   : > { %v4956_v41 = vrot.slane %v3043_v5, %v12293_v39  ;;  %v1447_v5 = vadd.f32 %v9325_v52, %v12281_v22 }
 0x273   : > { %3130 = vadd.xlane.f32.xlu1 %v2457_v58  ;;  %3152 = vadd.xlane.f32.xlu0 %v2468_v10  ;;  %v9342_v19 = vpop.xlane.xlu0 %3064  ;;  %v4942_v58 = vsel %vm4362_vm4, %v4941_v46, %v4937_v49  ;;  %v3051_v10 = vpop.xlane.xlu1 %3050  ;;  %v1946_v49 = vand.u32 2147483647, %v1434_v24  ;;  %v2474_v46 = vmul.f32 %v9233_v27, %v1955_v8  ;;  %v1438_v8 = vadd.f32 %v12274_v23, %v12282_v11 }
 0x274   : > { %v4947_v54 = vsel %vm4369_vm5, %v4946_v28, %v4942_v58  ;;  %v1957_v28 = vand.u32 2147483647, %v1445_v57  ;;  %v12297_v58 = vld [vmem:[#allocation46_spill] sm:$0xff]  ;;  %v1449_v57 = vadd.f32 %v9325_v52, %v12283_v42 }
 0x277   : > { %3134 = vadd.xlane.f32.xlu1 %v2459_v9  ;;  %3156 = vadd.xlane.f32.xlu0 %v2470_v4  ;;  %v9356_v47 = vpop.xlane.xlu0 %3068  ;;  %v12294_v9 = vld [vmem:[#allocation44_spill] sm:$0xff]  ;;  %v2463_v4 = vmul.f32 %v9233_v27, %v1944_v29  ;;  %v3055_v29 = vpop.xlane.xlu1 %3054 }
 0x278   : > { %v4951_v51 = vrot.slane %v9276_v15, %v12294_v9 }
 0x27a   : > { %v4952_v34 = vsel %vm12192_vm6, %v4951_v51, %v4947_v54  ;;  %v1959_v51 = vand.u32 2147483647, %v1447_v5 }
 0x27b   : > { %3138 = vadd.xlane.f32.xlu1 %v2461_v26  ;;  %3160 = vadd.xlane.f32.xlu0 %v2472_v60  ;;  %v9369_v2 = vpop.xlane.xlu0 %3072  ;;  %v4957_v15 = vsel %vm12296_vm7, %v4956_v41, %v4952_v34  ;;  %v4966_v26 = vrot.slane %v3047_v59, %v12271_v33  ;;  %v4961_v60 = vrot.slane %v9289_v7, %v12297_v58  ;;  %v3059_v5 = vpop.xlane.xlu1 %3058  ;;  %vm12191_vm7 = vcmask 1047559  }
 0x27c   : > { %12295 = vst [vmem:[#allocation50_spill] sm:$0xff] %v9369_v2  ;;  %v1948_v2 = vand.u32 2147483647, %v1436_v12  ;;  %v2465_v41 = vmul.f32 %v9233_v27, %v1946_v49  ;;  %v2476_v59 = vmul.f32 %v9233_v27, %v1957_v28  ;;  %v4971_v12 = vrot.slane %v9300_v1, %v8986_v20 }
 0x27d   : > { %v4962_v54 = vsel %vm12299_vm8, %v4961_v60, %v4957_v15  ;;  %v1440_v49 = vadd.f32 %v12274_v23, %v12284_v32  ;;  %v2478_v15 = vmul.f32 %v9233_v27, %v1959_v51  ;;  %v4986_v60 = vrot.slane %v3055_v29, %v9040_v53 }
 0x27e   : > { %v4967_v7 = vsel %vm4397_vm9, %v4966_v26, %v4962_v54  ;;  %v1961_v26 = vand.u32 2147483647, %v1449_v57  ;;  %v1442_v54 = vadd.f32 %v9325_v52, %v12287_v17  ;;  %v1453_v29 = vadd.f32 %v9325_v52, %v12263_v35 }
 0x27f   : > { %3142 = vadd.xlane.f32.xlu1 %v2463_v4  ;;  %3164 = vadd.xlane.f32.xlu0 %v2474_v46  ;;  %v9382_v24 = vpop.xlane.xlu0 %3076  ;;  %v4976_v4 = vrot.slane %v3051_v10, %v8989_v30  ;;  %v2467_v46 = vmul.f32 %v9233_v27, %v1948_v2  ;;  %v4972_v28 = vsel %vm4404_vm10, %v4971_v12, %v4967_v7  ;;  %v12300_v12 = vld [vmem:[#allocation20_spill] sm:$0xff]  ;;  %vm12313_vm8 = vcmask 392512  }
 0x280   : > { %12298 = vst [vmem:[#allocation51_spill] sm:$0xff] %v9382_v24  ;;  %v1950_v24 = vand.u32 2147483647, %v1438_v8  ;;  %v1451_v10 = vadd.f32 %v9325_v52, %v12285_v21  ;;  %v4981_v2 = vrot.slane %v9312_v55, %v9021_v40  ;;  %v1952_v8 = vand.u32 2147483647, %v1440_v49 }
 0x281   : > { %v4977_v1 = vsel %vm4411_vm11, %v4976_v4, %v4972_v28  ;;  %v4996_v7 = vrot.slane %v3059_v5, %v9067_v44  ;;  %v3063_v4 = vpop.xlane.xlu1 %3062  ;;  %v1954_v28 = vand.u32 2147483647, %v1442_v54 }
 0x282   : > { %v2469_v23 = vmul.f32 %v9233_v27, %v1950_v24  ;;  %v4982_v57 = vsel %vm4418_vm12, %v4981_v2, %v4977_v1  ;;  %v1963_v51 = vand.u32 2147483647, %v1451_v10  ;;  %v4991_v24 = vrot.slane %v9322_v13, %v9047_v45 }
 0x283   : > { %3146 = vadd.xlane.f32.xlu1 %v2465_v41  ;;  %3168 = vadd.xlane.f32.xlu0 %v2476_v59  ;;  %v9395_v34 = vpop.xlane.xlu0 %3080  ;;  %v2480_v59 = vmul.f32 %v9233_v27, %v1961_v26  ;;  %v4987_v55 = vsel %vm4425_vm13, %v4986_v60, %v4982_v57  ;;  %v2471_v49 = vmul.f32 %v9233_v27, %v1952_v8  ;;  %v1965_v10 = vand.u32 2147483647, %v1453_v29  ;;  %v12302_v8 = vld [vmem:[#allocation49_spill] sm:$0xff] }
 0x284   : > { %v4992_v26 = vsel %vm4432_vm14, %v4991_v24, %v4987_v55  ;;  %v2482_v5 = vmul.f32 %v9233_v27, %v1963_v51  ;;  %v1455_v13 = vadd.f32 %v9325_v52, %v12270_v38  ;;  %v5006_v60 = vrot.slane %v3063_v4, %v9058_v50 }
 0x285   : > { %v4997_v1 = vsel %vm4439_vm15, %v4996_v7, %v4992_v26  ;;  %v5001_v2 = vrot.slane %v9333_v14, %v9053_v6  ;;  %v9440_v54 = vrot.slane %v12302_v8, %v12288_v3  ;;  %v2473_v55 = vmul.f32 %v9233_v27, %v1954_v28 }
 0x286   : > { %v2484_v14 = vmul.f32 %v9233_v27, %v1965_v10  ;;  %v1967_v7 = vand.u32 2147483647, %v1455_v13  ;;  %v1448_v26 = vadd.f32 %v9325_v52, %v12276_v62 }
 0x287   : > { %3150 = vadd.xlane.f32.xlu1 %v2467_v46  ;;  %3172 = vadd.xlane.f32.xlu0 %v2478_v15  ;;  %v9412_v41 = vpop.xlane.xlu0 %3084  ;;  %v9423_v46 = vrot.slane %v12300_v12, %v12288_v3  ;;  %v1444_v15 = vadd.f32 %v9325_v52, %v12268_v37  ;;  %12303 = vst [vmem:[#allocation53_spill] sm:$0xff] %v9440_v54 }
 0x288   : > { %v5002_v29 = vsel %vm4446_vm0, %v5001_v2, %v4997_v1  ;;  %v2486_v10 = vmul.f32 %v9233_v27, %v1967_v7  ;;  %v1960_v2 = vand.u32 2147483647, %v1448_v26 }
 0x289   : > { %v1956_v57 = vand.u32 2147483647, %v1444_v15  ;;  %v1457_v51 = vadd.f32 %v9423_v46, %v12273_v0  ;;  %v5007_v24 = vsel %vm4453_vm2, %v5006_v60, %v5002_v29  ;;  %v1465_v26 = vadd.f32 %v9423_v46, %v12283_v42 }
 0x28a   : > { %v6917_v28 = vsel %vm12191_vm7, %v5007_v24, %v9304_v31  ;;  %v1461_v31 = vadd.f32 %v9423_v46, %v12279_v63  ;;  %vm12314_vm7 = vmmov %vm12313_vm8 }
 0x28b   : > { %3154 = vadd.xlane.f32.xlu1 %v2469_v23  ;;  %3176 = vadd.xlane.f32.xlu0 %v2480_v59  ;;  %v9436_v23 = vpop.xlane.xlu0 %3088  ;;  %v1446_v59 = vadd.f32 %v9325_v52, %v12272_v25  ;;  %v2475_v15 = vmul.f32 %v9233_v27, %v1956_v57  ;;  %v1969_v1 = vand.u32 2147483647, %v1457_v51  ;;  %v2479_v51 = vmul.f32 %v9233_v27, %v1960_v2 }
 0x28c   : > { %12301 = vst [vmem:[#allocation48_spill] sm:$0xff] %v9436_v23  ;;  %v1973_v24 = vand.u32 2147483647, %v1461_v31  ;;  %v1467_v31 = vadd.f32 %v9423_v46, %v12285_v21 }
 0x28d   : > { %v1958_v13 = vand.u32 2147483647, %v1446_v59  ;;  %v2488_v29 = vmul.f32 %v9233_v27, %v1969_v1  ;;  %v9467_v59 = vpop.xlane.xlu1 %3066 }
 0x28f   : > { %3158 = vadd.xlane.f32.xlu1 %v2471_v49  ;;  %3180 = vadd.xlane.f32.xlu0 %v2482_v5  ;;  %v1459_v5 = vadd.f32 %v9423_v46, %v12277_v43  ;;  %v2477_v57 = vmul.f32 %v9233_v27, %v1958_v13 }
 0x291   : > { %v1971_v8 = vand.u32 2147483647, %v1459_v5  ;;  %v9481_v1 = vpop.xlane.xlu1 %3070 }
 0x293   : > { %3162 = vadd.xlane.f32.xlu1 %v2473_v55  ;;  %3184 = vadd.xlane.f32.xlu0 %v2484_v14  ;;  %v880_v4 = vpop.permute.xlu0 %879  ;;  %v1450_v55 = vadd.f32 %v9325_v52, %v12278_v18  ;;  %v2490_v14 = vmul.f32 %v9233_v27, %v1971_v8  ;;  %v1456_v8 = vadd.f32 %v9325_v52, %v12284_v32 }
 0x294   : > { %v901_v49 = vadd.f32 %v9440_v54, %v880_v4  ;;  %v1452_v4 = vadd.f32 %v9325_v52, %v12280_v16 }
 0x295   : > { %v1962_v7 = vand.u32 2147483647, %v1450_v55  ;;  %v1977_v55 = vand.u32 2147483647, %v1465_v26 }
 0x296   : > { %v9459_v60 = vadd.f32 %v6917_v28, %v901_v49  ;;  %v1463_v49 = vadd.f32 %v9423_v46, %v12281_v22  ;;  %v2492_v28 = vmul.f32 %v9233_v27, %v1973_v24 }
 0x297   : > { %3166 = vadd.xlane.f32.xlu1 %v2475_v15  ;;  %3188 = vadd.xlane.f32.xlu0 %v2486_v10  ;;  %v1454_v15 = vadd.f32 %v9325_v52, %v12282_v11  ;;  %v2481_v5 = vmul.f32 %v9233_v27, %v1962_v7  ;;  %v1964_v10 = vand.u32 2147483647, %v1452_v4  ;;  %v1968_v7 = vand.u32 2147483647, %v1456_v8 }
 0x298   : > { %12304 = vst [vmem:[#allocation26_spill] sm:$0xff] %v9459_v60  ;;  %v1975_v13 = vand.u32 2147483647, %v1463_v49  ;;  %v2496_v24 = vmul.f32 %v9233_v27, %v1977_v55  ;;  %v1979_v4 = vand.u32 2147483647, %v1467_v31  ;;  %v1458_v52 = vadd.f32 %v9423_v46, %v12287_v17 }
 0x299   : > { %v1966_v2 = vand.u32 2147483647, %v1454_v15  ;;  %v1469_v49 = vadd.f32 %v9423_v46, %v12263_v35  ;;  %v12305_v15 = vld [vmem:[#allocation23_spill] sm:$0xff] }
 0x29a   : > { %v9499_v26 = vrot.slane %v12305_v15, %v12288_v3 }
 0x29b   : > { %3170 = vadd.xlane.f32.xlu1 %v2477_v57  ;;  %3192 = vadd.xlane.f32.xlu0 %v2488_v29  ;;  %v2483_v57 = vmul.f32 %v9233_v27, %v1964_v10  ;;  %v2494_v29 = vmul.f32 %v9233_v27, %v1975_v13  ;;  %v2487_v10 = vmul.f32 %v9233_v27, %v1968_v7  ;;  %v1981_v8 = vand.u32 2147483647, %v1469_v49 }
 0x29c   : > { %v2498_v13 = vmul.f32 %v9233_v27, %v1979_v4  ;;  %v1473_v7 = vadd.f32 %v9499_v26, %v12273_v0  ;;  %v1464_v49 = vadd.f32 %v9423_v46, %v12276_v62  ;;  %v1477_v60 = vadd.f32 %v9499_v26, %v12279_v63 }
 0x29d   : > { %v1478_v23 = vadd.f32 %v9499_v26, %v12272_v25  ;;  %v1482_v44 = vadd.f32 %v9499_v26, %v12278_v18 }
 0x29f   : > { %3174 = vadd.xlane.f32.xlu1 %v2479_v51  ;;  %3196 = vadd.xlane.f32.xlu0 %v2490_v14  ;;  %v9489_v51 = vpop.xlane.xlu1 %3074  ;;  %v2485_v14 = vmul.f32 %v9233_v27, %v1966_v2  ;;  %v1970_v2 = vand.u32 2147483647, %v1458_v52 }
 0x2a1   : > { %v2489_v31 = vmul.f32 %v9233_v27, %v1970_v2  ;;  %v1976_v2 = vand.u32 2147483647, %v1464_v49 }
 0x2a3   : > { %3178 = vadd.xlane.f32.xlu1 %v2481_v5  ;;  %3200 = vadd.xlane.f32.xlu0 %v2492_v28  ;;  %v1460_v5 = vadd.f32 %v9423_v46, %v12268_v37  ;;  %v1471_v28 = vadd.f32 %v9423_v46, %v12270_v38 }
 0x2a5   : > { %v1983_v55 = vand.u32 2147483647, %v1471_v28 }
 0x2a7   : > { %3182 = vadd.xlane.f32.xlu1 %v2483_v57  ;;  %3204 = vadd.xlane.f32.xlu0 %v2494_v29  ;;  %v9507_v57 = vpop.xlane.xlu1 %3078  ;;  %v1972_v29 = vand.u32 2147483647, %v1460_v5  ;;  %v2502_v5 = vmul.f32 %v9233_v27, %v1983_v55 }
 0x2a9   : > { %v2491_v52 = vmul.f32 %v9233_v27, %v1972_v29 }
 0x2ab   : > { %3186 = vadd.xlane.f32.xlu1 %v2485_v14  ;;  %3208 = vadd.xlane.f32.xlu0 %v2496_v24  ;;  %v2500_v14 = vmul.f32 %v9233_v27, %v1981_v8  ;;  %v1462_v24 = vadd.f32 %v9423_v46, %v12272_v25  ;;  %v9515_v4 = vpop.xlane.xlu1 %3082  ;;  %v1466_v8 = vadd.f32 %v9423_v46, %v12278_v18 }
 0x2ad   : > { %v1974_v28 = vand.u32 2147483647, %v1462_v24  ;;  %v1978_v24 = vand.u32 2147483647, %v1466_v8 }
 0x2af   : > { %3190 = vadd.xlane.f32.xlu1 %v2487_v10  ;;  %3212 = vadd.xlane.f32.xlu0 %v2498_v13  ;;  %v1985_v10 = vand.u32 2147483647, %v1473_v7  ;;  %v1475_v13 = vadd.f32 %v9499_v26, %v12277_v43  ;;  %v9529_v55 = vpop.xlane.xlu1 %3086  ;;  %v1468_v7 = vadd.f32 %v9423_v46, %v12280_v16 }
 0x2b1   : > { %v2504_v29 = vmul.f32 %v9233_v27, %v1985_v10  ;;  %v1980_v8 = vand.u32 2147483647, %v1468_v7 }
 0x2b3   : > { %3194 = vadd.xlane.f32.xlu1 %v2489_v31  ;;  %3216 = vadd.xlane.f32.xlu0 %v2500_v14  ;;  %v2493_v31 = vmul.f32 %v9233_v27, %v1974_v28  ;;  %v1987_v14 = vand.u32 2147483647, %v1475_v13  ;;  %v1479_v28 = vadd.f32 %v9499_v26, %v12281_v22  ;;  %v9537_v10 = vpop.xlane.xlu1 %3090 }
 0x2b4   : > { %12306 = vst [vmem:[#allocation52_spill] sm:$0xff] %v9537_v10 }
 0x2b5   : > { %v2506_v49 = vmul.f32 %v9233_v27, %v1987_v14  ;;  %v1991_v54 = vand.u32 2147483647, %v1479_v28  ;;  %v1483_v28 = vadd.f32 %v9499_v26, %v12285_v21 }
 0x2b7   : > { %3198 = vadd.xlane.f32.xlu1 %v2491_v52  ;;  %3220 = vadd.xlane.f32.xlu0 %v2502_v5  ;;  %v2495_v52 = vmul.f32 %v9233_v27, %v1976_v2  ;;  %v1989_v5 = vand.u32 2147483647, %v1477_v60  ;;  %v1470_v2 = vadd.f32 %v9423_v46, %v12282_v11  ;;  %v1481_v60 = vadd.f32 %v9499_v26, %v12283_v42  ;;  %v9555_v50 = vpop.xlane.xlu1 %3094 }
 0x2b8   : > { %12308 = vst [vmem:[#allocation39_spill] sm:$0xff] %v9555_v50  ;;  %v1476_v50 = vadd.f32 %v9499_v26, %v12268_v37 }
 0x2b9   : > { %v1982_v7 = vand.u32 2147483647, %v1470_v2 }
 0x2bb   : > { %3202 = vadd.xlane.f32.xlu1 %v2493_v31  ;;  %3224 = vadd.xlane.f32.xlu0 %v2504_v29  ;;  %v2497_v31 = vmul.f32 %v9233_v27, %v1978_v24  ;;  %v2508_v29 = vmul.f32 %v9233_v27, %v1989_v5  ;;  %v2510_v24 = vmul.f32 %v9233_v27, %v1991_v54  ;;  %v1993_v5 = vand.u32 2147483647, %v1481_v60 }
 0x2bc   : > { %v2501_v54 = vmul.f32 %v9233_v27, %v1982_v7  ;;  %v1995_v60 = vand.u32 2147483647, %v1483_v28 }
 0x2bd   : > { %v2512_v2 = vmul.f32 %v9233_v27, %v1993_v5 }
 0x2be   : > { %v2514_v5 = vmul.f32 %v9233_v27, %v1995_v60 }
 0x2bf   : > { %3206 = vadd.xlane.f32.xlu1 %v2495_v52  ;;  %3228 = vadd.xlane.f32.xlu0 %v2506_v49  ;;  %v2499_v52 = vmul.f32 %v9233_v27, %v1980_v8  ;;  %v1472_v49 = vadd.f32 %v9423_v46, %v12284_v32  ;;  %v1474_v46 = vadd.f32 %v9499_v26, %v12287_v17 }
 0x2c0   : > { %v9539_v13 = vpop.xlane.xlu0 %3092 }
 0x2c1   : > { %12307 = vst [vmem:[#allocation47_spill] sm:$0xff] %v9539_v13  ;;  %v1984_v8 = vand.u32 2147483647, %v1472_v49  ;;  %v1485_v13 = vadd.f32 %v9499_v26, %v12263_v35  ;;  %v1986_v49 = vand.u32 2147483647, %v1474_v46 }
 0x2c3   : > { %3210 = vadd.xlane.f32.xlu1 %v2497_v31  ;;  %3232 = vadd.xlane.f32.xlu0 %v2508_v29  ;;  %v1004_v31 = vcombine.high %v12300_v12, %v12300_v12  ;;  %v9570_v12 = vpop.permute.xlu1 %889  ;;  %v2503_v7 = vmul.f32 %v9233_v27, %v1984_v8  ;;  %v1997_v28 = vand.u32 2147483647, %v1485_v13 }
 0x2c4   : > { %v9547_v14 = vpop.xlane.xlu0 %3096  ;;  %12309 = vst [vmem:[#allocation25_spill] sm:$0xff] %v9570_v12  ;;  %v1988_v12 = vand.u32 2147483647, %v1476_v50 }
 0x2c5   : > { %v2516_v46 = vmul.f32 %v9233_v27, %v1997_v28  ;;  %v1990_v28 = vand.u32 2147483647, %v1478_v23  ;;  %v1484_v23 = vadd.f32 %v9499_v26, %v12280_v16 }
 0x2c7   : > { %3214 = vadd.xlane.f32.xlu1 %v2499_v52  ;;  %3236 = vadd.xlane.f32.xlu0 %v2510_v24  ;;  %v9568_v52 = vrot.slane %v1004_v31, %v12288_v3  ;;  %v9588_v13 = vpop.permute.xlu1 %894 }
 0x2c8   : > { %v9559_v29 = vpop.xlane.xlu0 %3100  ;;  %12310 = vst [vmem:[#allocation10_spill] sm:$0xff] %v9588_v13 }
 0x2c9   : > { %v1489_v8 = vadd.f32 %v9568_v52, %v12273_v0  ;;  %v1491_v50 = vadd.f32 %v9568_v52, %v12277_v43  ;;  %v1493_v43 = vadd.f32 %v9568_v52, %v12279_v63 }
 0x2cb   : > { %3218 = vadd.xlane.f32.xlu1 %v2501_v54  ;;  %3240 = vadd.xlane.f32.xlu0 %v2512_v2  ;;  %v1487_v54 = vadd.f32 %v9499_v26, %v12270_v38  ;;  %v2505_v2 = vmul.f32 %v9233_v27, %v1986_v49  ;;  %v2507_v49 = vmul.f32 %v9233_v27, %v1988_v12  ;;  %v9598_v10 = vpop.permute.xlu1 %884  ;;  %v2003_v13 = vand.u32 2147483647, %v1491_v50 }
 0x2cc   : > { %v9572_v24 = vpop.xlane.xlu0 %3104  ;;  %12311 = vst [vmem:[#allocation17_spill] sm:$0xff] %v9598_v10  ;;  %v2509_v12 = vmul.f32 %v9233_v27, %v1990_v28  ;;  %v1994_v10 = vand.u32 2147483647, %v1482_v44  ;;  %v2005_v63 = vand.u32 2147483647, %v1493_v43  ;;  %v5011_v28 = vrot.slane %v9342_v19, %v12290_v61 }
 0x2cd   : > { %v1999_v6 = vand.u32 2147483647, %v1487_v54  ;;  %v2001_v54 = vand.u32 2147483647, %v1489_v8  ;;  %v5015_v8 = vrot.slane %v9467_v59, %v12289_v36  ;;  %v1495_v59 = vadd.f32 %v9568_v52, %v12281_v22 }
 0x2ce   : > { %v5025_v44 = vrot.slane %v9481_v1, %v12291_v48  ;;  %v5020_v19 = vrot.slane %v9356_v47, %v12292_v56  ;;  %v1497_v1 = vadd.f32 %v9568_v52, %v12283_v42 }
 0x2cf   : > { %3222 = vadd.xlane.f32.xlu1 %v2503_v7  ;;  %3244 = vadd.xlane.f32.xlu0 %v2514_v5  ;;  %v1480_v7 = vadd.f32 %v9499_v26, %v12276_v62  ;;  %v2518_v5 = vmul.f32 %v9233_v27, %v1999_v6  ;;  %v2520_v6 = vmul.f32 %v9233_v27, %v2001_v54 }
 0x2d0   : > { %v9580_v31 = vpop.xlane.xlu0 %3108  ;;  %v5090_v54 = vrot.slane %v9547_v14, %v12290_v61 }
 0x2d3   : > { %3226 = vadd.xlane.f32.xlu1 %v2505_v2  ;;  %3248 = vadd.xlane.f32.xlu0 %v2516_v46  ;;  %v1992_v46 = vand.u32 2147483647, %v1480_v7 }
 0x2d4   : > { %v9590_v60 = vpop.xlane.xlu0 %3112 }
 0x2d7   : > { %3230 = vadd.xlane.f32.xlu1 %v2507_v49  ;;  %3252 = vadd.xlane.f32.xlu0 %v2518_v5  ;;  %v2511_v49 = vmul.f32 %v9233_v27, %v1992_v46  ;;  %v2522_v5 = vmul.f32 %v9233_v27, %v2003_v13  ;;  %v5016_v46 = vsel %vm4355_vm3, %v5015_v8, %v5011_v28  ;;  %v2007_v28 = vand.u32 2147483647, %v1495_v59  ;;  %v12312_v59 = vld [vmem:[#allocation50_spill] sm:$0xff] }
 0x2d8   : > { %v9600_v2 = vpop.xlane.xlu0 %3116  ;;  %v5021_v47 = vsel %vm4362_vm4, %v5020_v19, %v5016_v46 }
 0x2db   : > { %3234 = vadd.xlane.f32.xlu1 %v2509_v12  ;;  %3256 = vadd.xlane.f32.xlu0 %v2520_v6  ;;  %v5099_v12 = vrot.slane %v9559_v29, %v12292_v56  ;;  %v1996_v6 = vand.u32 2147483647, %v1484_v23  ;;  %v2513_v29 = vmul.f32 %v9233_v27, %v1994_v10  ;;  %v2524_v23 = vmul.f32 %v9233_v27, %v2005_v63 }
 0x2dc   : > { %v3099_v7 = vpop.xlane.xlu1 %3098  ;;  %v9612_v50 = vpop.xlane.xlu0 %3120  ;;  %v5026_v10 = vsel %vm4369_vm5, %v5025_v44, %v5021_v47  ;;  %v5035_v63 = vrot.slane %v9489_v51, %v12293_v39  ;;  %v2526_v44 = vmul.f32 %v9233_v27, %v2007_v28 }
 0x2dd   : > { %v5094_v16 = vrot.slane %v3099_v7, %v12289_v36 }
 0x2df   : > { %v5095_v43 = vsel %vm4355_vm3, %v5094_v16, %v5090_v54  ;;  %3238 = vadd.xlane.f32.xlu1 %v2511_v49  ;;  %3260 = vadd.xlane.f32.xlu0 %v2522_v5  ;;  %v1486_v16 = vadd.f32 %v9499_v26, %v12282_v11  ;;  %v5109_v49 = vrot.slane %v9572_v24, %v12294_v9 }
 0x2e0   : > { %v3103_v14 = vpop.xlane.xlu1 %3102  ;;  %v5100_v13 = vsel %vm4362_vm4, %v5099_v12, %v5095_v43  ;;  %v9632_v7 = vpop.xlane.xlu0 %3124  ;;  %v2515_v5 = vmul.f32 %v9233_v27, %v1996_v6  ;;  %v5030_v12 = vrot.slane %v12312_v59, %v12294_v9  ;;  %v1488_v24 = vadd.f32 %v9499_v26, %v12284_v32 }
 0x2e1   : > { %v5104_v8 = vrot.slane %v3103_v14, %v12291_v48  ;;  %v1499_v6 = vadd.f32 %v9568_v52, %v12285_v21  ;;  %v1998_v14 = vand.u32 2147483647, %v1486_v16  ;;  %v1490_v26 = vadd.f32 %v9568_v52, %v12287_v17  ;;  %v12315_v16 = vld [vmem:[#allocation51_spill] sm:$0xff] }
 0x2e3   : > { %v5105_v54 = vsel %vm4369_vm5, %v5104_v8, %v5100_v13  ;;  %3242 = vadd.xlane.f32.xlu1 %v2513_v29  ;;  %3264 = vadd.xlane.f32.xlu0 %v2524_v23  ;;  %v2009_v13 = vand.u32 2147483647, %v1497_v1  ;;  %v1006_v29 = vcombine.high %v12305_v15, %v12305_v15  ;;  %v5031_v23 = vsel %vm12192_vm6, %v5030_v12, %v5026_v10 }
 0x2e4   : > { %v3107_v43 = vpop.xlane.xlu1 %3106  ;;  %v5110_v46 = vsel %vm12192_vm6, %v5109_v49, %v5105_v54  ;;  %v9652_v19 = vpop.xlane.xlu0 %3128  ;;  %v5119_v8 = vrot.slane %v9580_v31, %v12297_v58  ;;  %v5036_v47 = vsel %vm12313_vm8, %v5035_v63, %v5031_v23  ;;  %v5045_v49 = vrot.slane %v9507_v57, %v12271_v33 }
 0x2e5   : > { %v5114_v51 = vrot.slane %v3107_v43, %v12293_v39  ;;  %v5040_v15 = vrot.slane %v12315_v16, %v12297_v58  ;;  %vm12316_vm6 = vcmask 458112   ;;  %v2000_v31 = vand.u32 2147483647, %v1488_v24 }
 0x2e6   : > { %v2011_v59 = vand.u32 2147483647, %v1499_v6  ;;  %v2517_v63 = vmul.f32 %v9233_v27, %v1998_v14  ;;  %v2528_v57 = vmul.f32 %v9233_v27, %v2009_v13  ;;  %v9682_v43 = vrot.slane %v1006_v29, %v12288_v3 }
 0x2e7   : > { %v5115_v28 = vsel %vm12314_vm7, %v5114_v51, %v5110_v46  ;;  %3246 = vadd.xlane.f32.xlu1 %v2515_v5  ;;  %3268 = vadd.xlane.f32.xlu0 %v2526_v44  ;;  %v1501_v5 = vadd.f32 %v9568_v52, %v12263_v35  ;;  %vm12317_vm7 = vmmov %vm12316_vm6  ;;  %v5129_v51 = vrot.slane %v9590_v60, %v8986_v20  ;;  %v2002_v14 = vand.u32 2147483647, %v1490_v26 }
 0x2e8   : > { %v3111_v1 = vpop.xlane.xlu1 %3110  ;;  %v5120_v10 = vsel %vm12316_vm6, %v5119_v8, %v5115_v28  ;;  %v9674_v54 = vpop.xlane.xlu0 %3132  ;;  %v5041_v46 = vsel %vm12317_vm7, %v5040_v15, %v5036_v47  ;;  %v5055_v6 = vrot.slane %v9515_v4, %v8989_v30  ;;  %v5050_v13 = vrot.slane %v9395_v34, %v8986_v20 }
 0x2e9   : > { %v5124_v12 = vrot.slane %v3111_v1, %v12271_v33  ;;  %v5046_v24 = vsel %vm4397_vm9, %v5045_v49, %v5041_v46  ;;  %v2519_v60 = vmul.f32 %v9233_v27, %v2000_v31  ;;  %v2530_v47 = vmul.f32 %v9233_v27, %v2011_v59 }
 0x2ea   : > { %v2013_v4 = vand.u32 2147483647, %v1501_v5  ;;  %v1492_v28 = vadd.f32 %v9568_v52, %v12268_v37  ;;  %v1503_v26 = vadd.f32 %v9568_v52, %v12270_v38  ;;  %v5051_v34 = vsel %vm4404_vm10, %v5050_v13, %v5046_v24  ;;  %v12318_v13 = vld [vmem:[#allocation24_spill] sm:$0xff] }
 0x2eb   : > { %v5125_v44 = vsel %vm4397_vm9, %v5124_v12, %v5120_v10  ;;  %3250 = vadd.xlane.f32.xlu1 %v2517_v63  ;;  %3272 = vadd.xlane.f32.xlu0 %v2528_v57  ;;  %v5139_v16 = vrot.slane %v9600_v2, %v9021_v40  ;;  %v1494_v15 = vadd.f32 %v9568_v52, %v12272_v25  ;;  %vm12328_vm6 = vcmask 326912  }
 0x2ec   : > { %v3115_v29 = vpop.xlane.xlu1 %3114  ;;  %v5130_v23 = vsel %vm4404_vm10, %v5129_v51, %v5125_v44  ;;  %v9694_v8 = vpop.xlane.xlu0 %3136  ;;  %v5056_v1 = vsel %vm4411_vm11, %v5055_v6, %v5051_v34  ;;  %v5065_v10 = vrot.slane %v9529_v55, %v9040_v53  ;;  %v5060_v59 = vrot.slane %v9412_v41, %v9021_v40  ;;  %v12323_v34 = vld [vmem:[#allocation47_spill] sm:$0xff] }
 0x2ed   : > { %v5134_v49 = vrot.slane %v3115_v29, %v8989_v30  ;;  %v2521_v2 = vmul.f32 %v9233_v27, %v2002_v14  ;;  %v1505_v5 = vadd.f32 %v9682_v43, %v12273_v0  ;;  %v2532_v55 = vmul.f32 %v9233_v27, %v2013_v4 }
 0x2ee   : > { %v2004_v51 = vand.u32 2147483647, %v1492_v28  ;;  %v2015_v24 = vand.u32 2147483647, %v1503_v26  ;;  %v5061_v6 = vsel %vm4418_vm12, %v5060_v59, %v5056_v1  ;;  %v5149_v41 = vrot.slane %v9612_v50, %v9047_v45  ;;  %v12321_v28 = vld [vmem:[#allocation48_spill] sm:$0xff]  ;;  %v12322_v50 = vld [vmem:[#allocation54_spill] sm:$0xff] }
 0x2ef   : > { %v5135_v31 = vsel %vm4411_vm11, %v5134_v49, %v5130_v23  ;;  %3254 = vadd.xlane.f32.xlu1 %v2519_v60  ;;  %3276 = vadd.xlane.f32.xlu0 %v2530_v47  ;;  %v1496_v44 = vadd.f32 %v9568_v52, %v12276_v62  ;;  %v1507_v14 = vadd.f32 %v9682_v43, %v12318_v13  ;;  %v12319_v23 = vld [vmem:[#allocation56_spill] sm:$0xff]  ;;  %v2006_v4 = vand.u32 2147483647, %v1494_v15 }
 0x2f0   : > { %v3119_v12 = vpop.xlane.xlu1 %3118  ;;  %v5140_v63 = vsel %vm4418_vm12, %v5139_v16, %v5135_v31  ;;  %v9715_v57 = vpop.xlane.xlu0 %3140  ;;  %v5066_v29 = vsel %vm4425_vm13, %v5065_v10, %v5061_v6  ;;  %v12320_v60 = vld [vmem:[#allocation52_spill] sm:$0xff]  ;;  %v5070_v26 = vrot.slane %v12321_v28, %v9047_v45  ;;  %v5080_v16 = vrot.slane %v12323_v34, %v12322_v50  ;;  %v12325_v28 = vld [vmem:[#allocation39_spill] sm:$0xff] }
 0x2f1   : > { %v5144_v46 = vrot.slane %v3119_v12, %v9040_v53  ;;  %v5075_v47 = vrot.slane %v12320_v60, %v12319_v23  ;;  %v2017_v10 = vand.u32 2147483647, %v1505_v5  ;;  %v2523_v6 = vmul.f32 %v9233_v27, %v2004_v51  ;;  %v9751_v5 = vld [vmem:[%s12094_s8] ss:$0 sm:$0xff] }
 0x2f2   : > { %v5071_v15 = vsel %vm4432_vm14, %v5070_v26, %v5066_v29  ;;  %v2525_v51 = vmul.f32 %v9751_v5, %v2006_v4  ;;  %v12326_v4 = vld [vmem:[#allocation38_spill] sm:$0xff] }
 0x2f3   : > { %v5145_v49 = vsel %vm4425_vm13, %v5144_v46, %v5140_v63  ;;  %3258 = vadd.xlane.f32.xlu1 %v2521_v2  ;;  %3280 = vadd.xlane.f32.xlu0 %v2532_v55  ;;  %v2534_v63 = vmul.f32 %v9233_v27, %v2015_v24  ;;  %v5159_v2 = vrot.slane %v9632_v7, %v12322_v50 }
 0x2f4   : > { %v3123_v1 = vpop.xlane.xlu1 %3122  ;;  %v5150_v31 = vsel %vm4432_vm14, %v5149_v41, %v5145_v49  ;;  %v9738_v59 = vpop.xlane.xlu0 %3144  ;;  %v5076_v46 = vsel %vm4439_vm15, %v5075_v47, %v5071_v15  ;;  %v2008_v41 = vand.u32 2147483647, %v1496_v44  ;;  %v2536_v60 = vmul.f32 %v9751_v5, %v2017_v10  ;;  %v12324_v49 = vld [vmem:[#allocation55_spill] sm:$0xff]  ;;  %v12327_v15 = vld [vmem:[#allocation32_spill] sm:$0xff] }
 0x2f5   : > { %v5154_v12 = vrot.slane %v3123_v1, %v12319_v23  ;;  %v5081_v27 = vsel %vm4446_vm0, %v5080_v16, %v5076_v46  ;;  %v2019_v47 = vand.u32 2147483647, %v1507_v14  ;;  %v5085_v26 = vrot.slane %v12325_v28, %v12324_v49 }
 0x2f6   : > { %v1498_v1 = vadd.f32 %v9568_v52, %v12278_v18  ;;  %v1509_v44 = vadd.f32 %v9682_v43, %v12326_v4  ;;  %v2527_v10 = vmul.f32 %v9751_v5, %v2008_v41  ;;  %v1511_v46 = vadd.f32 %v9682_v43, %v12281_v22 }
 0x2f7   : > { %v5155_v55 = vsel %vm4439_vm15, %v5154_v12, %v5150_v31  ;;  %3262 = vadd.xlane.f32.xlu1 %v2523_v6  ;;  %3284 = vadd.xlane.f32.xlu0 %v2534_v63  ;;  %v5086_v16 = vsel %vm4453_vm2, %v5085_v26, %v5081_v27  ;;  %v2538_v63 = vmul.f32 %v9751_v5, %v2019_v47 }
 0x2f8   : > { %v3127_v24 = vpop.xlane.xlu1 %3126  ;;  %v5160_v29 = vsel %vm4446_vm0, %v5159_v2, %v5155_v55  ;;  %v9756_v7 = vpop.xlane.xlu0 %3148  ;;  %v1500_v2 = vadd.f32 %v9568_v52, %v12327_v15  ;;  %v5169_v55 = vrot.slane %v9652_v19, %v12290_v61  ;;  %v2010_v41 = vand.u32 2147483647, %v1498_v1 }
 0x2f9   : > { %v5164_v34 = vrot.slane %v3127_v24, %v12324_v49  ;;  %v2021_v27 = vand.u32 2147483647, %v1509_v44  ;;  %v5178_v24 = vrot.slane %v9674_v54, %v12292_v56  ;;  %v1502_v19 = vadd.f32 %v9568_v52, %v12282_v11 }
 0x2fa   : > { %v2012_v26 = vand.u32 2147483647, %v1500_v2  ;;  %v2529_v44 = vmul.f32 %v9751_v5, %v2010_v41 }
 0x2fb   : > { %v5165_v31 = vsel %vm4453_vm2, %v5164_v34, %v5160_v29  ;;  %3266 = vadd.xlane.f32.xlu1 %v2525_v51  ;;  %3288 = vadd.xlane.f32.xlu0 %v2536_v60  ;;  %v2023_v34 = vand.u32 2147483647, %v1511_v46  ;;  %v2540_v54 = vmul.f32 %v9751_v5, %v2021_v27 }
 0x2fc   : > { %v9770_v14 = vsel %vm6904_vm1, %v5165_v31, %v5086_v16  ;;  %v3131_v12 = vpop.xlane.xlu1 %3130  ;;  %v9772_v6 = vpop.xlane.xlu0 %3152  ;;  %v1513_v16 = vadd.f32 %v9682_v43, %v12283_v42  ;;  %v5188_v31 = vrot.slane %v9694_v8, %v12294_v9  ;;  %v2531_v46 = vmul.f32 %v9751_v5, %v2012_v26 }
 0x2fd   : > { %v5173_v51 = vrot.slane %v3131_v12, %v12289_v36  ;;  %v2542_v27 = vmul.f32 %v9751_v5, %v2023_v34  ;;  %v1506_v34 = vadd.f32 %v9682_v43, %v12287_v17 }
 0x2fe   : > { %v2025_v8 = vand.u32 2147483647, %v1513_v16  ;;  %v1517_v16 = vadd.f32 %v9682_v43, %v12263_v35 }
 0x2ff   : > { %v5174_v29 = vsel %vm4355_vm3, %v5173_v51, %v5169_v55  ;;  %3270 = vadd.xlane.f32.xlu1 %v2527_v10  ;;  %3292 = vadd.xlane.f32.xlu0 %v2538_v63  ;;  %v2014_v55 = vand.u32 2147483647, %v1502_v19  ;;  %v1504_v51 = vadd.f32 %v9568_v52, %v12284_v32 }
 0x300   : > { %v3135_v60 = vpop.xlane.xlu1 %3134  ;;  %v5179_v47 = vsel %vm4362_vm4, %v5178_v24, %v5174_v29  ;;  %v9786_v28 = vpop.xlane.xlu0 %3156  ;;  %v1515_v24 = vadd.f32 %v9682_v43, %v12285_v21  ;;  %v5198_v29 = vrot.slane %v9715_v57, %v12297_v58 }
 0x301   : > { %v5183_v1 = vrot.slane %v3135_v60, %v12291_v48  ;;  %v2533_v52 = vmul.f32 %v9751_v5, %v2014_v55 }
 0x302   : > { %v2027_v57 = vand.u32 2147483647, %v1515_v24  ;;  %v1519_v24 = vadd.f32 %v9682_v43, %v12270_v38 }
 0x303   : > { %v5184_v10 = vsel %vm4369_vm5, %v5183_v1, %v5179_v47  ;;  %3274 = vadd.xlane.f32.xlu1 %v2529_v44  ;;  %3296 = vadd.xlane.f32.xlu0 %v2540_v54  ;;  %v2016_v1 = vand.u32 2147483647, %v1504_v51  ;;  %v2544_v54 = vmul.f32 %v9751_v5, %v2025_v8  ;;  %v2018_v51 = vand.u32 2147483647, %v1506_v34 }
 0x304   : > { %v3139_v12 = vpop.xlane.xlu1 %3138  ;;  %v5189_v63 = vsel %vm12328_vm6, %v5188_v31, %v5184_v10  ;;  %v9799_v2 = vpop.xlane.xlu0 %3160  ;;  %v5208_v31 = vrot.slane %v9738_v59, %v8986_v20  ;;  %v2546_v8 = vmul.f32 %v9751_v5, %v2027_v57  ;;  %v2029_v59 = vand.u32 2147483647, %v1517_v16 }
 0x305   : > { %v5193_v41 = vrot.slane %v3139_v12, %v12293_v39  ;;  %v2535_v55 = vmul.f32 %v9751_v5, %v2016_v1  ;;  %v1510_v57 = vadd.f32 %v9682_v43, %v12272_v25  ;;  %vm12330_vm6 = vcmask 1042434  }
 0x306   : > { %v2548_v16 = vmul.f32 %v9751_v5, %v2029_v59  ;;  %v1512_v59 = vadd.f32 %v9682_v43, %v12276_v62 }
 0x307   : > { %v5194_v60 = vsel %vm12313_vm8, %v5193_v41, %v5189_v63  ;;  %3278 = vadd.xlane.f32.xlu1 %v2531_v46  ;;  %3300 = vadd.xlane.f32.xlu0 %v2542_v27  ;;  %v1508_v41 = vadd.f32 %v9682_v43, %v12268_v37  ;;  %vm12331_vm8 = vcmask 326912  }
 0x308   : > { %v3143_v47 = vpop.xlane.xlu1 %3142  ;;  %v5199_v26 = vsel %vm12317_vm7, %v5198_v29, %v5194_v60  ;;  %v9812_v19 = vpop.xlane.xlu0 %3164  ;;  %v5218_v29 = vrot.slane %v9756_v7, %v9021_v40  ;;  %v12329_v60 = vld [vmem:[#allocation11_spill] sm:$0xff]  ;;  %vm12332_vm7 = vcmask 392512  }
 0x309   : > { %v5203_v44 = vrot.slane %v3143_v47, %v12271_v33  ;;  %v9838_v47 = vrot.slane %v12329_v60, %v12288_v3 }
 0x30b   : > { %v5204_v10 = vsel %vm4397_vm9, %v5203_v44, %v5199_v26  ;;  %3282 = vadd.xlane.f32.xlu1 %v2533_v52  ;;  %3304 = vadd.xlane.f32.xlu0 %v2544_v54  ;;  %v2537_v44 = vmul.f32 %v9751_v5, %v2018_v51  ;;  %v2020_v54 = vand.u32 2147483647, %v1508_v41 }
 0x30c   : > { %v3147_v12 = vpop.xlane.xlu1 %3146  ;;  %v5209_v63 = vsel %vm4404_vm10, %v5208_v31, %v5204_v10  ;;  %v9825_v46 = vpop.xlane.xlu0 %3168  ;;  %v2031_v31 = vand.u32 2147483647, %v1519_v24  ;;  %v1521_v10 = vadd.f32 %v9838_v47, %v12273_v0 }
 0x30d   : > { %v5213_v27 = vrot.slane %v3147_v12, %v8989_v30  ;;  %v5228_v12 = vrot.slane %v9772_v6, %v9047_v45 }
 0x30e   : > { %v2033_v6 = vand.u32 2147483647, %v1521_v10 }
 0x30f   : > { %v5214_v26 = vsel %vm4411_vm11, %v5213_v27, %v5209_v63  ;;  %3286 = vadd.xlane.f32.xlu1 %v2535_v55  ;;  %3308 = vadd.xlane.f32.xlu0 %v2546_v8  ;;  %v2539_v27 = vmul.f32 %v9751_v5, %v2020_v54  ;;  %v2022_v8 = vand.u32 2147483647, %v1510_v57 }
 0x310   : > { %v3151_v52 = vpop.xlane.xlu1 %3150  ;;  %v5219_v1 = vsel %vm4418_vm12, %v5218_v29, %v5214_v26  ;;  %v9842_v34 = vpop.xlane.xlu0 %3172  ;;  %v2550_v29 = vmul.f32 %v9751_v5, %v2031_v31  ;;  %v1523_v26 = vadd.f32 %v9838_v47, %v12318_v13  ;;  %v1514_v31 = vadd.f32 %v9682_v43, %v12278_v18 }
 0x311   : > { %v5223_v7 = vrot.slane %v3151_v52, %v9040_v53  ;;  %v5238_v52 = vrot.slane %v9786_v28, %v12322_v50 }
 0x312   : > { %v2035_v28 = vand.u32 2147483647, %v1523_v26  ;;  %v5248_v26 = vrot.slane %v9799_v2, %v12290_v61  ;;  %v1518_v2 = vadd.f32 %v9682_v43, %v12282_v11 }
 0x313   : > { %v5224_v63 = vsel %vm4425_vm13, %v5223_v7, %v5219_v1  ;;  %3290 = vadd.xlane.f32.xlu1 %v2537_v44  ;;  %3312 = vadd.xlane.f32.xlu0 %v2548_v16  ;;  %v2541_v7 = vmul.f32 %v9751_v5, %v2022_v8  ;;  %v2024_v16 = vand.u32 2147483647, %v1512_v59 }
 0x314   : > { %v3155_v55 = vpop.xlane.xlu1 %3154  ;;  %v5229_v51 = vsel %vm4432_vm14, %v5228_v12, %v5224_v63  ;;  %v9855_v41 = vpop.xlane.xlu0 %3176  ;;  %v2552_v12 = vmul.f32 %v9751_v5, %v2033_v6  ;;  %v1525_v63 = vadd.f32 %v9838_v47, %v12326_v4  ;;  %v1527_v6 = vadd.f32 %v9838_v47, %v12281_v22 }
 0x315   : > { %v5233_v24 = vrot.slane %v3155_v55, %v12319_v23 }
 0x317   : > { %v5234_v1 = vsel %vm4439_vm15, %v5233_v24, %v5229_v51  ;;  %3294 = vadd.xlane.f32.xlu1 %v2539_v27  ;;  %3316 = vadd.xlane.f32.xlu0 %v2550_v29  ;;  %v1516_v51 = vadd.f32 %v9682_v43, %v12327_v15  ;;  %v2543_v24 = vmul.f32 %v9751_v5, %v2024_v16  ;;  %v2026_v29 = vand.u32 2147483647, %v1514_v31 }
 0x318   : > { %v3159_v44 = vpop.xlane.xlu1 %3158  ;;  %v5239_v54 = vsel %vm4446_vm0, %v5238_v52, %v5234_v1  ;;  %v9868_v57 = vpop.xlane.xlu0 %3180  ;;  %v2554_v1 = vmul.f32 %v9751_v5, %v2035_v28 }
 0x319   : > { %v5243_v10 = vrot.slane %v3159_v44, %v12324_v49  ;;  %v2037_v44 = vand.u32 2147483647, %v1525_v63  ;;  %v2545_v63 = vmul.f32 %v9751_v5, %v2026_v29 }
 0x31b   : > { %v5244_v55 = vsel %vm4453_vm2, %v5243_v10, %v5239_v54  ;;  %3298 = vadd.xlane.f32.xlu1 %v2541_v7  ;;  %3320 = vadd.xlane.f32.xlu0 %v2552_v12  ;;  %v2028_v10 = vand.u32 2147483647, %v1516_v51  ;;  %v2039_v12 = vand.u32 2147483647, %v1527_v6 }
 0x31c   : > { %v9882_v27 = vsel %vm12330_vm6, %v5244_v55, %v9770_v14  ;;  %v3163_v8 = vpop.xlane.xlu1 %3162  ;;  %v9884_v59 = vpop.xlane.xlu0 %3184  ;;  %v5257_v14 = vrot.slane %v9812_v19, %v12292_v56  ;;  %v2556_v19 = vmul.f32 %v9751_v5, %v2037_v44  ;;  %v1529_v55 = vadd.f32 %v9838_v47, %v12283_v42 }
 0x31d   : > { %v5252_v52 = vrot.slane %v3163_v8, %v12289_v36  ;;  %v5267_v8 = vrot.slane %v9825_v46, %v12294_v9  ;;  %v2558_v29 = vmul.f32 %v9751_v5, %v2039_v12  ;;  %v1520_v46 = vadd.f32 %v9682_v43, %v12284_v32 }
 0x31e   : > { %vm12333_vm6 = vcmask 458112   ;;  %v1522_v43 = vadd.f32 %v9838_v47, %v12287_v17 }
 0x31f   : > { %v5253_v54 = vsel %vm4355_vm3, %v5252_v52, %v5248_v26  ;;  %3302 = vadd.xlane.f32.xlu1 %v2543_v24  ;;  %3324 = vadd.xlane.f32.xlu0 %v2554_v1  ;;  %v2547_v52 = vmul.f32 %v9751_v5, %v2028_v10  ;;  %v2030_v1 = vand.u32 2147483647, %v1518_v2 }
 0x320   : > { %v3167_v7 = vpop.xlane.xlu1 %3166  ;;  %v5258_v16 = vsel %vm4362_vm4, %v5257_v14, %v5253_v54  ;;  %v9897_v31 = vpop.xlane.xlu0 %3188  ;;  %v2041_v14 = vand.u32 2147483647, %v1529_v55  ;;  %v1531_v54 = vadd.f32 %v9838_v47, %v12285_v21  ;;  %v2032_v55 = vand.u32 2147483647, %v1520_v46 }
 0x321   : > { %v5262_v28 = vrot.slane %v3167_v7, %v12291_v48  ;;  %v5277_v7 = vrot.slane %v9842_v34, %v12297_v58 }
 0x322   : > { %v2560_v34 = vmul.f32 %v9751_v5, %v2041_v14  ;;  %v2551_v46 = vmul.f32 %v9751_v5, %v2032_v55 }
 0x323   : > { %v5263_v24 = vsel %vm4369_vm5, %v5262_v28, %v5258_v16  ;;  %3306 = vadd.xlane.f32.xlu1 %v2545_v63  ;;  %3328 = vadd.xlane.f32.xlu0 %v2556_v19  ;;  %v2549_v28 = vmul.f32 %v9751_v5, %v2030_v1  ;;  %v1533_v63 = vadd.f32 %v9838_v47, %v12263_v35  ;;  %v2034_v1 = vand.u32 2147483647, %v1522_v43 }
 0x324   : > { %v3171_v51 = vpop.xlane.xlu1 %3170  ;;  %v5268_v6 = vsel %vm12331_vm8, %v5267_v8, %v5263_v24  ;;  %v9910_v26 = vpop.xlane.xlu0 %3192  ;;  %v2043_v8 = vand.u32 2147483647, %v1531_v54  ;;  %v5287_v24 = vrot.slane %v9855_v41, %v8986_v20  ;;  %v1535_v54 = vadd.f32 %v9838_v47, %v12270_v38 }
 0x325   : > { %v5272_v44 = vrot.slane %v3171_v51, %v12293_v39  ;;  %vm12335_vm8 = vcmask 1043459  }
 0x326   : > { %v2562_v41 = vmul.f32 %v9751_v5, %v2043_v8 }
 0x327   : > { %v5273_v16 = vsel %vm12332_vm7, %v5272_v44, %v5268_v6  ;;  %3310 = vadd.xlane.f32.xlu1 %v2547_v52  ;;  %3332 = vadd.xlane.f32.xlu0 %v2558_v29  ;;  %v2045_v44 = vand.u32 2147483647, %v1533_v63  ;;  %vm12336_vm7 = vcmask 326912  }
 0x328   : > { %v3175_v10 = vpop.xlane.xlu1 %3174  ;;  %v5278_v12 = vsel %vm12333_vm6, %v5277_v7, %v5273_v16  ;;  %v9923_v2 = vpop.xlane.xlu0 %3196  ;;  %v1524_v7 = vadd.f32 %v9838_v47, %v12268_v37  ;;  %v5297_v16 = vrot.slane %v9868_v57, %v9021_v40  ;;  %vm12337_vm6 = vcmask 392512  }
 0x329   : > { %v5282_v19 = vrot.slane %v3175_v10, %v12271_v33  ;;  %v12334_v10 = vld [vmem:[#allocation13_spill] sm:$0xff]  ;;  %v2564_v55 = vmul.f32 %v9751_v5, %v2045_v44 }
 0x32a   : > { %v2036_v8 = vand.u32 2147483647, %v1524_v7 }
 0x32b   : > { %v5283_v51 = vsel %vm4397_vm9, %v5282_v19, %v5278_v12  ;;  %3314 = vadd.xlane.f32.xlu1 %v2549_v28  ;;  %3336 = vadd.xlane.f32.xlu0 %v2560_v34  ;;  %v9949_v12 = vrot.slane %v12334_v10, %v12288_v3  ;;  %v2553_v34 = vmul.f32 %v9751_v5, %v2034_v1 }
 0x32c   : > { %v3179_v6 = vpop.xlane.xlu1 %3178  ;;  %v5288_v52 = vsel %vm4404_vm10, %v5287_v24, %v5283_v51  ;;  %v9936_v29 = vpop.xlane.xlu0 %3200  ;;  %v2047_v24 = vand.u32 2147483647, %v1535_v54  ;;  %v1526_v51 = vadd.f32 %v9838_v47, %v12272_v25  ;;  %v1528_v1 = vadd.f32 %v9838_v47, %v12276_v62 }
 0x32d   : > { %v5292_v14 = vrot.slane %v3179_v6, %v8989_v30  ;;  %v1537_v6 = vadd.f32 %v9949_v12, %v12273_v0  ;;  %v1539_v54 = vadd.f32 %v9949_v12, %v12318_v13 }
 0x32f   : > { %v5293_v28 = vsel %vm4411_vm11, %v5292_v14, %v5288_v52  ;;  %3318 = vadd.xlane.f32.xlu1 %v2551_v46  ;;  %3340 = vadd.xlane.f32.xlu0 %v2562_v41  ;;  %v5307_v52 = vrot.slane %v9884_v59, %v9047_v45  ;;  %v2555_v41 = vmul.f32 %v9751_v5, %v2036_v8 }
 0x330   : > { %v3183_v43 = vpop.xlane.xlu1 %3182  ;;  %v5298_v63 = vsel %vm4418_vm12, %v5297_v16, %v5293_v28  ;;  %v9953_v19 = vpop.xlane.xlu0 %3204  ;;  %v2566_v59 = vmul.f32 %v9751_v5, %v2047_v24  ;;  %v2038_v28 = vand.u32 2147483647, %v1526_v51 }
 0x331   : > { %v5302_v57 = vrot.slane %v3183_v43, %v9040_v53  ;;  %v2049_v43 = vand.u32 2147483647, %v1537_v6  ;;  %v1541_v6 = vadd.f32 %v9949_v12, %v12326_v4 }
 0x332   : > { %v2557_v51 = vmul.f32 %v9751_v5, %v2038_v28 }
 0x333   : > { %v5303_v14 = vsel %vm4425_vm13, %v5302_v57, %v5298_v63  ;;  %3322 = vadd.xlane.f32.xlu1 %v2553_v34  ;;  %3344 = vadd.xlane.f32.xlu0 %v2564_v55  ;;  %v5317_v63 = vrot.slane %v9897_v31, %v12322_v50  ;;  %v2040_v55 = vand.u32 2147483647, %v1528_v1  ;;  %v2568_v31 = vmul.f32 %v9751_v5, %v2049_v43 }
 0x334   : > { %v3187_v44 = vpop.xlane.xlu1 %3186  ;;  %v5308_v7 = vsel %vm4432_vm14, %v5307_v52, %v5303_v14  ;;  %v9968_v46 = vpop.xlane.xlu0 %3208  ;;  %v2051_v14 = vand.u32 2147483647, %v1539_v54  ;;  %v1532_v43 = vadd.f32 %v9838_v47, %v12327_v15 }
 0x335   : > { %v5312_v16 = vrot.slane %v3187_v44, %v12319_v23  ;;  %v1530_v44 = vadd.f32 %v9838_v47, %v12278_v18 }
 0x337   : > { %v5313_v34 = vsel %vm4439_vm15, %v5312_v16, %v5308_v7  ;;  %3326 = vadd.xlane.f32.xlu1 %v2555_v41  ;;  %3348 = vadd.xlane.f32.xlu0 %v2566_v59  ;;  %v2559_v7 = vmul.f32 %v9751_v5, %v2040_v55  ;;  %v2570_v59 = vmul.f32 %v9751_v5, %v2051_v14  ;;  %v2042_v28 = vand.u32 2147483647, %v1530_v44 }
 0x338   : > { %v3191_v57 = vpop.xlane.xlu1 %3190  ;;  %v5318_v8 = vsel %vm4446_vm0, %v5317_v63, %v5313_v34  ;;  %v9979_v52 = vpop.xlane.xlu0 %3212  ;;  %v5327_v63 = vrot.slane %v9910_v26, %v12290_v61  ;;  %v1543_v55 = vadd.f32 %v9949_v12, %v12281_v22 }
 0x339   : > { %v5322_v24 = vrot.slane %v3191_v57, %v12324_v49  ;;  %v2053_v57 = vand.u32 2147483647, %v1541_v6  ;;  %v2561_v26 = vmul.f32 %v9751_v5, %v2042_v28 }
 0x33b   : > { %v5323_v1 = vsel %vm4453_vm2, %v5322_v24, %v5318_v8  ;;  %3330 = vadd.xlane.f32.xlu1 %v2557_v51  ;;  %3352 = vadd.xlane.f32.xlu0 %v2568_v31  ;;  %v2044_v51 = vand.u32 2147483647, %v1532_v43  ;;  %v1534_v31 = vadd.f32 %v9838_v47, %v12282_v11 }
 0x33c   : > { %v9992_v41 = vsel %vm12335_vm8, %v5323_v1, %v9882_v27  ;;  %v3195_v54 = vpop.xlane.xlu1 %3194  ;;  %v9994_v16 = vpop.xlane.xlu0 %3216  ;;  %v5336_v27 = vrot.slane %v9923_v2, %v12292_v56  ;;  %v2572_v1 = vmul.f32 %v9751_v5, %v2053_v57  ;;  %v2055_v2 = vand.u32 2147483647, %v1543_v55 }
 0x33d   : > { %v5331_v34 = vrot.slane %v3195_v54, %v12289_v36  ;;  %v5346_v54 = vrot.slane %v9936_v29, %v12294_v9  ;;  %v1536_v57 = vadd.f32 %v9838_v47, %v12284_v32  ;;  %vm12338_vm8 = vcmask 458112  }
 0x33f   : > { %v5332_v8 = vsel %vm4355_vm3, %v5331_v34, %v5327_v63  ;;  %3334 = vadd.xlane.f32.xlu1 %v2559_v7  ;;  %3356 = vadd.xlane.f32.xlu0 %v2570_v59  ;;  %v1545_v7 = vadd.f32 %v9949_v12, %v12283_v42  ;;  %v2563_v34 = vmul.f32 %v9751_v5, %v2044_v51 }
 0x340   : > { %v3199_v14 = vpop.xlane.xlu1 %3198  ;;  %v5337_v44 = vsel %vm4362_vm4, %v5336_v27, %v5332_v8  ;;  %v10008_v24 = vpop.xlane.xlu0 %3220  ;;  %v2046_v27 = vand.u32 2147483647, %v1534_v31  ;;  %v2574_v8 = vmul.f32 %v9751_v5, %v2055_v2  ;;  %v1538_v2 = vadd.f32 %v9949_v12, %v12287_v17 }
 0x341   : > { %v5341_v6 = vrot.slane %v3199_v14, %v12291_v48  ;;  %v2057_v29 = vand.u32 2147483647, %v1545_v7  ;;  %v1547_v14 = vadd.f32 %v9949_v12, %v12285_v21 }
 0x342   : > { %v2565_v47 = vmul.f32 %v9751_v5, %v2046_v27 }
 0x343   : > { %v5342_v59 = vsel %vm4369_vm5, %v5341_v6, %v5337_v44  ;;  %3338 = vadd.xlane.f32.xlu1 %v2561_v26  ;;  %3360 = vadd.xlane.f32.xlu0 %v2572_v1  ;;  %v5356_v44 = vrot.slane %v9953_v19, %v12297_v58  ;;  %v2048_v1 = vand.u32 2147483647, %v1536_v57  ;;  %v2059_v19 = vand.u32 2147483647, %v1547_v14 }
 0x344   : > { %v3203_v28 = vpop.xlane.xlu1 %3202  ;;  %v5347_v43 = vsel %vm12336_vm7, %v5346_v54, %v5342_v59  ;;  %v10021_v63 = vpop.xlane.xlu0 %3224  ;;  %v2576_v54 = vmul.f32 %v9751_v5, %v2057_v29  ;;  %v1549_v59 = vadd.f32 %v9949_v12, %v12263_v35  ;;  %v2050_v29 = vand.u32 2147483647, %v1538_v2 }
 0x345   : > { %v5351_v55 = vrot.slane %v3203_v28, %v12293_v39  ;;  %v5366_v28 = vrot.slane %v9968_v46, %v8986_v20  ;;  %v1540_v14 = vadd.f32 %v9949_v12, %v12268_v37  ;;  %vm12339_vm7 = vcmask 1044484  }
 0x347   : > { %v5352_v26 = vsel %vm12337_vm6, %v5351_v55, %v5347_v43  ;;  %3342 = vadd.xlane.f32.xlu1 %v2563_v34  ;;  %3364 = vadd.xlane.f32.xlu0 %v2574_v8  ;;  %v1052_v43 = vcombine.high %v12329_v60, %v12329_v60  ;;  %v2567_v8 = vmul.f32 %v9751_v5, %v2048_v1  ;;  %v2061_v60 = vand.u32 2147483647, %v1549_v59 }
 0x348   : > { %v3207_v51 = vpop.xlane.xlu1 %3206  ;;  %v5357_v31 = vsel %vm12338_vm8, %v5356_v44, %v5352_v26  ;;  %v10034_v6 = vpop.xlane.xlu0 %3228  ;;  %v2578_v44 = vmul.f32 %v9751_v5, %v2059_v19  ;;  %v1551_v26 = vadd.f32 %v9949_v12, %v12270_v38  ;;  %v2052_v19 = vand.u32 2147483647, %v1540_v14 }
 0x349   : > { %v5361_v7 = vrot.slane %v3207_v51, %v12271_v33  ;;  %v5376_v51 = vrot.slane %v9979_v52, %v9021_v40  ;;  %v1542_v59 = vadd.f32 %v9949_v12, %v12272_v25  ;;  %vm12340_vm6 = vcmask 326912  }
 0x34a   : > { %vm12341_vm8 = vcmask 392512  }
 0x34b   : > { %v5362_v34 = vsel %vm4397_vm9, %v5361_v7, %v5357_v31  ;;  %3346 = vadd.xlane.f32.xlu1 %v2565_v47  ;;  %3368 = vadd.xlane.f32.xlu0 %v2576_v54  ;;  %v10061_v31 = vrot.slane %v1052_v43, %v12288_v3  ;;  %v2569_v54 = vmul.f32 %v9751_v5, %v2050_v29  ;;  %v2063_v43 = vand.u32 2147483647, %v1551_v26 }
 0x34c   : > { %v3211_v27 = vpop.xlane.xlu1 %3210  ;;  %v5367_v57 = vsel %vm4404_vm10, %v5366_v28, %v5362_v34  ;;  %v10049_v55 = vpop.xlane.xlu0 %3232  ;;  %v2580_v28 = vmul.f32 %v9751_v5, %v2061_v60  ;;  %v2054_v60 = vand.u32 2147483647, %v1542_v59 }
 0x34d   : > { %v5371_v46 = vrot.slane %v3211_v27, %v8989_v30  ;;  %v1553_v34 = vadd.f32 %v10061_v31, %v12273_v0  ;;  %v5386_v27 = vrot.slane %v9994_v16, %v9047_v45 }
 0x34f   : > { %v5372_v47 = vsel %vm4411_vm11, %v5371_v46, %v5367_v57  ;;  %3350 = vadd.xlane.f32.xlu1 %v2567_v8  ;;  %3372 = vadd.xlane.f32.xlu0 %v2578_v44  ;;  %v1544_v8 = vadd.f32 %v9949_v12, %v12276_v62  ;;  %v2571_v44 = vmul.f32 %v9751_v5, %v2052_v19  ;;  %v2065_v16 = vand.u32 2147483647, %v1553_v34 }
 0x350   : > { %v3215_v1 = vpop.xlane.xlu1 %3214  ;;  %v5377_v2 = vsel %vm4418_vm12, %v5376_v51, %v5372_v47  ;;  %v10065_v7 = vpop.xlane.xlu0 %3236  ;;  %v2582_v51 = vmul.f32 %v9751_v5, %v2063_v43  ;;  %v1555_v47 = vadd.f32 %v10061_v31, %v12318_v13  ;;  %v1546_v43 = vadd.f32 %v9949_v12, %v12278_v18 }
 0x351   : > { %v5381_v52 = vrot.slane %v3215_v1, %v9040_v53  ;;  %v5396_v1 = vrot.slane %v10008_v24, %v12322_v50 }
 0x352   : > { %v2067_v24 = vand.u32 2147483647, %v1555_v47  ;;  %v5406_v47 = vrot.slane %v10021_v63, %v12290_v61  ;;  %v1550_v63 = vadd.f32 %v9949_v12, %v12282_v11 }
 0x353   : > { %v5382_v57 = vsel %vm4425_vm13, %v5381_v52, %v5377_v2  ;;  %3354 = vadd.xlane.f32.xlu1 %v2569_v54  ;;  %3376 = vadd.xlane.f32.xlu0 %v2580_v28  ;;  %v2056_v54 = vand.u32 2147483647, %v1544_v8  ;;  %v2573_v28 = vmul.f32 %v9751_v5, %v2054_v60 }
 0x354   : > { %v3219_v29 = vpop.xlane.xlu1 %3218  ;;  %v5387_v14 = vsel %vm4432_vm14, %v5386_v27, %v5382_v57  ;;  %v10080_v46 = vpop.xlane.xlu0 %3240  ;;  %v2584_v27 = vmul.f32 %v9751_v5, %v2065_v16  ;;  %v1557_v57 = vadd.f32 %v10061_v31, %v12326_v4  ;;  %v1559_v16 = vadd.f32 %v10061_v31, %v12281_v22 }
 0x355   : > { %v5391_v26 = vrot.slane %v3219_v29, %v12319_v23  ;;  %v2575_v29 = vmul.f32 %v9751_v5, %v2056_v54 }
 0x356   : > { %v2069_v54 = vand.u32 2147483647, %v1557_v57 }
 0x357   : > { %v5392_v2 = vsel %vm4439_vm15, %v5391_v26, %v5387_v14  ;;  %3358 = vadd.xlane.f32.xlu1 %v2571_v44  ;;  %3380 = vadd.xlane.f32.xlu0 %v2582_v51  ;;  %v2058_v26 = vand.u32 2147483647, %v1546_v43  ;;  %v1548_v51 = vadd.f32 %v9949_v12, %v12327_v15 }
 0x358   : > { %v3223_v52 = vpop.xlane.xlu1 %3222  ;;  %v5397_v19 = vsel %vm4446_vm0, %v5396_v1, %v5392_v2  ;;  %v10091_v59 = vpop.xlane.xlu0 %3244  ;;  %v2586_v2 = vmul.f32 %v9751_v5, %v2067_v24  ;;  %v2588_v57 = vmul.f32 %v9751_v5, %v2069_v54  ;;  %v1563_v54 = vadd.f32 %v10061_v31, %v12285_v21 }
 0x359   : > { %v5401_v34 = vrot.slane %v3223_v52, %v12324_v49 }
 0x35b   : > { %v5402_v8 = vsel %vm4453_vm2, %v5401_v34, %v5397_v19  ;;  %3362 = vadd.xlane.f32.xlu1 %v2573_v28  ;;  %3384 = vadd.xlane.f32.xlu0 %v2584_v27  ;;  %v2060_v34 = vand.u32 2147483647, %v1548_v51  ;;  %v1561_v27 = vadd.f32 %v10061_v31, %v12283_v42 }
 0x35c   : > { %v10104_v14 = vsel %vm12339_vm7, %v5402_v8, %v9992_v41  ;;  %v3227_v44 = vpop.xlane.xlu1 %3226  ;;  %v10106_v60 = vpop.xlane.xlu0 %3248  ;;  %v5415_v41 = vrot.slane %v10034_v6, %v12292_v56  ;;  %v2577_v6 = vmul.f32 %v9751_v5, %v2058_v26  ;;  %v2071_v8 = vand.u32 2147483647, %v1559_v16 }
 0x35d   : > { %v5410_v1 = vrot.slane %v3227_v44, %v12289_v36  ;;  %vm12342_vm7 = vcmask 458112  }
 0x35e   : > { %v2590_v16 = vmul.f32 %v9751_v5, %v2071_v8 }
 0x35f   : > { %v5411_v52 = vsel %vm4355_vm3, %v5410_v1, %v5406_v47  ;;  %3366 = vadd.xlane.f32.xlu1 %v2575_v29  ;;  %3388 = vadd.xlane.f32.xlu0 %v2586_v2  ;;  %v5425_v29 = vrot.slane %v10049_v55, %v12294_v9  ;;  %v2579_v2 = vmul.f32 %v9751_v5, %v2060_v34 }
 0x360   : > { %v3231_v19 = vpop.xlane.xlu1 %3230  ;;  %v5416_v28 = vsel %vm4362_vm4, %v5415_v41, %v5411_v52  ;;  %v10120_v43 = vpop.xlane.xlu0 %3252  ;;  %v2062_v41 = vand.u32 2147483647, %v1550_v63  ;;  %v2073_v52 = vand.u32 2147483647, %v1561_v27  ;;  %v1552_v55 = vadd.f32 %v9949_v12, %v12284_v32 }
 0x361   : > { %v5420_v24 = vrot.slane %v3231_v19, %v12291_v48  ;;  %v5435_v19 = vrot.slane %v10065_v7, %v12297_v58  ;;  %v1554_v12 = vadd.f32 %v10061_v31, %v12287_v17 }
 0x362   : > { %v2592_v7 = vmul.f32 %v9751_v5, %v2073_v52  ;;  %v2064_v8 = vand.u32 2147483647, %v1552_v55  ;;  %v1556_v52 = vadd.f32 %v10061_v31, %v12268_v37 }
 0x363   : > { %v5421_v44 = vsel %vm4369_vm5, %v5420_v24, %v5416_v28  ;;  %3370 = vadd.xlane.f32.xlu1 %v2577_v6  ;;  %3392 = vadd.xlane.f32.xlu0 %v2588_v57  ;;  %v2581_v24 = vmul.f32 %v9751_v5, %v2062_v41  ;;  %v1565_v6 = vadd.f32 %v10061_v31, %v12263_v35 }
 0x364   : > { %v3235_v51 = vpop.xlane.xlu1 %3234  ;;  %v5426_v47 = vsel %vm12340_vm6, %v5425_v29, %v5421_v44  ;;  %v10133_v1 = vpop.xlane.xlu0 %3256  ;;  %v2075_v29 = vand.u32 2147483647, %v1563_v54  ;;  %v5445_v44 = vrot.slane %v10080_v46, %v8986_v20  ;;  %v2583_v46 = vmul.f32 %v9751_v5, %v2064_v8 }
 0x365   : > { %v5430_v26 = vrot.slane %v3235_v51, %v12293_v39  ;;  %v1054_v51 = vcombine.high %v12334_v10, %v12334_v10  ;;  %v1567_v54 = vadd.f32 %v10061_v31, %v12270_v38  ;;  %v1558_v8 = vadd.f32 %v10061_v31, %v12272_v25 }
 0x366   : > { %v2594_v10 = vmul.f32 %v9751_v5, %v2075_v29  ;;  %v2068_v29 = vand.u32 2147483647, %v1556_v52  ;;  %v1560_v52 = vadd.f32 %v10061_v31, %v12276_v62  ;;  %vm12343_vm6 = vcmask 1045509  }
 0x367   : > { %v5431_v28 = vsel %vm12341_vm8, %v5430_v26, %v5426_v47  ;;  %3374 = vadd.xlane.f32.xlu1 %v2579_v2  ;;  %3396 = vadd.xlane.f32.xlu0 %v2590_v16  ;;  %v2066_v16 = vand.u32 2147483647, %v1554_v12  ;;  %vm12344_vm8 = vcmask 326912  }
 0x368   : > { %v3239_v34 = vpop.xlane.xlu1 %3238  ;;  %v5436_v63 = vsel %vm12342_vm7, %v5435_v19, %v5431_v28  ;;  %v10146_v27 = vpop.xlane.xlu0 %3260  ;;  %v2077_v19 = vand.u32 2147483647, %v1565_v6  ;;  %v5455_v28 = vrot.slane %v10091_v59, %v9021_v40  ;;  %vm12345_vm7 = vcmask 392512  }
 0x369   : > { %v5440_v57 = vrot.slane %v3239_v34, %v12271_v33  ;;  %v10173_v34 = vrot.slane %v1054_v51, %v12288_v3 }
 0x36b   : > { %v5441_v47 = vsel %vm4397_vm9, %v5440_v57, %v5436_v63  ;;  %3378 = vadd.xlane.f32.xlu1 %v2581_v24  ;;  %3400 = vadd.xlane.f32.xlu0 %v2592_v7  ;;  %v2585_v57 = vmul.f32 %v9751_v5, %v2066_v16  ;;  %v2596_v7 = vmul.f32 %v9751_v5, %v2077_v19 }
 0x36c   : > { %v3243_v2 = vpop.xlane.xlu1 %3242  ;;  %v5446_v41 = vsel %vm4404_vm10, %v5445_v44, %v5441_v47  ;;  %v10161_v26 = vpop.xlane.xlu0 %3264  ;;  %v2079_v44 = vand.u32 2147483647, %v1567_v54  ;;  %v1569_v51 = vadd.f32 %v10173_v34, %v12273_v0  ;;  %v5465_v47 = vrot.slane %v10106_v60, %v9047_v45 }
 0x36d   : > { %v5450_v55 = vrot.slane %v3243_v2, %v8989_v30  ;;  %v2587_v60 = vmul.f32 %v9751_v5, %v2068_v29  ;;  %v1562_v29 = vadd.f32 %v10061_v31, %v12278_v18 }
 0x36e   : > { %v2598_v54 = vmul.f32 %v9751_v5, %v2079_v44 }
 0x36f   : > { %v5451_v63 = vsel %vm4411_vm11, %v5450_v55, %v5446_v41  ;;  %3382 = vadd.xlane.f32.xlu1 %v2583_v46  ;;  %3404 = vadd.xlane.f32.xlu0 %v2594_v10  ;;  %v2070_v55 = vand.u32 2147483647, %v1558_v8  ;;  %v1571_v46 = vadd.f32 %v10173_v34, %v12318_v13  ;;  %v2072_v8 = vand.u32 2147483647, %v1560_v52 }
 0x370   : > { %v3247_v24 = vpop.xlane.xlu1 %3246  ;;  %v5456_v12 = vsel %vm4418_vm12, %v5455_v28, %v5451_v63  ;;  %v10177_v6 = vpop.xlane.xlu0 %3268  ;;  %v2081_v28 = vand.u32 2147483647, %v1569_v51  ;;  %v5475_v63 = vrot.slane %v10120_v43, %v12322_v50 }
 0x371   : > { %v5460_v59 = vrot.slane %v3247_v24, %v9040_v53  ;;  %v2589_v51 = vmul.f32 %v9751_v5, %v2070_v55  ;;  %v2591_v55 = vmul.f32 %v9751_v5, %v2072_v8 }
 0x372   : > { %v2600_v43 = vmul.f32 %v9751_v5, %v2081_v28 }
 0x373   : > { %v5461_v2 = vsel %vm4425_vm13, %v5460_v59, %v5456_v12  ;;  %3386 = vadd.xlane.f32.xlu1 %v2585_v57  ;;  %3408 = vadd.xlane.f32.xlu0 %v2596_v7  ;;  %v2083_v59 = vand.u32 2147483647, %v1571_v46 }
 0x374   : > { %v3251_v41 = vpop.xlane.xlu1 %3250  ;;  %v5466_v16 = vsel %vm4432_vm14, %v5465_v47, %v5461_v2  ;;  %v10190_v19 = vpop.xlane.xlu0 %3272  ;;  %v1573_v47 = vadd.f32 %v10173_v34, %v12326_v4 }
 0x375   : > { %v5470_v10 = vrot.slane %v3251_v41, %v12319_v23  ;;  %v1564_v41 = vadd.f32 %v10061_v31, %v12327_v15 }
 0x377   : > { %v5471_v24 = vsel %vm4439_vm15, %v5470_v10, %v5466_v16  ;;  %3390 = vadd.xlane.f32.xlu1 %v2587_v60  ;;  %3412 = vadd.xlane.f32.xlu0 %v2598_v54  ;;  %v2602_v10 = vmul.f32 %v9751_v5, %v2083_v59  ;;  %v2074_v60 = vand.u32 2147483647, %v1562_v29  ;;  %v5485_v54 = vrot.slane %v10133_v1, %v12290_v61 }
 0x378   : > { %v3255_v12 = vpop.xlane.xlu1 %3254  ;;  %v5476_v57 = vsel %vm4446_vm0, %v5475_v63, %v5471_v24  ;;  %v10203_v7 = vpop.xlane.xlu0 %3276  ;;  %v2085_v63 = vand.u32 2147483647, %v1573_v47  ;;  %v1575_v24 = vadd.f32 %v10173_v34, %v12281_v22  ;;  %v2076_v29 = vand.u32 2147483647, %v1564_v41 }
 0x379   : > { %v5480_v44 = vrot.slane %v3255_v12, %v12324_v49  ;;  %v2593_v1 = vmul.f32 %v9751_v5, %v2074_v60  ;;  %v1577_v47 = vadd.f32 %v10173_v34, %v12283_v42 }
 0x37a   : > { %v2595_v60 = vmul.f32 %v9751_v5, %v2076_v29 }
 0x37b   : > { %v5481_v2 = vsel %vm4453_vm2, %v5480_v44, %v5476_v57  ;;  %3394 = vadd.xlane.f32.xlu1 %v2589_v51  ;;  %3416 = vadd.xlane.f32.xlu0 %v2600_v43  ;;  %v1566_v44 = vadd.f32 %v10061_v31, %v12282_v11  ;;  %v2604_v43 = vmul.f32 %v9751_v5, %v2085_v63 }
 0x37c   : > { %v10217_v16 = vsel %vm12343_vm6, %v5481_v2, %v10104_v14  ;;  %v3259_v52 = vpop.xlane.xlu1 %3258  ;;  %v10219_v46 = vpop.xlane.xlu0 %3280  ;;  %v5494_v14 = vrot.slane %v10146_v27, %v12292_v56  ;;  %v2087_v27 = vand.u32 2147483647, %v1575_v24  ;;  %v5504_v2 = vrot.slane %v10161_v26, %v12294_v9 }
 0x37d   : > { %v5489_v28 = vrot.slane %v3259_v52, %v12289_v36  ;;  %v2089_v26 = vand.u32 2147483647, %v1577_v47  ;;  %vm12346_vm6 = vcmask 458112  }
 0x37e   : > { %v2606_v24 = vmul.f32 %v9751_v5, %v2087_v27  ;;  %v1570_v5 = vadd.f32 %v10173_v34, %v12287_v17 }
 0x37f   : > { %v5490_v12 = vsel %vm4355_vm3, %v5489_v28, %v5485_v54  ;;  %3398 = vadd.xlane.f32.xlu1 %v2591_v55  ;;  %3420 = vadd.xlane.f32.xlu0 %v2602_v10  ;;  %v2078_v54 = vand.u32 2147483647, %v1566_v44  ;;  %v1568_v28 = vadd.f32 %v10061_v31, %v12284_v32  ;;  %v1581_v44 = vadd.f32 %v10173_v34, %v12263_v35 }
 0x380   : > { %v3263_v57 = vpop.xlane.xlu1 %3262  ;;  %v5495_v8 = vsel %vm4362_vm4, %v5494_v14, %v5490_v12  ;;  %v10232_v59 = vpop.xlane.xlu0 %3284  ;;  %v1579_v14 = vadd.f32 %v10173_v34, %v12285_v21  ;;  %v5514_v12 = vrot.slane %v10177_v6, %v12297_v58  ;;  %v10268_v6 = vld [vmem:[%s12094_s8] ss:$0 sm:$0xff] }
 0x381   : > { %v5499_v51 = vrot.slane %v3263_v57, %v12291_v48  ;;  %v2080_v31 = vand.u32 2147483647, %v1568_v28  ;;  %v2608_v27 = vmul.f32 %v10268_v6, %v2089_v26 }
 0x382   : > { %v2091_v47 = vand.u32 2147483647, %v1579_v14  ;;  %v1583_v14 = vadd.f32 %v10173_v34, %v12270_v38 }
 0x383   : > { %v5500_v52 = vsel %vm4369_vm5, %v5499_v51, %v5495_v8  ;;  %3402 = vadd.xlane.f32.xlu1 %v2593_v1  ;;  %3424 = vadd.xlane.f32.xlu0 %v2604_v43  ;;  %v2597_v43 = vmul.f32 %v10268_v6, %v2078_v54  ;;  %v2599_v28 = vmul.f32 %v10268_v6, %v2080_v31 }
 0x384   : > { %v3267_v55 = vpop.xlane.xlu1 %3266  ;;  %v5505_v41 = vsel %vm12344_vm8, %v5504_v2, %v5500_v52  ;;  %v10245_v10 = vpop.xlane.xlu0 %3288  ;;  %v5524_v2 = vrot.slane %v10190_v19, %v8986_v20  ;;  %v2610_v26 = vmul.f32 %v10268_v6, %v2091_v47  ;;  %v1572_v19 = vadd.f32 %v10173_v34, %v12268_v37 }
 0x385   : > { %v5509_v63 = vrot.slane %v3267_v55, %v12293_v39  ;;  %vm12348_vm8 = vcmask 1046534  }
 0x386   : > { %v2084_v47 = vand.u32 2147483647, %v1572_v19 }
 0x387   : > { %v5510_v57 = vsel %vm12345_vm7, %v5509_v63, %v5505_v41  ;;  %3406 = vadd.xlane.f32.xlu1 %v2595_v60  ;;  %3428 = vadd.xlane.f32.xlu0 %v2606_v24  ;;  %v2082_v63 = vand.u32 2147483647, %v1570_v5  ;;  %v2093_v24 = vand.u32 2147483647, %v1581_v44  ;;  %vm12350_vm7 = vcmask 326912  }
 0x388   : > { %v3271_v8 = vpop.xlane.xlu1 %3270  ;;  %v5515_v1 = vsel %vm12346_vm6, %v5514_v12, %v5510_v57  ;;  %v10258_v29 = vpop.xlane.xlu0 %3292  ;;  %v5534_v12 = vrot.slane %v10203_v7, %v9021_v40  ;;  %v12347_v57 = vld [vmem:[#allocation12_spill] sm:$0xff]  ;;  %v1574_v7 = vadd.f32 %v10173_v34, %v12272_v25  ;;  %vm12351_vm6 = vcmask 392512  }
 0x389   : > { %v5519_v51 = vrot.slane %v3271_v8, %v12271_v33  ;;  %v10289_v8 = vrot.slane %v12347_v57, %v12288_v3 }
 0x38b   : > { %v5520_v52 = vsel %vm4397_vm9, %v5519_v51, %v5515_v1  ;;  %3410 = vadd.xlane.f32.xlu1 %v2597_v43  ;;  %3432 = vadd.xlane.f32.xlu0 %v2608_v27  ;;  %v2601_v51 = vmul.f32 %v10268_v6, %v2082_v63  ;;  %v2612_v43 = vmul.f32 %v10268_v6, %v2093_v24 }
 0x38c   : > { %v3275_v55 = vpop.xlane.xlu1 %3274  ;;  %v5525_v41 = vsel %vm4404_vm10, %v5524_v2, %v5520_v52  ;;  %v10276_v60 = vpop.xlane.xlu0 %3296  ;;  %v2095_v2 = vand.u32 2147483647, %v1583_v14  ;;  %v1585_v52 = vadd.f32 %v10289_v8, %v12273_v0  ;;  %v1587_v19 = vadd.f32 %v10289_v8, %v12318_v13 }
 0x38d   : > { %v5529_v54 = vrot.slane %v3275_v55, %v8989_v30  ;;  %v5544_v55 = vrot.slane %v10219_v46, %v9047_v45  ;;  %v2603_v46 = vmul.f32 %v10268_v6, %v2084_v47  ;;  %v1578_v47 = vadd.f32 %v10173_v34, %v12278_v18 }
 0x38f   : > { %v5530_v1 = vsel %vm4411_vm11, %v5529_v54, %v5525_v41  ;;  %3414 = vadd.xlane.f32.xlu1 %v2599_v28  ;;  %3436 = vadd.xlane.f32.xlu0 %v2610_v26  ;;  %v1576_v28 = vadd.f32 %v10173_v34, %v12276_v62  ;;  %v2086_v26 = vand.u32 2147483647, %v1574_v7 }
 0x390   : > { %v3279_v31 = vpop.xlane.xlu1 %3278  ;;  %v5535_v5 = vsel %vm4418_vm12, %v5534_v12, %v5530_v1  ;;  %v10293_v44 = vpop.xlane.xlu0 %3300  ;;  %v2614_v12 = vmul.f32 %v10268_v6, %v2095_v2  ;;  %v2097_v1 = vand.u32 2147483647, %v1585_v52 }
 0x391   : > { %v5539_v27 = vrot.slane %v3279_v31, %v9040_v53  ;;  %v5554_v31 = vrot.slane %v10232_v59, %v12322_v50  ;;  %v2605_v52 = vmul.f32 %v10268_v6, %v2086_v26 }
 0x392   : > { %v2616_v59 = vmul.f32 %v10268_v6, %v2097_v1  ;;  %v5564_v1 = vrot.slane %v10245_v10, %v12290_v61 }
 0x393   : > { %v5540_v41 = vsel %vm4425_vm13, %v5539_v27, %v5535_v5  ;;  %3418 = vadd.xlane.f32.xlu1 %v2601_v51  ;;  %3440 = vadd.xlane.f32.xlu0 %v2612_v43  ;;  %v2088_v51 = vand.u32 2147483647, %v1576_v28 }
 0x394   : > { %v3283_v63 = vpop.xlane.xlu1 %3282  ;;  %v5545_v24 = vsel %vm4432_vm14, %v5544_v55, %v5540_v41  ;;  %v10308_v54 = vpop.xlane.xlu0 %3304  ;;  %v2099_v55 = vand.u32 2147483647, %v1587_v19  ;;  %v1589_v41 = vadd.f32 %v10289_v8, %v12326_v4 }
 0x395   : > { %v5549_v14 = vrot.slane %v3283_v63, %v12319_v23  ;;  %v2607_v63 = vmul.f32 %v10268_v6, %v2088_v51  ;;  %v1591_v51 = vadd.f32 %v10289_v8, %v12281_v22 }
 0x396   : > { %v2618_v26 = vmul.f32 %v10268_v6, %v2099_v55 }
 0x397   : > { %v5550_v5 = vsel %vm4439_vm15, %v5549_v14, %v5545_v24  ;;  %3422 = vadd.xlane.f32.xlu1 %v2603_v46  ;;  %3444 = vadd.xlane.f32.xlu0 %v2614_v12  ;;  %v2090_v46 = vand.u32 2147483647, %v1578_v47  ;;  %v1580_v12 = vadd.f32 %v10173_v34, %v12327_v15 }
 0x398   : > { %v3287_v43 = vpop.xlane.xlu1 %3286  ;;  %v5555_v7 = vsel %vm4446_vm0, %v5554_v31, %v5550_v5  ;;  %v10319_v27 = vpop.xlane.xlu0 %3308  ;;  %v2101_v5 = vand.u32 2147483647, %v1589_v41 }
 0x399   : > { %v5559_v2 = vrot.slane %v3287_v43, %v12324_v49  ;;  %v2609_v10 = vmul.f32 %v10268_v6, %v2090_v46 }
 0x39a   : > { %v2620_v41 = vmul.f32 %v10268_v6, %v2101_v5  ;;  %v1584_v5 = vadd.f32 %v10173_v34, %v12284_v32 }
 0x39b   : > { %v5560_v28 = vsel %vm4453_vm2, %v5559_v2, %v5555_v7  ;;  %3426 = vadd.xlane.f32.xlu1 %v2605_v52  ;;  %3448 = vadd.xlane.f32.xlu0 %v2616_v59  ;;  %v2092_v2 = vand.u32 2147483647, %v1580_v12  ;;  %v1582_v52 = vadd.f32 %v10173_v34, %v12282_v11 }
 0x39c   : > { %v10332_v24 = vsel %vm12348_vm8, %v5560_v28, %v10217_v16  ;;  %v3291_v19 = vpop.xlane.xlu1 %3290  ;;  %v10334_v14 = vpop.xlane.xlu0 %3312  ;;  %v5573_v16 = vrot.slane %v10258_v29, %v12292_v56  ;;  %v2103_v29 = vand.u32 2147483647, %v1591_v51  ;;  %v1593_v28 = vadd.f32 %v10289_v8, %v12283_v42 }
 0x39d   : > { %12349 = vst [vmem:[#allocation37_spill] sm:$0xff] %v10332_v24  ;;  %v5568_v31 = vrot.slane %v3291_v19, %v12289_v36  ;;  %vm12352_vm8 = vcmask 458112   ;;  %v1598_v24 = vadd.f32 %v10289_v8, %v12282_v11 }
 0x39f   : > { %v5569_v43 = vsel %vm4355_vm3, %v5568_v31, %v5564_v1  ;;  %3430 = vadd.xlane.f32.xlu1 %v2607_v63  ;;  %3452 = vadd.xlane.f32.xlu0 %v2618_v26  ;;  %v5583_v63 = vrot.slane %v10276_v60, %v12294_v9  ;;  %v2611_v1 = vmul.f32 %v10268_v6, %v2092_v2  ;;  %v2094_v31 = vand.u32 2147483647, %v1582_v52 }
 0x3a0   : > { %v3295_v7 = vpop.xlane.xlu1 %3294  ;;  %v5574_v55 = vsel %vm4362_vm4, %v5573_v16, %v5569_v43  ;;  %v10348_v47 = vpop.xlane.xlu0 %3316  ;;  %v2622_v16 = vmul.f32 %v10268_v6, %v2103_v29  ;;  %v2105_v60 = vand.u32 2147483647, %v1593_v28  ;;  %v1595_v43 = vadd.f32 %v10289_v8, %v12285_v21 }
 0x3a1   : > { %v5578_v59 = vrot.slane %v3295_v7, %v12291_v48  ;;  %v5593_v7 = vrot.slane %v10293_v44, %v12297_v58  ;;  %v2613_v34 = vmul.f32 %v10268_v6, %v2094_v31 }
 0x3a2   : > { %v2624_v28 = vmul.f32 %v10268_v6, %v2105_v60  ;;  %v2107_v44 = vand.u32 2147483647, %v1595_v43 }
 0x3a3   : > { %v5579_v19 = vsel %vm4369_vm5, %v5578_v59, %v5574_v55  ;;  %3434 = vadd.xlane.f32.xlu1 %v2609_v10  ;;  %3456 = vadd.xlane.f32.xlu0 %v2620_v41  ;;  %v2096_v59 = vand.u32 2147483647, %v1584_v5  ;;  %v1586_v41 = vadd.f32 %v10289_v8, %v12287_v17 }
 0x3a4   : > { %v3299_v26 = vpop.xlane.xlu1 %3298  ;;  %v5584_v46 = vsel %vm12350_vm7, %v5583_v63, %v5579_v19  ;;  %v10361_v12 = vpop.xlane.xlu0 %3320  ;;  %v1597_v63 = vadd.f32 %v10289_v8, %v12263_v35  ;;  %v5603_v19 = vrot.slane %v10308_v54, %v8986_v20  ;;  %v2626_v43 = vmul.f32 %v10268_v6, %v2107_v44 }
 0x3a5   : > { %v5588_v51 = vrot.slane %v3299_v26, %v12293_v39  ;;  %v2615_v5 = vmul.f32 %v10268_v6, %v2096_v59 }
 0x3a6   : > { %v2109_v54 = vand.u32 2147483647, %v1597_v63  ;;  %v1590_v63 = vadd.f32 %v10289_v8, %v12272_v25 }
 0x3a7   : > { %v5589_v55 = vsel %vm12351_vm6, %v5588_v51, %v5584_v46  ;;  %3438 = vadd.xlane.f32.xlu1 %v2611_v1  ;;  %3460 = vadd.xlane.f32.xlu0 %v2622_v16  ;;  %v2098_v51 = vand.u32 2147483647, %v1586_v41  ;;  %v1588_v16 = vadd.f32 %v10289_v8, %v12268_v37 }
 0x3a8   : > { %v3303_v10 = vpop.xlane.xlu1 %3302  ;;  %v5594_v2 = vsel %vm12352_vm8, %v5593_v7, %v5589_v55  ;;  %v10374_v52 = vpop.xlane.xlu0 %3324  ;;  %v1599_v7 = vadd.f32 %v10289_v8, %v12270_v38  ;;  %v5613_v55 = vrot.slane %v10319_v27, %v9021_v40 }
 0x3a9   : > { %v5598_v29 = vrot.slane %v3303_v10, %v12271_v33  ;;  %v12353_v10 = vld [vmem:[#allocation14_spill] sm:$0xff]  ;;  %v2100_v44 = vand.u32 2147483647, %v1588_v16 }
 0x3ab   : > { %v5599_v26 = vsel %vm4397_vm9, %v5598_v29, %v5594_v2  ;;  %3442 = vadd.xlane.f32.xlu1 %v2613_v34  ;;  %3464 = vadd.xlane.f32.xlu0 %v2624_v28  ;;  %v10400_v2 = vrot.slane %v12353_v10, %v12288_v3  ;;  %v2617_v28 = vmul.f32 %v10268_v6, %v2098_v51 }
 0x3ac   : > { %v3307_v46 = vpop.xlane.xlu1 %3306  ;;  %v5604_v1 = vsel %vm4404_vm10, %v5603_v19, %v5599_v26  ;;  %v10387_v31 = vpop.xlane.xlu0 %3328  ;;  %v2628_v19 = vmul.f32 %v10268_v6, %v2109_v54  ;;  %v2111_v26 = vand.u32 2147483647, %v1599_v7  ;;  %v1592_v54 = vadd.f32 %v10289_v8, %v12276_v62 }
 0x3ad   : > { %v5608_v60 = vrot.slane %v3307_v46, %v8989_v30  ;;  %v1601_v46 = vadd.f32 %v10400_v2, %v12273_v0 }
 0x3af   : > { %v5609_v34 = vsel %vm4411_vm11, %v5608_v60, %v5604_v1  ;;  %3446 = vadd.xlane.f32.xlu1 %v2615_v5  ;;  %3468 = vadd.xlane.f32.xlu0 %v2626_v43  ;;  %v5623_v1 = vrot.slane %v10334_v14, %v9047_v45  ;;  %v2619_v43 = vmul.f32 %v10268_v6, %v2100_v44  ;;  %v2113_v14 = vand.u32 2147483647, %v1601_v46 }
 0x3b0   : > { %v3311_v59 = vpop.xlane.xlu1 %3310  ;;  %v5614_v41 = vsel %vm4418_vm12, %v5613_v55, %v5609_v34  ;;  %v10404_v29 = vpop.xlane.xlu0 %3332  ;;  %v2102_v55 = vand.u32 2147483647, %v1590_v63  ;;  %v2630_v34 = vmul.f32 %v10268_v6, %v2111_v26  ;;  %v1594_v26 = vadd.f32 %v10289_v8, %v12278_v18 }
 0x3b1   : > { %v5618_v27 = vrot.slane %v3311_v59, %v9040_v53  ;;  %v1603_v59 = vadd.f32 %v10400_v2, %v12318_v13  ;;  %v1605_v46 = vadd.f32 %v10400_v2, %v12326_v4 }
 0x3b3   : > { %v5619_v5 = vsel %vm4425_vm13, %v5618_v27, %v5614_v41  ;;  %3450 = vadd.xlane.f32.xlu1 %v2617_v28  ;;  %3472 = vadd.xlane.f32.xlu0 %v2628_v19  ;;  %v5633_v41 = vrot.slane %v10348_v47, %v12322_v50  ;;  %v2104_v19 = vand.u32 2147483647, %v1592_v54  ;;  %v2621_v47 = vmul.f32 %v10268_v6, %v2102_v55 }
 0x3b4   : > { %v3315_v51 = vpop.xlane.xlu1 %3314  ;;  %v5624_v16 = vsel %vm4432_vm14, %v5623_v1, %v5619_v5  ;;  %v10417_v60 = vpop.xlane.xlu0 %3336  ;;  %v2632_v5 = vmul.f32 %v10268_v6, %v2113_v14  ;;  %v1596_v55 = vadd.f32 %v10289_v8, %v12327_v15  ;;  %v5643_v14 = vrot.slane %v10361_v12, %v12290_v61 }
 0x3b5   : > { %v5628_v7 = vrot.slane %v3315_v51, %v12319_v23  ;;  %v2115_v51 = vand.u32 2147483647, %v1603_v59 }
 0x3b7   : > { %v5629_v28 = vsel %vm4439_vm15, %v5628_v7, %v5624_v16  ;;  %3454 = vadd.xlane.f32.xlu1 %v2619_v43  ;;  %3476 = vadd.xlane.f32.xlu0 %v2630_v34  ;;  %v12354_v16 = vld [vmem:[#allocation15_spill] sm:$0xff] }
 0x3b8   : > { %v3319_v44 = vpop.xlane.xlu1 %3318  ;;  %v5634_v63 = vsel %vm4446_vm0, %v5633_v41, %v5629_v28  ;;  %v10430_v27 = vpop.xlane.xlu0 %3340  ;;  %v10441_v43 = vrot.slane %v12354_v16, %v12288_v3  ;;  %v2623_v41 = vmul.f32 %v10268_v6, %v2104_v19  ;;  %v2106_v28 = vand.u32 2147483647, %v1594_v26  ;;  %v12356_v19 = vld [vmem:[#allocation18_spill] sm:$0xff] }
 0x3b9   : > { %v5638_v1 = vrot.slane %v3319_v44, %v12324_v49  ;;  %v2117_v44 = vand.u32 2147483647, %v1605_v46  ;;  %v10461_v26 = vrot.slane %v12356_v19, %v12288_v3 }
 0x3bb   : > { %v10444_v7 = vsel %vm4453_vm2, %v5638_v1, %v5634_v63  ;;  %3458 = vadd.xlane.f32.xlu1 %v2621_v47  ;;  %3480 = vadd.xlane.f32.xlu0 %v2632_v5  ;;  %v2634_v63 = vmul.f32 %v10268_v6, %v2115_v51  ;;  %v1650_v1 = vadd.f32 %v10441_v43, %v12287_v17 }
 0x3bc   : > { %12355 = vst [vmem:[#allocation34_spill] sm:$0xff] %v10444_v7  ;;  %v3323_v54 = vpop.xlane.xlu1 %3322  ;;  %v10446_v34 = vpop.xlane.xlu0 %3344  ;;  %v5652_v47 = vrot.slane %v10374_v52, %v12292_v56  ;;  %v2625_v51 = vmul.f32 %v10268_v6, %v2106_v28  ;;  %v2108_v7 = vand.u32 2147483647, %v1596_v55  ;;  %v2636_v38 = vmul.f32 %v10268_v6, %v2117_v44 }
 0x3bd   : > { %v5647_v59 = vrot.slane %v3323_v54, %v12289_v36  ;;  %v2162_v35 = vand.u32 2147483647, %v1650_v1  ;;  %v2110_v1 = vand.u32 2147483647, %v1598_v24 }
 0x3be   : > { %v2627_v44 = vmul.f32 %v10268_v6, %v2108_v7 }
 0x3bf   : > { %v5648_v46 = vsel %vm4355_vm3, %v5647_v59, %v5643_v14  ;;  %3462 = vadd.xlane.f32.xlu1 %v2623_v41  ;;  %3484 = vadd.xlane.f32.xlu0 %v2634_v63  ;;  %v1666_v41 = vadd.f32 %v10461_v26, %v12287_v17  ;;  %v5662_v14 = vrot.slane %v10387_v31, %v12294_v9 }
 0x3c0   : > { %v3327_v5 = vpop.xlane.xlu1 %3326  ;;  %v5653_v12 = vsel %vm4362_vm4, %v5652_v47, %v5648_v46  ;;  %v10465_v54 = vpop.xlane.xlu0 %3348  ;;  %v1101_v59 = vcombine.high %v12354_v16, %v12354_v16  ;;  %v1600_v46 = vadd.f32 %v10289_v8, %v12284_v32 }
 0x3c1   : > { %v5657_v52 = vrot.slane %v3327_v5, %v12291_v48  ;;  %v2681_v5 = vmul.f32 %v10268_v6, %v2162_v35  ;;  %v2178_v16 = vand.u32 2147483647, %v1666_v41  ;;  %v2629_v41 = vmul.f32 %v10268_v6, %v2110_v1 }
 0x3c2   : > { %v10494_v7 = vrot.slane %v1101_v59, %v12288_v3 }
 0x3c3   : > { %v5658_v28 = vsel %vm4369_vm5, %v5657_v52, %v5653_v12  ;;  %3466 = vadd.xlane.f32.xlu1 %v2625_v51  ;;  %3488 = vadd.xlane.f32.xlu0 %v2636_v38  ;;  %v1667_v12 = vadd.f32 %v10461_v26, %v12318_v13  ;;  %v5672_v38 = vrot.slane %v10404_v29, %v12297_v58 }
 0x3c4   : > { %v3331_v55 = vpop.xlane.xlu1 %3330  ;;  %v5663_v63 = vsel %vm12350_vm7, %v5662_v14, %v5658_v28  ;;  %v10480_v47 = vpop.xlane.xlu0 %3352  ;;  %v1103_v51 = vcombine.high %v12356_v19, %v12356_v19  ;;  %v2112_v14 = vand.u32 2147483647, %v1600_v46  ;;  %v1602_v29 = vadd.f32 %v10400_v2, %v12287_v17 }
 0x3c5   : > { %v5667_v31 = vrot.slane %v3331_v55, %v12293_v39  ;;  %v2697_v59 = vmul.f32 %v10268_v6, %v2178_v16  ;;  %v2179_v28 = vand.u32 2147483647, %v1667_v12  ;;  %v1682_v55 = vadd.f32 %v10494_v7, %v12287_v17 }
 0x3c6   : > { %v2114_v16 = vand.u32 2147483647, %v1602_v29  ;;  %v1604_v12 = vadd.f32 %v10400_v2, %v12268_v37 }
 0x3c7   : > { %v5668_v24 = vsel %vm12351_vm6, %v5667_v31, %v5663_v63  ;;  %3470 = vadd.xlane.f32.xlu1 %v2627_v44  ;;  %3578 = vadd.xlane.f32.xlu0 %v2681_v5  ;;  %v5682_v63 = vrot.slane %v10417_v60, %v8986_v20  ;;  %v10510_v44 = vrot.slane %v1103_v51, %v12288_v3 }
 0x3c8   : > { %v3335_v8 = vpop.xlane.xlu1 %3334  ;;  %v5673_v35 = vsel %vm12352_vm8, %v5672_v38, %v5668_v24  ;;  %v10498_v52 = vpop.xlane.xlu0 %3356  ;;  %v1668_v38 = vadd.f32 %v10461_v26, %v12268_v37  ;;  %v2631_v51 = vmul.f32 %v10268_v6, %v2112_v14  ;;  %v2698_v24 = vmul.f32 %v10268_v6, %v2179_v28 }
 0x3c9   : > { %v5677_v19 = vrot.slane %v3335_v8, %v12271_v33  ;;  %v2194_v8 = vand.u32 2147483647, %v1682_v55  ;;  %v1697_v55 = vadd.f32 %v10510_v44, %v12273_v0 }
 0x3cb   : > { %v5678_v1 = vsel %vm4397_vm9, %v5677_v19, %v5673_v35  ;;  %3474 = vadd.xlane.f32.xlu1 %v2629_v41  ;;  %3610 = vadd.xlane.f32.xlu0 %v2697_v59  ;;  %v5692_v35 = vrot.slane %v10430_v27, %v9021_v40  ;;  %v2713_v28 = vmul.f32 %v10268_v6, %v2194_v8 }
 0x3cc   : > { %v3339_v46 = vpop.xlane.xlu1 %3338  ;;  %v5683_v31 = vsel %vm4404_vm10, %v5682_v63, %v5678_v1  ;;  %v10514_v5 = vpop.xlane.xlu0 %3360  ;;  %v2633_v63 = vmul.f32 %v10268_v6, %v2114_v16  ;;  %v2116_v1 = vand.u32 2147483647, %v1604_v12  ;;  %v1649_v27 = vadd.f32 %v10441_v43, %v12273_v0 }
 0x3cd   : > { %v5687_v60 = vrot.slane %v3339_v46, %v8989_v30  ;;  %v2180_v46 = vand.u32 2147483647, %v1668_v38  ;;  %v1665_v8 = vadd.f32 %v10461_v26, %v12273_v0 }
 0x3cf   : > { %v5688_v41 = vsel %vm4411_vm11, %v5687_v60, %v5683_v31  ;;  %3478 = vadd.xlane.f32.xlu1 %v2631_v51  ;;  %3612 = vadd.xlane.f32.xlu0 %v2698_v24  ;;  %v5702_v31 = vrot.slane %v10446_v34, %v9047_v45  ;;  %v2635_v51 = vmul.f32 %v10268_v6, %v2116_v1  ;;  %v2209_v34 = vand.u32 2147483647, %v1697_v55 }
 0x3d0   : > { %v3343_v29 = vpop.xlane.xlu1 %3342  ;;  %v5693_v19 = vsel %vm4418_vm12, %v5692_v35, %v5688_v41  ;;  %v10527_v59 = vpop.xlane.xlu0 %3364  ;;  %v2699_v24 = vmul.f32 %v10268_v6, %v2180_v46  ;;  %v2161_v41 = vand.u32 2147483647, %v1649_v27  ;;  %v2177_v27 = vand.u32 2147483647, %v1665_v8 }
 0x3d1   : > { %v5697_v14 = vrot.slane %v3343_v29, %v9040_v53  ;;  %v1653_v29 = vadd.f32 %v10441_v43, %v12326_v4  ;;  %v1651_v55 = vadd.f32 %v10441_v43, %v12318_v13 }
 0x3d3   : > { %v5698_v60 = vsel %vm4425_vm13, %v5697_v14, %v5693_v19  ;;  %3482 = vadd.xlane.f32.xlu1 %v2633_v63  ;;  %3642 = vadd.xlane.f32.xlu0 %v2713_v28  ;;  %v5712_v19 = vrot.slane %v10465_v54, %v12322_v50  ;;  %v12357_v63 = vld [vmem:[#allocation16_spill] sm:$0xff]  ;;  %v1684_v54 = vadd.f32 %v10494_v7, %v12268_v37 }
 0x3d4   : > { %v3347_v16 = vpop.xlane.xlu1 %3346  ;;  %v5703_v12 = vsel %vm4432_vm14, %v5702_v31, %v5698_v60  ;;  %v10540_v38 = vpop.xlane.xlu0 %3368  ;;  %v10553_v14 = vrot.slane %v12357_v63, %v12288_v3 }
 0x3d5   : > { %v5707_v35 = vrot.slane %v3347_v16, %v12319_v23  ;;  %v2680_v16 = vmul.f32 %v10268_v6, %v2161_v41  ;;  %v2196_v32 = vand.u32 2147483647, %v1684_v54  ;;  %v5722_v41 = vrot.slane %v10480_v47, %v12290_v61 }
 0x3d7   : > { %v5708_v1 = vsel %vm4439_vm15, %v5707_v35, %v5703_v12  ;;  %3486 = vadd.xlane.f32.xlu1 %v2635_v51  ;;  %3614 = vadd.xlane.f32.xlu0 %v2699_v24  ;;  %v2728_v12 = vmul.f32 %v10268_v6, %v2209_v34  ;;  %v2165_v51 = vand.u32 2147483647, %v1653_v29 }
 0x3d8   : > { %v3351_v46 = vpop.xlane.xlu1 %3350  ;;  %v5713_v28 = vsel %vm4446_vm0, %v5712_v19, %v5708_v1  ;;  %v10557_v31 = vpop.xlane.xlu0 %3372  ;;  %v2696_v19 = vmul.f32 %v10268_v6, %v2177_v27  ;;  %v2163_v1 = vand.u32 2147483647, %v1651_v55 }
 0x3d9   : > { %v5717_v60 = vrot.slane %v3351_v46, %v12324_v49  ;;  %v1681_v46 = vadd.f32 %v10494_v7, %v12273_v0  ;;  %v2684_v29 = vmul.f32 %v10268_v6, %v2165_v51 }
 0x3da   : > { %v2682_v47 = vmul.f32 %v10268_v6, %v2163_v1 }
 0x3db   : > { %v10567_v24 = vsel %vm4453_vm2, %v5717_v60, %v5713_v28  ;;  %3576 = vadd.xlane.f32.xlu1 %v2680_v16  ;;  %3672 = vadd.xlane.f32.xlu0 %v2728_v12  ;;  %v1713_v28 = vadd.f32 %v10553_v14, %v12273_v0  ;;  %v5731_v60 = vrot.slane %v10498_v52, %v12292_v56  ;;  %v2193_v51 = vand.u32 2147483647, %v1681_v46 }
 0x3dc   : > { %v3355_v35 = vpop.xlane.xlu1 %3354  ;;  %v10569_v8 = vpop.xlane.xlu0 %3376  ;;  %v2715_v12 = vmul.f32 %v10268_v6, %v2196_v32  ;;  %v1652_v52 = vadd.f32 %v10441_v43, %v12268_v37 }
 0x3dd   : > { %v5726_v34 = vrot.slane %v3355_v35, %v12289_v36  ;;  %v2225_v11 = vand.u32 2147483647, %v1713_v28  ;;  %v1683_v28 = vadd.f32 %v10494_v7, %v12318_v13 }
 0x3df   : > { %v5727_v27 = vsel %vm4355_vm3, %v5726_v34, %v5722_v41  ;;  %3608 = vadd.xlane.f32.xlu1 %v2696_v19  ;;  %3584 = vadd.xlane.f32.xlu0 %v2684_v29  ;;  %v1654_v19 = vadd.f32 %v10441_v43, %v12272_v25  ;;  %v5741_v41 = vrot.slane %v10514_v5, %v12294_v9 }
 0x3e0   : > { %v3359_v55 = vpop.xlane.xlu1 %3358  ;;  %v5732_v54 = vsel %vm4362_vm4, %v5731_v60, %v5727_v27  ;;  %v10584_v16 = vpop.xlane.xlu0 %3380  ;;  %v2712_v29 = vmul.f32 %v10268_v6, %v2193_v51  ;;  %v1685_v60 = vadd.f32 %v10494_v7, %v12326_v4  ;;  %v2744_v5 = vmul.f32 %v10268_v6, %v2225_v11 }
 0x3e1   : > { %v5736_v35 = vrot.slane %v3359_v55, %v12291_v48  ;;  %v2164_v55 = vand.u32 2147483647, %v1652_v52 }
 0x3e2   : > { %v2197_v15 = vand.u32 2147483647, %v1685_v60 }
 0x3e3   : > { %v5737_v34 = vsel %vm4369_vm5, %v5736_v35, %v5732_v54  ;;  %3580 = vadd.xlane.f32.xlu1 %v2682_v47  ;;  %3646 = vadd.xlane.f32.xlu0 %v2715_v12  ;;  %v2166_v54 = vand.u32 2147483647, %v1654_v19  ;;  %v5751_v47 = vrot.slane %v10527_v59, %v12297_v58  ;;  %v2683_v52 = vmul.f32 %v10268_v6, %v2164_v55 }
 0x3e4   : > { %v3363_v1 = vpop.xlane.xlu1 %3362  ;;  %v5742_v32 = vsel %vm12350_vm7, %v5741_v41, %v5737_v34  ;;  %v10597_v46 = vpop.xlane.xlu0 %3384  ;;  %v2195_v34 = vand.u32 2147483647, %v1683_v28  ;;  %v1715_v19 = vadd.f32 %v10553_v14, %v12318_v13  ;;  %v12358_v28 = vld [vmem:[#allocation19_spill] sm:$0xff] }
 0x3e5   : > { %v5746_v27 = vrot.slane %v3363_v1, %v12293_v39  ;;  %v1698_v1 = vadd.f32 %v10510_v44, %v12287_v17  ;;  %v2685_v59 = vmul.f32 %v10268_v6, %v2166_v54  ;;  %v10625_v60 = vrot.slane %v12358_v28, %v12288_v3 }
 0x3e6   : > { %v2227_v21 = vand.u32 2147483647, %v1715_v19 }
 0x3e7   : > { %v5747_v12 = vsel %vm12351_vm6, %v5746_v27, %v5742_v32  ;;  %3640 = vadd.xlane.f32.xlu1 %v2712_v29  ;;  %3704 = vadd.xlane.f32.xlu0 %v2744_v5  ;;  %v5761_v32 = vrot.slane %v10540_v38, %v8986_v20  ;;  %v1053_v29 = vcombine.high %v12347_v57, %v12347_v57 }
 0x3e8   : > { %v3367_v51 = vpop.xlane.xlu1 %3366  ;;  %v5752_v35 = vsel %vm12352_vm8, %v5751_v47, %v5747_v12  ;;  %v10610_v41 = vpop.xlane.xlu0 %3388  ;;  %v2714_v47 = vmul.f32 %v10268_v6, %v2195_v34  ;;  %v2210_v12 = vand.u32 2147483647, %v1698_v1  ;;  %v1669_v38 = vadd.f32 %v10461_v26, %v12326_v4 }
 0x3e9   : > { %v5756_v11 = vrot.slane %v3367_v51, %v12271_v33  ;;  %v2716_v51 = vmul.f32 %v10268_v6, %v2197_v15 }
 0x3ea   : > { %v2729_v15 = vmul.f32 %v10268_v6, %v2210_v12  ;;  %v2181_v19 = vand.u32 2147483647, %v1669_v38  ;;  %v1714_v12 = vadd.f32 %v10553_v14, %v12287_v17 }
 0x3eb   : > { %v5757_v27 = vsel %vm4397_vm9, %v5756_v11, %v5752_v35  ;;  %3582 = vadd.xlane.f32.xlu1 %v2683_v52  ;;  %3586 = vadd.xlane.f32.xlu0 %v2685_v59  ;;  %v1730_v35 = vadd.f32 %v10625_v60, %v12287_v17  ;;  %v5771_v11 = vrot.slane %v10557_v31, %v9021_v40 }
 0x3ec   : > { %v3371_v5 = vpop.xlane.xlu1 %3370  ;;  %v5762_v55 = vsel %vm4404_vm10, %v5761_v32, %v5757_v27  ;;  %v10629_v54 = vpop.xlane.xlu0 %3392  ;;  %v10641_v52 = vrot.slane %v1053_v29, %v12288_v3  ;;  %v1699_v27 = vadd.f32 %v10510_v44, %v12318_v13  ;;  %v2746_v29 = vmul.f32 %v10268_v6, %v2227_v21 }
 0x3ed   : > { %v5766_v57 = vrot.slane %v3371_v5, %v8989_v30  ;;  %v2242_v5 = vand.u32 2147483647, %v1730_v35  ;;  %v2700_v21 = vmul.f32 %v10268_v6, %v2181_v19 }
 0x3ee   : > { %v2211_v35 = vand.u32 2147483647, %v1699_v27 }
 0x3ef   : > { %v5767_v34 = vsel %vm4411_vm11, %v5766_v57, %v5762_v55  ;;  %3644 = vadd.xlane.f32.xlu1 %v2714_v47  ;;  %3648 = vadd.xlane.f32.xlu0 %v2716_v51  ;;  %v1618_v55 = vadd.f32 %v10641_v52, %v12287_v17  ;;  %v5781_v47 = vrot.slane %v10569_v8, %v9047_v45 }
 0x3f0   : > { %v3375_v1 = vpop.xlane.xlu1 %3374  ;;  %v5772_v59 = vsel %vm4418_vm12, %v5771_v11, %v5767_v34  ;;  %v10645_v32 = vpop.xlane.xlu0 %3396 }
 0x3f1   : > { %v5776_v31 = vrot.slane %v3375_v1, %v9040_v53  ;;  %v2761_v1 = vmul.f32 %v10268_v6, %v2242_v5  ;;  %v2130_v8 = vand.u32 2147483647, %v1618_v55  ;;  %v1670_v5 = vadd.f32 %v10461_v26, %v12272_v25 }
 0x3f2   : > { %v1701_v55 = vadd.f32 %v10510_v44, %v12326_v4 }
 0x3f3   : > { %v5777_v57 = vsel %vm4425_vm13, %v5776_v31, %v5772_v59  ;;  %3674 = vadd.xlane.f32.xlu1 %v2729_v15  ;;  %3708 = vadd.xlane.f32.xlu0 %v2746_v29  ;;  %v1671_v59 = vadd.f32 %v10461_v26, %v12281_v22  ;;  %v5791_v15 = vrot.slane %v10584_v16, %v12322_v50  ;;  %v2226_v29 = vand.u32 2147483647, %v1714_v12 }
 0x3f4   : > { %v3379_v38 = vpop.xlane.xlu1 %3378  ;;  %v5782_v51 = vsel %vm4432_vm14, %v5781_v47, %v5777_v57  ;;  %v10660_v11 = vpop.xlane.xlu0 %3400  ;;  %v2730_v16 = vmul.f32 %v10268_v6, %v2211_v35  ;;  %v1055_v12 = vcombine.high %v12353_v10, %v12353_v10  ;;  %v1700_v10 = vadd.f32 %v10510_v44, %v12268_v37 }
 0x3f5   : > { %v5786_v34 = vrot.slane %v3379_v38, %v12319_v23  ;;  %v2649_v38 = vmul.f32 %v10268_v6, %v2130_v8  ;;  %v2182_v8 = vand.u32 2147483647, %v1670_v5 }
 0x3f7   : > { %v5787_v31 = vsel %vm4439_vm15, %v5786_v34, %v5782_v51  ;;  %3616 = vadd.xlane.f32.xlu1 %v2700_v21  ;;  %3738 = vadd.xlane.f32.xlu0 %v2761_v1  ;;  %v2183_v51 = vand.u32 2147483647, %v1671_v59  ;;  %v1102_v21 = vcombine.high %v12357_v63, %v12357_v63  ;;  %v2745_v1 = vmul.f32 %v10268_v6, %v2226_v29 }
 0x3f8   : > { %v3383_v47 = vpop.xlane.xlu1 %3382  ;;  %v5792_v19 = vsel %vm4446_vm0, %v5791_v15, %v5787_v31  ;;  %v10671_v27 = vpop.xlane.xlu0 %3404  ;;  %v2213_v59 = vand.u32 2147483647, %v1701_v55  ;;  %v5801_v63 = vrot.slane %v10597_v46, %v12290_v61  ;;  %v1731_v29 = vadd.f32 %v10625_v60, %v12318_v13 }
 0x3f9   : > { %v5796_v57 = vrot.slane %v3383_v47, %v12324_v49  ;;  %v10706_v5 = vrot.slane %v1102_v21, %v12288_v3 }
 0x3fa   : > { %v2732_v21 = vmul.f32 %v10268_v6, %v2213_v59  ;;  %v1617_v59 = vadd.f32 %v10641_v52, %v12273_v0 }
 0x3fb   : > { %v5797_v34 = vsel %vm4453_vm2, %v5796_v57, %v5792_v19  ;;  %3676 = vadd.xlane.f32.xlu1 %v2730_v16  ;;  %3514 = vadd.xlane.f32.xlu0 %v2649_v38  ;;  %v2702_v19 = vmul.f32 %v10268_v6, %v2183_v51  ;;  %v10703_v57 = vrot.slane %v1055_v12, %v12288_v3 }
 0x3fc   : > { %v10688_v15 = vsel %vm6904_vm1, %v5797_v34, %v10567_v24  ;;  %v3387_v35 = vpop.xlane.xlu1 %3386  ;;  %v10690_v31 = vpop.xlane.xlu0 %3408  ;;  %v5810_v24 = vrot.slane %v10610_v41, %v12292_v56  ;;  %v2701_v51 = vmul.f32 %v10268_v6, %v2182_v8  ;;  %v2212_v34 = vand.u32 2147483647, %v1700_v10 }
 0x3fd   : > { %v5805_v47 = vrot.slane %v3387_v35, %v12289_v36  ;;  %v1729_v41 = vadd.f32 %v10625_v60, %v12273_v0  ;;  %v2243_v35 = vand.u32 2147483647, %v1731_v29 }
 0x3ff   : > { %v5806_v55 = vsel %vm4355_vm3, %v5805_v47, %v5801_v63  ;;  %3706 = vadd.xlane.f32.xlu1 %v2745_v1  ;;  %3620 = vadd.xlane.f32.xlu0 %v2702_v19  ;;  %v1746_v1 = vadd.f32 %v10706_v5, %v12287_v17  ;;  %v5820_v63 = vrot.slane %v10629_v54, %v12294_v9 }
 0x400   : > { %v3391_v46 = vpop.xlane.xlu1 %3390  ;;  %v5811_v16 = vsel %vm4362_vm4, %v5810_v24, %v5806_v55  ;;  %v10710_v38 = vpop.xlane.xlu0 %3412  ;;  %v2731_v24 = vmul.f32 %v10268_v6, %v2212_v34  ;;  %v2241_v55 = vand.u32 2147483647, %v1729_v41 }
 0x401   : > { %v5815_v12 = vrot.slane %v3391_v46, %v12291_v48  ;;  %v2762_v46 = vmul.f32 %v10268_v6, %v2243_v35  ;;  %v2258_v54 = vand.u32 2147483647, %v1746_v1  ;;  %v1655_v35 = vadd.f32 %v10441_v43, %v12281_v22 }
 0x403   : > { %v5816_v47 = vsel %vm4369_vm5, %v5815_v12, %v5811_v16  ;;  %3618 = vadd.xlane.f32.xlu1 %v2701_v51  ;;  %3680 = vadd.xlane.f32.xlu0 %v2732_v21  ;;  %v1633_v16 = vadd.f32 %v10703_v57, %v12273_v0  ;;  %v5830_v51 = vrot.slane %v10645_v32, %v12297_v58 }
 0x404   : > { %v3395_v8 = vpop.xlane.xlu1 %3394  ;;  %v5821_v10 = vsel %vm12350_vm7, %v5820_v63, %v5816_v47  ;;  %v10723_v19 = vpop.xlane.xlu0 %3416  ;;  %v2760_v63 = vmul.f32 %v10268_v6, %v2241_v55  ;;  %v2129_v47 = vand.u32 2147483647, %v1617_v59  ;;  %vm12359_vm7 = vcmask 1042434  }
 0x405   : > { %v5825_v29 = vrot.slane %v3395_v8, %v12293_v39  ;;  %v2777_v8 = vmul.f32 %v10268_v6, %v2258_v54  ;;  %v2145_v32 = vand.u32 2147483647, %v1633_v16  ;;  %v1686_v54 = vadd.f32 %v10494_v7, %v12272_v25 }
 0x407   : > { %v5826_v12 = vsel %vm12351_vm6, %v5825_v29, %v5821_v10  ;;  %3678 = vadd.xlane.f32.xlu1 %v2731_v24  ;;  %3740 = vadd.xlane.f32.xlu0 %v2762_v46  ;;  %v1656_v10 = vadd.f32 %v10441_v43, %v12276_v62  ;;  %v5840_v24 = vrot.slane %v10660_v11, %v8986_v20  ;;  %vm12360_vm6 = vcmask 326912  }
 0x408   : > { %v3399_v34 = vpop.xlane.xlu1 %3398  ;;  %v5831_v41 = vsel %vm12352_vm8, %v5830_v51, %v5826_v12  ;;  %v10736_v21 = vpop.xlane.xlu0 %3420  ;;  %v2648_v51 = vmul.f32 %v10268_v6, %v2129_v47  ;;  %v2167_v12 = vand.u32 2147483647, %v1655_v35  ;;  %vm12361_vm8 = vcmask 392512  }
 0x409   : > { %v5835_v1 = vrot.slane %v3399_v34, %v12271_v33  ;;  %v2664_v34 = vmul.f32 %v10268_v6, %v2145_v32  ;;  %v2168_v11 = vand.u32 2147483647, %v1656_v10  ;;  %v2198_v10 = vand.u32 2147483647, %v1686_v54 }
 0x40a   : > { %v2686_v32 = vmul.f32 %v10268_v6, %v2167_v12 }
 0x40b   : > { %v5836_v29 = vsel %vm4397_vm9, %v5835_v1, %v5831_v41  ;;  %3736 = vadd.xlane.f32.xlu1 %v2760_v63  ;;  %3770 = vadd.xlane.f32.xlu0 %v2777_v8  ;;  %v1687_v41 = vadd.f32 %v10494_v7, %v12281_v22  ;;  %v5850_v63 = vrot.slane %v10671_v27, %v9021_v40 }
 0x40c   : > { %v3403_v55 = vpop.xlane.xlu1 %3402  ;;  %v5841_v59 = vsel %vm4404_vm10, %v5840_v24, %v5836_v29  ;;  %v10749_v46 = vpop.xlane.xlu0 %3424  ;;  %v1104_v1 = vcombine.high %v12358_v28, %v12358_v28  ;;  %v1716_v29 = vadd.f32 %v10553_v14, %v12268_v37 }
 0x40d   : > { %v5845_v16 = vrot.slane %v3403_v55, %v8989_v30  ;;  %v2687_v55 = vmul.f32 %v10268_v6, %v2168_v11  ;;  %v2199_v28 = vand.u32 2147483647, %v1687_v41  ;;  %v2717_v11 = vmul.f32 %v10268_v6, %v2198_v10 }
 0x40e   : > { %v2228_v41 = vand.u32 2147483647, %v1716_v29 }
 0x40f   : > { %v5846_v47 = vsel %vm4411_vm11, %v5845_v16, %v5841_v59  ;;  %3512 = vadd.xlane.f32.xlu1 %v2648_v51  ;;  %3544 = vadd.xlane.f32.xlu0 %v2664_v34  ;;  %v1717_v59 = vadd.f32 %v10553_v14, %v12326_v4  ;;  %v5860_v51 = vrot.slane %v10690_v31, %v9047_v45 }
 0x410   : > { %v3407_v35 = vpop.xlane.xlu1 %3406  ;;  %v5851_v8 = vsel %vm4418_vm12, %v5850_v63, %v5846_v47  ;;  %v10764_v24 = vpop.xlane.xlu0 %3428  ;;  %v10776_v16 = vrot.slane %v1104_v1, %v12288_v3  ;;  %v1745_v47 = vadd.f32 %v10706_v5, %v12273_v0  ;;  %v2718_v3 = vmul.f32 %v10268_v6, %v2199_v28  ;;  %v10798_v6 = vld [vmem:[%s12094_s8] ss:$0 sm:$0xff] }
 0x411   : > { %v5855_v27 = vrot.slane %v3407_v35, %v9040_v53  ;;  %v2229_v1 = vand.u32 2147483647, %v1717_v59  ;;  %v1747_v35 = vadd.f32 %v10706_v5, %v12318_v13 }
 0x412   : > { %v2257_v28 = vand.u32 2147483647, %v1745_v47 }
 0x413   : > { %v5856_v12 = vsel %vm4425_vm13, %v5855_v27, %v5851_v8  ;;  %3588 = vadd.xlane.f32.xlu1 %v2686_v32  ;;  %3590 = vadd.xlane.f32.xlu0 %v2687_v55  ;;  %v5870_v8 = vrot.slane %v10710_v38, %v12322_v50  ;;  %v2747_v55 = vmul.f32 %v10798_v6, %v2228_v41 }
 0x414   : > { %v3411_v54 = vpop.xlane.xlu1 %3410  ;;  %v5861_v34 = vsel %vm4432_vm14, %v5860_v51, %v5856_v12  ;;  %v10780_v63 = vpop.xlane.xlu0 %3432  ;;  %v1619_v38 = vadd.f32 %v10641_v52, %v12318_v13  ;;  %v2748_v51 = vmul.f32 %v10798_v6, %v2229_v1  ;;  %v2259_v12 = vand.u32 2147483647, %v1747_v35 }
 0x415   : > { %v5865_v31 = vrot.slane %v3411_v54, %v12319_v23  ;;  %v1762_v54 = vadd.f32 %v10776_v16, %v12287_v17  ;;  %v1635_v35 = vadd.f32 %v10703_v57, %v12318_v13 }
 0x416   : > { %v2131_v1 = vand.u32 2147483647, %v1619_v38 }
 0x417   : > { %v5866_v32 = vsel %vm4439_vm15, %v5865_v31, %v5861_v34  ;;  %3650 = vadd.xlane.f32.xlu1 %v2717_v11  ;;  %3652 = vadd.xlane.f32.xlu0 %v2718_v3  ;;  %v1634_v11 = vadd.f32 %v10703_v57, %v12287_v17  ;;  %v2776_v3 = vmul.f32 %v10798_v6, %v2257_v28 }
 0x418   : > { %v3415_v10 = vpop.xlane.xlu1 %3414  ;;  %v5871_v29 = vsel %vm4446_vm0, %v5870_v8, %v5866_v32  ;;  %v10793_v27 = vpop.xlane.xlu0 %3436  ;;  %v5880_v8 = vrot.slane %v10723_v19, %v12290_v61  ;;  %v2778_v17 = vmul.f32 %v10798_v6, %v2259_v12  ;;  %v1672_v19 = vadd.f32 %v10461_v26, %v12276_v62 }
 0x419   : > { %v5875_v59 = vrot.slane %v3415_v10, %v12324_v49  ;;  %v2274_v10 = vand.u32 2147483647, %v1762_v54  ;;  %v2650_v54 = vmul.f32 %v10798_v6, %v2131_v1 }
 0x41b   : > { %v5876_v34 = vsel %vm4453_vm2, %v5875_v59, %v5871_v29  ;;  %3710 = vadd.xlane.f32.xlu1 %v2747_v55  ;;  %3712 = vadd.xlane.f32.xlu0 %v2748_v51  ;;  %v2146_v59 = vand.u32 2147483647, %v1634_v11  ;;  %v2147_v51 = vand.u32 2147483647, %v1635_v35 }
 0x41c   : > { %v10812_v41 = vsel %vm12359_vm7, %v5876_v34, %v10688_v15  ;;  %v3419_v47 = vpop.xlane.xlu1 %3418  ;;  %v10814_v31 = vpop.xlane.xlu0 %3440  ;;  %v5889_v15 = vrot.slane %v10736_v21, %v12292_v56  ;;  %v2793_v21 = vmul.f32 %v10798_v6, %v2274_v10  ;;  %v1673_v34 = vadd.f32 %v10461_v26, %v12283_v42 }
 0x41d   : > { %v5884_v32 = vrot.slane %v3419_v47, %v12289_v36  ;;  %v5899_v47 = vrot.slane %v10749_v46, %v12294_v9  ;;  %v2666_v1 = vmul.f32 %v10798_v6, %v2147_v51  ;;  %v1702_v46 = vadd.f32 %v10510_v44, %v12272_v25 }
 0x41e   : > { %vm12362_vm7 = vcmask 458112  }
 0x41f   : > { %v5885_v29 = vsel %vm4355_vm3, %v5884_v32, %v5880_v8  ;;  %3768 = vadd.xlane.f32.xlu1 %v2776_v3  ;;  %3772 = vadd.xlane.f32.xlu0 %v2778_v17  ;;  %v2665_v32 = vmul.f32 %v10798_v6, %v2146_v59  ;;  %v2184_v17 = vand.u32 2147483647, %v1672_v19 }
 0x420   : > { %v3423_v55 = vpop.xlane.xlu1 %3422  ;;  %v5890_v28 = vsel %vm4362_vm4, %v5889_v15, %v5885_v29  ;;  %v10827_v38 = vpop.xlane.xlu0 %3444  ;;  %v2185_v15 = vand.u32 2147483647, %v1673_v34  ;;  %v1703_v29 = vadd.f32 %v10510_v44, %v12281_v22 }
 0x421   : > { %v5894_v12 = vrot.slane %v3423_v55, %v12291_v48  ;;  %v5909_v55 = vrot.slane %v10764_v24, %v12297_v58 }
 0x422   : > { %v2704_v24 = vmul.f32 %v10798_v6, %v2185_v15 }
 0x423   : > { %v5895_v3 = vsel %vm4369_vm5, %v5894_v12, %v5890_v28  ;;  %3516 = vadd.xlane.f32.xlu1 %v2650_v54  ;;  %3802 = vadd.xlane.f32.xlu0 %v2793_v21  ;;  %v2703_v12 = vmul.f32 %v10798_v6, %v2184_v17  ;;  %v1732_v54 = vadd.f32 %v10625_v60, %v12268_v37 }
 0x424   : > { %v3427_v11 = vpop.xlane.xlu1 %3426  ;;  %v5900_v35 = vsel %vm12360_vm6, %v5899_v47, %v5895_v3  ;;  %v10840_v8 = vpop.xlane.xlu0 %3448  ;;  %v1733_v21 = vadd.f32 %v10625_v60, %v12326_v4  ;;  %v2214_v47 = vand.u32 2147483647, %v1702_v46  ;;  %v2215_v3 = vand.u32 2147483647, %v1703_v29 }
 0x425   : > { %v5904_v10 = vrot.slane %v3427_v11, %v12293_v39  ;;  %v5919_v11 = vrot.slane %v10780_v63, %v8986_v20  ;;  %v1763_v29 = vadd.f32 %v10776_v16, %v12318_v13  ;;  %vm12363_vm6 = vcmask 1043459  }
 0x426   : > { %v2733_v46 = vmul.f32 %v10798_v6, %v2214_v47  ;;  %v2734_v63 = vmul.f32 %v10798_v6, %v2215_v3  ;;  %v1621_v3 = vadd.f32 %v10641_v52, %v12326_v4 }
 0x427   : > { %v5905_v28 = vsel %vm12361_vm8, %v5904_v10, %v5900_v35  ;;  %3546 = vadd.xlane.f32.xlu1 %v2665_v32  ;;  %3548 = vadd.xlane.f32.xlu0 %v2666_v1  ;;  %v2244_v10 = vand.u32 2147483647, %v1732_v54  ;;  %v2275_v13 = vand.u32 2147483647, %v1763_v29  ;;  %vm12364_vm8 = vcmask 326912  }
 0x428   : > { %v3431_v59 = vpop.xlane.xlu1 %3430  ;;  %v5910_v51 = vsel %vm12362_vm7, %v5909_v55, %v5905_v28  ;;  %v10853_v19 = vpop.xlane.xlu0 %3452  ;;  %v2245_v55 = vand.u32 2147483647, %v1733_v21  ;;  %v1761_v28 = vadd.f32 %v10776_v16, %v12273_v0  ;;  %v2133_v29 = vand.u32 2147483647, %v1621_v3 }
 0x429   : > { %v5914_v34 = vrot.slane %v3431_v59, %v12271_v33  ;;  %v5929_v59 = vrot.slane %v10793_v27, %v9021_v40  ;;  %v2763_v21 = vmul.f32 %v10798_v6, %v2244_v10  ;;  %v1620_v27 = vadd.f32 %v10641_v52, %v12268_v37 }
 0x42a   : > { %v1689_v3 = vadd.f32 %v10494_v7, %v12283_v42  ;;  %vm12365_vm7 = vcmask 392512  }
 0x42b   : > { %v5915_v35 = vsel %vm4397_vm9, %v5914_v34, %v5910_v51  ;;  %3622 = vadd.xlane.f32.xlu1 %v2703_v12  ;;  %3624 = vadd.xlane.f32.xlu0 %v2704_v24  ;;  %v2764_v34 = vmul.f32 %v10798_v6, %v2245_v55  ;;  %v2273_v24 = vand.u32 2147483647, %v1761_v28 }
 0x42c   : > { %v3435_v32 = vpop.xlane.xlu1 %3434  ;;  %v5920_v1 = vsel %vm4404_vm10, %v5919_v11, %v5915_v35  ;;  %v10866_v17 = vpop.xlane.xlu0 %3456  ;;  %v5939_v11 = vrot.slane %v10814_v31, %v9047_v45  ;;  %v2794_v31 = vmul.f32 %v10798_v6, %v2275_v13 }
 0x42d   : > { %v5924_v15 = vrot.slane %v3435_v32, %v8989_v30  ;;  %v1657_v32 = vadd.f32 %v10441_v43, %v12283_v42  ;;  %v2792_v28 = vmul.f32 %v10798_v6, %v2273_v24 }
 0x42f   : > { %v5925_v51 = vsel %vm4411_vm11, %v5924_v15, %v5920_v1  ;;  %3682 = vadd.xlane.f32.xlu1 %v2733_v46  ;;  %3684 = vadd.xlane.f32.xlu0 %v2734_v63  ;;  %v1658_v15 = vadd.f32 %v10441_v43, %v12278_v18  ;;  %v2132_v63 = vand.u32 2147483647, %v1620_v27 }
 0x430   : > { %v3439_v12 = vpop.xlane.xlu1 %3438  ;;  %v5930_v54 = vsel %vm4418_vm12, %v5929_v59, %v5925_v51  ;;  %v10879_v0 = vpop.xlane.xlu0 %3460  ;;  %v5949_v59 = vrot.slane %v10827_v38, %v12322_v50  ;;  %v2652_v38 = vmul.f32 %v10798_v6, %v2133_v29  ;;  %v2201_v29 = vand.u32 2147483647, %v1689_v3 }
 0x431   : > { %v5934_v47 = vrot.slane %v3439_v12, %v9040_v53  ;;  %v2169_v12 = vand.u32 2147483647, %v1657_v32  ;;  %v2170_v24 = vand.u32 2147483647, %v1658_v15  ;;  %v2651_v27 = vmul.f32 %v10798_v6, %v2132_v63 }
 0x432   : > { %v5978_v3 = vrot.slane %v10866_v17, %v12294_v9 }
 0x433   : > { %v5935_v35 = vsel %vm4425_vm13, %v5934_v47, %v5930_v54  ;;  %3742 = vadd.xlane.f32.xlu1 %v2763_v21  ;;  %3744 = vadd.xlane.f32.xlu0 %v2764_v34  ;;  %v1688_v47 = vadd.f32 %v10494_v7, %v12276_v62 }
 0x434   : > { %v3443_v1 = vpop.xlane.xlu1 %3442  ;;  %v5940_v10 = vsel %vm4432_vm14, %v5939_v11, %v5935_v35  ;;  %v10894_v55 = vpop.xlane.xlu0 %3464  ;;  %v2688_v35 = vmul.f32 %v10798_v6, %v2169_v12 }
 0x435   : > { %v5944_v46 = vrot.slane %v3443_v1, %v12319_v23  ;;  %v2200_v15 = vand.u32 2147483647, %v1688_v47  ;;  %v1748_v47 = vadd.f32 %v10706_v5, %v12268_v37 }
 0x437   : > { %v5945_v51 = vsel %vm4439_vm15, %v5944_v46, %v5940_v10  ;;  %3800 = vadd.xlane.f32.xlu1 %v2792_v28  ;;  %3804 = vadd.xlane.f32.xlu0 %v2794_v31  ;;  %v2689_v28 = vmul.f32 %v10798_v6, %v2170_v24  ;;  %v1718_v46 = vadd.f32 %v10553_v14, %v12272_v25 }
 0x438   : > { %v3447_v54 = vpop.xlane.xlu1 %3446  ;;  %v5950_v21 = vsel %vm4446_vm0, %v5949_v59, %v5945_v51  ;;  %v10905_v34 = vpop.xlane.xlu0 %3468  ;;  %v5959_v31 = vrot.slane %v10840_v8, %v12290_v61  ;;  %v1719_v59 = vadd.f32 %v10553_v14, %v12281_v22  ;;  %v2719_v8 = vmul.f32 %v10798_v6, %v2200_v15 }
 0x439   : > { %v5954_v13 = vrot.slane %v3447_v54, %v12324_v49  ;;  %v2230_v24 = vand.u32 2147483647, %v1718_v46  ;;  %v2260_v46 = vand.u32 2147483647, %v1748_v47 }
 0x43b   : > { %v5955_v11 = vsel %vm4453_vm2, %v5954_v13, %v5950_v21  ;;  %3518 = vadd.xlane.f32.xlu1 %v2651_v27  ;;  %3520 = vadd.xlane.f32.xlu0 %v2652_v38  ;;  %v2720_v27 = vmul.f32 %v10798_v6, %v2201_v29  ;;  %v1749_v38 = vadd.f32 %v10706_v5, %v12326_v4 }
 0x43c   : > { %v10918_v32 = vsel %vm12363_vm6, %v5955_v11, %v10812_v41  ;;  %v3451_v1 = vpop.xlane.xlu1 %3450  ;;  %v10920_v10 = vpop.xlane.xlu0 %3472  ;;  %v5968_v41 = vrot.slane %v10853_v19, %v12292_v56  ;;  %v2231_v19 = vand.u32 2147483647, %v1719_v59  ;;  %v2749_v15 = vmul.f32 %v10798_v6, %v2230_v24 }
 0x43d   : > { %v5963_v63 = vrot.slane %v3451_v1, %v12289_v36  ;;  %v2261_v17 = vand.u32 2147483647, %v1749_v38  ;;  %v1607_v59 = vadd.f32 %v10400_v2, %v12281_v22  ;;  %vm12366_vm6 = vcmask 458112  }
 0x43e   : > { %v2750_v29 = vmul.f32 %v10798_v6, %v2231_v19  ;;  %v2779_v24 = vmul.f32 %v10798_v6, %v2260_v46  ;;  %v1637_v38 = vadd.f32 %v10703_v57, %v12326_v4 }
 0x43f   : > { %v5964_v51 = vsel %vm4355_vm3, %v5963_v63, %v5959_v31  ;;  %3592 = vadd.xlane.f32.xlu1 %v2688_v35  ;;  %3594 = vadd.xlane.f32.xlu0 %v2689_v28  ;;  %v1606_v31 = vadd.f32 %v10400_v2, %v12272_v25  ;;  %v2780_v19 = vmul.f32 %v10798_v6, %v2261_v17 }
 0x440   : > { %v3455_v12 = vpop.xlane.xlu1 %3454  ;;  %v5969_v54 = vsel %vm4362_vm4, %v5968_v41, %v5964_v51  ;;  %v10934_v21 = vpop.xlane.xlu0 %3476  ;;  %v5988_v41 = vrot.slane %v10879_v0, %v12297_v58  ;;  %v2119_v0 = vand.u32 2147483647, %v1607_v59 }
 0x441   : > { %v5973_v13 = vrot.slane %v3455_v12, %v12291_v48  ;;  %v2118_v47 = vand.u32 2147483647, %v1606_v31  ;;  %v1674_v31 = vadd.f32 %v10461_v26, %v12278_v18 }
 0x442   : > { %v2638_v59 = vmul.f32 %v10798_v6, %v2119_v0 }
 0x443   : > { %v5974_v11 = vsel %vm4369_vm5, %v5973_v13, %v5969_v54  ;;  %3654 = vadd.xlane.f32.xlu1 %v2719_v8  ;;  %3656 = vadd.xlane.f32.xlu0 %v2720_v27  ;;  %v1636_v13 = vadd.f32 %v10703_v57, %v12268_v37 }
 0x444   : > { %v3459_v35 = vpop.xlane.xlu1 %3458  ;;  %v5979_v1 = vsel %vm12364_vm8, %v5978_v3, %v5974_v11  ;;  %v10947_v28 = vpop.xlane.xlu0 %3480  ;;  %v5998_v3 = vrot.slane %v10894_v55, %v8986_v20  ;;  %v2637_v55 = vmul.f32 %v10798_v6, %v2118_v47  ;;  %vm12368_vm8 = vcmask 1044484  }
 0x445   : > { %v5983_v63 = vrot.slane %v3459_v35, %v12293_v39  ;;  %v2148_v46 = vand.u32 2147483647, %v1636_v13 }
 0x447   : > { %v5984_v51 = vsel %vm12365_vm7, %v5983_v63, %v5979_v1  ;;  %3714 = vadd.xlane.f32.xlu1 %v2749_v15  ;;  %3716 = vadd.xlane.f32.xlu0 %v2750_v29  ;;  %v12367_v63 = vld [vmem:[#allocation33_spill] sm:$0xff]  ;;  %vm12371_vm7 = vcmask 326912  }
 0x448   : > { %v3463_v12 = vpop.xlane.xlu1 %3462  ;;  %v5989_v54 = vsel %vm12366_vm6, %v5988_v41, %v5984_v51  ;;  %v10960_v8 = vpop.xlane.xlu0 %3484  ;;  %v1675_v29 = vadd.f32 %v10461_v26, %v12367_v63  ;;  %v2149_v41 = vand.u32 2147483647, %v1637_v38  ;;  %v6008_v51 = vrot.slane %v10905_v34, %v9021_v40  ;;  %vm12372_vm6 = vmmov %vm12371_vm7 }
 0x449   : > { %v5993_v27 = vrot.slane %v3463_v12, %v12271_v33  ;;  %v1704_v34 = vadd.f32 %v10510_v44, %v12276_v62  ;;  %v1705_v38 = vadd.f32 %v10510_v44, %v12283_v42 }
 0x44a   : > { %v2668_v0 = vmul.f32 %v10798_v6, %v2149_v41 }
 0x44b   : > { %v5994_v11 = vsel %vm4397_vm9, %v5993_v27, %v5989_v54  ;;  %3774 = vadd.xlane.f32.xlu1 %v2779_v24  ;;  %3776 = vadd.xlane.f32.xlu0 %v2780_v19  ;;  %v2667_v27 = vmul.f32 %v10798_v6, %v2148_v46  ;;  %v2186_v19 = vand.u32 2147483647, %v1674_v31  ;;  %v2216_v41 = vand.u32 2147483647, %v1704_v34 }
 0x44c   : > { %v3467_v35 = vpop.xlane.xlu1 %3466  ;;  %v5999_v1 = vsel %vm4404_vm10, %v5998_v3, %v5994_v11  ;;  %v10973_v15 = vpop.xlane.xlu0 %3488  ;;  %v2187_v3 = vand.u32 2147483647, %v1675_v29  ;;  %v6018_v11 = vrot.slane %v10920_v10, %v9047_v45  ;;  %v2217_v10 = vand.u32 2147483647, %v1705_v38 }
 0x44d   : > { %v6003_v17 = vrot.slane %v3467_v35, %v8989_v30  ;;  %v2705_v29 = vmul.f32 %v10798_v6, %v2186_v19 }
 0x44e   : > { %v2736_v38 = vmul.f32 %v10798_v6, %v2217_v10 }
 0x44f   : > { %v6004_v12 = vsel %vm4411_vm11, %v6003_v17, %v5999_v1  ;;  %3490 = vadd.xlane.f32.xlu1 %v2637_v55  ;;  %3492 = vadd.xlane.f32.xlu0 %v2638_v59  ;;  %v2706_v17 = vmul.f32 %v10798_v6, %v2187_v3  ;;  %v1734_v55 = vadd.f32 %v10625_v60, %v12272_v25 }
 0x450   : > { %v3471_v54 = vpop.xlane.xlu1 %3470  ;;  %v6009_v24 = vsel %vm4418_vm12, %v6008_v51, %v6004_v12  ;;  %v10986_v13 = vpop.xlane.xlu0 %3578  ;;  %v1735_v51 = vadd.f32 %v10625_v60, %v12281_v22  ;;  %v6028_v12 = vrot.slane %v10934_v21, %v12322_v50  ;;  %v2735_v21 = vmul.f32 %v10798_v6, %v2216_v41  ;;  %v12386_v50 = vld [vmem:[#allocation34_spill] sm:$0xff] }
 0x451   : > { %v6013_v47 = vrot.slane %v3471_v54, %v9040_v53  ;;  %v2246_v3 = vand.u32 2147483647, %v1734_v55 }
 0x453   : > { %v6014_v35 = vsel %vm4425_vm13, %v6013_v47, %v6009_v24  ;;  %3550 = vadd.xlane.f32.xlu1 %v2667_v27  ;;  %3552 = vadd.xlane.f32.xlu0 %v2668_v0  ;;  %v1764_v47 = vadd.f32 %v10776_v16, %v12268_v37  ;;  %v1765_v0 = vadd.f32 %v10776_v16, %v12326_v4 }
 0x454   : > { %v3475_v1 = vpop.xlane.xlu1 %3474  ;;  %v6019_v46 = vsel %vm4432_vm14, %v6018_v11, %v6014_v35  ;;  %v10999_v31 = vpop.xlane.xlu0 %3610  ;;  %v2247_v11 = vand.u32 2147483647, %v1735_v51  ;;  %v1623_v51 = vadd.f32 %v10641_v52, %v12281_v22 }
 0x455   : > { %v6023_v59 = vrot.slane %v3475_v1, %v12319_v23  ;;  %v1622_v1 = vadd.f32 %v10641_v52, %v12272_v25  ;;  %v2277_v55 = vand.u32 2147483647, %v1765_v0 }
 0x456   : > { %v2766_v10 = vmul.f32 %v10798_v6, %v2247_v11  ;;  %v6057_v11 = vrot.slane %v10973_v15, %v12294_v9  ;;  %v6279_v15 = vrot.slane %v10986_v13, %v12289_v36  ;;  %v6358_v13 = vrot.slane %v10999_v31, %v12289_v36 }
 0x457   : > { %v6024_v54 = vsel %vm4439_vm15, %v6023_v59, %v6019_v46  ;;  %3626 = vadd.xlane.f32.xlu1 %v2705_v29  ;;  %3628 = vadd.xlane.f32.xlu0 %v2706_v17  ;;  %v2765_v29 = vmul.f32 %v10798_v6, %v2246_v3  ;;  %v2276_v17 = vand.u32 2147483647, %v1764_v47  ;;  %v6038_v59 = vrot.slane %v10947_v28, %v12290_v61 }
 0x458   : > { %v3479_v24 = vpop.xlane.xlu1 %3478  ;;  %v6029_v27 = vsel %vm4446_vm0, %v6028_v12, %v6024_v54  ;;  %v11012_v19 = vpop.xlane.xlu0 %3612  ;;  %v2134_v3 = vand.u32 2147483647, %v1622_v1  ;;  %v1659_v47 = vadd.f32 %v10441_v43, %v12367_v63  ;;  %v1690_v1 = vadd.f32 %v10494_v7, %v12278_v18 }
 0x459   : > { %v6033_v34 = vrot.slane %v3479_v24, %v12324_v49  ;;  %v2795_v28 = vmul.f32 %v10798_v6, %v2276_v17 }
 0x45a   : > { %v2653_v17 = vmul.f32 %v10798_v6, %v2134_v3 }
 0x45b   : > { %v6034_v35 = vsel %vm4453_vm2, %v6033_v34, %v6029_v27  ;;  %3686 = vadd.xlane.f32.xlu1 %v2735_v21  ;;  %3688 = vadd.xlane.f32.xlu0 %v2736_v38  ;;  %v2796_v34 = vmul.f32 %v10798_v6, %v2277_v55  ;;  %v2135_v21 = vand.u32 2147483647, %v1623_v51  ;;  %v2171_v55 = vand.u32 2147483647, %v1659_v47 }
 0x45c   : > { %v11026_v37 = vsel %vm12368_vm8, %v6034_v35, %v10918_v32  ;;  %v3483_v46 = vpop.xlane.xlu1 %3482  ;;  %v11028_v4 = vpop.xlane.xlu0 %3642  ;;  %v6047_v32 = vrot.slane %v10960_v8, %v12292_v56  ;;  %v12370_v8 = vld [vmem:[#allocation32_spill] sm:$0xff]  ;;  %vm12374_vm8 = vcmask 392512  }
 0x45d   : > { %12369 = vst [vmem:[#allocation36_spill] sm:$0xff] %v11026_v37  ;;  %v6042_v41 = vrot.slane %v3483_v46, %v12289_v36  ;;  %v1660_v38 = vadd.f32 %v10441_v43, %v12370_v8  ;;  %v2654_v51 = vmul.f32 %v10798_v6, %v2135_v21  ;;  %v2690_v3 = vmul.f32 %v10798_v6, %v2171_v55 }
 0x45f   : > { %v6043_v12 = vsel %vm4355_vm3, %v6042_v41, %v6038_v59  ;;  %3746 = vadd.xlane.f32.xlu1 %v2765_v29  ;;  %3748 = vadd.xlane.f32.xlu0 %v2766_v10  ;;  %v1691_v59 = vadd.f32 %v10494_v7, %v12367_v63 }
 0x460   : > { %v3487_v54 = vpop.xlane.xlu1 %3486  ;;  %v6048_v24 = vsel %vm4362_vm4, %v6047_v32, %v6043_v12  ;;  %v3615_v27 = vpop.xlane.xlu0 %3614  ;;  %v2172_v32 = vand.u32 2147483647, %v1660_v38  ;;  %v1721_v38 = vadd.f32 %v10553_v14, %v12283_v42 }
 0x461   : > { %v6052_v0 = vrot.slane %v3487_v54, %v12291_v48  ;;  %v2202_v54 = vand.u32 2147483647, %v1690_v1  ;;  %v2203_v47 = vand.u32 2147483647, %v1691_v59 }
 0x462   : > { %v2691_v21 = vmul.f32 %v10798_v6, %v2172_v32 }
 0x463   : > { %v6053_v35 = vsel %vm4369_vm5, %v6052_v0, %v6048_v24  ;;  %3806 = vadd.xlane.f32.xlu1 %v2795_v28  ;;  %3808 = vadd.xlane.f32.xlu0 %v2796_v34  ;;  %v1720_v0 = vadd.f32 %v10553_v14, %v12276_v62  ;;  %v2722_v59 = vmul.f32 %v10798_v6, %v2203_v47 }
 0x464   : > { %v3577_v46 = vpop.xlane.xlu1 %3576  ;;  %v11053_v29 = vpop.xlane.xlu0 %3672  ;;  %v11059_v41 = vsel %vm12371_vm7, %v6057_v11, %v6053_v35  ;;  %v6363_v11 = vrot.slane %v11012_v19, %v12292_v56  ;;  %v6368_v35 = vrot.slane %v3615_v27, %v12291_v48  ;;  %v1751_v27 = vadd.f32 %v10706_v5, %v12281_v22  ;;  %vm12375_vm7 = vmmov %vm12372_vm6 }
 0x465   : > { %v6275_v10 = vrot.slane %v3577_v46, %v12290_v61  ;;  %v2721_v46 = vmul.f32 %v10798_v6, %v2202_v54 }
 0x467   : > { %v6280_v12 = vsel %vm4355_vm3, %v6279_v15, %v6275_v10  ;;  %3522 = vadd.xlane.f32.xlu1 %v2653_v17  ;;  %3524 = vadd.xlane.f32.xlu0 %v2654_v51  ;;  %v2232_v15 = vand.u32 2147483647, %v1720_v0  ;;  %v1750_v10 = vadd.f32 %v10706_v5, %v12272_v25  ;;  %v2233_v51 = vand.u32 2147483647, %v1721_v38 }
 0x468   : > { %v3609_v24 = vpop.xlane.xlu1 %3608  ;;  %v3585_v28 = vpop.xlane.xlu0 %3584 }
 0x469   : > { %v6354_v34 = vrot.slane %v3609_v24, %v12290_v61  ;;  %v2751_v47 = vmul.f32 %v10798_v6, %v2232_v15  ;;  %v2262_v0 = vand.u32 2147483647, %v1750_v10 }
 0x46b   : > { %v6359_v1 = vsel %vm4355_vm3, %v6358_v13, %v6354_v34  ;;  %3596 = vadd.xlane.f32.xlu1 %v2690_v3  ;;  %3598 = vadd.xlane.f32.xlu0 %v2691_v21  ;;  %v1608_v13 = vadd.f32 %v10400_v2, %v12276_v62  ;;  %v1609_v34 = vadd.f32 %v10400_v2, %v12283_v42 }
 0x46c   : > { %v6364_v31 = vsel %vm4362_vm4, %v6363_v11, %v6359_v1  ;;  %v3581_v17 = vpop.xlane.xlu1 %3580  ;;  %v3647_v55 = vpop.xlane.xlu0 %3646  ;;  %v6437_v21 = vrot.slane %v11028_v4, %v12289_v36  ;;  %v2263_v11 = vand.u32 2147483647, %v1751_v27 }
 0x46d   : > { %v6284_v19 = vrot.slane %v3581_v17, %v12292_v56  ;;  %v11088_v32 = vsel %vm4369_vm5, %v6368_v35, %v6364_v31  ;;  %v1638_v35 = vadd.f32 %v10703_v57, %v12272_v25  ;;  %v2781_v17 = vmul.f32 %v10798_v6, %v2262_v0 }
 0x46e   : > { %v2782_v4 = vmul.f32 %v10798_v6, %v2263_v11  ;;  %v2121_v10 = vand.u32 2147483647, %v1609_v34  ;;  %v1676_v34 = vadd.f32 %v10461_v26, %v12370_v8 }
 0x46f   : > { %v6285_v54 = vsel %vm4362_vm4, %v6284_v19, %v6280_v12  ;;  %3658 = vadd.xlane.f32.xlu1 %v2721_v46  ;;  %3660 = vadd.xlane.f32.xlu0 %v2722_v59  ;;  %v2752_v12 = vmul.f32 %v10798_v6, %v2233_v51  ;;  %v2120_v59 = vand.u32 2147483647, %v1608_v13  ;;  %v1639_v19 = vadd.f32 %v10703_v57, %v12281_v22 }
 0x470   : > { %v3641_v24 = vpop.xlane.xlu1 %3640  ;;  %v11091_v3 = vpop.xlane.xlu0 %3704  ;;  %v6294_v51 = vrot.slane %v3585_v28, %v12294_v9  ;;  %v2150_v27 = vand.u32 2147483647, %v1638_v35  ;;  %v2640_v35 = vmul.f32 %v10798_v6, %v2121_v10 }
 0x471   : > { %v6433_v38 = vrot.slane %v3641_v24, %v12290_v61 }
 0x473   : > { %v6438_v1 = vsel %vm4355_vm3, %v6437_v21, %v6433_v38  ;;  %3718 = vadd.xlane.f32.xlu1 %v2751_v47  ;;  %3720 = vadd.xlane.f32.xlu0 %v2752_v12  ;;  %v2639_v38 = vmul.f32 %v10798_v6, %v2120_v59  ;;  %v12373_v12 = vld [vmem:[#allocation30_spill] sm:$0xff] }
 0x474   : > { %v3583_v46 = vpop.xlane.xlu1 %3582  ;;  %v3587_v31 = vpop.xlane.xlu0 %3586  ;;  %v1677_v11 = vadd.f32 %v10461_v26, %v12373_v12 }
 0x475   : > { %v6289_v15 = vrot.slane %v3583_v46, %v12291_v48  ;;  %v6299_v47 = vrot.slane %v3587_v31, %v12293_v39  ;;  %v2151_v46 = vand.u32 2147483647, %v1639_v19  ;;  %v6447_v31 = vrot.slane %v3647_v55, %v12291_v48 }
 0x476   : > { %v2189_v10 = vand.u32 2147483647, %v1677_v11  ;;  %v1707_v55 = vadd.f32 %v10510_v44, %v12367_v63  ;;  %v6512_v19 = vrot.slane %v11053_v29, %v12290_v61  ;;  %v1736_v29 = vadd.f32 %v10625_v60, %v12276_v62 }
 0x477   : > { %v6290_v24 = vsel %vm4369_vm5, %v6289_v15, %v6285_v54  ;;  %3778 = vadd.xlane.f32.xlu1 %v2781_v17  ;;  %3780 = vadd.xlane.f32.xlu0 %v2782_v4  ;;  %v2669_v17 = vmul.f32 %v10798_v6, %v2150_v27  ;;  %v1706_v4 = vadd.f32 %v10510_v44, %v12278_v18 }
 0x478   : > { %v6295_v0 = vsel %vm12372_vm6, %v6294_v51, %v6290_v24  ;;  %v3645_v13 = vpop.xlane.xlu1 %3644  ;;  %v3649_v21 = vpop.xlane.xlu0 %3648 }
 0x479   : > { %v11120_v28 = vsel %vm12374_vm8, %v6299_v47, %v6295_v0  ;;  %v6442_v54 = vrot.slane %v3645_v13, %v12292_v56  ;;  %v6452_v15 = vrot.slane %v3649_v21, %v12294_v9  ;;  %v2188_v0 = vand.u32 2147483647, %v1676_v34 }
 0x47a   : > { %v2670_v13 = vmul.f32 %v10798_v6, %v2151_v46  ;;  %v1737_v46 = vadd.f32 %v10625_v60, %v12283_v42 }
 0x47b   : > { %v6443_v59 = vsel %vm4362_vm4, %v6442_v54, %v6438_v1  ;;  %3494 = vadd.xlane.f32.xlu1 %v2639_v38  ;;  %3496 = vadd.xlane.f32.xlu0 %v2640_v35  ;;  %v2707_v11 = vmul.f32 %v10798_v6, %v2188_v0  ;;  %v2218_v54 = vand.u32 2147483647, %v1706_v4  ;;  %v1766_v0 = vadd.f32 %v10776_v16, %v12272_v25 }
 0x47c   : > { %v6448_v51 = vsel %vm4369_vm5, %v6447_v31, %v6443_v59  ;;  %v3675_v24 = vpop.xlane.xlu1 %3674  ;;  %v3709_v47 = vpop.xlane.xlu0 %3708  ;;  %v2708_v31 = vmul.f32 %v10798_v6, %v2189_v10  ;;  %v2219_v59 = vand.u32 2147483647, %v1707_v55  ;;  %v1624_v25 = vadd.f32 %v10641_v52, %v12276_v62 }
 0x47d   : > { %v11136_v1 = vsel %vm12375_vm7, %v6452_v15, %v6448_v51  ;;  %v6516_v27 = vrot.slane %v3675_v24, %v12289_v36  ;;  %v2737_v4 = vmul.f32 %v10798_v6, %v2218_v54  ;;  %v2248_v24 = vand.u32 2147483647, %v1736_v29 }
 0x47e   : > { %v2738_v55 = vmul.f32 %v10798_v6, %v2219_v59  ;;  %v2278_v54 = vand.u32 2147483647, %v1766_v0  ;;  %v1625_v29 = vadd.f32 %v10641_v52, %v12283_v42  ;;  %v6600_v59 = vrot.slane %v3709_v47, %v12292_v56 }
 0x47f   : > { %v6517_v21 = vsel %vm4355_vm3, %v6516_v27, %v6512_v19  ;;  %3554 = vadd.xlane.f32.xlu1 %v2669_v17  ;;  %3556 = vadd.xlane.f32.xlu0 %v2670_v13  ;;  %v2249_v19 = vand.u32 2147483647, %v1737_v46  ;;  %v1767_v27 = vadd.f32 %v10776_v16, %v12281_v22  ;;  %v2136_v0 = vand.u32 2147483647, %v1624_v25 }
 0x480   : > { %v3617_v38 = vpop.xlane.xlu1 %3616  ;;  %v11141_v34 = vpop.xlane.xlu0 %3738  ;;  %v2137_v47 = vand.u32 2147483647, %v1625_v29  ;;  %vm12377_vm7 = vcmask 458112  }
 0x481   : > { %v6373_v35 = vrot.slane %v3617_v38, %v12294_v9 }
 0x483   : > { %v6374_v17 = vsel %vm12372_vm6, %v6373_v35, %v11088_v32  ;;  %3630 = vadd.xlane.f32.xlu1 %v2707_v11  ;;  %3632 = vadd.xlane.f32.xlu0 %v2708_v31  ;;  %v2767_v11 = vmul.f32 %v10798_v6, %v2248_v24  ;;  %v6591_v35 = vrot.slane %v11091_v3, %v12290_v61  ;;  %v2279_v31 = vand.u32 2147483647, %v1767_v27  ;;  %v12376_v27 = vld [vmem:[#allocation29_spill] sm:$0xff] }
 0x484   : > { %v3677_v15 = vpop.xlane.xlu1 %3676  ;;  %v11152_v51 = vpop.xlane.xlu0 %3514  ;;  %v2797_v24 = vmul.f32 %v10798_v6, %v2278_v54 }
 0x485   : > { %v6521_v10 = vrot.slane %v3677_v15, %v12292_v56 }
 0x487   : > { %v6522_v32 = vsel %vm4362_vm4, %v6521_v10, %v6517_v21  ;;  %3690 = vadd.xlane.f32.xlu1 %v2737_v4  ;;  %3692 = vadd.xlane.f32.xlu0 %v2738_v55  ;;  %v2768_v21 = vmul.f32 %v10798_v6, %v2249_v19  ;;  %v1661_v10 = vadd.f32 %v10441_v43, %v12373_v12 }
 0x488   : > { %v3707_v13 = vpop.xlane.xlu1 %3706  ;;  %v3621_v38 = vpop.xlane.xlu0 %3620  ;;  %v2798_v19 = vmul.f32 %v10798_v6, %v2279_v31 }
 0x489   : > { %v6595_v22 = vrot.slane %v3707_v13, %v12289_v36  ;;  %v1662_v13 = vadd.f32 %v10441_v43, %v12376_v27 }
 0x48b   : > { %v6596_v46 = vsel %vm4355_vm3, %v6595_v22, %v6591_v35  ;;  %3750 = vadd.xlane.f32.xlu1 %v2767_v11  ;;  %3752 = vadd.xlane.f32.xlu0 %v2768_v21  ;;  %v6383_v11 = vrot.slane %v3621_v38, %v12297_v58  ;;  %v2655_v22 = vmul.f32 %v10798_v6, %v2136_v0  ;;  %v2173_v21 = vand.u32 2147483647, %v1661_v10 }
 0x48c   : > { %v3619_v15 = vpop.xlane.xlu1 %3618  ;;  %v3681_v4 = vpop.xlane.xlu0 %3680  ;;  %v11177_v3 = vsel %vm4362_vm4, %v6600_v59, %v6596_v46  ;;  %v1692_v59 = vadd.f32 %v10494_v7, %v12370_v8  ;;  %v2656_v46 = vmul.f32 %v10798_v6, %v2137_v47  ;;  %v2174_v38 = vand.u32 2147483647, %v1662_v13 }
 0x48d   : > { %v6378_v55 = vrot.slane %v3619_v15, %v12293_v39  ;;  %v6531_v15 = vrot.slane %v3681_v4, %v12294_v9  ;;  %v1722_v0 = vadd.f32 %v10553_v14, %v12278_v18  ;;  %v1723_v47 = vadd.f32 %v10553_v14, %v12367_v63 }
 0x48f   : > { %v6379_v35 = vsel %vm12374_vm8, %v6378_v55, %v6374_v17  ;;  %3810 = vadd.xlane.f32.xlu1 %v2797_v24  ;;  %3812 = vadd.xlane.f32.xlu0 %v2798_v19  ;;  %v1693_v17 = vadd.f32 %v10494_v7, %v12373_v12  ;;  %v2692_v19 = vmul.f32 %v10798_v6, %v2173_v21  ;;  %v2234_v21 = vand.u32 2147483647, %v1722_v0  ;;  %vm12378_vm8 = vmmov %vm12377_vm7 }
 0x490   : > { %v3679_v54 = vpop.xlane.xlu1 %3678  ;;  %v3741_v25 = vpop.xlane.xlu0 %3740  ;;  %v11189_v31 = vsel %vm12377_vm7, %v6383_v11, %v6379_v35  ;;  %v2204_v11 = vand.u32 2147483647, %v1692_v59  ;;  %v2693_v35 = vmul.f32 %v10798_v6, %v2174_v38  ;;  %v1753_v0 = vadd.f32 %v10706_v5, %v12283_v42 }
 0x491   : > { %v6526_v29 = vrot.slane %v3679_v54, %v12291_v48  ;;  %v2205_v54 = vand.u32 2147483647, %v1693_v17  ;;  %vm12379_vm7 = vcmask 392512  }
 0x493   : > { %v6527_v24 = vsel %vm4369_vm5, %v6526_v29, %v6522_v32  ;;  %3526 = vadd.xlane.f32.xlu1 %v2655_v22  ;;  %3528 = vadd.xlane.f32.xlu0 %v2656_v46  ;;  %v6674_v32 = vrot.slane %v11141_v34, %v12289_v36  ;;  %v6679_v22 = vrot.slane %v3741_v25, %v12292_v56 }
 0x494   : > { %v3737_v10 = vpop.xlane.xlu1 %3736  ;;  %v11199_v55 = vpop.xlane.xlu0 %3770  ;;  %v11205_v13 = vsel %vm12372_vm6, %v6531_v15, %v6527_v24  ;;  %v2723_v15 = vmul.f32 %v10798_v6, %v2204_v11  ;;  %v2235_v24 = vand.u32 2147483647, %v1723_v47  ;;  %v1752_v34 = vadd.f32 %v10706_v5, %v12276_v62  ;;  %vm12380_vm6 = vmmov %vm12378_vm8 }
 0x495   : > { %v6670_v4 = vrot.slane %v3737_v10, %v12290_v61  ;;  %v6121_v25 = vrot.slane %v11152_v51, %v12289_v36  ;;  %v2724_v17 = vmul.f32 %v10798_v6, %v2205_v54  ;;  %v1610_v51 = vadd.f32 %v10400_v2, %v12278_v18 }
 0x497   : > { %v6675_v29 = vsel %vm4355_vm3, %v6674_v32, %v6670_v4  ;;  %3600 = vadd.xlane.f32.xlu1 %v2692_v19  ;;  %3602 = vadd.xlane.f32.xlu0 %v2693_v35  ;;  %v2753_v32 = vmul.f32 %v10798_v6, %v2234_v21  ;;  %v2754_v4 = vmul.f32 %v10798_v6, %v2235_v24  ;;  %v2264_v35 = vand.u32 2147483647, %v1752_v34 }
 0x498   : > { %v3513_v59 = vpop.xlane.xlu1 %3512  ;;  %v11213_v46 = vpop.xlane.xlu0 %3544  ;;  %v11219_v10 = vsel %vm4362_vm4, %v6679_v22, %v6675_v29  ;;  %v2265_v29 = vand.u32 2147483647, %v1753_v0  ;;  %v1640_v21 = vadd.f32 %v10703_v57, %v12276_v62  ;;  %v1641_v0 = vadd.f32 %v10703_v57, %v12283_v42 }
 0x499   : > { %v6117_v38 = vrot.slane %v3513_v59, %v12290_v61  ;;  %v1611_v59 = vadd.f32 %v10400_v2, %v12367_v63 }
 0x49b   : > { %v11228_v19 = vsel %vm4355_vm3, %v6121_v25, %v6117_v38  ;;  %3662 = vadd.xlane.f32.xlu1 %v2723_v15  ;;  %3664 = vadd.xlane.f32.xlu0 %v2724_v17  ;;  %v2783_v38 = vmul.f32 %v10798_v6, %v2264_v35  ;;  %v2122_v17 = vand.u32 2147483647, %v1610_v51  ;;  %v1678_v35 = vadd.f32 %v10461_v26, %v12376_v27 }
 0x49c   : > { %v3589_v11 = vpop.xlane.xlu1 %3588  ;;  %v3591_v47 = vpop.xlane.xlu0 %3590 }
 0x49d   : > { %v6304_v54 = vrot.slane %v3589_v11, %v12297_v58  ;;  %v6309_v22 = vrot.slane %v3591_v47, %v12271_v33  ;;  %v2784_v47 = vmul.f32 %v10798_v6, %v2265_v29 }
 0x49f   : > { %v6305_v15 = vsel %vm12378_vm8, %v6304_v54, %v11120_v28  ;;  %3722 = vadd.xlane.f32.xlu1 %v2753_v32  ;;  %3724 = vadd.xlane.f32.xlu0 %v2754_v4  ;;  %v2123_v32 = vand.u32 2147483647, %v1611_v59  ;;  %v2152_v54 = vand.u32 2147483647, %v1640_v21  ;;  %vm12382_vm8 = vcmask 326912  }
 0x4a0   : > { %v11243_v24 = vsel %vm4397_vm9, %v6309_v22, %v6305_v15  ;;  %v3651_v34 = vpop.xlane.xlu1 %3650  ;;  %v3653_v25 = vpop.xlane.xlu0 %3652 }
 0x4a1   : > { %v6457_v11 = vrot.slane %v3651_v34, %v12293_v39  ;;  %v6462_v28 = vrot.slane %v3653_v25, %v12297_v58  ;;  %v2641_v34 = vmul.f32 %v10798_v6, %v2122_v17  ;;  %v2153_v25 = vand.u32 2147483647, %v1641_v0 }
 0x4a3   : > { %v6458_v4 = vsel %vm12379_vm7, %v6457_v11, %v11136_v1  ;;  %3782 = vadd.xlane.f32.xlu1 %v2783_v38  ;;  %3784 = vadd.xlane.f32.xlu0 %v2784_v47  ;;  %v2642_v1 = vmul.f32 %v10798_v6, %v2123_v32  ;;  %v12381_v38 = vld [vmem:[#allocation28_spill] sm:$0xff]  ;;  %v2190_v47 = vand.u32 2147483647, %v1678_v35  ;;  %v1708_v32 = vadd.f32 %v10510_v44, %v12370_v8 }
 0x4a4   : > { %v11256_v51 = vsel %vm12380_vm6, %v6462_v28, %v6458_v4  ;;  %v3711_v22 = vpop.xlane.xlu1 %3710  ;;  %v3713_v15 = vpop.xlane.xlu0 %3712  ;;  %v1679_v21 = vadd.f32 %v10461_v26, %v12381_v38  ;;  %v2671_v28 = vmul.f32 %v10798_v6, %v2152_v54  ;;  %vm12387_vm7 = vcmask 1047559  }
 0x4a5   : > { %v6605_v29 = vrot.slane %v3711_v22, %v12291_v48  ;;  %v6610_v59 = vrot.slane %v3713_v15, %v12294_v9  ;;  %v2672_v22 = vmul.f32 %v10798_v6, %v2153_v25  ;;  %v1709_v15 = vadd.f32 %v10510_v44, %v12373_v12 }
 0x4a6   : > { %v2191_v35 = vand.u32 2147483647, %v1679_v21  ;;  %v1738_v6 = vadd.f32 %v10625_v60, %v12278_v18  ;;  %v11293_v21 = vld [vmem:[%s12094_s8] ss:$0 sm:$0xff]  ;;  %vm12390_vm6 = vcmask 392512  }
 0x4a7   : > { %v6606_v11 = vsel %vm4369_vm5, %v6605_v29, %v11177_v3  ;;  %3498 = vadd.xlane.f32.xlu1 %v2641_v34  ;;  %3500 = vadd.xlane.f32.xlu0 %v2642_v1  ;;  %v6753_v3 = vrot.slane %v11199_v55, %v12289_v36  ;;  %v1739_v55 = vadd.f32 %v10625_v60, %v12367_v63 }
 0x4a8   : > { %v11268_v17 = vsel %vm12382_vm8, %v6610_v59, %v6606_v11  ;;  %v3769_v0 = vpop.xlane.xlu1 %3768  ;;  %v3773_v4 = vpop.xlane.xlu0 %3772  ;;  %v2220_v11 = vand.u32 2147483647, %v1708_v32  ;;  %vm12391_vm8 = vcmask 458112  }
 0x4a9   : > { %v6749_v34 = vrot.slane %v3769_v0, %v12290_v61  ;;  %v6758_v54 = vrot.slane %v3773_v4, %v12292_v56  ;;  %v2710_v4 = vmul.f32 %v11293_v21, %v2191_v35  ;;  %v2251_v37 = vand.u32 2147483647, %v1739_v55 }
 0x4ab   : > { %v6754_v29 = vsel %vm4355_vm3, %v6753_v3, %v6749_v34  ;;  %3558 = vadd.xlane.f32.xlu1 %v2671_v28  ;;  %3560 = vadd.xlane.f32.xlu0 %v2672_v22  ;;  %v2709_v28 = vmul.f32 %v11293_v21, %v2190_v47  ;;  %v2221_v22 = vand.u32 2147483647, %v1709_v15  ;;  %v1768_v3 = vadd.f32 %v10776_v16, %v12276_v62 }
 0x4ac   : > { %v11283_v25 = vsel %vm4362_vm4, %v6758_v54, %v6754_v29  ;;  %v3517_v59 = vpop.xlane.xlu1 %3516  ;;  %v11285_v1 = vpop.xlane.xlu0 %3802  ;;  %v2250_v34 = vand.u32 2147483647, %v1738_v6  ;;  %v1769_v54 = vadd.f32 %v10776_v16, %v12283_v42  ;;  %v2739_v47 = vmul.f32 %v11293_v21, %v2220_v11  ;;  %v12384_v6 = vld [vmem:[#allocation53_spill] sm:$0xff] }
 0x4ad   : > { %v6126_v0 = vrot.slane %v3517_v59, %v12292_v56  ;;  %v6196_v15 = vrot.slane %v11213_v46, %v12290_v61 }
 0x4ae   : > { %v2769_v11 = vmul.f32 %v11293_v21, %v2250_v34  ;;  %v2281_v55 = vand.u32 2147483647, %v1769_v54  ;;  %v1627_v34 = vadd.f32 %v10641_v52, %v12367_v63 }
 0x4af   : > { %v11301_v32 = vsel %vm4362_vm4, %v6126_v0, %v11228_v19  ;;  %3634 = vadd.xlane.f32.xlu1 %v2709_v28  ;;  %3636 = vadd.xlane.f32.xlu0 %v2710_v4  ;;  %v2740_v19 = vmul.f32 %v11293_v21, %v2221_v22  ;;  %v2280_v0 = vand.u32 2147483647, %v1768_v3  ;;  %v12383_v28 = vld [vmem:[#allocation17_spill] sm:$0xff]  ;;  %v1626_v22 = vadd.f32 %v10641_v52, %v12278_v18 }
 0x4b0   : > { %v3547_v29 = vpop.xlane.xlu1 %3546  ;;  %v3549_v59 = vpop.xlane.xlu0 %3548  ;;  %v902_v4 = vadd.f32 %v12384_v6, %v12383_v28  ;;  %v12385_v3 = vld [vmem:[#allocation37_spill] sm:$0xff] }
 0x4b1   : > { %v6200_v62 = vrot.slane %v3547_v29, %v12289_v36  ;;  %v6205_v35 = vrot.slane %v3549_v59, %v12292_v56  ;;  %v2770_v59 = vmul.f32 %v11293_v21, %v2251_v37  ;;  %v6924_v28 = vsel %vm12387_vm7, %v12386_v50, %v12385_v3 }
 0x4b2   : > { %v11328_v54 = vadd.f32 %v6924_v28, %v902_v4  ;;  %v1663_v37 = vadd.f32 %v10441_v43, %v12381_v38  ;;  %vm12392_vm7 = vcmask 326912  }
 0x4b3   : > { %v6201_v42 = vsel %vm4355_vm3, %v6200_v62, %v6196_v15  ;;  %3694 = vadd.xlane.f32.xlu1 %v2739_v47  ;;  %3696 = vadd.xlane.f32.xlu0 %v2740_v19 }
 0x4b4   : > { %v11316_v49 = vsel %vm4362_vm4, %v6205_v35, %v6201_v42  ;;  %v3623_v46 = vpop.xlane.xlu1 %3622  ;;  %v3625_v29 = vpop.xlane.xlu0 %3624  ;;  %12388 = vst [vmem:[#allocation35_spill] sm:$0xff] %v11328_v54  ;;  %v2799_v42 = vmul.f32 %v11293_v21, %v2280_v0 }
 0x4b5   : > { %v6388_v47 = vrot.slane %v3623_v46, %v12271_v33  ;;  %v6393_v15 = vrot.slane %v3625_v29, %v8986_v20  ;;  %v2800_v46 = vmul.f32 %v11293_v21, %v2281_v55  ;;  %v2138_v29 = vand.u32 2147483647, %v1626_v22 }
 0x4b7   : > { %v6389_v62 = vsel %vm4397_vm9, %v6388_v47, %v11189_v31  ;;  %3754 = vadd.xlane.f32.xlu1 %v2769_v11  ;;  %3756 = vadd.xlane.f32.xlu0 %v2770_v59  ;;  %v2139_v31 = vand.u32 2147483647, %v1627_v34  ;;  %v12389_v11 = vld [vmem:[#allocation27_spill] sm:$0xff]  ;;  %v2175_v47 = vand.u32 2147483647, %v1663_v37  ;;  %v2657_v22 = vmul.f32 %v11293_v21, %v2138_v29 }
 0x4b8   : > { %v11335_v35 = vsel %vm4404_vm10, %v6393_v15, %v6389_v62  ;;  %v3683_v50 = vpop.xlane.xlu1 %3682  ;;  %v3685_v19 = vpop.xlane.xlu0 %3684  ;;  %v1664_v59 = vadd.f32 %v10441_v43, %v12389_v11  ;;  %v1694_v62 = vadd.f32 %v10494_v7, %v12376_v27  ;;  %v1695_v34 = vadd.f32 %v10494_v7, %v12381_v38 }
 0x4b9   : > { %v6536_v4 = vrot.slane %v3683_v50, %v12293_v39  ;;  %v6541_v3 = vrot.slane %v3685_v19, %v12297_v58  ;;  %v2658_v50 = vmul.f32 %v11293_v21, %v2139_v31 }
 0x4ba   : > { %v2176_v37 = vand.u32 2147483647, %v1664_v59  ;;  %v2206_v31 = vand.u32 2147483647, %v1694_v62  ;;  %v2207_v59 = vand.u32 2147483647, %v1695_v34 }
 0x4bb   : > { %v6537_v28 = vsel %vm12390_vm6, %v6536_v4, %v11205_v13  ;;  %3814 = vadd.xlane.f32.xlu1 %v2799_v42  ;;  %3816 = vadd.xlane.f32.xlu0 %v2800_v46  ;;  %v1724_v42 = vadd.f32 %v10553_v14, %v12370_v8  ;;  %v1725_v46 = vadd.f32 %v10553_v14, %v12373_v12 }
 0x4bc   : > { %v11346_v15 = vsel %vm12391_vm8, %v6541_v3, %v6537_v28  ;;  %v3743_v0 = vpop.xlane.xlu1 %3742  ;;  %v3745_v55 = vpop.xlane.xlu0 %3744  ;;  %v2694_v28 = vmul.f32 %v11293_v21, %v2175_v47  ;;  %v2725_v34 = vmul.f32 %v11293_v21, %v2206_v31 }
 0x4bd   : > { %v6684_v43 = vrot.slane %v3743_v0, %v12291_v48  ;;  %v6689_v13 = vrot.slane %v3745_v55, %v12294_v9 }
 0x4bf   : > { %v6685_v19 = vsel %vm4369_vm5, %v6684_v43, %v11219_v10  ;;  %3530 = vadd.xlane.f32.xlu1 %v2657_v22  ;;  %3532 = vadd.xlane.f32.xlu0 %v2658_v50  ;;  %v6832_v10 = vrot.slane %v11285_v1, %v12289_v36  ;;  %v2695_v22 = vmul.f32 %v11293_v21, %v2176_v37 }
 0x4c0   : > { %v11363_v29 = vsel %vm12392_vm7, %v6689_v13, %v6685_v19  ;;  %v3801_v4 = vpop.xlane.xlu1 %3800  ;;  %v3805_v3 = vpop.xlane.xlu0 %3804  ;;  %v2236_v13 = vand.u32 2147483647, %v1724_v42  ;;  %v2237_v19 = vand.u32 2147483647, %v1725_v46  ;;  %v1754_v36 = vadd.f32 %v10706_v5, %v12278_v18 }
 0x4c1   : > { %v6828_v0 = vrot.slane %v3801_v4, %v12290_v61  ;;  %v6837_v55 = vrot.slane %v3805_v3, %v12292_v56  ;;  %v2726_v1 = vmul.f32 %v11293_v21, %v2207_v59  ;;  %v1755_v37 = vadd.f32 %v10706_v5, %v12367_v63 }
 0x4c2   : > { %v2755_v4 = vmul.f32 %v11293_v21, %v2236_v13  ;;  %v2756_v31 = vmul.f32 %v11293_v21, %v2237_v19  ;;  %v1612_v59 = vadd.f32 %v10400_v2, %v12370_v8  ;;  %v1642_v13 = vadd.f32 %v10703_v57, %v12278_v18 }
 0x4c3   : > { %v6833_v43 = vsel %vm4355_vm3, %v6832_v10, %v6828_v0  ;;  %3604 = vadd.xlane.f32.xlu1 %v2694_v28  ;;  %3606 = vadd.xlane.f32.xlu0 %v2695_v22  ;;  %vm12393_vm3 = vmmov %vm12392_vm7  ;;  %v2266_v10 = vand.u32 2147483647, %v1754_v36  ;;  %v1613_v22 = vadd.f32 %v10400_v2, %v12373_v12 }
 0x4c4   : > { %v11373_v50 = vsel %vm4362_vm4, %v6837_v55, %v6833_v43  ;;  %v3519_v47 = vpop.xlane.xlu1 %3518  ;;  %v3521_v62 = vpop.xlane.xlu0 %3520  ;;  %v2124_v36 = vand.u32 2147483647, %v1612_v59  ;;  %v2154_v59 = vand.u32 2147483647, %v1642_v13  ;;  %vm12394_vm4 = vmmov %vm12390_vm6 }
 0x4c5   : > { %v6131_v61 = vrot.slane %v3519_v47, %v12291_v48  ;;  %v6136_v56 = vrot.slane %v3521_v62, %v12294_v9  ;;  %v2785_v19 = vmul.f32 %v11293_v21, %v2266_v10  ;;  %vm12395_vm6 = vmmov %vm12391_vm8 }
 0x4c6   : > { %v2643_v10 = vmul.f32 %v11293_v21, %v2124_v36  ;;  %vm12396_vm8 = vmmov %vm12393_vm3 }
 0x4c7   : > { %v6132_v42 = vsel %vm4369_vm5, %v6131_v61, %v11301_v32  ;;  %3666 = vadd.xlane.f32.xlu1 %v2725_v34  ;;  %3668 = vadd.xlane.f32.xlu0 %v2726_v1  ;;  %v2267_v32 = vand.u32 2147483647, %v1755_v37  ;;  %v1643_v61 = vadd.f32 %v10703_v57, %v12367_v63  ;;  %v2125_v37 = vand.u32 2147483647, %v1613_v22  ;;  %vm12397_vm7 = vmmov %vm12394_vm4 }
 0x4c8   : > { %v11387_v46 = vsel %vm12393_vm3, %v6136_v56, %v6132_v42  ;;  %v3593_v3 = vpop.xlane.xlu1 %3592  ;;  %v3595_v28 = vpop.xlane.xlu0 %3594  ;;  %v1711_v22 = vadd.f32 %v10510_v44, %v12381_v38  ;;  %vm12398_vm3 = vmmov %vm12395_vm6 }
 0x4c9   : > { %v6314_v0 = vrot.slane %v3593_v3, %v8986_v20  ;;  %v6319_v55 = vrot.slane %v3595_v28, %v8989_v30  ;;  %v2786_v1 = vmul.f32 %v11293_v21, %v2267_v32 }
 0x4cb   : > { %v6315_v43 = vsel %vm4404_vm10, %v6314_v0, %v11243_v24  ;;  %3726 = vadd.xlane.f32.xlu1 %v2755_v4  ;;  %3728 = vadd.xlane.f32.xlu0 %v2756_v31  ;;  %v1680_v4 = vadd.f32 %v10461_v26, %v12389_v11  ;;  %v2155_v0 = vand.u32 2147483647, %v1643_v61  ;;  %v1710_v61 = vadd.f32 %v10510_v44, %v12376_v27 }
 0x4cc   : > { %v11401_v47 = vsel %vm4411_vm11, %v6319_v55, %v6315_v43  ;;  %v3655_v62 = vpop.xlane.xlu1 %3654  ;;  %v3657_v34 = vpop.xlane.xlu0 %3656 }
 0x4cd   : > { %v6467_v56 = vrot.slane %v3655_v62, %v12271_v33  ;;  %v6472_v24 = vrot.slane %v3657_v34, %v8986_v20  ;;  %v2192_v43 = vand.u32 2147483647, %v1680_v4  ;;  %v2674_v36 = vmul.f32 %v11293_v21, %v2155_v0 }
 0x4ce   : > { %v1771_v0 = vadd.f32 %v10776_v16, %v12367_v63 }
 0x4cf   : > { %v6468_v42 = vsel %vm4397_vm9, %v6467_v56, %v11256_v51  ;;  %3786 = vadd.xlane.f32.xlu1 %v2785_v19  ;;  %3788 = vadd.xlane.f32.xlu0 %v2786_v1  ;;  %v2644_v51 = vmul.f32 %v11293_v21, %v2125_v37  ;;  %v2673_v19 = vmul.f32 %v11293_v21, %v2154_v59 }
 0x4d0   : > { %v11414_v3 = vsel %vm4404_vm10, %v6472_v24, %v6468_v42  ;;  %v3715_v28 = vpop.xlane.xlu1 %3714  ;;  %v3717_v31 = vpop.xlane.xlu0 %3716  ;;  %v1741_v1 = vadd.f32 %v10625_v60, %v12373_v12  ;;  %v2711_v42 = vmul.f32 %v11293_v21, %v2192_v43  ;;  %v1740_v59 = vadd.f32 %v10625_v60, %v12370_v8 }
 0x4d1   : > { %v6615_v55 = vrot.slane %v3715_v28, %v12293_v39  ;;  %v6620_v32 = vrot.slane %v3717_v31, %v12297_v58 }
 0x4d3   : > { %v6616_v26 = vsel %vm12394_vm4, %v6615_v55, %v11268_v17  ;;  %3502 = vadd.xlane.f32.xlu1 %v2643_v10  ;;  %3504 = vadd.xlane.f32.xlu0 %v2644_v51  ;;  %v2223_v17 = vand.u32 2147483647, %v1711_v22  ;;  %v2222_v10 = vand.u32 2147483647, %v1710_v61  ;;  %v2253_v51 = vand.u32 2147483647, %v1741_v1  ;;  %vm12399_vm4 = vmmov %vm12396_vm8 }
 0x4d4   : > { %v11425_v62 = vsel %vm12395_vm6, %v6620_v32, %v6616_v26  ;;  %v3775_v13 = vpop.xlane.xlu1 %3774  ;;  %v3777_v34 = vpop.xlane.xlu0 %3776  ;;  %v1770_v26 = vadd.f32 %v10776_v16, %v12278_v18  ;;  %vm12400_vm6 = vmmov %vm12397_vm7 }
 0x4d5   : > { %v6763_v56 = vrot.slane %v3775_v13, %v12291_v48  ;;  %v6768_v24 = vrot.slane %v3777_v34, %v12294_v9  ;;  %v2742_v32 = vmul.f32 %v11293_v21, %v2223_v17  ;;  %v2741_v34 = vmul.f32 %v11293_v21, %v2222_v10 }
 0x4d6   : > { %v1628_v17 = vadd.f32 %v10641_v52, %v12370_v8  ;;  %v1712_v10 = vadd.f32 %v10510_v44, %v12389_v11 }
 0x4d7   : > { %v6764_v37 = vsel %vm4369_vm5, %v6763_v56, %v11283_v25  ;;  %3562 = vadd.xlane.f32.xlu1 %v2673_v19  ;;  %3564 = vadd.xlane.f32.xlu0 %v2674_v36  ;;  %v2252_v19 = vand.u32 2147483647, %v1740_v59  ;;  %v1629_v36 = vadd.f32 %v10641_v52, %v12373_v12  ;;  %v2772_v56 = vmul.f32 %v11293_v21, %v2253_v51 }
 0x4d8   : > { %v11439_v4 = vsel %vm12396_vm8, %v6768_v24, %v6764_v37  ;;  %v3491_v28 = vpop.xlane.xlu1 %3490  ;;  %v3493_v31 = vpop.xlane.xlu0 %3492  ;;  %v2283_v24 = vand.u32 2147483647, %v1771_v0 }
 0x4d9   : > { %v6062_v55 = vrot.slane %v3491_v28, %v12293_v39  ;;  %v6067_v25 = vrot.slane %v3493_v31, %v12297_v58  ;;  %v2282_v28 = vand.u32 2147483647, %v1770_v26  ;;  %v2141_v31 = vand.u32 2147483647, %v1629_v36 }
 0x4da   : > { %v2140_v26 = vand.u32 2147483647, %v1628_v17 }
 0x4db   : > { %v6063_v22 = vsel %vm12397_vm7, %v6062_v55, %v11059_v41  ;;  %3638 = vadd.xlane.f32.xlu1 %v2711_v42  ;;  %3700 = vadd.xlane.f32.xlu0 %v2742_v32  ;;  %v2802_v55 = vmul.f32 %v11293_v21, %v2283_v24  ;;  %v2801_v44 = vmul.f32 %v11293_v21, %v2282_v28 }
 0x4dc   : > { %v11453_v43 = vsel %vm12398_vm3, %v6067_v25, %v6063_v22  ;;  %v3551_v13 = vpop.xlane.xlu1 %3550  ;;  %v3553_v63 = vpop.xlane.xlu0 %3552  ;;  %v1726_v24 = vadd.f32 %v10553_v14, %v12376_v27 }
 0x4dd   : > { %v6210_v61 = vrot.slane %v3551_v13, %v12291_v48  ;;  %v6215_v41 = vrot.slane %v3553_v63, %v12294_v9  ;;  %v1696_v13 = vadd.f32 %v10494_v7, %v12389_v11 }
 0x4df   : > { %v6211_v18 = vsel %vm4369_vm5, %v6210_v61, %v11316_v49  ;;  %3698 = vadd.xlane.f32.xlu1 %v2741_v34  ;;  %3760 = vadd.xlane.f32.xlu0 %v2772_v56  ;;  %v2771_v49 = vmul.f32 %v11293_v21, %v2252_v19  ;;  %v2660_v34 = vmul.f32 %v11293_v21, %v2141_v31  ;;  %v2224_v19 = vand.u32 2147483647, %v1712_v10 }
 0x4e0   : > { %v11466_v1 = vsel %vm12399_vm4, %v6215_v41, %v6211_v18  ;;  %v3627_v37 = vpop.xlane.xlu1 %3626  ;;  %v3629_v42 = vpop.xlane.xlu0 %3628  ;;  %v2659_v56 = vmul.f32 %v11293_v21, %v2140_v26  ;;  %v2208_v7 = vand.u32 2147483647, %v1696_v13 }
 0x4e1   : > { %v6398_v59 = vrot.slane %v3627_v37, %v8989_v30  ;;  %v6403_v0 = vrot.slane %v3629_v42, %v9021_v40  ;;  %v2743_v17 = vmul.f32 %v11293_v21, %v2224_v19 }
 0x4e2   : > { %v2727_v10 = vmul.f32 %v11293_v21, %v2208_v7 }
 0x4e3   : > { %v6399_v25 = vsel %vm4411_vm11, %v6398_v59, %v11335_v35  ;;  %3758 = vadd.xlane.f32.xlu1 %v2771_v49  ;;  %3820 = vadd.xlane.f32.xlu0 %v2802_v55  ;;  %v1742_v35 = vadd.f32 %v10625_v60, %v12376_v27  ;;  %v2238_v59 = vand.u32 2147483647, %v1726_v24 }
 0x4e4   : > { %v11477_v32 = vsel %vm4418_vm12, %v6403_v0, %v6399_v25  ;;  %v3687_v51 = vpop.xlane.xlu1 %3686  ;;  %v11479_v22 = vpop.xlane.xlu0 %3688  ;;  %v1756_v0 = vadd.f32 %v10706_v5, %v12370_v8 }
 0x4e5   : > { %v6546_v63 = vrot.slane %v3687_v51, %v12271_v33  ;;  %v2254_v37 = vand.u32 2147483647, %v1742_v35  ;;  %v2757_v19 = vmul.f32 %v11293_v21, %v2238_v59 }
 0x4e6   : > { %v2268_v13 = vand.u32 2147483647, %v1756_v0 }
 0x4e7   : > { %v11490_v36 = vsel %vm4397_vm9, %v6546_v63, %v11346_v15  ;;  %3818 = vadd.xlane.f32.xlu1 %v2801_v44  ;;  %3536 = vadd.xlane.f32.xlu0 %v2660_v34  ;;  %v1772_v15 = vadd.f32 %v10776_v16, %v12370_v8  ;;  %v2773_v55 = vmul.f32 %v11293_v21, %v2254_v37 }
 0x4e8   : > { %v3747_v61 = vpop.xlane.xlu1 %3746  ;;  %v11492_v41 = vpop.xlane.xlu0 %3748  ;;  %v1728_v63 = vadd.f32 %v10553_v14, %v12389_v11  ;;  %v2787_v24 = vmul.f32 %v11293_v21, %v2268_v13 }
 0x4e9   : > { %v6694_v18 = vrot.slane %v3747_v61, %v12293_v39  ;;  %v2284_v25 = vand.u32 2147483647, %v1772_v15 }
 0x4eb   : > { %v11503_v42 = vsel %vm12400_vm6, %v6694_v18, %v11363_v29  ;;  %3534 = vadd.xlane.f32.xlu1 %v2659_v56  ;;  %3702 = vadd.xlane.f32.xlu0 %v2743_v17  ;;  %v1630_v29 = vadd.f32 %v10641_v52, %v12376_v27  ;;  %v2803_v35 = vmul.f32 %v11293_v21, %v2284_v25  ;;  %v11553_v25 = vld [vmem:[%s478_s20] sm:$0xff]  ;;  %s7720_s20 = sshll.u32 %s7799_s12, 4  ;;  %s7721_s20 = int_to_ptr.vmem [resolvable:$false] %s7720_s20 }
 0x4ec   : > { %v3807_v28 = vpop.xlane.xlu1 %3806  ;;  %v11505_v31 = vpop.xlane.xlu0 %3808  ;;  %v1644_v17 = vadd.f32 %v10703_v57, %v12370_v8  ;;  %vm6948_vm8 = vnez %v11553_v25 }
 0x4ed   : > { %v6842_v49 = vrot.slane %v3807_v28, %v12291_v48  ;;  %v1614_v48 = vadd.f32 %v10400_v2, %v12376_v27  ;;  %v2240_v28 = vand.u32 2147483647, %v1728_v63 }
 0x4ef   : > { %v11516_v51 = vsel %vm4369_vm5, %v6842_v49, %v11373_v50  ;;  %3670 = vadd.xlane.f32.xlu1 %v2727_v10  ;;  %3762 = vadd.xlane.f32.xlu0 %v2773_v55  ;;  %v2142_v50 = vand.u32 2147483647, %v1630_v29  ;;  %vm12401_vm5 = vmmov %vm12400_vm6  ;;  %v2126_v18 = vand.u32 2147483647, %v1614_v48  ;;  %v2156_v49 = vand.u32 2147483647, %v1644_v17 }
 0x4f0   : > { %v3523_v44 = vpop.xlane.xlu1 %3522  ;;  %v11518_v26 = vpop.xlane.xlu0 %3524  ;;  %v1727_v55 = vadd.f32 %v10553_v14, %v12381_v38  ;;  %vm12403_vm7 = vmmov %vm12401_vm5 }
 0x4f1   : > { %v6141_v34 = vrot.slane %v3523_v44, %v12293_v39  ;;  %v2661_v15 = vmul.f32 %v11293_v21, %v2142_v50  ;;  %v2645_v0 = vmul.f32 %v11293_v21, %v2126_v18  ;;  %v2759_v44 = vmul.f32 %v11293_v21, %v2240_v28  ;;  %vm12404_vm6 = vmmov %vm12398_vm3 }
 0x4f2   : > { %v2239_v50 = vand.u32 2147483647, %v1727_v55  ;;  %v1615_v28 = vadd.f32 %v10400_v2, %v12381_v38 }
 0x4f3   : > { %v11530_v61 = vsel %vm12401_vm5, %v6141_v34, %v11387_v46  ;;  %3730 = vadd.xlane.f32.xlu1 %v2757_v19  ;;  %3822 = vadd.xlane.f32.xlu0 %v2803_v35  ;;  %v1758_v46 = vadd.f32 %v10706_v5, %v12376_v27  ;;  %v2675_v34 = vmul.f32 %v11293_v21, %v2156_v49 }
 0x4f4   : > { %v3597_v56 = vpop.xlane.xlu1 %3596  ;;  %v11532_v7 = vpop.xlane.xlu0 %3598  ;;  %v1757_v19 = vadd.f32 %v10706_v5, %v12373_v12 }
 0x4f5   : > { %v6324_v37 = vrot.slane %v3597_v56, %v9021_v40  ;;  %v2270_v13 = vand.u32 2147483647, %v1758_v46  ;;  %v1759_v46 = vadd.f32 %v10706_v5, %v12381_v38 }
 0x4f7   : > { %v11546_v10 = vsel %vm4418_vm12, %v6324_v37, %v11401_v47  ;;  %3790 = vadd.xlane.f32.xlu1 %v2787_v24  ;;  %3538 = vadd.xlane.f32.xlu0 %v2661_v15  ;;  %v1616_v47 = vadd.f32 %v10400_v2, %v12389_v11  ;;  %v2789_v35 = vmul.f32 %v11293_v21, %v2270_v13  ;;  %v12402_v24 = vmov 0  }
 0x4f8   : > { %v3659_v59 = vpop.xlane.xlu1 %3658  ;;  %v11548_v8 = vpop.xlane.xlu0 %3660  ;;  %v11575_v18 = vsel %vm6948_vm8, 16843009, %v12402_v24  ;;  %v2269_v15 = vand.u32 2147483647, %v1757_v19  ;;  %v2127_v2 = vand.u32 2147483647, %v1615_v28 }
 0x4f9   : > { %v6477_v29 = vrot.slane %v3659_v59, %v8989_v30  ;;  %v2128_v56 = vand.u32 2147483647, %v1616_v47  ;;  %v2758_v59 = vmul.f32 %v11293_v21, %v2239_v50  ;;  %v6962_v55 = vunpack.c.0.s8 %v11575_v18 }
 0x4fa   : > { %v2271_v47 = vand.u32 2147483647, %v1759_v46  ;;  %v2788_v19 = vmul.f32 %v11293_v21, %v2269_v15  ;;  %v2646_v6 = vmul.f32 %v11293_v21, %v2127_v2  ;;  %vm12405_vm8 = vcmask 326912  }
 0x4fb   : > { %v11561_v48 = vsel %vm4411_vm11, %v6477_v29, %v11414_v3  ;;  %3506 = vadd.xlane.f32.xlu1 %v2645_v0  ;;  %3734 = vadd.xlane.f32.xlu0 %v2759_v44  ;;  %v1646_v3 = vadd.f32 %v10703_v57, %v12376_v27  ;;  %v2647_v0 = vmul.f32 %v11293_v21, %v2128_v56 }
 0x4fc   : > { %v11564_v63 = vpop.xlane.xlu1 %3718  ;;  %v11566_v14 = vpop.xlane.xlu0 %3720  ;;  %v1645_v29 = vadd.f32 %v10703_v57, %v12373_v12  ;;  %v6966_v50 = vpack.c.b16 %v6962_v55, %v6962_v55  ;;  %v2790_v28 = vmul.f32 %v11293_v21, %v2271_v47 }
 0x4fd   : > { %v2158_v49 = vand.u32 2147483647, %v1646_v3  ;;  %v1743_v3 = vadd.f32 %v10625_v60, %v12381_v38 }
 0x4fe   : > { %v2157_v56 = vand.u32 2147483647, %v1645_v29  ;;  %v6967_v55 = vpack.c.b8 %v6966_v50, %v6966_v50  ;;  %v6551_v50 = vrot.slane %v11479_v22, %v8986_v20 }
 0x4ff   : > { %3566 = vadd.xlane.f32.xlu1 %v2675_v34  ;;  %3794 = vadd.xlane.f32.xlu0 %v2789_v35  ;;  %v1632_v34 = vadd.f32 %v10641_v52, %v12389_v11  ;;  %v2677_v35 = vmul.f32 %v11293_v21, %v2158_v49  ;;  %v1760_v49 = vadd.f32 %v10706_v5, %v12389_v11 }
 0x500   : > { %v11577_v17 = vpop.xlane.xlu1 %3778  ;;  %v11579_v37 = vpop.xlane.xlu0 %3780  ;;  %v1648_v5 = vadd.f32 %v10703_v57, %v12389_v11  ;;  %vm6974_vm4 = vnez %v6967_v55 }
 0x501   : > { %v2144_v46 = vand.u32 2147483647, %v1632_v34  ;;  %v6978_v22 = vsel %vm6974_vm4, 16843009, %v12402_v24  ;;  %vm12407_vm4 = vmmov %vm12398_vm3 }
 0x503   : > { %3732 = vadd.xlane.f32.xlu1 %v2758_v59  ;;  %3510 = vadd.xlane.f32.xlu0 %v2647_v0 }
 0x504   : > { %v11590_v44 = vpop.xlane.xlu1 %3494  ;;  %v11592_v13 = vpop.xlane.xlu0 %3496 }
 0x507   : > { %3792 = vadd.xlane.f32.xlu1 %v2788_v19  ;;  %3570 = vadd.xlane.f32.xlu0 %v2677_v35  ;;  %v2676_v19 = vmul.f32 %v11293_v21, %v2157_v56  ;;  %v2255_v35 = vand.u32 2147483647, %v1743_v3  ;;  %v6949_v56 = vunpack.c.0.s8 %v11553_v25 }
 0x508   : > { %v3555_v59 = vpop.xlane.xlu1 %3554  ;;  %v3557_v0 = vpop.xlane.xlu0 %3556 }
 0x509   : > { %v6220_v54 = vrot.slane %v3555_v59, %v12293_v39  ;;  %v6225_v15 = vrot.slane %v3557_v0, %v12297_v58  ;;  %v2663_v59 = vmul.f32 %v11293_v21, %v2144_v46  ;;  %v1773_v0 = vadd.f32 %v10776_v16, %v12373_v12 }
 0x50a   : > { %v1631_v12 = vadd.f32 %v10641_v52, %v12381_v38  ;;  %v6552_v52 = vsel %vm4404_vm10, %v6551_v50, %v11490_v36 }
 0x50b   : > { %v6221_v29 = vsel %vm12403_vm7, %v6220_v54, %v11466_v1  ;;  %3508 = vadd.xlane.f32.xlu1 %v2646_v6  ;;  %3796 = vadd.xlane.f32.xlu0 %v2790_v28  ;;  %v2272_v1 = vand.u32 2147483647, %v1760_v49  ;;  %v2774_v49 = vmul.f32 %v11293_v21, %v2255_v35  ;;  %v2285_v55 = vand.u32 2147483647, %v1773_v0 }
 0x50c   : > { %v11610_v2 = vsel %vm12398_vm3, %v6225_v15, %v6221_v29  ;;  %v3631_v47 = vpop.xlane.xlu1 %3630  ;;  %v3633_v34 = vpop.xlane.xlu0 %3632  ;;  %v6982_v35 = vunpack.c.0.s8 %v6978_v22 }
 0x50d   : > { %v6408_v54 = vrot.slane %v3631_v47, %v9040_v53  ;;  %v6413_v6 = vrot.slane %v3633_v34, %v9047_v45  ;;  %v6699_v34 = vrot.slane %v11492_v41, %v12297_v58  ;;  %v2804_v41 = vmul.f32 %v11293_v21, %v2285_v55 }
 0x50e   : > { %vm6986_vm5 = vcmp.ne.s32.totalorder %v6982_v35, 0 }
 0x50f   : > { %v6409_v3 = vsel %vm4425_vm13, %v6408_v54, %v11477_v32  ;;  %3568 = vadd.xlane.f32.xlu1 %v2676_v19  ;;  %3542 = vadd.xlane.f32.xlu0 %v2663_v59  ;;  %v2791_v32 = vmul.f32 %v11293_v21, %v2272_v1  ;;  %v2160_v19 = vand.u32 2147483647, %v1648_v5  ;;  %v6953_v59 = vcvt.s32.f32 %v6949_v56 }
 0x510   : > { %v11627_v28 = vsel %vm4432_vm14, %v6413_v6, %v6409_v3  ;;  %v3691_v46 = vpop.xlane.xlu1 %3690  ;;  %v3693_v15 = vpop.xlane.xlu0 %3692  ;;  %v1744_v5 = vadd.f32 %v10625_v60, %v12389_v11  ;;  %v6700_v56 = vsel %vm12404_vm6, %v6699_v34, %v11503_v42  ;;  %v12406_v34 = vld [vmem:[#allocation26_spill] sm:$0xff] }
 0x511   : > { %v6556_v29 = vrot.slane %v3691_v46, %v8989_v30  ;;  %v6561_v47 = vrot.slane %v3693_v15, %v9021_v40  ;;  %v2143_v46 = vand.u32 2147483647, %v1631_v12  ;;  %v2679_v50 = vmul.f32 %v11293_v21, %v2160_v19 }
 0x512   : > { %v6847_v15 = vrot.slane %v11505_v31, %v12294_v9  ;;  %v2256_v55 = vand.u32 2147483647, %v1744_v5  ;;  %v6963_v31 = vunpack.c.1.s8 %v11575_v18 }
 0x513   : > { %v6557_v54 = vsel %vm4411_vm11, %v6556_v29, %v6552_v52  ;;  %3764 = vadd.xlane.f32.xlu1 %v2774_v49  ;;  %3798 = vadd.xlane.f32.xlu0 %v2791_v32  ;;  %v6957_v49 = vmul.f32 -1e+09, %v6953_v59  ;;  %v2662_v9 = vmul.f32 %v11293_v21, %v2143_v46  ;;  %v6146_v52 = vrot.slane %v11518_v26, %v12297_v58 }
 0x514   : > { %v11640_v0 = vsel %vm4418_vm12, %v6561_v47, %v6557_v54  ;;  %v3751_v6 = vpop.xlane.xlu1 %3750  ;;  %v3753_v3 = vpop.xlane.xlu0 %3752  ;;  %v1774_v47 = vadd.f32 %v10776_v16, %v12376_v27  ;;  %v6848_v19 = vsel %vm12405_vm8, %v6847_v15, %v11516_v51  ;;  %v1647_v51 = vadd.f32 %v10703_v57, %v12381_v38 }
 0x515   : > { %v6704_v36 = vrot.slane %v3751_v6, %v12271_v33  ;;  %v6709_v1 = vrot.slane %v3753_v3, %v8986_v20  ;;  %v11667_v59 = vsel %vm6986_vm5, %v6957_v49, %v12406_v34  ;;  %v2775_v5 = vmul.f32 %v11293_v21, %v2256_v55 }
 0x516   : > { %v2286_v3 = vand.u32 2147483647, %v1774_v47  ;;  %v6482_v47 = vrot.slane %v11548_v8, %v9021_v40  ;;  %vm12408_vm5 = vcmask 7168  }
 0x517   : > { %v6705_v12 = vsel %vm4397_vm9, %v6704_v36, %v6700_v56  ;;  %3824 = vadd.xlane.f32.xlu1 %v2804_v41  ;;  %3574 = vadd.xlane.f32.xlu0 %v2679_v50  ;;  %v6968_v36 = vpack.c.b16 %v6963_v31, %v6963_v31  ;;  %v6329_v41 = vrot.slane %v11532_v7, %v9040_v53  ;;  %vm12409_vm8 = vmmov %vm12408_vm5 }
 0x518   : > { %v11654_v60 = vsel %vm4404_vm10, %v6709_v1, %v6705_v12  ;;  %v3811_v22 = vpop.xlane.xlu1 %3810  ;;  %v3813_v29 = vpop.xlane.xlu0 %3812  ;;  %v6147_v1 = vsel %vm12407_vm4, %v6146_v52, %v11530_v61  ;;  %v2805_v49 = vmul.f32 %v11293_v21, %v2286_v3  ;;  %v2159_v12 = vand.u32 2147483647, %v1647_v51 }
 0x519   : > { %v6852_v42 = vrot.slane %v3811_v22, %v12293_v39  ;;  %v6857_v32 = vrot.slane %v3813_v29, %v12297_v58  ;;  %v1775_v61 = vadd.f32 %v10776_v16, %v12381_v38  ;;  %v6969_v55 = vpack.c.b8 %v6968_v36, %v6968_v36 }
 0x51a   : > { %v6330_v7 = vsel %vm4425_vm13, %v6329_v41, %v11546_v10  ;;  %v2678_v38 = vmul.f32 %v11293_v21, %v2159_v12  ;;  %v1776_v52 = vadd.f32 %v10776_v16, %v12389_v11  ;;  %v6773_v16 = vrot.slane %v11577_v17, %v12293_v39 }
 0x51b   : > { %v6853_v54 = vsel %vm12403_vm7, %v6852_v42, %v6848_v19  ;;  %3540 = vadd.xlane.f32.xlu1 %v2662_v9  ;;  %6998 = vmax.xlane.f32.xlu0 %v11667_v59  ;;  %v6625_v42 = vrot.slane %v11564_v63, %v12271_v33  ;;  %v2287_v34 = vand.u32 2147483647, %v1775_v61  ;;  %vm6975_vm6 = vnez %v6969_v55  ;;  %vm12410_vm7 = vmmov %vm12408_vm5 }
 0x51c   : > { %v11672_v27 = vsel %vm12398_vm3, %v6857_v32, %v6853_v54  ;;  %v3527_v35 = vpop.xlane.xlu1 %3526  ;;  %v3529_v6 = vpop.xlane.xlu0 %3528  ;;  %v6483_v63 = vsel %vm4418_vm12, %v6482_v47, %v11561_v48  ;;  %v6630_v54 = vrot.slane %v11566_v14, %v8986_v20  ;;  %v6979_v48 = vsel %vm6975_vm6, 16843009, %v12402_v24  ;;  %vm12411_vm3 = vmmov %vm12408_vm5 }
 0x51d   : > { %v6151_v46 = vrot.slane %v3527_v35, %v12271_v33  ;;  %v6156_v26 = vrot.slane %v3529_v6, %v8986_v20  ;;  %v6950_v35 = vunpack.c.1.s8 %v11553_v25  ;;  %v6626_v6 = vsel %vm4397_vm9, %v6625_v42, %v11425_v62 }
 0x51e   : > { %v2288_v62 = vand.u32 2147483647, %v1776_v52  ;;  %v7798_v36 = vmov -1e+30   ;;  %v6631_v39 = vsel %vm4404_vm10, %v6630_v54, %v6626_v6  ;;  %v6778_v17 = vrot.slane %v11579_v37, %v12297_v58 }
 0x51f   : > { %v6152_v50 = vsel %vm4397_vm9, %v6151_v46, %v6147_v1  ;;  %3766 = vadd.xlane.f32.xlu1 %v2775_v5  ;;  %v2806_v5 = vmul.f32 %v11293_v21, %v2287_v34  ;;  %593 = vst.msk [vmem:[#allocation4] sm:$0xff] %vm12408_vm5, %v7798_v36  ;;  %v6954_v1 = vcvt.s32.f32 %v6950_v35  ;;  %vm12412_vm4 = vcmask 392512  }
 0x520   : > { %v11685_v56 = vsel %vm4404_vm10, %v6156_v26, %v6152_v50  ;;  %v3601_v57 = vpop.xlane.xlu1 %3600  ;;  %v3603_v15 = vpop.xlane.xlu0 %3602  ;;  %594 = vst.msk [vmem:[#allocation4 + $0x8] sm:$0xff] %vm12409_vm8, %v7798_v36  ;;  %v6774_v41 = vsel %vm12412_vm4, %v6773_v16, %v11439_v4  ;;  %v6072_v50 = vrot.slane %v11590_v44, %v12271_v33  ;;  %v2807_v37 = vmul.f32 %v11293_v21, %v2288_v62 }
 0x521   : > { %v6334_v22 = vrot.slane %v3601_v57, %v9047_v45  ;;  %v6339_v29 = vrot.slane %v3603_v15, %v12319_v23  ;;  %595 = vst.msk [vmem:[#allocation4 + $0x10] sm:$0xff] %vm12410_vm7, %v7798_v36  ;;  %v6983_v15 = vunpack.c.0.s8 %v6979_v48  ;;  %vm12413_vm6 = vcmask 458112  }
 0x522   : > { %596 = vst.msk [vmem:[#allocation4 + $0x18] sm:$0xff] %vm12411_vm3, %v7798_v36  ;;  %v6779_v4 = vsel %vm12413_vm6, %v6778_v17, %v6774_v41  ;;  %v6077_v44 = vrot.slane %v11592_v13, %v8986_v20  ;;  %v6958_v61 = vmul.f32 -1e+09, %v6954_v1  ;;  %v6073_v55 = vsel %vm4397_vm9, %v6072_v50, %v11453_v43  ;;  %v12414_v13 = vld [vmem:[#allocation35_spill] sm:$0xff] }
 0x523   : > { %v6335_v32 = vsel %vm4432_vm14, %v6334_v22, %v6330_v7  ;;  %3826 = vadd.xlane.f32.xlu1 %v2805_v49  ;;  %vm6987_vm5 = vcmp.ne.s32.totalorder %v6983_v15, 0  ;;  %vm12423_vm8 = vcmask 1046534  }
 0x524   : > { %v11700_v9 = vsel %vm4439_vm15, %v6339_v29, %v6335_v32  ;;  %v3663_v31 = vpop.xlane.xlu1 %3662  ;;  %v3665_v19 = vpop.xlane.xlu0 %3664  ;;  %vm12425_vm4 = vmmov %vm12423_vm8 }
 0x525   : > { %v6487_v10 = vrot.slane %v3663_v31, %v9040_v53  ;;  %v6492_v8 = vrot.slane %v3665_v19, %v9047_v45  ;;  %v6078_v19 = vsel %vm4404_vm10, %v6077_v44, %v6073_v55 }
 0x527   : > { %v6488_v11 = vsel %vm4425_vm13, %v6487_v10, %v6483_v63  ;;  %3572 = vadd.xlane.f32.xlu1 %v2678_v38  ;;  %v11755_v38 = vsel %vm6987_vm5, %v6958_v61, %v12414_v13  ;;  %vm12428_vm5 = vcmask 1047559  }
 0x528   : > { %v11718_v3 = vsel %vm4432_vm14, %v6492_v8, %v6488_v11  ;;  %v3723_v51 = vpop.xlane.xlu1 %3722  ;;  %v3725_v46 = vpop.xlane.xlu0 %3724 }
 0x529   : > { %v6635_v14 = vrot.slane %v3723_v51, %v8989_v30  ;;  %v6640_v26 = vrot.slane %v3725_v46, %v9021_v40  ;;  %v12415_v51 = vld [vmem:[#allocation54_spill] sm:$0xff] }
 0x52b   : > { %v6636_v57 = vsel %vm4411_vm11, %v6635_v14, %v6631_v39  ;;  %3828 = vadd.xlane.f32.xlu1 %v2806_v5 }
 0x52c   : > { %v11737_v49 = vsel %vm4418_vm12, %v6640_v26, %v6636_v57  ;;  %v3783_v12 = vpop.xlane.xlu1 %3782  ;;  %v3785_v22 = vpop.xlane.xlu0 %3784 }
 0x52d   : > { %v6783_v29 = vrot.slane %v3783_v12, %v12271_v33  ;;  %v6788_v58 = vrot.slane %v3785_v22, %v8986_v20 }
 0x52f   : > { %v6784_v7 = vsel %vm4397_vm9, %v6783_v29, %v6779_v4  ;;  %3830 = vadd.xlane.f32.xlu1 %v2807_v37 }
 0x530   : > { %v11749_v47 = vsel %vm4404_vm10, %v6788_v58, %v6784_v7  ;;  %v3499_v42 = vpop.xlane.xlu1 %3498  ;;  %v3501_v32 = vpop.xlane.xlu0 %3500 }
 0x531   : > { %v6082_v21 = vrot.slane %v3499_v42, %v8989_v30  ;;  %v6087_v31 = vrot.slane %v3501_v32, %v9021_v40 }
 0x533   : > { %v6083_v43 = vsel %vm4411_vm11, %v6082_v21, %v6078_v19  ;;  %7000 = vmax.xlane.f32.xlu1 %v11755_v38 }
 0x534   : > { %v11760_v52 = vsel %vm4418_vm12, %v6087_v31, %v6083_v43  ;;  %v3559_v10 = vpop.xlane.xlu1 %3558  ;;  %v3561_v8 = vpop.xlane.xlu0 %3560 }
 0x535   : > { %v6230_v34 = vrot.slane %v3559_v10, %v12271_v33  ;;  %v6235_v63 = vrot.slane %v3561_v8, %v8986_v20 }
 0x537   : > { %v6231_v54 = vsel %vm4397_vm9, %v6230_v34, %v11610_v2 }
 0x538   : > { %v11767_v35 = vsel %vm4404_vm10, %v6235_v63, %v6231_v54  ;;  %v3635_v6 = vpop.xlane.xlu1 %3634  ;;  %v3637_v16 = vpop.xlane.xlu0 %3636 }
 0x539   : > { %v6418_v11 = vrot.slane %v3635_v6, %v12319_v23  ;;  %v6423_v46 = vrot.slane %v3637_v16, %v12415_v51 }
 0x53b   : > { %v6419_v48 = vsel %vm4439_vm15, %v6418_v11, %v11627_v28 }
 0x53c   : > { %v11774_v14 = vsel %vm4446_vm0, %v6423_v46, %v6419_v48  ;;  %v3695_v26 = vpop.xlane.xlu1 %3694  ;;  %v3697_v5 = vpop.xlane.xlu0 %3696 }
 0x53d   : > { %v6566_v62 = vrot.slane %v3695_v26, %v9040_v53  ;;  %v6571_v2 = vrot.slane %v3697_v5, %v9047_v45 }
 0x53f   : > { %v6567_v36 = vsel %vm4425_vm13, %v6566_v62, %v11640_v0 }
 0x540   : > { %v11781_v39 = vsel %vm4432_vm14, %v6571_v2, %v6567_v36  ;;  %v3755_v17 = vpop.xlane.xlu1 %3754  ;;  %v3757_v1 = vpop.xlane.xlu0 %3756 }
 0x541   : > { %v6714_v41 = vrot.slane %v3755_v17, %v8989_v30  ;;  %v6719_v28 = vrot.slane %v3757_v1, %v9021_v40 }
 0x543   : > { %v6715_v50 = vsel %vm4411_vm11, %v6714_v41, %v11654_v60 }
 0x544   : > { %v11788_v57 = vsel %vm4418_vm12, %v6719_v28, %v6715_v50  ;;  %v3815_v15 = vpop.xlane.xlu1 %3814  ;;  %v3817_v12 = vpop.xlane.xlu0 %3816 }
 0x545   : > { %v6862_v22 = vrot.slane %v3815_v15, %v12271_v33  ;;  %v6867_v0 = vrot.slane %v3817_v12, %v8986_v20 }
 0x547   : > { %v6863_v29 = vsel %vm4397_vm9, %v6862_v22, %v11672_v27  ;;  %v12416_v27 = vld [vmem:[#allocation55_spill] sm:$0xff]  ;;  %vm12418_vm9 = vcmask 1043459  }
 0x548   : > { %v11795_v58 = vsel %vm4404_vm10, %v6867_v0, %v6863_v29  ;;  %v3531_v37 = vpop.xlane.xlu1 %3530  ;;  %v3533_v4 = vpop.xlane.xlu0 %3532  ;;  %vm12419_vm10 = vcmask 1044484  }
 0x549   : > { %v6161_v44 = vrot.slane %v3531_v37, %v8989_v30  ;;  %v6166_v60 = vrot.slane %v3533_v4, %v9021_v40 }
 0x54b   : > { %v6162_v61 = vsel %vm4411_vm11, %v6161_v44, %v11685_v56 }
 0x54c   : > { %v11802_v55 = vsel %vm4418_vm12, %v6166_v60, %v6162_v61  ;;  %v3605_v33 = vpop.xlane.xlu1 %3604  ;;  %v3607_v20 = vpop.xlane.xlu0 %3606 }
 0x54d   : > { %v6344_v7 = vrot.slane %v3605_v33, %v12415_v51  ;;  %v6349_v42 = vrot.slane %v3607_v20, %v12416_v27 }
 0x54f   : > { %v6345_v32 = vsel %vm4446_vm0, %v6344_v7, %v11700_v9 }
 0x550   : > { %v6350_v21 = vsel %vm4453_vm2, %v6349_v42, %v6345_v32  ;;  %v3667_v31 = vpop.xlane.xlu1 %3666  ;;  %v3669_v19 = vpop.xlane.xlu0 %3668 }
 0x551   : > { %v6497_v13 = vrot.slane %v3667_v31, %v12319_v23  ;;  %v6502_v56 = vrot.slane %v3669_v19, %v12415_v51 }
 0x553   : > { %v6498_v43 = vsel %vm4439_vm15, %v6497_v13, %v11718_v3 }
 0x554   : > { %v6503_v10 = vsel %vm4446_vm0, %v6502_v56, %v6498_v43  ;;  %v3727_v8 = vpop.xlane.xlu1 %3726  ;;  %v3729_v34 = vpop.xlane.xlu0 %3728 }
 0x555   : > { %v6645_v63 = vrot.slane %v3727_v8, %v9040_v53  ;;  %v6650_v54 = vrot.slane %v3729_v34, %v9047_v45 }
 0x557   : > { %v6646_v9 = vsel %vm4425_vm13, %v6645_v63, %v11737_v49 }
 0x558   : > { %v11819_v6 = vsel %vm4432_vm14, %v6650_v54, %v6646_v9  ;;  %v3787_v16 = vpop.xlane.xlu1 %3786  ;;  %v3789_v11 = vpop.xlane.xlu0 %3788 }
 0x559   : > { %v6793_v46 = vrot.slane %v3787_v16, %v8989_v30  ;;  %v6798_v3 = vrot.slane %v3789_v11, %v9021_v40 }
 0x55b   : > { %v6794_v48 = vsel %vm4411_vm11, %v6793_v46, %v11749_v47 }
 0x55c   : > { %v11826_v26 = vsel %vm4418_vm12, %v6798_v3, %v6794_v48  ;;  %v3503_v5 = vpop.xlane.xlu1 %3502  ;;  %v3505_v62 = vpop.xlane.xlu0 %3504 }
 0x55d   : > { %v6092_v2 = vrot.slane %v3503_v5, %v9040_v53  ;;  %v6097_v49 = vrot.slane %v3505_v62, %v9047_v45 }
 0x55f   : > { %v6093_v36 = vsel %vm4425_vm13, %v6092_v2, %v11760_v52 }
 0x560   : > { %v11833_v17 = vsel %vm4432_vm14, %v6097_v49, %v6093_v36  ;;  %v3563_v1 = vpop.xlane.xlu1 %3562  ;;  %v3565_v41 = vpop.xlane.xlu0 %3564 }
 0x561   : > { %v6240_v28 = vrot.slane %v3563_v1, %v8989_v30  ;;  %v6245_v47 = vrot.slane %v3565_v41, %v9021_v40 }
 0x563   : > { %v6241_v50 = vsel %vm4411_vm11, %v6240_v28, %v11767_v35 }
 0x564   : > { %v11840_v15 = vsel %vm4418_vm12, %v6245_v47, %v6241_v50  ;;  %v3639_v12 = vpop.xlane.xlu1 %3638  ;;  %v3701_v22 = vpop.xlane.xlu0 %3700 }
 0x565   : > { %v6428_v0 = vrot.slane %v3639_v12, %v12416_v27  ;;  %v6581_v60 = vrot.slane %v3701_v22, %v12415_v51 }
 0x567   : > { %v6429_v52 = vsel %vm4453_vm2, %v6428_v0, %v11774_v14 }
 0x568   : > { %v6932_v29 = vsel %vm6904_vm1, %v6429_v52, %v6350_v21  ;;  %v3699_v37 = vpop.xlane.xlu1 %3698  ;;  %v3761_v4 = vpop.xlane.xlu0 %3760  ;;  %vm12417_vm1 = vcmask 1042434  }
 0x569   : > { %v6576_v44 = vrot.slane %v3699_v37, %v12319_v23  ;;  %v6729_v42 = vrot.slane %v3761_v4, %v9047_v45 }
 0x56b   : > { %v6577_v35 = vsel %vm4439_vm15, %v6576_v44, %v11781_v39 }
 0x56c   : > { %v3759_v61 = vpop.xlane.xlu1 %3758  ;;  %v3821_v33 = vpop.xlane.xlu0 %3820  ;;  %v6582_v20 = vsel %vm4446_vm0, %v6581_v60, %v6577_v35 }
 0x56d   : > { %v6724_v7 = vrot.slane %v3759_v61, %v9040_v53  ;;  %v6877_v39 = vrot.slane %v3821_v33, %v9021_v40 }
 0x56f   : > { %v6725_v14 = vsel %vm4425_vm13, %v6724_v7, %v11788_v57 }
 0x570   : > { %v3819_v32 = vpop.xlane.xlu1 %3818  ;;  %v11855_v21 = vpop.xlane.xlu0 %3536  ;;  %v11858_v31 = vsel %vm4432_vm14, %v6729_v42, %v6725_v14 }
 0x571   : > { %v6872_v19 = vrot.slane %v3819_v32, %v8989_v30  ;;  %v6964_v32 = vunpack.c.2.s8 %v11575_v18 }
 0x573   : > { %v6873_v13 = vsel %vm4411_vm11, %v6872_v19, %v11795_v58  ;;  %vm12421_vm11 = vcmask 1045509  }
 0x574   : > { %v3535_v56 = vpop.xlane.xlu1 %3534  ;;  %v3703_v43 = vpop.xlane.xlu0 %3702  ;;  %v11865_v8 = vsel %vm4418_vm12, %v6877_v39, %v6873_v13  ;;  %v6970_v13 = vpack.c.b16 %v6964_v32, %v6964_v32  ;;  %vm12422_vm12 = vmmov %vm12411_vm3 }
 0x575   : > { %v6586_v57 = vrot.slane %v3703_v43, %v12416_v27  ;;  %v6171_v19 = vrot.slane %v3535_v56, %v9040_v53  ;;  %vm12424_vm3 = vmmov %vm12421_vm11 }
 0x577   : > { %v6587_v34 = vsel %vm4453_vm2, %v6586_v57, %v6582_v20  ;;  %v12420_v20 = vld [vmem:[#allocation36_spill] sm:$0xff]  ;;  %v6172_v43 = vsel %vm4425_vm13, %v6171_v19, %v11802_v55 }
 0x578   : > { %v3671_v63 = vpop.xlane.xlu1 %3670  ;;  %v11869_v54 = vpop.xlane.xlu0 %3762 }
 0x579   : > { %v6507_v9 = vrot.slane %v3671_v63, %v12416_v27  ;;  %v11910_v63 = vld [vmem:[#allocation4] sm:$0xff] }
 0x57b   : > { %v6508_v30 = vsel %vm4453_vm2, %v6507_v9, %v6503_v10  ;;  %v6176_v9 = vrot.slane %v11855_v21, %v9047_v45 }
 0x57c   : > { %v6933_v40 = vsel %vm12417_vm1, %v6508_v30, %v6932_v29  ;;  %v3731_v16 = vpop.xlane.xlu1 %3730  ;;  %v11874_v58 = vpop.xlane.xlu0 %3822 }
 0x57d   : > { %v6934_v11 = vsel %vm12418_vm9, %v6587_v34, %v6933_v40  ;;  %v6655_v49 = vrot.slane %v3731_v16, %v12319_v23  ;;  %v6971_v16 = vpack.c.b8 %v6970_v13, %v6970_v13  ;;  %v6177_v55 = vsel %vm4432_vm14, %v6176_v9, %v6172_v43 }
 0x57f   : > { %v6656_v41 = vsel %vm4439_vm15, %v6655_v49, %v11819_v6  ;;  %vm6976_vm7 = vnez %v6971_v16 }
 0x580   : > { %v3791_v46 = vpop.xlane.xlu1 %3790  ;;  %v3539_v3 = vpop.xlane.xlu0 %3538 }
 0x581   : > { %v6803_v57 = vrot.slane %v3791_v46, %v9040_v53  ;;  %v6181_v34 = vrot.slane %v3539_v3, %v12319_v23 }
 0x583   : > { %v6804_v21 = vsel %vm4425_vm13, %v6803_v57, %v11826_v26 }
 0x584   : > { %v3507_v48 = vpop.xlane.xlu1 %3506  ;;  %v3735_v5 = vpop.xlane.xlu0 %3734 }
 0x585   : > { %v6665_v28 = vrot.slane %v3735_v5, %v12416_v27  ;;  %v6102_v52 = vrot.slane %v3507_v48, %v12319_v23  ;;  %v6734_v48 = vrot.slane %v11869_v54, %v12319_v23  ;;  %v6182_v5 = vsel %vm4439_vm15, %v6181_v34, %v6177_v55 }
 0x587   : > { %v6103_v6 = vsel %vm4439_vm15, %v6102_v52, %v11833_v17 }
 0x588   : > { %v11877_v62 = vpop.xlane.xlu1 %3566  ;;  %v11879_v2 = vpop.xlane.xlu0 %3794 }
 0x589   : > { %v6813_v26 = vrot.slane %v11879_v2, %v12319_v23 }
 0x58c   : > { %v3733_v36 = vpop.xlane.xlu1 %3732  ;;  %v3511_v1 = vpop.xlane.xlu0 %3510 }
 0x58d   : > { %v6660_v10 = vrot.slane %v3733_v36, %v12415_v51  ;;  %v6112_v44 = vrot.slane %v3511_v1, %v12416_v27 }
 0x58f   : > { %v6661_v47 = vsel %vm4446_vm0, %v6660_v10, %v6656_v41 }
 0x590   : > { %v6666_v50 = vsel %vm4453_vm2, %v6665_v28, %v6661_v47  ;;  %v3793_v12 = vpop.xlane.xlu1 %3792  ;;  %v11888_v22 = vpop.xlane.xlu0 %3570 }
 0x591   : > { %v6935_v0 = vsel %vm12419_vm10, %v6666_v50, %v6934_v11  ;;  %v6808_v30 = vrot.slane %v3793_v12, %v9047_v45  ;;  %v6965_v11 = vunpack.c.3.s8 %v11575_v18  ;;  %v6735_v50 = vsel %vm4439_vm15, %v6734_v48, %v11858_v31 }
 0x592   : > { %v6260_v32 = vrot.slane %v11888_v22, %v12319_v23  ;;  %v12427_v22 = vld [vmem:[#allocation53_spill] sm:$0xff] }
 0x593   : > { %v6809_v18 = vsel %vm4432_vm14, %v6808_v30, %v6804_v21  ;;  %v6972_v2 = vpack.c.b16 %v6965_v11, %v6965_v11  ;;  %v6952_v30 = vunpack.c.3.s8 %v11553_v25 }
 0x594   : > { %v3509_v29 = vpop.xlane.xlu1 %3508  ;;  %v3797_v37 = vpop.xlane.xlu0 %3796 }
 0x595   : > { %v6107_v4 = vrot.slane %v3509_v29, %v12415_v51  ;;  %v6818_v54 = vrot.slane %v3797_v37, %v12415_v51  ;;  %v6250_v29 = vrot.slane %v11877_v62, %v9040_v53  ;;  %v6814_v37 = vsel %vm4439_vm15, %v6813_v26, %v6809_v18 }
 0x597   : > { %v6108_v60 = vsel %vm4446_vm0, %v6107_v4, %v6103_v6  ;;  %v6819_v6 = vsel %vm4446_vm0, %v6818_v54, %v6814_v37  ;;  %v12429_v54 = vld [vmem:[#allocation10_spill] sm:$0xff]  ;;  %v12003_v37 = vld [vmem:[#allocation4 + $0x10] sm:$0xff] }
 0x598   : > { %v6113_v35 = vsel %vm4453_vm2, %v6112_v44, %v6108_v60  ;;  %v3569_v61 = vpop.xlane.xlu1 %3568  ;;  %v3543_v33 = vpop.xlane.xlu0 %3542 }
 0x599   : > { %v6929_v7 = vsel %vm12421_vm11, %v6113_v35, %v12420_v20  ;;  %v6191_v49 = vrot.slane %v3543_v33, %v12416_v27  ;;  %v6255_v44 = vrot.slane %v3569_v61, %v9047_v45  ;;  %v6951_v20 = vunpack.c.2.s8 %v11553_v25 }
 0x59b   : > { %v6955_v13 = vcvt.s32.f32 %v6951_v20 }
 0x59c   : > { %v3765_v42 = vpop.xlane.xlu1 %3764  ;;  %v3799_v14 = vpop.xlane.xlu0 %3798 }
 0x59d   : > { %v6739_v36 = vrot.slane %v3765_v42, %v12415_v51  ;;  %v6823_v41 = vrot.slane %v3799_v14, %v12416_v27  ;;  %v6980_v42 = vsel %vm6976_vm7, 16843009, %v12402_v24  ;;  %v6973_v14 = vpack.c.b8 %v6972_v2, %v6972_v2 }
 0x59e   : > { %v6984_v43 = vunpack.c.0.s8 %v6980_v42  ;;  %v7682_v42 = vld [vmem:[%s7931_s28 + $0x18] sm:$0xff]  }
 0x59f   : > { %v6740_v4 = vsel %vm4446_vm0, %v6739_v36, %v6735_v50  ;;  %v6824_v31 = vsel %vm4453_vm2, %v6823_v41, %v6819_v6  ;;  %vm6977_vm6 = vnez %v6973_v14 }
 0x5a0   : > { %v11902_v39 = vpop.xlane.xlu1 %3824  ;;  %v11904_v17 = vpop.xlane.xlu0 %3574  ;;  %vm6988_vm1 = vcmp.ne.s32.totalorder %v6984_v43, 0 }
 0x5a1   : > { %v6270_v57 = vrot.slane %v11904_v17, %v12416_v27  ;;  %v6887_v16 = vrot.slane %v11902_v39, %v9047_v45  ;;  %v6959_v17 = vmul.f32 -1e+09, %v6955_v13  ;;  %v7683_v13 = vld [vmem:[%s7931_s28 + $0x10] sm:$0xff]  }
 0x5a4   : > { %v3541_v56 = vpop.xlane.xlu1 %3540  ;;  %v6999_v40 = vpop.xlane.xlu0 %6998 }
 0x5a5   : > { %v6186_v46 = vrot.slane %v3541_v56, %v12415_v51  ;;  %v11921_v3 = vmax.f32 %v11910_v63, %v6999_v40  ;;  %v12426_v56 = vld [vmem:[#allocation25_spill] sm:$0xff] }
 0x5a6   : > { %v903_v40 = vadd.f32 %v12427_v22, %v12426_v56 }
 0x5a7   : > { %v6187_v1 = vsel %vm4446_vm0, %v6186_v46, %v6182_v5  ;;  %v7010_v10 = vsub.f32 %v11910_v63, %v11921_v3  ;;  %7230 = vst.msk [vmem:[#allocation4] sm:$0xff] %vm12422_vm12, %v11921_v3  ;;  %v6956_v5 = vcvt.s32.f32 %v6952_v30 }
 0x5a8   : > { %v6192_v28 = vsel %vm4453_vm2, %v6191_v49, %v6187_v1  ;;  %v3767_v47 = vpop.xlane.xlu1 %3766 }
 0x5a9   : > { %v6744_v12 = vrot.slane %v3767_v47, %v12416_v27  ;;  %v6930_v52 = vsel %vm12423_vm8, %v6192_v28, %v6929_v7  ;;  %v6251_v7 = vsel %vm4425_vm13, %v6250_v29, %v11840_v15  ;;  %v6882_v15 = vrot.slane %v11874_v58, %v9040_v53  ;;  %v7679_v29 = vld [vmem:[%s7931_s28 + $0x30] sm:$0xff]  }
 0x5aa   : > { %v6256_v61 = vsel %vm4432_vm14, %v6255_v44, %v6251_v7  ;;  %v6981_v53 = vsel %vm6977_vm6, 16843009, %v12402_v24  ;;  %v6960_v26 = vmul.f32 -1e+09, %v6956_v5  ;;  %v7680_v44 = vld [vmem:[%s7931_s28 + $0x28] sm:$0xff]   ;;  %v7681_v7 = vld [vmem:[%s7931_s28 + $0x20] sm:$0xff]  }
 0x5ab   : > { %v6745_v60 = vsel %vm4453_vm2, %v6744_v12, %v6740_v4  ;;  %v6261_v34 = vsel %vm4439_vm15, %v6260_v32, %v6256_v61  ;;  %v6883_v21 = vsel %vm4425_vm13, %v6882_v15, %v11865_v8  ;;  %v6985_v36 = vunpack.c.0.s8 %v6981_v53  ;;  %vm12430_vm13 = vmmov %vm12428_vm5 }
 0x5ac   : > { %v6936_v35 = vsel %vm12424_vm3, %v6745_v60, %v6935_v0  ;;  %v3827_v33 = vpop.xlane.xlu1 %3826  ;;  %v6888_v45 = vsel %vm4432_vm14, %v6887_v16, %v6883_v21  ;;  %v904_v8 = vadd.f32 %v12427_v22, %v12429_v54  ;;  %v6997_v60 = vld [vmem:[#allocation4 + $0x18] sm:$0xff]  ;;  %v7014_v16 = vmul.f32 1.442695, %v7010_v10  ;;  %v7054_v10 = vld [vmem:[#allocation5] sm:$0xff]  ;;  %v7056_v54 = vld [vmem:[#allocation5 + $0x10] sm:$0xff] }
 0x5ad   : > { %v6937_v62 = vsel %vm12425_vm4, %v6824_v31, %v6936_v35  ;;  %v6892_v55 = vrot.slane %v3827_v33, %v12319_v23  ;;  %vm6989_vm14 = vcmp.ne.s32.totalorder %v6985_v36, 0 }
 0x5af   : > { %v6893_v23 = vsel %vm4439_vm15, %v6892_v55, %v6888_v45  ;;  %vm12431_vm15 = vmmov %vm12422_vm12 }
 0x5b0   : > { %v3573_v19 = vpop.xlane.xlu1 %3572 }
 0x5b1   : > { %v6265_v0 = vrot.slane %v3573_v19, %v12415_v51 }
 0x5b3   : > { %v6266_v9 = vsel %vm4446_vm0, %v6265_v0, %v6261_v34  ;;  %v7685_v0 = vld [vmem:[%s7931_s28] sm:$0xff]  }
 0x5b4   : > { %v6271_v11 = vsel %vm4453_vm2, %v6270_v57, %v6266_v9  ;;  %v3829_v48 = vpop.xlane.xlu1 %3828 }
 0x5b5   : > { %v6931_v46 = vsel %vm12428_vm5, %v6271_v11, %v6930_v52  ;;  %v6897_v58 = vrot.slane %v3829_v48, %v12415_v51  ;;  %v11986_v51 = vld [vmem:[#allocation4 + $0x8] sm:$0xff]  ;;  %v7678_v52 = vld [vmem:[%s7931_s28 + $0x38] sm:$0xff]  }
 0x5b6   : > { %v6945_v25 = vadd.f32 %v6931_v46, %v903_v40  ;;  %7582 = vmatprep.subr.bf16.mxu1 %v7678_v52 }
 0x5b7   : > { %v6898_v24 = vsel %vm4446_vm0, %v6897_v58, %v6893_v23  ;;  %7583 = vmatpush3.bf16.msra.mxu1 %v7678_v52  ;;  %vm12432_vm0 = vmmov %vm12422_vm12 }
 0x5b8   : > { %v3831_v39 = vpop.xlane.xlu1 %3830  ;;  %v11980_v49 = vsel %vm6988_vm1, %v6959_v17, %v6945_v25  ;;  %7584 = vmatprep.subr.bf16.mxu1 %v7679_v29  ;;  %v7055_v25 = vld [vmem:[#allocation5 + $0x8] sm:$0xff]  ;;  %vm12434_vm9 = vmmov %vm12432_vm0 }
 0x5b9   : > { %v6902_v18 = vrot.slane %v3831_v39, %v12416_v27  ;;  %7002 = vmax.xlane.f32.xlu0 %v11980_v49  ;;  %vm12435_vm10 = vmmov %vm12432_vm0 }
 0x5ba   : > { %vm12436_vm11 = vmmov %vm12432_vm0 }
 0x5bb   : > { %v6903_v1 = vsel %vm4453_vm2, %v6902_v18, %v6898_v24  ;;  %7585 = vmatpush3.bf16.msra.mxu1 %v7679_v29  ;;  %vm12433_vm2 = vmmov %vm12432_vm0 }
 0x5bc   : > { %v7001_v41 = vpop.xlane.xlu1 %7000  ;;  %v6938_v28 = vsel %vm12430_vm13, %v6903_v1, %v6937_v62  ;;  %7586 = vmatprep.subr.bf16.mxu1 %v7680_v44  ;;  %vm12437_vm12 = vmmov %vm12432_vm0 }
 0x5bd   : > { %v11993_v27 = vmax.f32 %v11986_v51, %v7001_v41  ;;  %v6946_v47 = vadd.f32 %v6938_v28, %v904_v8  ;;  %v7057_v41 = vld [vmem:[#allocation5 + $0x18] sm:$0xff] }
 0x5bf   : > { %v7011_v50 = vsub.f32 %v11986_v51, %v11993_v27  ;;  %7231 = vst.msk [vmem:[#allocation4 + $0x8] sm:$0xff] %vm12431_vm15, %v11993_v27  ;;  %v6993_v12 = vsel %vm6989_vm14, %v6960_v26, %v6946_v47  ;;  %7587 = vmatpush3.bf16.msra.mxu1 %v7680_v44 }
 0x5c0   : > { %7004 = vmax.xlane.f32.xlu1 %v6993_v12  ;;  %7588 = vmatprep.subr.bf16.mxu1 %v7681_v7 }
 0x5c1   : > { %v7016_v48 = vmul.f32 1.442695, %v7011_v50 }
 0x5c3   : > { %7589 = vmatpush3.bf16.msra.mxu1 %v7681_v7 }
 0x5c4   : > { %7590 = vmatprep.subr.bf16.mxu1 %v7682_v42 }
 0x5c7   : > { %7591 = vmatpush3.bf16.msra.mxu1 %v7682_v42 }
 0x5c8   : > { %7592 = vmatprep.subr.bf16.mxu1 %v7683_v13 }
 0x5cb   : > { %7593 = vmatpush3.bf16.msra.mxu1 %v7683_v13 }
 0x5cf   : > { %7024 = vperm.xlu0 %7664, %v11921_v3  }
 0x5d1   : > { %7029 = vperm.xlu1 %7665, %v11993_v27  }
 0x642   : > { %v7003_v4 = vpop.xlane.xlu0 %7002 }
 0x643   : > { %v7008_v2 = vmax.f32 %v12003_v37, %v7003_v4 }
 0x645   : > { %v7012_v6 = vsub.f32 %v12003_v37, %v7008_v2  ;;  %7232 = vst.msk [vmem:[#allocation4 + $0x10] sm:$0xff] %vm12432_vm0, %v7008_v2  ;;  %7034 = vperm.xlu1 %7665, %v7008_v2  }
 0x647   : > { %v7018_v46 = vmul.f32 1.442695, %v7012_v6 }
 0x649   : > { %v7005_v31 = vpop.xlane.xlu1 %7004 }
 0x64a   : > { %v7009_v35 = vmax.f32 %v6997_v60, %v7005_v31  ;;  %v7025_v33 = vpop.permute.xlu0 %7024 }
 0x64b   : > { %v7042_v20 = vsub.f32 %v11667_v59, %v7025_v33  ;;  %v7684_v59 = vld [vmem:[%s7931_s28 + $0x8] sm:$0xff]   ;;  %s436_s28 = sand.u32 1, %s7776_s10  }
 0x64c   : > { %v7013_v62 = vsub.f32 %v6997_v60, %v7009_v35  ;;  %7233 = vst.msk [vmem:[#allocation4 + $0x18] sm:$0xff] %vm12433_vm2, %v7009_v35  ;;  %7039 = vperm.xlu0 %7664, %v7009_v35   ;;  %7594 = vmatprep.subr.bf16.mxu1 %v7684_v59  ;;  %s7434_s23 = sshll.u32 %s436_s28, 5  ;;  %s12041_s27 = scalar_lea.sflag [#allocation8], %s436_s28 }
 0x64d   : > { %v7046_v14 = vmul.f32 1.442695, %v7042_v20  ;;  %v7030_v61 = vpop.permute.xlu1 %7029  ;;  %7595 = vmatpush3.bf16.msra.mxu1 %v7684_v59  ;;  %s438_s24 = scalar_lea.vmem [#allocation7], %s7434_s23  ;;  %s7722_s23 = scalar_lea.vmem %s7721_s20, 1024 }
 0x64e   : > { %v7043_v32 = vsub.f32 %v11755_v38, %v7030_v61  ;;  %7596 = vmatprep.subr.bf16.mxu1 %v7685_v0  ;;  %v7020_v55 = vmul.f32 1.442695, %v7013_v62  ;;  %s7293_s25 = sshll.u32 %s438_s24, 4  ;;  %s12032_s25 = int_to_ptr.vmem [resolvable:$true] %s7293_s25 }
 0x64f   : > { %7686 = vpow2.f32 %v7046_v14  ;;  %s7716_s18 = scalar_lea.vmem %s12032_s25, 512  ;;  %p7723_p1 = scmp.lt.s32.totalorder %s12032_s25, %s7721_s20 }
 0x650   : > { %v7048_v19 = vmul.f32 1.442695, %v7043_v32  ;;  %p7717_p12 = scmp.ne.s32.totalorder %s12032_s25, %s7716_s18  ;;  %p7724_p2 = scmp.lt.s32.totalorder %s7722_s23, %s7716_s18 }
 0x651   : > { %7597 = vmatpush3.bf16.msra.mxu1 %v7685_v0 }
 0x652   : > { %7688 = vpow2.f32 %v7048_v19  ;;  %p7718_p13 = pnand %p7717_p12, %p7892_p4  ;;  %p7725_p3 = por %p7724_p2, %p7723_p1 }
 0x654   : > { %p7719_p0 = pneg %p7718_p13 }
 0x656   : > { %p7726_p5 = pnand %p7725_p3, %p7719_p0 }
 0x65c   : > { %v7687_v43 = vpop.eup %7686 }
 0x65f   : > { %v7689_v57 = vpop.eup %7688 }
 0x660   : > { %v7107_v34 = vpack.c.bf16 %v7689_v57, %v7687_v43 }
 0x662   : > { %7598 = vmatprep.mubr.bf16.mxu1 %v7107_v34 }
 0x669   : > { %7062 = vadd.xlane.f32.xlu1 %v7687_v43 }
 0x66b   : > { %7064 = vadd.xlane.f32.xlu0 %v7689_v57 }
 0x6c0   : > { %v7035_v38 = vpop.permute.xlu1 %7034 }
 0x6c1   : > { %v7044_v15 = vsub.f32 %v11980_v49, %v7035_v38 }
 0x6c3   : > { %v7050_v9 = vmul.f32 1.442695, %v7044_v15 }
 0x6c5   : > { %7690 = vpow2.f32 %v7050_v9 }
 0x6c7   : > { %v7040_v30 = vpop.permute.xlu0 %7039 }
 0x6c8   : > { %v7045_v56 = vsub.f32 %v6993_v12, %v7040_v30 }
 0x6ca   : > { %v7052_v22 = vmul.f32 1.442695, %v7045_v56 }
 0x6cc   : > { %7692 = vpow2.f32 %v7052_v22 }
 0x6cd   : > { %7694 = vpow2.f32 %v7014_v16 }
 0x6ce   : > { %7696 = vpow2.f32 %v7016_v48 }
 0x6cf   : > { %7698 = vpow2.f32 %v7020_v55 }
 0x6d0   : > { %7700 = vpow2.f32 %v7018_v46 }
 0x6d2   : > { %v7691_v40 = vpop.eup %7690 }
 0x6d3   : > { %7066 = vadd.xlane.f32.xlu0 %v7691_v40 }
 0x6d9   : > { %v7693_v11 = vpop.eup %7692 }
 0x6da   : > { %7068 = vadd.xlane.f32.xlu1 %v7693_v11  ;;  %v7108_v17 = vpack.c.bf16 %v7693_v11, %v7691_v40  ;;  %v7695_v53 = vpop.eup %7694 }
 0x6db   : > { %v7697_v58 = vpop.eup %7696  ;;  %v7058_v21 = vmul.f32 %v7695_v53, %v7054_v10 }
 0x6dc   : > { %7599 = vmatmul.mubr.bf16.vlgmr.msra.gmra.mxu1 %v7108_v17  ;;  %v7699_v63 = vpop.eup %7698  ;;  %v7059_v39 = vmul.f32 %v7697_v58, %v7055_v25 }
 0x6dd   : > { %v7701_v3 = vpop.eup %7700  ;;  %v7061_v28 = vmul.f32 %v7699_v63, %v7057_v41 }
 0x6de   : > { %v7060_v8 = vmul.f32 %v7701_v3, %v7056_v54 }
 0x6e9   : > { %7085 = vperm.xlu0 %7664, %v7695_v53  }
 0x6eb   : > { %7090 = vperm.xlu1 %7665, %v7697_v58  }
 0x6ed   : > { %7100 = vperm.xlu0 %7664, %v7699_v63  }
 0x6ef   : > { %7095 = vperm.xlu1 %7665, %v7701_v3  }
 0x6f2   : > { %v7063_v5 = vpop.xlane.xlu1 %7062 }
 0x6f3   : > { %v7070_v45 = vadd.f32 %v7063_v5, %v7058_v21 }
 0x6f4   : > { %v7065_v49 = vpop.xlane.xlu0 %7064 }
 0x6f5   : > { %7075 = vst.msk [vmem:[#allocation5] sm:$0xff] %vm12434_vm9, %v7070_v45  ;;  %v7071_v36 = vadd.f32 %v7065_v49, %v7059_v39 }
 0x6f7   : > { %7076 = vst.msk [vmem:[#allocation5 + $0x8] sm:$0xff] %vm12435_vm10, %v7071_v36 }
 0x6fc   : > { %v7237_v23 = vld [vmem:[#allocation5] sm:$0xff] }
 0x6fd   : > { %7702 = vrcp.f32 %v7237_v23 }
 0x6fe   : > { %v7238_v18 = vld [vmem:[#allocation5 + $0x8] sm:$0xff] }
 0x6ff   : > { %7704 = vrcp.f32 %v7238_v18 }
 0x70a   : > { %v7703_v24 = vpop.eup %7702 }
 0x70b   : > { %7251 = vperm.xlu1 %7665, %v7703_v24  }
 0x70c   : > { %v7705_v51 = vpop.eup %7704 }
 0x70d   : > { %7256 = vperm.xlu0 %7664, %v7705_v51  }
 0x75c   : > { %v7067_v1 = vpop.xlane.xlu0 %7066 }
 0x75d   : > { %v7072_v26 = vadd.f32 %v7067_v1, %v7060_v8 }
 0x75f   : > { %7077 = vst.msk [vmem:[#allocation5 + $0x10] sm:$0xff] %vm12436_vm11, %v7072_v26 }
 0x763   : > { %v7069_v27 = vpop.xlane.xlu1 %7068 }
 0x764   : > { %v7073_v47 = vadd.f32 %v7069_v27, %v7061_v28  ;;  %v7086_v4 = vpop.permute.xlu0 %7085 }
 0x765   : > { %v7103_v31 = vmul.f32 0.0, %v7086_v4 }
 0x766   : > { %v7239_v50 = vld [vmem:[#allocation5 + $0x10] sm:$0xff]  ;;  %7078 = vst.msk [vmem:[#allocation5 + $0x18] sm:$0xff] %vm12437_vm12, %v7073_v47 }
 0x767   : > { %7706 = vrcp.f32 %v7239_v50  ;;  %v7091_v37 = vpop.permute.xlu1 %7090 }
 0x768   : > { %v7101_v44 = vpop.permute.xlu0 %7100  ;;  %v7104_v14 = vmul.f32 0.0, %v7091_v37 }
 0x769   : > { %v7106_v20 = vmul.f32 0.0, %v7101_v44 }
 0x76b   : > { %v7096_v2 = vpop.permute.xlu1 %7095 }
 0x76c   : > { %v7105_v6 = vmul.f32 0.0, %v7096_v2 }
 0x76d   : > { %v7240_v12 = vld [vmem:[#allocation5 + $0x18] sm:$0xff] }
 0x76e   : > { %7708 = vrcp.f32 %v7240_v12 }
 0x774   : > { %v7707_v52 = vpop.eup %7706 }
 0x775   : > { %7261 = vperm.xlu1 %7665, %v7707_v52  }
 0x77b   : > { %v7709_v29 = vpop.eup %7708 }
 0x77c   : > { %7266 = vperm.xlu0 %7664, %v7709_v29  }
 0x786   : > { %v7252_v7 = vpop.permute.xlu1 %7251 }
 0x788   : > { %v7257_v59 = vpop.permute.xlu0 %7256 }
 0x79c   : > { %v7600_v60 = vpop.f32.mrf.mxu1 }
 0x79d   : > { %v7224_v35 = vadd.f32 %v7600_v60, %v7105_v6 }
 0x79e   : > { %v7207_v33 = vpop.f32.mrf.mxu1 }
 0x79f   : > { %v7222_v62 = vadd.f32 %v7207_v33, %v7103_v31 }
 0x7a0   : > { %v7601_v42 = vpop.f32.mrf.mxu1 }
 0x7a1   : > { %v7269_v61 = vmul.f32 %v7252_v7, %v7222_v62  ;;  %v7225_v32 = vadd.f32 %v7601_v42, %v7106_v20 }
 0x7a2   : > { %v7210_v19 = vpop.f32.mrf.mxu1 }
 0x7a3   : > { %7273 = vst [vmem:[%s438_s24] sm:$0xff] %v7269_v61  ;;  %v7223_v13 = vadd.f32 %v7210_v19, %v7104_v14 }
 0x7a5   : > { %v7270_v0 = vmul.f32 %v7257_v59, %v7223_v13 }
 0x7a7   : > { %7274 = vst [vmem:[%s438_s24 + $0x8] sm:$0xff] %v7270_v0 }
 0x7f0   : > { %v7262_v43 = vpop.permute.xlu1 %7261 }
 0x7f1   : > { %v7271_v57 = vmul.f32 %v7262_v43, %v7224_v35 }
 0x7f3   : > { %7275 = vst [vmem:[%s438_s24 + $0x10] sm:$0xff] %v7271_v57 }
 0x7f7   : > { %v7267_v34 = vpop.permute.xlu0 %7266 }
 0x7f8   : > { %v7272_v38 = vmul.f32 %v7267_v34, %v7225_v32 }
 0x7fa   : > { %7276 = vst [vmem:[%s438_s24 + $0x18] sm:$0xff] %v7272_v38 }
 0x7fb   : > { %7729 = shalt.err (!%p7726_p5)
}
 0x7fc   : > { %s7730_s28 = scalar_lea.hbm %s12037_s16, 512  ;;  %s7734_s29 = scalar_lea.hbm %s12095_s9, 1024 }
 0x7fd   : > { %p7731_p6 = scmp.ne.s32.totalorder %s12037_s16, %s7730_s28  ;;  %p7735_p10 = scmp.lt.s32.totalorder %s12037_s16, %s12095_s9 }
 0x7fe   : > { %p7736_p11 = scmp.lt.s32.totalorder %s7734_s29, %s7730_s28 }
 0x7ff   : > { %p7732_p7 = pnand %p7731_p6, %p7892_p4 }
 0x800   : > { %p7737_p12 = por %p7736_p11, %p7735_p10 }
 0x801   : > { %p7733_p9 = pneg %p7732_p7 }
 0x803   : > { %p7738_p13 = pnand %p7737_p12, %p7733_p9 }
 0x805   : > { %7741 = shalt.err (!%p7738_p13)
}
 0x806   : > { %s7800_s18 = smov 128   ;;  %s7801_s20 = smov 8  }
 0x807   : > { %7602 = dma.vmem_to_hbm [thread:$0]  (%p7892_p4), %s12032_s25, 512, %s12037_s16, %s12041_s27, %s7800_s18, %s7800_s18, %s7801_s20  }
 0x808 PF: > { %p7608_p0 = scmp.ge.s32.totalorder %s7792_s14, 2  ;;  %s7308_s23 = sand.u32 1, %s7772_s30  }
 0x809   : > { %s7309_s28 = scalar_lea.sflag [#allocation8], %s7308_s23 }
 0x80a   : > { %p7605_p1 = pnand %p7608_p0, %p7899_p8 }
 0x80c   : > { %p7606_p2 = pneg %p7605_p1 }
 0x80e   : > { %7767 = dma.done.wait (%p7606_p2), %s7309_s28, 512  }
 0x80f   : > { %7769 = vsyncadd (%p7606_p2), %s7309_s28, 4294966784  ;;  %s22_s14 = sadd.s32 1, %s7792_s14   ;;  %s12438_s30 = smov %s7776_s10 }
 0x810   : > { %p19_p3 = scmp.ge.s32.totalorder %s22_s14, 4   ;;  %s12439_s10 = smov %s7780_s11 }
 0x811   : > { %s12440_s11 = smov %s7905_s22  ;;  %s12441_s12 = smov %s7788_s13 }
 0x812   : > { %s12442_s13 = smov %s12444_s17  ;;  %21 = sbr.rel (!%p19_p3) target bundleno = 4 (0x4), region = 108 }
 0x817   :  { %7314 = vsyncpa [#allocation8], 1 }
 0x818   :  { %7316 = vsyncpa [#allocation8 + $0x1], 1 }

</bundles_post_ra>
